<compile_context>
chip_gen: v6e
topology: v6e:2x2x1
jax: 0.10.0
libtpu: 0.0.40
codegen_flags: <defaults>
</compile_context>

<pallas_src>
import functools
import math

import jax
import jax.numpy as jnp
from jax import lax
from jax.experimental import pallas as pl
from jax.experimental.pallas import tpu as pltpu


def _round_up(x, m):
    return (x + m - 1) // m * m


# ---------------------------------------------------------------------------
# Kernel
# ---------------------------------------------------------------------------
def make_recurrent_matcher_kernel(seq_len, hidden, num_layers, batch_tile, unroll):
    """Ref signature:
         x_ref                            (L, F, TB)            batch-in-lanes
         per GRU layer (4 refs):          W_i (3H, F_l), W_h (3H, H),
                                          b_i (3H, 1) = [b_ir+b_hr; b_iz+b_hz; b_in],
                                          b_hn (H, 1)
         w_out (H, 1), b_out (1, 1)
         out_ref                          (L, TB)
         scratch: gi (L, 3H, TB), act (L, H, TB)
    """
    L, H, TB = seq_len, hidden, batch_tile
    n_w = 4 * num_layers + 2

    def _sigmoid(x):
        # exp on the EUP + approx reciprocal (keeps the divide off the VPU path).
        return pl.reciprocal(1.0 + jnp.exp(-x), approx=True)

    def kernel(x_ref, *refs):
        w_refs = refs[:n_w]
        out_ref = refs[n_w]
        gi_ref = refs[n_w + 1]      # (L, 3H, TB) input-side gate projections
        act_ref = refs[n_w + 2]     # (L, H, TB)  per-layer activations

        for l in range(num_layers):
            W_i = w_refs[4 * l + 0][...]                                   # (3H, F_l)
            W_h = w_refs[4 * l + 1][...]                                   # (3H, H)
            b_i = jnp.broadcast_to(w_refs[4 * l + 2][...], (3 * H, TB))    # folded biases
            b_hn = jnp.broadcast_to(w_refs[4 * l + 3][...], (H, TB))
            in_ref = x_ref if l == 0 else act_ref

            # ---- Phase A: input projections for every timestep (off the
            # serial h-chain; biases for r/z/n folded in here). ----
            def proj_body(t, carry):
                xt = in_ref[t].astype(jnp.float32)                         # (F_l, TB)
                gi_ref[t] = (jnp.dot(W_i, xt, preferred_element_type=jnp.float32)
                             + b_i)
                return carry

            lax.fori_loop(0, L, proj_body, 0, unroll=unroll)

            # ---- Phase B: serial recurrence; single fused (3H,H)@(H,TB)
            # matmul per step, sublane-aligned gate slices, h in registers,
            # per-step outputs written straight to VMEM scratch. ----
            def rec_body(t, h):
                gi = gi_ref[t]                                             # (3H, TB)
                gh = jnp.dot(W_h, h, preferred_element_type=jnp.float32)   # (3H, TB)
                r = _sigmoid(gi[:H] + gh[:H])
                z = _sigmoid(gi[H:2 * H] + gh[H:2 * H])
                n = jnp.tanh(gi[2 * H:] + r * (gh[2 * H:] + b_hn))
                h = (1.0 - z) * n + z * h
                act_ref[t] = h
                return h

            lax.fori_loop(0, L, rec_body,
                          jnp.zeros((H, TB), jnp.float32), unroll=unroll)

        # ---- Output Linear(H, 1) + sigmoid once over the whole slab:
        # sublane reduce over H, single lane-dense (L, TB) store. ----
        w_out = w_refs[4 * num_layers][...]        # (H, 1)
        b_out = w_refs[4 * num_layers + 1][...]    # (1, 1)
        logits = jnp.sum(act_ref[...] * w_out[None, :, :], axis=1) + b_out
        out_ref[...] = _sigmoid(logits)

    return kernel


# ---------------------------------------------------------------------------
# Wrapper
# ---------------------------------------------------------------------------
def _choose_batch_tile(B):
    """Lane-dense batch tiles: multiples of 128 whenever the batch allows it
    (>=2 grid steps for B>128 so v7x's two TensorCores both get work, and no
    pathological padding), otherwise a single small tile equal to the padded
    batch (block dim == full array dim is allowed)."""
    if B <= 128:
        return _round_up(max(B, 1), 8)
    if B <= 1024:
        return 128
    return 256


@functools.partial(jax.jit, static_argnames=("num_layers",))
def recurrent_matcher_forward(x, kernel_params, *, num_layers):
    """x: (L, B, F) already-concatenated inputs.  Returns (L, B, 1)."""
    L, B, F = x.shape
    H = kernel_params[-2].shape[0]          # w_out is (H, 1)

    TB = _choose_batch_tile(B)
    B_pad = _round_up(B, TB)

    # Batch-in-lanes layout for the kernel: (L, F, B_pad).
    xt = jnp.transpose(x, (0, 2, 1))
    if B_pad != B:
        xt = jnp.pad(xt, ((0, 0), (0, 0), (0, B_pad - B)))

    grid = (B_pad // TB,)
    x_spec = pl.BlockSpec((L, F, TB), lambda i: (0, 0, i))
    # Constant index maps -> weights stay VMEM-resident, DMA'd once per call.
    w_specs = [pl.BlockSpec(p.shape, lambda i, nd=p.ndim: (0,) * nd)
               for p in kernel_params]
    out_spec = pl.BlockSpec((L, TB), lambda i: (0, i))

    # Advisory cost estimate (tiny-FLOP, latency/bandwidth dominated).
    flops, trans, f_in = 0, 0, F
    for _ in range(num_layers):
        flops += 2 * L * B_pad * 3 * H * (f_in + H) + 12 * L * B_pad * H
        trans += 3 * L * B_pad * H
        f_in = H
    flops += 2 * L * B_pad * H
    trans += L * B_pad
    weight_bytes = 4 * sum(math.prod(p.shape) for p in kernel_params)
    bytes_accessed = 4 * L * B_pad * (F + 1) + weight_bytes

    # VMEM budget (lane/sublane-padded, double-buffered I/O + scratch + weights).
    lane = max(TB, 128)
    vmem_need = 4 * (2 * L * _round_up(F, 8) * lane        # x blocks (x2 buffers)
                     + 2 * _round_up(L, 8) * lane          # out blocks
                     + L * _round_up(3 * H, 8) * lane      # gi scratch
                     + L * _round_up(H, 8) * lane)         # act scratch
    vmem_need += 2 * weight_bytes
    vmem_limit = int(min(64 * 1024 * 1024,
                         max(vmem_need + (4 << 20), 32 * 1024 * 1024)))

    unroll = True if L <= 64 else 8

    out = pl.pallas_call(
        make_recurrent_matcher_kernel(L, H, num_layers, TB, unroll),
        out_shape=jax.ShapeDtypeStruct((L, B_pad), jnp.float32),
        grid=grid,
        in_specs=[x_spec] + w_specs,
        out_specs=out_spec,
        scratch_shapes=[pltpu.VMEM((L, 3 * H, TB), jnp.float32),
                        pltpu.VMEM((L, H, TB), jnp.float32)],
        compiler_params=pltpu.CompilerParams(
            dimension_semantics=("parallel",),
            vmem_limit_bytes=vmem_limit),
        cost_estimate=pl.CostEstimate(flops=flops, transcendentals=trans,
                                      bytes_accessed=bytes_accessed),
    )(xt, *kernel_params)

    # (L, B_pad) lane-dense kernel output -> (L, B, 1) module output (no transpose).
    return out[:, :B, None]


# ---------------------------------------------------------------------------
# Parameter construction (PyTorch layout) and conversion to kernel layout
# ---------------------------------------------------------------------------
def init_torch_params(key, input_size, hidden_size, num_layers):
    """nn.GRU-style weights (W_ih (3H,F), W_hh (3H,H), b_ih, b_hh per layer,
    gate order r,z,n) + output Linear (1,H),(1,), uniform +-1/sqrt(H)."""
    params = []
    bound = 1.0 / math.sqrt(hidden_size)
    f = input_size
    for _ in range(num_layers):
        key, k1, k2, k3, k4 = jax.random.split(key, 5)
        W_ih = jax.random.uniform(k1, (3 * hidden_size, f), jnp.float32, -bound, bound)
        W_hh = jax.random.uniform(k2, (3 * hidden_size, hidden_size), jnp.float32, -bound, bound)
        b_ih = jax.random.uniform(k3, (3 * hidden_size,), jnp.float32, -bound, bound)
        b_hh = jax.random.uniform(k4, (3 * hidden_size,), jnp.float32, -bound, bound)
        params.append((W_ih, W_hh, b_ih, b_hh))
        f = hidden_size
    key, k1, k2 = jax.random.split(key, 3)
    W_out = jax.random.uniform(k1, (1, hidden_size), jnp.float32, -bound, bound)
    b_out = jax.random.uniform(k2, (1,), jnp.float32, -bound, bound)
    params.append((W_out, b_out))
    return params


def to_kernel_params(torch_params, num_layers):
    """Pack for the batch-in-lanes kernel: per layer W_i (3H,F_l), W_h (3H,H),
    folded bias column b_i (3H,1) = [b_ir+b_hr; b_iz+b_hz; b_in], b_hn (H,1);
    plus w_out (H,1) and b_out (1,1).  No in-kernel slicing/concats needed."""
    kparams = []
    for l in range(num_layers):
        W_ih, W_hh, b_ih, b_hh = torch_params[l]
        H = W_hh.shape[1]
        b_i = jnp.concatenate([b_ih[:2 * H] + b_hh[:2 * H], b_ih[2 * H:]])
        kparams += [W_ih, W_hh,
                    b_i.reshape(3 * H, 1),
                    b_hh[2 * H:].reshape(H, 1)]
    W_out, b_out = torch_params[-1]
    kparams += [W_out.T, b_out.reshape(1, 1)]
    return kparams


# ---------------------------------------------------------------------------
# Pure-JAX reference (mirrors torch.nn.GRU + MLP(hidden, 1, 0, 0, 'sigmoid'))
# ---------------------------------------------------------------------------
def _sigmoid_ref(x):
    return 1.0 / (1.0 + jnp.exp(-x))


def _dot_f32_ref(a, b):
    return jnp.dot(a, b, preferred_element_type=jnp.float32,
                   precision=jax.lax.Precision.HIGHEST)


def reference_forward(x, torch_params, num_layers):
    L, B, _ = x.shape
    seq = x
    for l in range(num_layers):
        W_ih, W_hh, b_ih, b_hh = torch_params[l]
        H = W_hh.shape[1]
        h = jnp.zeros((B, H), jnp.float32)
        outs = []
        for t in range(L):
            gi = _dot_f32_ref(seq[t], W_ih.T) + b_ih
            gh = _dot_f32_ref(h, W_hh.T) + b_hh
            i_r, i_z, i_n = jnp.split(gi, 3, axis=-1)
            h_r, h_z, h_n = jnp.split(gh, 3, axis=-1)
            r = _sigmoid_ref(i_r + h_r)
            z = _sigmoid_ref(i_z + h_z)
            n = jnp.tanh(i_n + r * h_n)
            h = (1.0 - z) * n + z * h
            outs.append(h)
        seq = jnp.stack(outs, axis=0)
    W_out, b_out = torch_params[-1]
    H = W_out.shape[1]
    logits = _dot_f32_ref(seq.reshape(L * B, H), W_out.T).reshape(L, B, 1) + b_out
    return _sigmoid_ref(logits)


if __name__ == "__main__":
    # nn.GRU default layout: (seq, batch, features).
    seq_len = 8
    batch = 8
    input_feats = [5, 3]       # RecurrentMatcher concatenates its inputs -> F=8
    hidden_features = 32
    hidden_layers = 2          # num_layers of the GRU

    key = jax.random.PRNGKey(0)
    key, *ikeys = jax.random.split(key, 1 + len(input_feats))
    inputs = [jax.random.normal(k, (seq_len, batch, f), jnp.float32)
              for k, f in zip(ikeys, input_feats)]

    torch_params = init_torch_params(key, sum(input_feats), hidden_features,
                                     hidden_layers)
    kernel_params = to_kernel_params(torch_params, hidden_layers)

    # forward(): x = torch.cat(inputs, dim=-1) -- done in the wrapper so the
    # kernel never concatenates along the lane axis.
    x = jnp.concatenate(inputs, axis=-1)

    out = recurrent_matcher_forward(x, kernel_params, num_layers=hidden_layers)
    out = jax.block_until_ready(out)

    ref = reference_forward(x, torch_params, hidden_layers)
    assert out.shape == (seq_len, batch, 1), out.shape
    err = float(jnp.max(jnp.abs(out - ref)))
    # Default single-pass bf16 MXU precision + approx reciprocal vs the
    # Precision.HIGHEST f32 reference -> ~1e-3-level differences are expected.
    assert err < 2e-2, err
    print("KERNEL_OK")
</pallas_src>

<mosaic_0001>
module attributes {stable_mosaic.version = 11 : i64} {
  func.func @kernel(%arg0: i32, %arg1: memref<8x8x8xf32, #tpu.memory_space<vmem>>, %arg2: memref<96x8xf32, #tpu.memory_space<vmem>>, %arg3: memref<96x32xf32, #tpu.memory_space<vmem>>, %arg4: memref<96x1xf32, #tpu.memory_space<vmem>>, %arg5: memref<32x1xf32, #tpu.memory_space<vmem>>, %arg6: memref<96x32xf32, #tpu.memory_space<vmem>>, %arg7: memref<96x32xf32, #tpu.memory_space<vmem>>, %arg8: memref<96x1xf32, #tpu.memory_space<vmem>>, %arg9: memref<32x1xf32, #tpu.memory_space<vmem>>, %arg10: memref<32x1xf32, #tpu.memory_space<vmem>>, %arg11: memref<1x1xf32, #tpu.memory_space<vmem>>, %arg12: memref<8x8xf32, #tpu.memory_space<vmem>>, %arg13: memref<8x96x8xf32, #tpu.memory_space<vmem>>, %arg14: memref<8x32x8xf32, #tpu.memory_space<vmem>>) attributes {dimension_semantics = [#tpu.dimension_semantics<parallel>], iteration_bounds = array<i64: 1>, scalar_prefetch = 0 : i64, scratch_operands = 2 : i64, tpu.core_type = #tpu.core_type<tc>, window_params = [{transform_indices = @transform_0, window_bounds = array<i64: 8, 8, 8>}, {pipeline_mode = #tpu.pipeline_mode<synchronous>, transform_indices = @transform_1, window_bounds = array<i64: 96, 8>}, {pipeline_mode = #tpu.pipeline_mode<synchronous>, transform_indices = @transform_2, window_bounds = array<i64: 96, 32>}, {pipeline_mode = #tpu.pipeline_mode<synchronous>, transform_indices = @transform_3, window_bounds = array<i64: 96, 1>}, {pipeline_mode = #tpu.pipeline_mode<synchronous>, transform_indices = @transform_4, window_bounds = array<i64: 32, 1>}, {pipeline_mode = #tpu.pipeline_mode<synchronous>, transform_indices = @transform_5, window_bounds = array<i64: 96, 32>}, {pipeline_mode = #tpu.pipeline_mode<synchronous>, transform_indices = @transform_6, window_bounds = array<i64: 96, 32>}, {pipeline_mode = #tpu.pipeline_mode<synchronous>, transform_indices = @transform_7, window_bounds = array<i64: 96, 1>}, {pipeline_mode = #tpu.pipeline_mode<synchronous>, transform_indices = @transform_8, window_bounds = array<i64: 32, 1>}, {pipeline_mode = #tpu.pipeline_mode<synchronous>, transform_indices = @transform_9, window_bounds = array<i64: 32, 1>}, {pipeline_mode = #tpu.pipeline_mode<synchronous>, transform_indices = @transform_10, window_bounds = array<i64: 1, 1>}, {transform_indices = @transform_11, window_bounds = array<i64: 8, 8>}]} {
    %c0 = arith.constant 0 : index
    %c0_0 = arith.constant 0 : index
    %0 = vector.load %arg2[%c0, %c0_0] : memref<96x8xf32, #tpu.memory_space<vmem>>, vector<96x8xf32>
    %c0_1 = arith.constant 0 : index
    %c0_2 = arith.constant 0 : index
    %1 = vector.load %arg3[%c0_1, %c0_2] : memref<96x32xf32, #tpu.memory_space<vmem>>, vector<96x32xf32>
    %c0_3 = arith.constant 0 : index
    %c0_4 = arith.constant 0 : index
    %2 = vector.load %arg4[%c0_3, %c0_4] : memref<96x1xf32, #tpu.memory_space<vmem>>, vector<96x1xf32>
    %3 = vector.shape_cast %2 : vector<96x1xf32> to vector<96x1xf32>
    %4 = vector.broadcast %3 : vector<96x1xf32> to vector<96x8xf32>
    %c0_5 = arith.constant 0 : index
    %c0_6 = arith.constant 0 : index
    %5 = vector.load %arg5[%c0_5, %c0_6] : memref<32x1xf32, #tpu.memory_space<vmem>>, vector<32x1xf32>
    %6 = vector.shape_cast %5 : vector<32x1xf32> to vector<32x1xf32>
    %7 = vector.broadcast %6 : vector<32x1xf32> to vector<32x8xf32>
    %c0_i32 = arith.constant 0 : i32
    %8 = arith.index_cast %c0_i32 : i32 to index
    %c0_7 = arith.constant 0 : index
    %c0_8 = arith.constant 0 : index
    %9 = vector.load %arg1[%8, %c0_7, %c0_8] : memref<8x8x8xf32, #tpu.memory_space<vmem>>, vector<1x8x8xf32>
    %10 = vector.shape_cast %9 : vector<1x8x8xf32> to vector<8x8xf32>
    %cst = arith.constant dense<0.000000e+00> : vector<96x8xf32>
    %11 = tpu.matmul %0, %10, %cst {dimension_numbers = #tpu.dot_dimension_numbers<[1], [0], [0], [1], [0, 0, 1, 1], [], []>} : vector<96x8xf32>, vector<8x8xf32>, vector<96x8xf32> -> vector<96x8xf32>
    %12 = arith.addf %11, %4 : vector<96x8xf32>
    %13 = arith.index_cast %c0_i32 : i32 to index
    %c0_9 = arith.constant 0 : index
    %c0_10 = arith.constant 0 : index
    %14 = vector.load %arg13[%13, %c0_9, %c0_10] : memref<8x96x8xf32, #tpu.memory_space<vmem>>, vector<1x96x8xf32>
    %15 = vector.shape_cast %14 : vector<1x96x8xf32> to vector<96x8xf32>
    %16 = vector.shape_cast %12 : vector<96x8xf32> to vector<1x96x8xf32>
    tpu.vector_store %arg13[%13, %c0_9, %c0_10], %16 {strides = array<i32>} : memref<8x96x8xf32, #tpu.memory_space<vmem>>, vector<1x96x8xf32>,
    %c1_i32 = arith.constant 1 : i32
    %17 = arith.index_cast %c1_i32 : i32 to index
    %c0_11 = arith.constant 0 : index
    %c0_12 = arith.constant 0 : index
    %18 = vector.load %arg1[%17, %c0_11, %c0_12] : memref<8x8x8xf32, #tpu.memory_space<vmem>>, vector<1x8x8xf32>
    %19 = vector.shape_cast %18 : vector<1x8x8xf32> to vector<8x8xf32>
    %cst_13 = arith.constant dense<0.000000e+00> : vector<96x8xf32>
    %20 = tpu.matmul %0, %19, %cst_13 {dimension_numbers = #tpu.dot_dimension_numbers<[1], [0], [0], [1], [0, 0, 1, 1], [], []>} : vector<96x8xf32>, vector<8x8xf32>, vector<96x8xf32> -> vector<96x8xf32>
    %21 = arith.addf %20, %4 : vector<96x8xf32>
    %22 = arith.index_cast %c1_i32 : i32 to index
    %c0_14 = arith.constant 0 : index
    %c0_15 = arith.constant 0 : index
    %23 = vector.load %arg13[%22, %c0_14, %c0_15] : memref<8x96x8xf32, #tpu.memory_space<vmem>>, vector<1x96x8xf32>
    %24 = vector.shape_cast %23 : vector<1x96x8xf32> to vector<96x8xf32>
    %25 = vector.shape_cast %21 : vector<96x8xf32> to vector<1x96x8xf32>
    tpu.vector_store %arg13[%22, %c0_14, %c0_15], %25 {strides = array<i32>} : memref<8x96x8xf32, #tpu.memory_space<vmem>>, vector<1x96x8xf32>,
    %c2_i32 = arith.constant 2 : i32
    %26 = arith.index_cast %c2_i32 : i32 to index
    %c0_16 = arith.constant 0 : index
    %c0_17 = arith.constant 0 : index
    %27 = vector.load %arg1[%26, %c0_16, %c0_17] : memref<8x8x8xf32, #tpu.memory_space<vmem>>, vector<1x8x8xf32>
    %28 = vector.shape_cast %27 : vector<1x8x8xf32> to vector<8x8xf32>
    %cst_18 = arith.constant dense<0.000000e+00> : vector<96x8xf32>
    %29 = tpu.matmul %0, %28, %cst_18 {dimension_numbers = #tpu.dot_dimension_numbers<[1], [0], [0], [1], [0, 0, 1, 1], [], []>} : vector<96x8xf32>, vector<8x8xf32>, vector<96x8xf32> -> vector<96x8xf32>
    %30 = arith.addf %29, %4 : vector<96x8xf32>
    %31 = arith.index_cast %c2_i32 : i32 to index
    %c0_19 = arith.constant 0 : index
    %c0_20 = arith.constant 0 : index
    %32 = vector.load %arg13[%31, %c0_19, %c0_20] : memref<8x96x8xf32, #tpu.memory_space<vmem>>, vector<1x96x8xf32>
    %33 = vector.shape_cast %32 : vector<1x96x8xf32> to vector<96x8xf32>
    %34 = vector.shape_cast %30 : vector<96x8xf32> to vector<1x96x8xf32>
    tpu.vector_store %arg13[%31, %c0_19, %c0_20], %34 {strides = array<i32>} : memref<8x96x8xf32, #tpu.memory_space<vmem>>, vector<1x96x8xf32>,
    %c3_i32 = arith.constant 3 : i32
    %35 = arith.index_cast %c3_i32 : i32 to index
    %c0_21 = arith.constant 0 : index
    %c0_22 = arith.constant 0 : index
    %36 = vector.load %arg1[%35, %c0_21, %c0_22] : memref<8x8x8xf32, #tpu.memory_space<vmem>>, vector<1x8x8xf32>
    %37 = vector.shape_cast %36 : vector<1x8x8xf32> to vector<8x8xf32>
    %cst_23 = arith.constant dense<0.000000e+00> : vector<96x8xf32>
    %38 = tpu.matmul %0, %37, %cst_23 {dimension_numbers = #tpu.dot_dimension_numbers<[1], [0], [0], [1], [0, 0, 1, 1], [], []>} : vector<96x8xf32>, vector<8x8xf32>, vector<96x8xf32> -> vector<96x8xf32>
    %39 = arith.addf %38, %4 : vector<96x8xf32>
    %40 = arith.index_cast %c3_i32 : i32 to index
    %c0_24 = arith.constant 0 : index
    %c0_25 = arith.constant 0 : index
    %41 = vector.load %arg13[%40, %c0_24, %c0_25] : memref<8x96x8xf32, #tpu.memory_space<vmem>>, vector<1x96x8xf32>
    %42 = vector.shape_cast %41 : vector<1x96x8xf32> to vector<96x8xf32>
    %43 = vector.shape_cast %39 : vector<96x8xf32> to vector<1x96x8xf32>
    tpu.vector_store %arg13[%40, %c0_24, %c0_25], %43 {strides = array<i32>} : memref<8x96x8xf32, #tpu.memory_space<vmem>>, vector<1x96x8xf32>,
    %c4_i32 = arith.constant 4 : i32
    %44 = arith.index_cast %c4_i32 : i32 to index
    %c0_26 = arith.constant 0 : index
    %c0_27 = arith.constant 0 : index
    %45 = vector.load %arg1[%44, %c0_26, %c0_27] : memref<8x8x8xf32, #tpu.memory_space<vmem>>, vector<1x8x8xf32>
    %46 = vector.shape_cast %45 : vector<1x8x8xf32> to vector<8x8xf32>
    %cst_28 = arith.constant dense<0.000000e+00> : vector<96x8xf32>
    %47 = tpu.matmul %0, %46, %cst_28 {dimension_numbers = #tpu.dot_dimension_numbers<[1], [0], [0], [1], [0, 0, 1, 1], [], []>} : vector<96x8xf32>, vector<8x8xf32>, vector<96x8xf32> -> vector<96x8xf32>
    %48 = arith.addf %47, %4 : vector<96x8xf32>
    %49 = arith.index_cast %c4_i32 : i32 to index
    %c0_29 = arith.constant 0 : index
    %c0_30 = arith.constant 0 : index
    %50 = vector.load %arg13[%49, %c0_29, %c0_30] : memref<8x96x8xf32, #tpu.memory_space<vmem>>, vector<1x96x8xf32>
    %51 = vector.shape_cast %50 : vector<1x96x8xf32> to vector<96x8xf32>
    %52 = vector.shape_cast %48 : vector<96x8xf32> to vector<1x96x8xf32>
    tpu.vector_store %arg13[%49, %c0_29, %c0_30], %52 {strides = array<i32>} : memref<8x96x8xf32, #tpu.memory_space<vmem>>, vector<1x96x8xf32>,
    %c5_i32 = arith.constant 5 : i32
    %53 = arith.index_cast %c5_i32 : i32 to index
    %c0_31 = arith.constant 0 : index
    %c0_32 = arith.constant 0 : index
    %54 = vector.load %arg1[%53, %c0_31, %c0_32] : memref<8x8x8xf32, #tpu.memory_space<vmem>>, vector<1x8x8xf32>
    %55 = vector.shape_cast %54 : vector<1x8x8xf32> to vector<8x8xf32>
    %cst_33 = arith.constant dense<0.000000e+00> : vector<96x8xf32>
    %56 = tpu.matmul %0, %55, %cst_33 {dimension_numbers = #tpu.dot_dimension_numbers<[1], [0], [0], [1], [0, 0, 1, 1], [], []>} : vector<96x8xf32>, vector<8x8xf32>, vector<96x8xf32> -> vector<96x8xf32>
    %57 = arith.addf %56, %4 : vector<96x8xf32>
    %58 = arith.index_cast %c5_i32 : i32 to index
    %c0_34 = arith.constant 0 : index
    %c0_35 = arith.constant 0 : index
    %59 = vector.load %arg13[%58, %c0_34, %c0_35] : memref<8x96x8xf32, #tpu.memory_space<vmem>>, vector<1x96x8xf32>
    %60 = vector.shape_cast %59 : vector<1x96x8xf32> to vector<96x8xf32>
    %61 = vector.shape_cast %57 : vector<96x8xf32> to vector<1x96x8xf32>
    tpu.vector_store %arg13[%58, %c0_34, %c0_35], %61 {strides = array<i32>} : memref<8x96x8xf32, #tpu.memory_space<vmem>>, vector<1x96x8xf32>,
    %c6_i32 = arith.constant 6 : i32
    %62 = arith.index_cast %c6_i32 : i32 to index
    %c0_36 = arith.constant 0 : index
    %c0_37 = arith.constant 0 : index
    %63 = vector.load %arg1[%62, %c0_36, %c0_37] : memref<8x8x8xf32, #tpu.memory_space<vmem>>, vector<1x8x8xf32>
    %64 = vector.shape_cast %63 : vector<1x8x8xf32> to vector<8x8xf32>
    %cst_38 = arith.constant dense<0.000000e+00> : vector<96x8xf32>
    %65 = tpu.matmul %0, %64, %cst_38 {dimension_numbers = #tpu.dot_dimension_numbers<[1], [0], [0], [1], [0, 0, 1, 1], [], []>} : vector<96x8xf32>, vector<8x8xf32>, vector<96x8xf32> -> vector<96x8xf32>
    %66 = arith.addf %65, %4 : vector<96x8xf32>
    %67 = arith.index_cast %c6_i32 : i32 to index
    %c0_39 = arith.constant 0 : index
    %c0_40 = arith.constant 0 : index
    %68 = vector.load %arg13[%67, %c0_39, %c0_40] : memref<8x96x8xf32, #tpu.memory_space<vmem>>, vector<1x96x8xf32>
    %69 = vector.shape_cast %68 : vector<1x96x8xf32> to vector<96x8xf32>
    %70 = vector.shape_cast %66 : vector<96x8xf32> to vector<1x96x8xf32>
    tpu.vector_store %arg13[%67, %c0_39, %c0_40], %70 {strides = array<i32>} : memref<8x96x8xf32, #tpu.memory_space<vmem>>, vector<1x96x8xf32>,
    %c7_i32 = arith.constant 7 : i32
    %71 = arith.index_cast %c7_i32 : i32 to index
    %c0_41 = arith.constant 0 : index
    %c0_42 = arith.constant 0 : index
    %72 = vector.load %arg1[%71, %c0_41, %c0_42] : memref<8x8x8xf32, #tpu.memory_space<vmem>>, vector<1x8x8xf32>
    %73 = vector.shape_cast %72 : vector<1x8x8xf32> to vector<8x8xf32>
    %cst_43 = arith.constant dense<0.000000e+00> : vector<96x8xf32>
    %74 = tpu.matmul %0, %73, %cst_43 {dimension_numbers = #tpu.dot_dimension_numbers<[1], [0], [0], [1], [0, 0, 1, 1], [], []>} : vector<96x8xf32>, vector<8x8xf32>, vector<96x8xf32> -> vector<96x8xf32>
    %75 = arith.addf %74, %4 : vector<96x8xf32>
    %76 = arith.index_cast %c7_i32 : i32 to index
    %c0_44 = arith.constant 0 : index
    %c0_45 = arith.constant 0 : index
    %77 = vector.load %arg13[%76, %c0_44, %c0_45] : memref<8x96x8xf32, #tpu.memory_space<vmem>>, vector<1x96x8xf32>
    %78 = vector.shape_cast %77 : vector<1x96x8xf32> to vector<96x8xf32>
    %79 = vector.shape_cast %75 : vector<96x8xf32> to vector<1x96x8xf32>
    tpu.vector_store %arg13[%76, %c0_44, %c0_45], %79 {strides = array<i32>} : memref<8x96x8xf32, #tpu.memory_space<vmem>>, vector<1x96x8xf32>,
    %c8_i32 = arith.constant 8 : i32
    %cst_46 = arith.constant 0.000000e+00 : f32
    %80 = vector.broadcast %cst_46 : f32 to vector<32x8xf32>
    %c0_i32_47 = arith.constant 0 : i32
    %81 = arith.index_cast %c0_i32_47 : i32 to index
    %c0_48 = arith.constant 0 : index
    %c0_49 = arith.constant 0 : index
    %82 = vector.load %arg13[%81, %c0_48, %c0_49] : memref<8x96x8xf32, #tpu.memory_space<vmem>>, vector<1x96x8xf32>
    %83 = vector.shape_cast %82 : vector<1x96x8xf32> to vector<96x8xf32>
    %cst_50 = arith.constant dense<0.000000e+00> : vector<96x8xf32>
    %84 = tpu.matmul %1, %80, %cst_50 {dimension_numbers = #tpu.dot_dimension_numbers<[1], [0], [0], [1], [0, 0, 1, 1], [], []>} : vector<96x32xf32>, vector<32x8xf32>, vector<96x8xf32> -> vector<96x8xf32>
    %85 = vector.extract_strided_slice %83 {offsets = [0, 0], sizes = [32, 8], strides = [1, 1]} : vector<96x8xf32> to vector<32x8xf32>
    %86 = vector.extract_strided_slice %84 {offsets = [0, 0], sizes = [32, 8], strides = [1, 1]} : vector<96x8xf32> to vector<32x8xf32>
    %87 = arith.addf %85, %86 : vector<32x8xf32>
    %cst_51 = arith.constant 0.000000e+00 : f32
    %88 = vector.broadcast %cst_51 : f32 to vector<32x8xf32>
    %89 = arith.subf %88, %87 : vector<32x8xf32>
    %90 = math.exp %89 : vector<32x8xf32>
    %cst_52 = arith.constant 1.000000e+00 : f32
    %91 = vector.broadcast %cst_52 : f32 to vector<32x8xf32>
    %92 = arith.addf %91, %90 : vector<32x8xf32>
    %93 = tpu.reciprocal %92 {approx = true} : vector<32x8xf32> -> vector<32x8xf32>
    %94 = vector.extract_strided_slice %83 {offsets = [32, 0], sizes = [32, 8], strides = [1, 1]} : vector<96x8xf32> to vector<32x8xf32>
    %95 = vector.extract_strided_slice %84 {offsets = [32, 0], sizes = [32, 8], strides = [1, 1]} : vector<96x8xf32> to vector<32x8xf32>
    %96 = arith.addf %94, %95 : vector<32x8xf32>
    %cst_53 = arith.constant 0.000000e+00 : f32
    %97 = vector.broadcast %cst_53 : f32 to vector<32x8xf32>
    %98 = arith.subf %97, %96 : vector<32x8xf32>
    %99 = math.exp %98 : vector<32x8xf32>
    %cst_54 = arith.constant 1.000000e+00 : f32
    %100 = vector.broadcast %cst_54 : f32 to vector<32x8xf32>
    %101 = arith.addf %100, %99 : vector<32x8xf32>
    %102 = tpu.reciprocal %101 {approx = true} : vector<32x8xf32> -> vector<32x8xf32>
    %103 = vector.extract_strided_slice %83 {offsets = [64, 0], sizes = [32, 8], strides = [1, 1]} : vector<96x8xf32> to vector<32x8xf32>
    %104 = vector.extract_strided_slice %84 {offsets = [64, 0], sizes = [32, 8], strides = [1, 1]} : vector<96x8xf32> to vector<32x8xf32>
    %105 = arith.addf %104, %7 : vector<32x8xf32>
    %106 = arith.mulf %93, %105 : vector<32x8xf32>
    %107 = arith.addf %103, %106 : vector<32x8xf32>
    %108 = math.tanh %107 : vector<32x8xf32>
    %cst_55 = arith.constant 1.000000e+00 : f32
    %109 = vector.broadcast %cst_55 : f32 to vector<32x8xf32>
    %110 = arith.subf %109, %102 : vector<32x8xf32>
    %111 = arith.mulf %110, %108 : vector<32x8xf32>
    %112 = arith.mulf %102, %80 : vector<32x8xf32>
    %113 = arith.addf %111, %112 : vector<32x8xf32>
    %114 = arith.index_cast %c0_i32_47 : i32 to index
    %c0_56 = arith.constant 0 : index
    %c0_57 = arith.constant 0 : index
    %115 = vector.load %arg14[%114, %c0_56, %c0_57] : memref<8x32x8xf32, #tpu.memory_space<vmem>>, vector<1x32x8xf32>
    %116 = vector.shape_cast %115 : vector<1x32x8xf32> to vector<32x8xf32>
    %117 = vector.shape_cast %113 : vector<32x8xf32> to vector<1x32x8xf32>
    tpu.vector_store %arg14[%114, %c0_56, %c0_57], %117 {strides = array<i32>} : memref<8x32x8xf32, #tpu.memory_space<vmem>>, vector<1x32x8xf32>,
    %c1_i32_58 = arith.constant 1 : i32
    %118 = arith.index_cast %c1_i32_58 : i32 to index
    %c0_59 = arith.constant 0 : index
    %c0_60 = arith.constant 0 : index
    %119 = vector.load %arg13[%118, %c0_59, %c0_60] : memref<8x96x8xf32, #tpu.memory_space<vmem>>, vector<1x96x8xf32>
    %120 = vector.shape_cast %119 : vector<1x96x8xf32> to vector<96x8xf32>
    %cst_61 = arith.constant dense<0.000000e+00> : vector<96x8xf32>
    %121 = tpu.matmul %1, %113, %cst_61 {dimension_numbers = #tpu.dot_dimension_numbers<[1], [0], [0], [1], [0, 0, 1, 1], [], []>} : vector<96x32xf32>, vector<32x8xf32>, vector<96x8xf32> -> vector<96x8xf32>
    %122 = vector.extract_strided_slice %120 {offsets = [0, 0], sizes = [32, 8], strides = [1, 1]} : vector<96x8xf32> to vector<32x8xf32>
    %123 = vector.extract_strided_slice %121 {offsets = [0, 0], sizes = [32, 8], strides = [1, 1]} : vector<96x8xf32> to vector<32x8xf32>
    %124 = arith.addf %122, %123 : vector<32x8xf32>
    %cst_62 = arith.constant 0.000000e+00 : f32
    %125 = vector.broadcast %cst_62 : f32 to vector<32x8xf32>
    %126 = arith.subf %125, %124 : vector<32x8xf32>
    %127 = math.exp %126 : vector<32x8xf32>
    %cst_63 = arith.constant 1.000000e+00 : f32
    %128 = vector.broadcast %cst_63 : f32 to vector<32x8xf32>
    %129 = arith.addf %128, %127 : vector<32x8xf32>
    %130 = tpu.reciprocal %129 {approx = true} : vector<32x8xf32> -> vector<32x8xf32>
    %131 = vector.extract_strided_slice %120 {offsets = [32, 0], sizes = [32, 8], strides = [1, 1]} : vector<96x8xf32> to vector<32x8xf32>
    %132 = vector.extract_strided_slice %121 {offsets = [32, 0], sizes = [32, 8], strides = [1, 1]} : vector<96x8xf32> to vector<32x8xf32>
    %133 = arith.addf %131, %132 : vector<32x8xf32>
    %cst_64 = arith.constant 0.000000e+00 : f32
    %134 = vector.broadcast %cst_64 : f32 to vector<32x8xf32>
    %135 = arith.subf %134, %133 : vector<32x8xf32>
    %136 = math.exp %135 : vector<32x8xf32>
    %cst_65 = arith.constant 1.000000e+00 : f32
    %137 = vector.broadcast %cst_65 : f32 to vector<32x8xf32>
    %138 = arith.addf %137, %136 : vector<32x8xf32>
    %139 = tpu.reciprocal %138 {approx = true} : vector<32x8xf32> -> vector<32x8xf32>
    %140 = vector.extract_strided_slice %120 {offsets = [64, 0], sizes = [32, 8], strides = [1, 1]} : vector<96x8xf32> to vector<32x8xf32>
    %141 = vector.extract_strided_slice %121 {offsets = [64, 0], sizes = [32, 8], strides = [1, 1]} : vector<96x8xf32> to vector<32x8xf32>
    %142 = arith.addf %141, %7 : vector<32x8xf32>
    %143 = arith.mulf %130, %142 : vector<32x8xf32>
    %144 = arith.addf %140, %143 : vector<32x8xf32>
    %145 = math.tanh %144 : vector<32x8xf32>
    %cst_66 = arith.constant 1.000000e+00 : f32
    %146 = vector.broadcast %cst_66 : f32 to vector<32x8xf32>
    %147 = arith.subf %146, %139 : vector<32x8xf32>
    %148 = arith.mulf %147, %145 : vector<32x8xf32>
    %149 = arith.mulf %139, %113 : vector<32x8xf32>
    %150 = arith.addf %148, %149 : vector<32x8xf32>
    %151 = arith.index_cast %c1_i32_58 : i32 to index
    %c0_67 = arith.constant 0 : index
    %c0_68 = arith.constant 0 : index
    %152 = vector.load %arg14[%151, %c0_67, %c0_68] : memref<8x32x8xf32, #tpu.memory_space<vmem>>, vector<1x32x8xf32>
    %153 = vector.shape_cast %152 : vector<1x32x8xf32> to vector<32x8xf32>
    %154 = vector.shape_cast %150 : vector<32x8xf32> to vector<1x32x8xf32>
    tpu.vector_store %arg14[%151, %c0_67, %c0_68], %154 {strides = array<i32>} : memref<8x32x8xf32, #tpu.memory_space<vmem>>, vector<1x32x8xf32>,
    %c2_i32_69 = arith.constant 2 : i32
    %155 = arith.index_cast %c2_i32_69 : i32 to index
    %c0_70 = arith.constant 0 : index
    %c0_71 = arith.constant 0 : index
    %156 = vector.load %arg13[%155, %c0_70, %c0_71] : memref<8x96x8xf32, #tpu.memory_space<vmem>>, vector<1x96x8xf32>
    %157 = vector.shape_cast %156 : vector<1x96x8xf32> to vector<96x8xf32>
    %cst_72 = arith.constant dense<0.000000e+00> : vector<96x8xf32>
    %158 = tpu.matmul %1, %150, %cst_72 {dimension_numbers = #tpu.dot_dimension_numbers<[1], [0], [0], [1], [0, 0, 1, 1], [], []>} : vector<96x32xf32>, vector<32x8xf32>, vector<96x8xf32> -> vector<96x8xf32>
    %159 = vector.extract_strided_slice %157 {offsets = [0, 0], sizes = [32, 8], strides = [1, 1]} : vector<96x8xf32> to vector<32x8xf32>
    %160 = vector.extract_strided_slice %158 {offsets = [0, 0], sizes = [32, 8], strides = [1, 1]} : vector<96x8xf32> to vector<32x8xf32>
    %161 = arith.addf %159, %160 : vector<32x8xf32>
    %cst_73 = arith.constant 0.000000e+00 : f32
    %162 = vector.broadcast %cst_73 : f32 to vector<32x8xf32>
    %163 = arith.subf %162, %161 : vector<32x8xf32>
    %164 = math.exp %163 : vector<32x8xf32>
    %cst_74 = arith.constant 1.000000e+00 : f32
    %165 = vector.broadcast %cst_74 : f32 to vector<32x8xf32>
    %166 = arith.addf %165, %164 : vector<32x8xf32>
    %167 = tpu.reciprocal %166 {approx = true} : vector<32x8xf32> -> vector<32x8xf32>
    %168 = vector.extract_strided_slice %157 {offsets = [32, 0], sizes = [32, 8], strides = [1, 1]} : vector<96x8xf32> to vector<32x8xf32>
    %169 = vector.extract_strided_slice %158 {offsets = [32, 0], sizes = [32, 8], strides = [1, 1]} : vector<96x8xf32> to vector<32x8xf32>
    %170 = arith.addf %168, %169 : vector<32x8xf32>
    %cst_75 = arith.constant 0.000000e+00 : f32
    %171 = vector.broadcast %cst_75 : f32 to vector<32x8xf32>
    %172 = arith.subf %171, %170 : vector<32x8xf32>
    %173 = math.exp %172 : vector<32x8xf32>
    %cst_76 = arith.constant 1.000000e+00 : f32
    %174 = vector.broadcast %cst_76 : f32 to vector<32x8xf32>
    %175 = arith.addf %174, %173 : vector<32x8xf32>
    %176 = tpu.reciprocal %175 {approx = true} : vector<32x8xf32> -> vector<32x8xf32>
    %177 = vector.extract_strided_slice %157 {offsets = [64, 0], sizes = [32, 8], strides = [1, 1]} : vector<96x8xf32> to vector<32x8xf32>
    %178 = vector.extract_strided_slice %158 {offsets = [64, 0], sizes = [32, 8], strides = [1, 1]} : vector<96x8xf32> to vector<32x8xf32>
    %179 = arith.addf %178, %7 : vector<32x8xf32>
    %180 = arith.mulf %167, %179 : vector<32x8xf32>
    %181 = arith.addf %177, %180 : vector<32x8xf32>
    %182 = math.tanh %181 : vector<32x8xf32>
    %cst_77 = arith.constant 1.000000e+00 : f32
    %183 = vector.broadcast %cst_77 : f32 to vector<32x8xf32>
    %184 = arith.subf %183, %176 : vector<32x8xf32>
    %185 = arith.mulf %184, %182 : vector<32x8xf32>
    %186 = arith.mulf %176, %150 : vector<32x8xf32>
    %187 = arith.addf %185, %186 : vector<32x8xf32>
    %188 = arith.index_cast %c2_i32_69 : i32 to index
    %c0_78 = arith.constant 0 : index
    %c0_79 = arith.constant 0 : index
    %189 = vector.load %arg14[%188, %c0_78, %c0_79] : memref<8x32x8xf32, #tpu.memory_space<vmem>>, vector<1x32x8xf32>
    %190 = vector.shape_cast %189 : vector<1x32x8xf32> to vector<32x8xf32>
    %191 = vector.shape_cast %187 : vector<32x8xf32> to vector<1x32x8xf32>
    tpu.vector_store %arg14[%188, %c0_78, %c0_79], %191 {strides = array<i32>} : memref<8x32x8xf32, #tpu.memory_space<vmem>>, vector<1x32x8xf32>,
    %c3_i32_80 = arith.constant 3 : i32
    %192 = arith.index_cast %c3_i32_80 : i32 to index
    %c0_81 = arith.constant 0 : index
    %c0_82 = arith.constant 0 : index
    %193 = vector.load %arg13[%192, %c0_81, %c0_82] : memref<8x96x8xf32, #tpu.memory_space<vmem>>, vector<1x96x8xf32>
    %194 = vector.shape_cast %193 : vector<1x96x8xf32> to vector<96x8xf32>
    %cst_83 = arith.constant dense<0.000000e+00> : vector<96x8xf32>
    %195 = tpu.matmul %1, %187, %cst_83 {dimension_numbers = #tpu.dot_dimension_numbers<[1], [0], [0], [1], [0, 0, 1, 1], [], []>} : vector<96x32xf32>, vector<32x8xf32>, vector<96x8xf32> -> vector<96x8xf32>
    %196 = vector.extract_strided_slice %194 {offsets = [0, 0], sizes = [32, 8], strides = [1, 1]} : vector<96x8xf32> to vector<32x8xf32>
    %197 = vector.extract_strided_slice %195 {offsets = [0, 0], sizes = [32, 8], strides = [1, 1]} : vector<96x8xf32> to vector<32x8xf32>
    %198 = arith.addf %196, %197 : vector<32x8xf32>
    %cst_84 = arith.constant 0.000000e+00 : f32
    %199 = vector.broadcast %cst_84 : f32 to vector<32x8xf32>
    %200 = arith.subf %199, %198 : vector<32x8xf32>
    %201 = math.exp %200 : vector<32x8xf32>
    %cst_85 = arith.constant 1.000000e+00 : f32
    %202 = vector.broadcast %cst_85 : f32 to vector<32x8xf32>
    %203 = arith.addf %202, %201 : vector<32x8xf32>
    %204 = tpu.reciprocal %203 {approx = true} : vector<32x8xf32> -> vector<32x8xf32>
    %205 = vector.extract_strided_slice %194 {offsets = [32, 0], sizes = [32, 8], strides = [1, 1]} : vector<96x8xf32> to vector<32x8xf32>
    %206 = vector.extract_strided_slice %195 {offsets = [32, 0], sizes = [32, 8], strides = [1, 1]} : vector<96x8xf32> to vector<32x8xf32>
    %207 = arith.addf %205, %206 : vector<32x8xf32>
    %cst_86 = arith.constant 0.000000e+00 : f32
    %208 = vector.broadcast %cst_86 : f32 to vector<32x8xf32>
    %209 = arith.subf %208, %207 : vector<32x8xf32>
    %210 = math.exp %209 : vector<32x8xf32>
    %cst_87 = arith.constant 1.000000e+00 : f32
    %211 = vector.broadcast %cst_87 : f32 to vector<32x8xf32>
    %212 = arith.addf %211, %210 : vector<32x8xf32>
    %213 = tpu.reciprocal %212 {approx = true} : vector<32x8xf32> -> vector<32x8xf32>
    %214 = vector.extract_strided_slice %194 {offsets = [64, 0], sizes = [32, 8], strides = [1, 1]} : vector<96x8xf32> to vector<32x8xf32>
    %215 = vector.extract_strided_slice %195 {offsets = [64, 0], sizes = [32, 8], strides = [1, 1]} : vector<96x8xf32> to vector<32x8xf32>
    %216 = arith.addf %215, %7 : vector<32x8xf32>
    %217 = arith.mulf %204, %216 : vector<32x8xf32>
    %218 = arith.addf %214, %217 : vector<32x8xf32>
    %219 = math.tanh %218 : vector<32x8xf32>
    %cst_88 = arith.constant 1.000000e+00 : f32
    %220 = vector.broadcast %cst_88 : f32 to vector<32x8xf32>
    %221 = arith.subf %220, %213 : vector<32x8xf32>
    %222 = arith.mulf %221, %219 : vector<32x8xf32>
    %223 = arith.mulf %213, %187 : vector<32x8xf32>
    %224 = arith.addf %222, %223 : vector<32x8xf32>
    %225 = arith.index_cast %c3_i32_80 : i32 to index
    %c0_89 = arith.constant 0 : index
    %c0_90 = arith.constant 0 : index
    %226 = vector.load %arg14[%225, %c0_89, %c0_90] : memref<8x32x8xf32, #tpu.memory_space<vmem>>, vector<1x32x8xf32>
    %227 = vector.shape_cast %226 : vector<1x32x8xf32> to vector<32x8xf32>
    %228 = vector.shape_cast %224 : vector<32x8xf32> to vector<1x32x8xf32>
    tpu.vector_store %arg14[%225, %c0_89, %c0_90], %228 {strides = array<i32>} : memref<8x32x8xf32, #tpu.memory_space<vmem>>, vector<1x32x8xf32>,
    %c4_i32_91 = arith.constant 4 : i32
    %229 = arith.index_cast %c4_i32_91 : i32 to index
    %c0_92 = arith.constant 0 : index
    %c0_93 = arith.constant 0 : index
    %230 = vector.load %arg13[%229, %c0_92, %c0_93] : memref<8x96x8xf32, #tpu.memory_space<vmem>>, vector<1x96x8xf32>
    %231 = vector.shape_cast %230 : vector<1x96x8xf32> to vector<96x8xf32>
    %cst_94 = arith.constant dense<0.000000e+00> : vector<96x8xf32>
    %232 = tpu.matmul %1, %224, %cst_94 {dimension_numbers = #tpu.dot_dimension_numbers<[1], [0], [0], [1], [0, 0, 1, 1], [], []>} : vector<96x32xf32>, vector<32x8xf32>, vector<96x8xf32> -> vector<96x8xf32>
    %233 = vector.extract_strided_slice %231 {offsets = [0, 0], sizes = [32, 8], strides = [1, 1]} : vector<96x8xf32> to vector<32x8xf32>
    %234 = vector.extract_strided_slice %232 {offsets = [0, 0], sizes = [32, 8], strides = [1, 1]} : vector<96x8xf32> to vector<32x8xf32>
    %235 = arith.addf %233, %234 : vector<32x8xf32>
    %cst_95 = arith.constant 0.000000e+00 : f32
    %236 = vector.broadcast %cst_95 : f32 to vector<32x8xf32>
    %237 = arith.subf %236, %235 : vector<32x8xf32>
    %238 = math.exp %237 : vector<32x8xf32>
    %cst_96 = arith.constant 1.000000e+00 : f32
    %239 = vector.broadcast %cst_96 : f32 to vector<32x8xf32>
    %240 = arith.addf %239, %238 : vector<32x8xf32>
    %241 = tpu.reciprocal %240 {approx = true} : vector<32x8xf32> -> vector<32x8xf32>
    %242 = vector.extract_strided_slice %231 {offsets = [32, 0], sizes = [32, 8], strides = [1, 1]} : vector<96x8xf32> to vector<32x8xf32>
    %243 = vector.extract_strided_slice %232 {offsets = [32, 0], sizes = [32, 8], strides = [1, 1]} : vector<96x8xf32> to vector<32x8xf32>
    %244 = arith.addf %242, %243 : vector<32x8xf32>
    %cst_97 = arith.constant 0.000000e+00 : f32
    %245 = vector.broadcast %cst_97 : f32 to vector<32x8xf32>
    %246 = arith.subf %245, %244 : vector<32x8xf32>
    %247 = math.exp %246 : vector<32x8xf32>
    %cst_98 = arith.constant 1.000000e+00 : f32
    %248 = vector.broadcast %cst_98 : f32 to vector<32x8xf32>
    %249 = arith.addf %248, %247 : vector<32x8xf32>
    %250 = tpu.reciprocal %249 {approx = true} : vector<32x8xf32> -> vector<32x8xf32>
    %251 = vector.extract_strided_slice %231 {offsets = [64, 0], sizes = [32, 8], strides = [1, 1]} : vector<96x8xf32> to vector<32x8xf32>
    %252 = vector.extract_strided_slice %232 {offsets = [64, 0], sizes = [32, 8], strides = [1, 1]} : vector<96x8xf32> to vector<32x8xf32>
    %253 = arith.addf %252, %7 : vector<32x8xf32>
    %254 = arith.mulf %241, %253 : vector<32x8xf32>
    %255 = arith.addf %251, %254 : vector<32x8xf32>
    %256 = math.tanh %255 : vector<32x8xf32>
    %cst_99 = arith.constant 1.000000e+00 : f32
    %257 = vector.broadcast %cst_99 : f32 to vector<32x8xf32>
    %258 = arith.subf %257, %250 : vector<32x8xf32>
    %259 = arith.mulf %258, %256 : vector<32x8xf32>
    %260 = arith.mulf %250, %224 : vector<32x8xf32>
    %261 = arith.addf %259, %260 : vector<32x8xf32>
    %262 = arith.index_cast %c4_i32_91 : i32 to index
    %c0_100 = arith.constant 0 : index
    %c0_101 = arith.constant 0 : index
    %263 = vector.load %arg14[%262, %c0_100, %c0_101] : memref<8x32x8xf32, #tpu.memory_space<vmem>>, vector<1x32x8xf32>
    %264 = vector.shape_cast %263 : vector<1x32x8xf32> to vector<32x8xf32>
    %265 = vector.shape_cast %261 : vector<32x8xf32> to vector<1x32x8xf32>
    tpu.vector_store %arg14[%262, %c0_100, %c0_101], %265 {strides = array<i32>} : memref<8x32x8xf32, #tpu.memory_space<vmem>>, vector<1x32x8xf32>,
    %c5_i32_102 = arith.constant 5 : i32
    %266 = arith.index_cast %c5_i32_102 : i32 to index
    %c0_103 = arith.constant 0 : index
    %c0_104 = arith.constant 0 : index
    %267 = vector.load %arg13[%266, %c0_103, %c0_104] : memref<8x96x8xf32, #tpu.memory_space<vmem>>, vector<1x96x8xf32>
    %268 = vector.shape_cast %267 : vector<1x96x8xf32> to vector<96x8xf32>
    %cst_105 = arith.constant dense<0.000000e+00> : vector<96x8xf32>
    %269 = tpu.matmul %1, %261, %cst_105 {dimension_numbers = #tpu.dot_dimension_numbers<[1], [0], [0], [1], [0, 0, 1, 1], [], []>} : vector<96x32xf32>, vector<32x8xf32>, vector<96x8xf32> -> vector<96x8xf32>
    %270 = vector.extract_strided_slice %268 {offsets = [0, 0], sizes = [32, 8], strides = [1, 1]} : vector<96x8xf32> to vector<32x8xf32>
    %271 = vector.extract_strided_slice %269 {offsets = [0, 0], sizes = [32, 8], strides = [1, 1]} : vector<96x8xf32> to vector<32x8xf32>
    %272 = arith.addf %270, %271 : vector<32x8xf32>
    %cst_106 = arith.constant 0.000000e+00 : f32
    %273 = vector.broadcast %cst_106 : f32 to vector<32x8xf32>
    %274 = arith.subf %273, %272 : vector<32x8xf32>
    %275 = math.exp %274 : vector<32x8xf32>
    %cst_107 = arith.constant 1.000000e+00 : f32
    %276 = vector.broadcast %cst_107 : f32 to vector<32x8xf32>
    %277 = arith.addf %276, %275 : vector<32x8xf32>
    %278 = tpu.reciprocal %277 {approx = true} : vector<32x8xf32> -> vector<32x8xf32>
    %279 = vector.extract_strided_slice %268 {offsets = [32, 0], sizes = [32, 8], strides = [1, 1]} : vector<96x8xf32> to vector<32x8xf32>
    %280 = vector.extract_strided_slice %269 {offsets = [32, 0], sizes = [32, 8], strides = [1, 1]} : vector<96x8xf32> to vector<32x8xf32>
    %281 = arith.addf %279, %280 : vector<32x8xf32>
    %cst_108 = arith.constant 0.000000e+00 : f32
    %282 = vector.broadcast %cst_108 : f32 to vector<32x8xf32>
    %283 = arith.subf %282, %281 : vector<32x8xf32>
    %284 = math.exp %283 : vector<32x8xf32>
    %cst_109 = arith.constant 1.000000e+00 : f32
    %285 = vector.broadcast %cst_109 : f32 to vector<32x8xf32>
    %286 = arith.addf %285, %284 : vector<32x8xf32>
    %287 = tpu.reciprocal %286 {approx = true} : vector<32x8xf32> -> vector<32x8xf32>
    %288 = vector.extract_strided_slice %268 {offsets = [64, 0], sizes = [32, 8], strides = [1, 1]} : vector<96x8xf32> to vector<32x8xf32>
    %289 = vector.extract_strided_slice %269 {offsets = [64, 0], sizes = [32, 8], strides = [1, 1]} : vector<96x8xf32> to vector<32x8xf32>
    %290 = arith.addf %289, %7 : vector<32x8xf32>
    %291 = arith.mulf %278, %290 : vector<32x8xf32>
    %292 = arith.addf %288, %291 : vector<32x8xf32>
    %293 = math.tanh %292 : vector<32x8xf32>
    %cst_110 = arith.constant 1.000000e+00 : f32
    %294 = vector.broadcast %cst_110 : f32 to vector<32x8xf32>
    %295 = arith.subf %294, %287 : vector<32x8xf32>
    %296 = arith.mulf %295, %293 : vector<32x8xf32>
    %297 = arith.mulf %287, %261 : vector<32x8xf32>
    %298 = arith.addf %296, %297 : vector<32x8xf32>
    %299 = arith.index_cast %c5_i32_102 : i32 to index
    %c0_111 = arith.constant 0 : index
    %c0_112 = arith.constant 0 : index
    %300 = vector.load %arg14[%299, %c0_111, %c0_112] : memref<8x32x8xf32, #tpu.memory_space<vmem>>, vector<1x32x8xf32>
    %301 = vector.shape_cast %300 : vector<1x32x8xf32> to vector<32x8xf32>
    %302 = vector.shape_cast %298 : vector<32x8xf32> to vector<1x32x8xf32>
    tpu.vector_store %arg14[%299, %c0_111, %c0_112], %302 {strides = array<i32>} : memref<8x32x8xf32, #tpu.memory_space<vmem>>, vector<1x32x8xf32>,
    %c6_i32_113 = arith.constant 6 : i32
    %303 = arith.index_cast %c6_i32_113 : i32 to index
    %c0_114 = arith.constant 0 : index
    %c0_115 = arith.constant 0 : index
    %304 = vector.load %arg13[%303, %c0_114, %c0_115] : memref<8x96x8xf32, #tpu.memory_space<vmem>>, vector<1x96x8xf32>
    %305 = vector.shape_cast %304 : vector<1x96x8xf32> to vector<96x8xf32>
    %cst_116 = arith.constant dense<0.000000e+00> : vector<96x8xf32>
    %306 = tpu.matmul %1, %298, %cst_116 {dimension_numbers = #tpu.dot_dimension_numbers<[1], [0], [0], [1], [0, 0, 1, 1], [], []>} : vector<96x32xf32>, vector<32x8xf32>, vector<96x8xf32> -> vector<96x8xf32>
    %307 = vector.extract_strided_slice %305 {offsets = [0, 0], sizes = [32, 8], strides = [1, 1]} : vector<96x8xf32> to vector<32x8xf32>
    %308 = vector.extract_strided_slice %306 {offsets = [0, 0], sizes = [32, 8], strides = [1, 1]} : vector<96x8xf32> to vector<32x8xf32>
    %309 = arith.addf %307, %308 : vector<32x8xf32>
    %cst_117 = arith.constant 0.000000e+00 : f32
    %310 = vector.broadcast %cst_117 : f32 to vector<32x8xf32>
    %311 = arith.subf %310, %309 : vector<32x8xf32>
    %312 = math.exp %311 : vector<32x8xf32>
    %cst_118 = arith.constant 1.000000e+00 : f32
    %313 = vector.broadcast %cst_118 : f32 to vector<32x8xf32>
    %314 = arith.addf %313, %312 : vector<32x8xf32>
    %315 = tpu.reciprocal %314 {approx = true} : vector<32x8xf32> -> vector<32x8xf32>
    %316 = vector.extract_strided_slice %305 {offsets = [32, 0], sizes = [32, 8], strides = [1, 1]} : vector<96x8xf32> to vector<32x8xf32>
    %317 = vector.extract_strided_slice %306 {offsets = [32, 0], sizes = [32, 8], strides = [1, 1]} : vector<96x8xf32> to vector<32x8xf32>
    %318 = arith.addf %316, %317 : vector<32x8xf32>
    %cst_119 = arith.constant 0.000000e+00 : f32
    %319 = vector.broadcast %cst_119 : f32 to vector<32x8xf32>
    %320 = arith.subf %319, %318 : vector<32x8xf32>
    %321 = math.exp %320 : vector<32x8xf32>
    %cst_120 = arith.constant 1.000000e+00 : f32
    %322 = vector.broadcast %cst_120 : f32 to vector<32x8xf32>
    %323 = arith.addf %322, %321 : vector<32x8xf32>
    %324 = tpu.reciprocal %323 {approx = true} : vector<32x8xf32> -> vector<32x8xf32>
    %325 = vector.extract_strided_slice %305 {offsets = [64, 0], sizes = [32, 8], strides = [1, 1]} : vector<96x8xf32> to vector<32x8xf32>
    %326 = vector.extract_strided_slice %306 {offsets = [64, 0], sizes = [32, 8], strides = [1, 1]} : vector<96x8xf32> to vector<32x8xf32>
    %327 = arith.addf %326, %7 : vector<32x8xf32>
    %328 = arith.mulf %315, %327 : vector<32x8xf32>
    %329 = arith.addf %325, %328 : vector<32x8xf32>
    %330 = math.tanh %329 : vector<32x8xf32>
    %cst_121 = arith.constant 1.000000e+00 : f32
    %331 = vector.broadcast %cst_121 : f32 to vector<32x8xf32>
    %332 = arith.subf %331, %324 : vector<32x8xf32>
    %333 = arith.mulf %332, %330 : vector<32x8xf32>
    %334 = arith.mulf %324, %298 : vector<32x8xf32>
    %335 = arith.addf %333, %334 : vector<32x8xf32>
    %336 = arith.index_cast %c6_i32_113 : i32 to index
    %c0_122 = arith.constant 0 : index
    %c0_123 = arith.constant 0 : index
    %337 = vector.load %arg14[%336, %c0_122, %c0_123] : memref<8x32x8xf32, #tpu.memory_space<vmem>>, vector<1x32x8xf32>
    %338 = vector.shape_cast %337 : vector<1x32x8xf32> to vector<32x8xf32>
    %339 = vector.shape_cast %335 : vector<32x8xf32> to vector<1x32x8xf32>
    tpu.vector_store %arg14[%336, %c0_122, %c0_123], %339 {strides = array<i32>} : memref<8x32x8xf32, #tpu.memory_space<vmem>>, vector<1x32x8xf32>,
    %c7_i32_124 = arith.constant 7 : i32
    %340 = arith.index_cast %c7_i32_124 : i32 to index
    %c0_125 = arith.constant 0 : index
    %c0_126 = arith.constant 0 : index
    %341 = vector.load %arg13[%340, %c0_125, %c0_126] : memref<8x96x8xf32, #tpu.memory_space<vmem>>, vector<1x96x8xf32>
    %342 = vector.shape_cast %341 : vector<1x96x8xf32> to vector<96x8xf32>
    %cst_127 = arith.constant dense<0.000000e+00> : vector<96x8xf32>
    %343 = tpu.matmul %1, %335, %cst_127 {dimension_numbers = #tpu.dot_dimension_numbers<[1], [0], [0], [1], [0, 0, 1, 1], [], []>} : vector<96x32xf32>, vector<32x8xf32>, vector<96x8xf32> -> vector<96x8xf32>
    %344 = vector.extract_strided_slice %342 {offsets = [0, 0], sizes = [32, 8], strides = [1, 1]} : vector<96x8xf32> to vector<32x8xf32>
    %345 = vector.extract_strided_slice %343 {offsets = [0, 0], sizes = [32, 8], strides = [1, 1]} : vector<96x8xf32> to vector<32x8xf32>
    %346 = arith.addf %344, %345 : vector<32x8xf32>
    %cst_128 = arith.constant 0.000000e+00 : f32
    %347 = vector.broadcast %cst_128 : f32 to vector<32x8xf32>
    %348 = arith.subf %347, %346 : vector<32x8xf32>
    %349 = math.exp %348 : vector<32x8xf32>
    %cst_129 = arith.constant 1.000000e+00 : f32
    %350 = vector.broadcast %cst_129 : f32 to vector<32x8xf32>
    %351 = arith.addf %350, %349 : vector<32x8xf32>
    %352 = tpu.reciprocal %351 {approx = true} : vector<32x8xf32> -> vector<32x8xf32>
    %353 = vector.extract_strided_slice %342 {offsets = [32, 0], sizes = [32, 8], strides = [1, 1]} : vector<96x8xf32> to vector<32x8xf32>
    %354 = vector.extract_strided_slice %343 {offsets = [32, 0], sizes = [32, 8], strides = [1, 1]} : vector<96x8xf32> to vector<32x8xf32>
    %355 = arith.addf %353, %354 : vector<32x8xf32>
    %cst_130 = arith.constant 0.000000e+00 : f32
    %356 = vector.broadcast %cst_130 : f32 to vector<32x8xf32>
    %357 = arith.subf %356, %355 : vector<32x8xf32>
    %358 = math.exp %357 : vector<32x8xf32>
    %cst_131 = arith.constant 1.000000e+00 : f32
    %359 = vector.broadcast %cst_131 : f32 to vector<32x8xf32>
    %360 = arith.addf %359, %358 : vector<32x8xf32>
    %361 = tpu.reciprocal %360 {approx = true} : vector<32x8xf32> -> vector<32x8xf32>
    %362 = vector.extract_strided_slice %342 {offsets = [64, 0], sizes = [32, 8], strides = [1, 1]} : vector<96x8xf32> to vector<32x8xf32>
    %363 = vector.extract_strided_slice %343 {offsets = [64, 0], sizes = [32, 8], strides = [1, 1]} : vector<96x8xf32> to vector<32x8xf32>
    %364 = arith.addf %363, %7 : vector<32x8xf32>
    %365 = arith.mulf %352, %364 : vector<32x8xf32>
    %366 = arith.addf %362, %365 : vector<32x8xf32>
    %367 = math.tanh %366 : vector<32x8xf32>
    %cst_132 = arith.constant 1.000000e+00 : f32
    %368 = vector.broadcast %cst_132 : f32 to vector<32x8xf32>
    %369 = arith.subf %368, %361 : vector<32x8xf32>
    %370 = arith.mulf %369, %367 : vector<32x8xf32>
    %371 = arith.mulf %361, %335 : vector<32x8xf32>
    %372 = arith.addf %370, %371 : vector<32x8xf32>
    %373 = arith.index_cast %c7_i32_124 : i32 to index
    %c0_133 = arith.constant 0 : index
    %c0_134 = arith.constant 0 : index
    %374 = vector.load %arg14[%373, %c0_133, %c0_134] : memref<8x32x8xf32, #tpu.memory_space<vmem>>, vector<1x32x8xf32>
    %375 = vector.shape_cast %374 : vector<1x32x8xf32> to vector<32x8xf32>
    %376 = vector.shape_cast %372 : vector<32x8xf32> to vector<1x32x8xf32>
    tpu.vector_store %arg14[%373, %c0_133, %c0_134], %376 {strides = array<i32>} : memref<8x32x8xf32, #tpu.memory_space<vmem>>, vector<1x32x8xf32>,
    %c8_i32_135 = arith.constant 8 : i32
    %c0_136 = arith.constant 0 : index
    %c0_137 = arith.constant 0 : index
    %377 = vector.load %arg6[%c0_136, %c0_137] : memref<96x32xf32, #tpu.memory_space<vmem>>, vector<96x32xf32>
    %c0_138 = arith.constant 0 : index
    %c0_139 = arith.constant 0 : index
    %378 = vector.load %arg7[%c0_138, %c0_139] : memref<96x32xf32, #tpu.memory_space<vmem>>, vector<96x32xf32>
    %c0_140 = arith.constant 0 : index
    %c0_141 = arith.constant 0 : index
    %379 = vector.load %arg8[%c0_140, %c0_141] : memref<96x1xf32, #tpu.memory_space<vmem>>, vector<96x1xf32>
    %380 = vector.shape_cast %379 : vector<96x1xf32> to vector<96x1xf32>
    %381 = vector.broadcast %380 : vector<96x1xf32> to vector<96x8xf32>
    %c0_142 = arith.constant 0 : index
    %c0_143 = arith.constant 0 : index
    %382 = vector.load %arg9[%c0_142, %c0_143] : memref<32x1xf32, #tpu.memory_space<vmem>>, vector<32x1xf32>
    %383 = vector.shape_cast %382 : vector<32x1xf32> to vector<32x1xf32>
    %384 = vector.broadcast %383 : vector<32x1xf32> to vector<32x8xf32>
    %c0_i32_144 = arith.constant 0 : i32
    %385 = arith.index_cast %c0_i32_144 : i32 to index
    %c0_145 = arith.constant 0 : index
    %c0_146 = arith.constant 0 : index
    %386 = vector.load %arg14[%385, %c0_145, %c0_146] : memref<8x32x8xf32, #tpu.memory_space<vmem>>, vector<1x32x8xf32>
    %387 = vector.shape_cast %386 : vector<1x32x8xf32> to vector<32x8xf32>
    %cst_147 = arith.constant dense<0.000000e+00> : vector<96x8xf32>
    %388 = tpu.matmul %377, %387, %cst_147 {dimension_numbers = #tpu.dot_dimension_numbers<[1], [0], [0], [1], [0, 0, 1, 1], [], []>} : vector<96x32xf32>, vector<32x8xf32>, vector<96x8xf32> -> vector<96x8xf32>
    %389 = arith.addf %388, %381 : vector<96x8xf32>
    %390 = arith.index_cast %c0_i32_144 : i32 to index
    %c0_148 = arith.constant 0 : index
    %c0_149 = arith.constant 0 : index
    %391 = vector.load %arg13[%390, %c0_148, %c0_149] : memref<8x96x8xf32, #tpu.memory_space<vmem>>, vector<1x96x8xf32>
    %392 = vector.shape_cast %391 : vector<1x96x8xf32> to vector<96x8xf32>
    %393 = vector.shape_cast %389 : vector<96x8xf32> to vector<1x96x8xf32>
    tpu.vector_store %arg13[%390, %c0_148, %c0_149], %393 {strides = array<i32>} : memref<8x96x8xf32, #tpu.memory_space<vmem>>, vector<1x96x8xf32>,
    %c1_i32_150 = arith.constant 1 : i32
    %394 = arith.index_cast %c1_i32_150 : i32 to index
    %c0_151 = arith.constant 0 : index
    %c0_152 = arith.constant 0 : index
    %395 = vector.load %arg14[%394, %c0_151, %c0_152] : memref<8x32x8xf32, #tpu.memory_space<vmem>>, vector<1x32x8xf32>
    %396 = vector.shape_cast %395 : vector<1x32x8xf32> to vector<32x8xf32>
    %cst_153 = arith.constant dense<0.000000e+00> : vector<96x8xf32>
    %397 = tpu.matmul %377, %396, %cst_153 {dimension_numbers = #tpu.dot_dimension_numbers<[1], [0], [0], [1], [0, 0, 1, 1], [], []>} : vector<96x32xf32>, vector<32x8xf32>, vector<96x8xf32> -> vector<96x8xf32>
    %398 = arith.addf %397, %381 : vector<96x8xf32>
    %399 = arith.index_cast %c1_i32_150 : i32 to index
    %c0_154 = arith.constant 0 : index
    %c0_155 = arith.constant 0 : index
    %400 = vector.load %arg13[%399, %c0_154, %c0_155] : memref<8x96x8xf32, #tpu.memory_space<vmem>>, vector<1x96x8xf32>
    %401 = vector.shape_cast %400 : vector<1x96x8xf32> to vector<96x8xf32>
    %402 = vector.shape_cast %398 : vector<96x8xf32> to vector<1x96x8xf32>
    tpu.vector_store %arg13[%399, %c0_154, %c0_155], %402 {strides = array<i32>} : memref<8x96x8xf32, #tpu.memory_space<vmem>>, vector<1x96x8xf32>,
    %c2_i32_156 = arith.constant 2 : i32
    %403 = arith.index_cast %c2_i32_156 : i32 to index
    %c0_157 = arith.constant 0 : index
    %c0_158 = arith.constant 0 : index
    %404 = vector.load %arg14[%403, %c0_157, %c0_158] : memref<8x32x8xf32, #tpu.memory_space<vmem>>, vector<1x32x8xf32>
    %405 = vector.shape_cast %404 : vector<1x32x8xf32> to vector<32x8xf32>
    %cst_159 = arith.constant dense<0.000000e+00> : vector<96x8xf32>
    %406 = tpu.matmul %377, %405, %cst_159 {dimension_numbers = #tpu.dot_dimension_numbers<[1], [0], [0], [1], [0, 0, 1, 1], [], []>} : vector<96x32xf32>, vector<32x8xf32>, vector<96x8xf32> -> vector<96x8xf32>
    %407 = arith.addf %406, %381 : vector<96x8xf32>
    %408 = arith.index_cast %c2_i32_156 : i32 to index
    %c0_160 = arith.constant 0 : index
    %c0_161 = arith.constant 0 : index
    %409 = vector.load %arg13[%408, %c0_160, %c0_161] : memref<8x96x8xf32, #tpu.memory_space<vmem>>, vector<1x96x8xf32>
    %410 = vector.shape_cast %409 : vector<1x96x8xf32> to vector<96x8xf32>
    %411 = vector.shape_cast %407 : vector<96x8xf32> to vector<1x96x8xf32>
    tpu.vector_store %arg13[%408, %c0_160, %c0_161], %411 {strides = array<i32>} : memref<8x96x8xf32, #tpu.memory_space<vmem>>, vector<1x96x8xf32>,
    %c3_i32_162 = arith.constant 3 : i32
    %412 = arith.index_cast %c3_i32_162 : i32 to index
    %c0_163 = arith.constant 0 : index
    %c0_164 = arith.constant 0 : index
    %413 = vector.load %arg14[%412, %c0_163, %c0_164] : memref<8x32x8xf32, #tpu.memory_space<vmem>>, vector<1x32x8xf32>
    %414 = vector.shape_cast %413 : vector<1x32x8xf32> to vector<32x8xf32>
    %cst_165 = arith.constant dense<0.000000e+00> : vector<96x8xf32>
    %415 = tpu.matmul %377, %414, %cst_165 {dimension_numbers = #tpu.dot_dimension_numbers<[1], [0], [0], [1], [0, 0, 1, 1], [], []>} : vector<96x32xf32>, vector<32x8xf32>, vector<96x8xf32> -> vector<96x8xf32>
    %416 = arith.addf %415, %381 : vector<96x8xf32>
    %417 = arith.index_cast %c3_i32_162 : i32 to index
    %c0_166 = arith.constant 0 : index
    %c0_167 = arith.constant 0 : index
    %418 = vector.load %arg13[%417, %c0_166, %c0_167] : memref<8x96x8xf32, #tpu.memory_space<vmem>>, vector<1x96x8xf32>
    %419 = vector.shape_cast %418 : vector<1x96x8xf32> to vector<96x8xf32>
    %420 = vector.shape_cast %416 : vector<96x8xf32> to vector<1x96x8xf32>
    tpu.vector_store %arg13[%417, %c0_166, %c0_167], %420 {strides = array<i32>} : memref<8x96x8xf32, #tpu.memory_space<vmem>>, vector<1x96x8xf32>,
    %c4_i32_168 = arith.constant 4 : i32
    %421 = arith.index_cast %c4_i32_168 : i32 to index
    %c0_169 = arith.constant 0 : index
    %c0_170 = arith.constant 0 : index
    %422 = vector.load %arg14[%421, %c0_169, %c0_170] : memref<8x32x8xf32, #tpu.memory_space<vmem>>, vector<1x32x8xf32>
    %423 = vector.shape_cast %422 : vector<1x32x8xf32> to vector<32x8xf32>
    %cst_171 = arith.constant dense<0.000000e+00> : vector<96x8xf32>
    %424 = tpu.matmul %377, %423, %cst_171 {dimension_numbers = #tpu.dot_dimension_numbers<[1], [0], [0], [1], [0, 0, 1, 1], [], []>} : vector<96x32xf32>, vector<32x8xf32>, vector<96x8xf32> -> vector<96x8xf32>
    %425 = arith.addf %424, %381 : vector<96x8xf32>
    %426 = arith.index_cast %c4_i32_168 : i32 to index
    %c0_172 = arith.constant 0 : index
    %c0_173 = arith.constant 0 : index
    %427 = vector.load %arg13[%426, %c0_172, %c0_173] : memref<8x96x8xf32, #tpu.memory_space<vmem>>, vector<1x96x8xf32>
    %428 = vector.shape_cast %427 : vector<1x96x8xf32> to vector<96x8xf32>
    %429 = vector.shape_cast %425 : vector<96x8xf32> to vector<1x96x8xf32>
    tpu.vector_store %arg13[%426, %c0_172, %c0_173], %429 {strides = array<i32>} : memref<8x96x8xf32, #tpu.memory_space<vmem>>, vector<1x96x8xf32>,
    %c5_i32_174 = arith.constant 5 : i32
    %430 = arith.index_cast %c5_i32_174 : i32 to index
    %c0_175 = arith.constant 0 : index
    %c0_176 = arith.constant 0 : index
    %431 = vector.load %arg14[%430, %c0_175, %c0_176] : memref<8x32x8xf32, #tpu.memory_space<vmem>>, vector<1x32x8xf32>
    %432 = vector.shape_cast %431 : vector<1x32x8xf32> to vector<32x8xf32>
    %cst_177 = arith.constant dense<0.000000e+00> : vector<96x8xf32>
    %433 = tpu.matmul %377, %432, %cst_177 {dimension_numbers = #tpu.dot_dimension_numbers<[1], [0], [0], [1], [0, 0, 1, 1], [], []>} : vector<96x32xf32>, vector<32x8xf32>, vector<96x8xf32> -> vector<96x8xf32>
    %434 = arith.addf %433, %381 : vector<96x8xf32>
    %435 = arith.index_cast %c5_i32_174 : i32 to index
    %c0_178 = arith.constant 0 : index
    %c0_179 = arith.constant 0 : index
    %436 = vector.load %arg13[%435, %c0_178, %c0_179] : memref<8x96x8xf32, #tpu.memory_space<vmem>>, vector<1x96x8xf32>
    %437 = vector.shape_cast %436 : vector<1x96x8xf32> to vector<96x8xf32>
    %438 = vector.shape_cast %434 : vector<96x8xf32> to vector<1x96x8xf32>
    tpu.vector_store %arg13[%435, %c0_178, %c0_179], %438 {strides = array<i32>} : memref<8x96x8xf32, #tpu.memory_space<vmem>>, vector<1x96x8xf32>,
    %c6_i32_180 = arith.constant 6 : i32
    %439 = arith.index_cast %c6_i32_180 : i32 to index
    %c0_181 = arith.constant 0 : index
    %c0_182 = arith.constant 0 : index
    %440 = vector.load %arg14[%439, %c0_181, %c0_182] : memref<8x32x8xf32, #tpu.memory_space<vmem>>, vector<1x32x8xf32>
    %441 = vector.shape_cast %440 : vector<1x32x8xf32> to vector<32x8xf32>
    %cst_183 = arith.constant dense<0.000000e+00> : vector<96x8xf32>
    %442 = tpu.matmul %377, %441, %cst_183 {dimension_numbers = #tpu.dot_dimension_numbers<[1], [0], [0], [1], [0, 0, 1, 1], [], []>} : vector<96x32xf32>, vector<32x8xf32>, vector<96x8xf32> -> vector<96x8xf32>
    %443 = arith.addf %442, %381 : vector<96x8xf32>
    %444 = arith.index_cast %c6_i32_180 : i32 to index
    %c0_184 = arith.constant 0 : index
    %c0_185 = arith.constant 0 : index
    %445 = vector.load %arg13[%444, %c0_184, %c0_185] : memref<8x96x8xf32, #tpu.memory_space<vmem>>, vector<1x96x8xf32>
    %446 = vector.shape_cast %445 : vector<1x96x8xf32> to vector<96x8xf32>
    %447 = vector.shape_cast %443 : vector<96x8xf32> to vector<1x96x8xf32>
    tpu.vector_store %arg13[%444, %c0_184, %c0_185], %447 {strides = array<i32>} : memref<8x96x8xf32, #tpu.memory_space<vmem>>, vector<1x96x8xf32>,
    %c7_i32_186 = arith.constant 7 : i32
    %448 = arith.index_cast %c7_i32_186 : i32 to index
    %c0_187 = arith.constant 0 : index
    %c0_188 = arith.constant 0 : index
    %449 = vector.load %arg14[%448, %c0_187, %c0_188] : memref<8x32x8xf32, #tpu.memory_space<vmem>>, vector<1x32x8xf32>
    %450 = vector.shape_cast %449 : vector<1x32x8xf32> to vector<32x8xf32>
    %cst_189 = arith.constant dense<0.000000e+00> : vector<96x8xf32>
    %451 = tpu.matmul %377, %450, %cst_189 {dimension_numbers = #tpu.dot_dimension_numbers<[1], [0], [0], [1], [0, 0, 1, 1], [], []>} : vector<96x32xf32>, vector<32x8xf32>, vector<96x8xf32> -> vector<96x8xf32>
    %452 = arith.addf %451, %381 : vector<96x8xf32>
    %453 = arith.index_cast %c7_i32_186 : i32 to index
    %c0_190 = arith.constant 0 : index
    %c0_191 = arith.constant 0 : index
    %454 = vector.load %arg13[%453, %c0_190, %c0_191] : memref<8x96x8xf32, #tpu.memory_space<vmem>>, vector<1x96x8xf32>
    %455 = vector.shape_cast %454 : vector<1x96x8xf32> to vector<96x8xf32>
    %456 = vector.shape_cast %452 : vector<96x8xf32> to vector<1x96x8xf32>
    tpu.vector_store %arg13[%453, %c0_190, %c0_191], %456 {strides = array<i32>} : memref<8x96x8xf32, #tpu.memory_space<vmem>>, vector<1x96x8xf32>,
    %c8_i32_192 = arith.constant 8 : i32
    %cst_193 = arith.constant 0.000000e+00 : f32
    %457 = vector.broadcast %cst_193 : f32 to vector<32x8xf32>
    %c0_i32_194 = arith.constant 0 : i32
    %458 = arith.index_cast %c0_i32_194 : i32 to index
    %c0_195 = arith.constant 0 : index
    %c0_196 = arith.constant 0 : index
    %459 = vector.load %arg13[%458, %c0_195, %c0_196] : memref<8x96x8xf32, #tpu.memory_space<vmem>>, vector<1x96x8xf32>
    %460 = vector.shape_cast %459 : vector<1x96x8xf32> to vector<96x8xf32>
    %cst_197 = arith.constant dense<0.000000e+00> : vector<96x8xf32>
    %461 = tpu.matmul %378, %457, %cst_197 {dimension_numbers = #tpu.dot_dimension_numbers<[1], [0], [0], [1], [0, 0, 1, 1], [], []>} : vector<96x32xf32>, vector<32x8xf32>, vector<96x8xf32> -> vector<96x8xf32>
    %462 = vector.extract_strided_slice %460 {offsets = [0, 0], sizes = [32, 8], strides = [1, 1]} : vector<96x8xf32> to vector<32x8xf32>
    %463 = vector.extract_strided_slice %461 {offsets = [0, 0], sizes = [32, 8], strides = [1, 1]} : vector<96x8xf32> to vector<32x8xf32>
    %464 = arith.addf %462, %463 : vector<32x8xf32>
    %cst_198 = arith.constant 0.000000e+00 : f32
    %465 = vector.broadcast %cst_198 : f32 to vector<32x8xf32>
    %466 = arith.subf %465, %464 : vector<32x8xf32>
    %467 = math.exp %466 : vector<32x8xf32>
    %cst_199 = arith.constant 1.000000e+00 : f32
    %468 = vector.broadcast %cst_199 : f32 to vector<32x8xf32>
    %469 = arith.addf %468, %467 : vector<32x8xf32>
    %470 = tpu.reciprocal %469 {approx = true} : vector<32x8xf32> -> vector<32x8xf32>
    %471 = vector.extract_strided_slice %460 {offsets = [32, 0], sizes = [32, 8], strides = [1, 1]} : vector<96x8xf32> to vector<32x8xf32>
    %472 = vector.extract_strided_slice %461 {offsets = [32, 0], sizes = [32, 8], strides = [1, 1]} : vector<96x8xf32> to vector<32x8xf32>
    %473 = arith.addf %471, %472 : vector<32x8xf32>
    %cst_200 = arith.constant 0.000000e+00 : f32
    %474 = vector.broadcast %cst_200 : f32 to vector<32x8xf32>
    %475 = arith.subf %474, %473 : vector<32x8xf32>
    %476 = math.exp %475 : vector<32x8xf32>
    %cst_201 = arith.constant 1.000000e+00 : f32
    %477 = vector.broadcast %cst_201 : f32 to vector<32x8xf32>
    %478 = arith.addf %477, %476 : vector<32x8xf32>
    %479 = tpu.reciprocal %478 {approx = true} : vector<32x8xf32> -> vector<32x8xf32>
    %480 = vector.extract_strided_slice %460 {offsets = [64, 0], sizes = [32, 8], strides = [1, 1]} : vector<96x8xf32> to vector<32x8xf32>
    %481 = vector.extract_strided_slice %461 {offsets = [64, 0], sizes = [32, 8], strides = [1, 1]} : vector<96x8xf32> to vector<32x8xf32>
    %482 = arith.addf %481, %384 : vector<32x8xf32>
    %483 = arith.mulf %470, %482 : vector<32x8xf32>
    %484 = arith.addf %480, %483 : vector<32x8xf32>
    %485 = math.tanh %484 : vector<32x8xf32>
    %cst_202 = arith.constant 1.000000e+00 : f32
    %486 = vector.broadcast %cst_202 : f32 to vector<32x8xf32>
    %487 = arith.subf %486, %479 : vector<32x8xf32>
    %488 = arith.mulf %487, %485 : vector<32x8xf32>
    %489 = arith.mulf %479, %457 : vector<32x8xf32>
    %490 = arith.addf %488, %489 : vector<32x8xf32>
    %491 = arith.index_cast %c0_i32_194 : i32 to index
    %c0_203 = arith.constant 0 : index
    %c0_204 = arith.constant 0 : index
    %492 = vector.load %arg14[%491, %c0_203, %c0_204] : memref<8x32x8xf32, #tpu.memory_space<vmem>>, vector<1x32x8xf32>
    %493 = vector.shape_cast %492 : vector<1x32x8xf32> to vector<32x8xf32>
    %494 = vector.shape_cast %490 : vector<32x8xf32> to vector<1x32x8xf32>
    tpu.vector_store %arg14[%491, %c0_203, %c0_204], %494 {strides = array<i32>} : memref<8x32x8xf32, #tpu.memory_space<vmem>>, vector<1x32x8xf32>,
    %c1_i32_205 = arith.constant 1 : i32
    %495 = arith.index_cast %c1_i32_205 : i32 to index
    %c0_206 = arith.constant 0 : index
    %c0_207 = arith.constant 0 : index
    %496 = vector.load %arg13[%495, %c0_206, %c0_207] : memref<8x96x8xf32, #tpu.memory_space<vmem>>, vector<1x96x8xf32>
    %497 = vector.shape_cast %496 : vector<1x96x8xf32> to vector<96x8xf32>
    %cst_208 = arith.constant dense<0.000000e+00> : vector<96x8xf32>
    %498 = tpu.matmul %378, %490, %cst_208 {dimension_numbers = #tpu.dot_dimension_numbers<[1], [0], [0], [1], [0, 0, 1, 1], [], []>} : vector<96x32xf32>, vector<32x8xf32>, vector<96x8xf32> -> vector<96x8xf32>
    %499 = vector.extract_strided_slice %497 {offsets = [0, 0], sizes = [32, 8], strides = [1, 1]} : vector<96x8xf32> to vector<32x8xf32>
    %500 = vector.extract_strided_slice %498 {offsets = [0, 0], sizes = [32, 8], strides = [1, 1]} : vector<96x8xf32> to vector<32x8xf32>
    %501 = arith.addf %499, %500 : vector<32x8xf32>
    %cst_209 = arith.constant 0.000000e+00 : f32
    %502 = vector.broadcast %cst_209 : f32 to vector<32x8xf32>
    %503 = arith.subf %502, %501 : vector<32x8xf32>
    %504 = math.exp %503 : vector<32x8xf32>
    %cst_210 = arith.constant 1.000000e+00 : f32
    %505 = vector.broadcast %cst_210 : f32 to vector<32x8xf32>
    %506 = arith.addf %505, %504 : vector<32x8xf32>
    %507 = tpu.reciprocal %506 {approx = true} : vector<32x8xf32> -> vector<32x8xf32>
    %508 = vector.extract_strided_slice %497 {offsets = [32, 0], sizes = [32, 8], strides = [1, 1]} : vector<96x8xf32> to vector<32x8xf32>
    %509 = vector.extract_strided_slice %498 {offsets = [32, 0], sizes = [32, 8], strides = [1, 1]} : vector<96x8xf32> to vector<32x8xf32>
    %510 = arith.addf %508, %509 : vector<32x8xf32>
    %cst_211 = arith.constant 0.000000e+00 : f32
    %511 = vector.broadcast %cst_211 : f32 to vector<32x8xf32>
    %512 = arith.subf %511, %510 : vector<32x8xf32>
    %513 = math.exp %512 : vector<32x8xf32>
    %cst_212 = arith.constant 1.000000e+00 : f32
    %514 = vector.broadcast %cst_212 : f32 to vector<32x8xf32>
    %515 = arith.addf %514, %513 : vector<32x8xf32>
    %516 = tpu.reciprocal %515 {approx = true} : vector<32x8xf32> -> vector<32x8xf32>
    %517 = vector.extract_strided_slice %497 {offsets = [64, 0], sizes = [32, 8], strides = [1, 1]} : vector<96x8xf32> to vector<32x8xf32>
    %518 = vector.extract_strided_slice %498 {offsets = [64, 0], sizes = [32, 8], strides = [1, 1]} : vector<96x8xf32> to vector<32x8xf32>
    %519 = arith.addf %518, %384 : vector<32x8xf32>
    %520 = arith.mulf %507, %519 : vector<32x8xf32>
    %521 = arith.addf %517, %520 : vector<32x8xf32>
    %522 = math.tanh %521 : vector<32x8xf32>
    %cst_213 = arith.constant 1.000000e+00 : f32
    %523 = vector.broadcast %cst_213 : f32 to vector<32x8xf32>
    %524 = arith.subf %523, %516 : vector<32x8xf32>
    %525 = arith.mulf %524, %522 : vector<32x8xf32>
    %526 = arith.mulf %516, %490 : vector<32x8xf32>
    %527 = arith.addf %525, %526 : vector<32x8xf32>
    %528 = arith.index_cast %c1_i32_205 : i32 to index
    %c0_214 = arith.constant 0 : index
    %c0_215 = arith.constant 0 : index
    %529 = vector.load %arg14[%528, %c0_214, %c0_215] : memref<8x32x8xf32, #tpu.memory_space<vmem>>, vector<1x32x8xf32>
    %530 = vector.shape_cast %529 : vector<1x32x8xf32> to vector<32x8xf32>
    %531 = vector.shape_cast %527 : vector<32x8xf32> to vector<1x32x8xf32>
    tpu.vector_store %arg14[%528, %c0_214, %c0_215], %531 {strides = array<i32>} : memref<8x32x8xf32, #tpu.memory_space<vmem>>, vector<1x32x8xf32>,
    %c2_i32_216 = arith.constant 2 : i32
    %532 = arith.index_cast %c2_i32_216 : i32 to index
    %c0_217 = arith.constant 0 : index
    %c0_218 = arith.constant 0 : index
    %533 = vector.load %arg13[%532, %c0_217, %c0_218] : memref<8x96x8xf32, #tpu.memory_space<vmem>>, vector<1x96x8xf32>
    %534 = vector.shape_cast %533 : vector<1x96x8xf32> to vector<96x8xf32>
    %cst_219 = arith.constant dense<0.000000e+00> : vector<96x8xf32>
    %535 = tpu.matmul %378, %527, %cst_219 {dimension_numbers = #tpu.dot_dimension_numbers<[1], [0], [0], [1], [0, 0, 1, 1], [], []>} : vector<96x32xf32>, vector<32x8xf32>, vector<96x8xf32> -> vector<96x8xf32>
    %536 = vector.extract_strided_slice %534 {offsets = [0, 0], sizes = [32, 8], strides = [1, 1]} : vector<96x8xf32> to vector<32x8xf32>
    %537 = vector.extract_strided_slice %535 {offsets = [0, 0], sizes = [32, 8], strides = [1, 1]} : vector<96x8xf32> to vector<32x8xf32>
    %538 = arith.addf %536, %537 : vector<32x8xf32>
    %cst_220 = arith.constant 0.000000e+00 : f32
    %539 = vector.broadcast %cst_220 : f32 to vector<32x8xf32>
    %540 = arith.subf %539, %538 : vector<32x8xf32>
    %541 = math.exp %540 : vector<32x8xf32>
    %cst_221 = arith.constant 1.000000e+00 : f32
    %542 = vector.broadcast %cst_221 : f32 to vector<32x8xf32>
    %543 = arith.addf %542, %541 : vector<32x8xf32>
    %544 = tpu.reciprocal %543 {approx = true} : vector<32x8xf32> -> vector<32x8xf32>
    %545 = vector.extract_strided_slice %534 {offsets = [32, 0], sizes = [32, 8], strides = [1, 1]} : vector<96x8xf32> to vector<32x8xf32>
    %546 = vector.extract_strided_slice %535 {offsets = [32, 0], sizes = [32, 8], strides = [1, 1]} : vector<96x8xf32> to vector<32x8xf32>
    %547 = arith.addf %545, %546 : vector<32x8xf32>
    %cst_222 = arith.constant 0.000000e+00 : f32
    %548 = vector.broadcast %cst_222 : f32 to vector<32x8xf32>
    %549 = arith.subf %548, %547 : vector<32x8xf32>
    %550 = math.exp %549 : vector<32x8xf32>
    %cst_223 = arith.constant 1.000000e+00 : f32
    %551 = vector.broadcast %cst_223 : f32 to vector<32x8xf32>
    %552 = arith.addf %551, %550 : vector<32x8xf32>
    %553 = tpu.reciprocal %552 {approx = true} : vector<32x8xf32> -> vector<32x8xf32>
    %554 = vector.extract_strided_slice %534 {offsets = [64, 0], sizes = [32, 8], strides = [1, 1]} : vector<96x8xf32> to vector<32x8xf32>
    %555 = vector.extract_strided_slice %535 {offsets = [64, 0], sizes = [32, 8], strides = [1, 1]} : vector<96x8xf32> to vector<32x8xf32>
    %556 = arith.addf %555, %384 : vector<32x8xf32>
    %557 = arith.mulf %544, %556 : vector<32x8xf32>
    %558 = arith.addf %554, %557 : vector<32x8xf32>
    %559 = math.tanh %558 : vector<32x8xf32>
    %cst_224 = arith.constant 1.000000e+00 : f32
    %560 = vector.broadcast %cst_224 : f32 to vector<32x8xf32>
    %561 = arith.subf %560, %553 : vector<32x8xf32>
    %562 = arith.mulf %561, %559 : vector<32x8xf32>
    %563 = arith.mulf %553, %527 : vector<32x8xf32>
    %564 = arith.addf %562, %563 : vector<32x8xf32>
    %565 = arith.index_cast %c2_i32_216 : i32 to index
    %c0_225 = arith.constant 0 : index
    %c0_226 = arith.constant 0 : index
    %566 = vector.load %arg14[%565, %c0_225, %c0_226] : memref<8x32x8xf32, #tpu.memory_space<vmem>>, vector<1x32x8xf32>
    %567 = vector.shape_cast %566 : vector<1x32x8xf32> to vector<32x8xf32>
    %568 = vector.shape_cast %564 : vector<32x8xf32> to vector<1x32x8xf32>
    tpu.vector_store %arg14[%565, %c0_225, %c0_226], %568 {strides = array<i32>} : memref<8x32x8xf32, #tpu.memory_space<vmem>>, vector<1x32x8xf32>,
    %c3_i32_227 = arith.constant 3 : i32
    %569 = arith.index_cast %c3_i32_227 : i32 to index
    %c0_228 = arith.constant 0 : index
    %c0_229 = arith.constant 0 : index
    %570 = vector.load %arg13[%569, %c0_228, %c0_229] : memref<8x96x8xf32, #tpu.memory_space<vmem>>, vector<1x96x8xf32>
    %571 = vector.shape_cast %570 : vector<1x96x8xf32> to vector<96x8xf32>
    %cst_230 = arith.constant dense<0.000000e+00> : vector<96x8xf32>
    %572 = tpu.matmul %378, %564, %cst_230 {dimension_numbers = #tpu.dot_dimension_numbers<[1], [0], [0], [1], [0, 0, 1, 1], [], []>} : vector<96x32xf32>, vector<32x8xf32>, vector<96x8xf32> -> vector<96x8xf32>
    %573 = vector.extract_strided_slice %571 {offsets = [0, 0], sizes = [32, 8], strides = [1, 1]} : vector<96x8xf32> to vector<32x8xf32>
    %574 = vector.extract_strided_slice %572 {offsets = [0, 0], sizes = [32, 8], strides = [1, 1]} : vector<96x8xf32> to vector<32x8xf32>
    %575 = arith.addf %573, %574 : vector<32x8xf32>
    %cst_231 = arith.constant 0.000000e+00 : f32
    %576 = vector.broadcast %cst_231 : f32 to vector<32x8xf32>
    %577 = arith.subf %576, %575 : vector<32x8xf32>
    %578 = math.exp %577 : vector<32x8xf32>
    %cst_232 = arith.constant 1.000000e+00 : f32
    %579 = vector.broadcast %cst_232 : f32 to vector<32x8xf32>
    %580 = arith.addf %579, %578 : vector<32x8xf32>
    %581 = tpu.reciprocal %580 {approx = true} : vector<32x8xf32> -> vector<32x8xf32>
    %582 = vector.extract_strided_slice %571 {offsets = [32, 0], sizes = [32, 8], strides = [1, 1]} : vector<96x8xf32> to vector<32x8xf32>
    %583 = vector.extract_strided_slice %572 {offsets = [32, 0], sizes = [32, 8], strides = [1, 1]} : vector<96x8xf32> to vector<32x8xf32>
    %584 = arith.addf %582, %583 : vector<32x8xf32>
    %cst_233 = arith.constant 0.000000e+00 : f32
    %585 = vector.broadcast %cst_233 : f32 to vector<32x8xf32>
    %586 = arith.subf %585, %584 : vector<32x8xf32>
    %587 = math.exp %586 : vector<32x8xf32>
    %cst_234 = arith.constant 1.000000e+00 : f32
    %588 = vector.broadcast %cst_234 : f32 to vector<32x8xf32>
    %589 = arith.addf %588, %587 : vector<32x8xf32>
    %590 = tpu.reciprocal %589 {approx = true} : vector<32x8xf32> -> vector<32x8xf32>
    %591 = vector.extract_strided_slice %571 {offsets = [64, 0], sizes = [32, 8], strides = [1, 1]} : vector<96x8xf32> to vector<32x8xf32>
    %592 = vector.extract_strided_slice %572 {offsets = [64, 0], sizes = [32, 8], strides = [1, 1]} : vector<96x8xf32> to vector<32x8xf32>
    %593 = arith.addf %592, %384 : vector<32x8xf32>
    %594 = arith.mulf %581, %593 : vector<32x8xf32>
    %595 = arith.addf %591, %594 : vector<32x8xf32>
    %596 = math.tanh %595 : vector<32x8xf32>
    %cst_235 = arith.constant 1.000000e+00 : f32
    %597 = vector.broadcast %cst_235 : f32 to vector<32x8xf32>
    %598 = arith.subf %597, %590 : vector<32x8xf32>
    %599 = arith.mulf %598, %596 : vector<32x8xf32>
    %600 = arith.mulf %590, %564 : vector<32x8xf32>
    %601 = arith.addf %599, %600 : vector<32x8xf32>
    %602 = arith.index_cast %c3_i32_227 : i32 to index
    %c0_236 = arith.constant 0 : index
    %c0_237 = arith.constant 0 : index
    %603 = vector.load %arg14[%602, %c0_236, %c0_237] : memref<8x32x8xf32, #tpu.memory_space<vmem>>, vector<1x32x8xf32>
    %604 = vector.shape_cast %603 : vector<1x32x8xf32> to vector<32x8xf32>
    %605 = vector.shape_cast %601 : vector<32x8xf32> to vector<1x32x8xf32>
    tpu.vector_store %arg14[%602, %c0_236, %c0_237], %605 {strides = array<i32>} : memref<8x32x8xf32, #tpu.memory_space<vmem>>, vector<1x32x8xf32>,
    %c4_i32_238 = arith.constant 4 : i32
    %606 = arith.index_cast %c4_i32_238 : i32 to index
    %c0_239 = arith.constant 0 : index
    %c0_240 = arith.constant 0 : index
    %607 = vector.load %arg13[%606, %c0_239, %c0_240] : memref<8x96x8xf32, #tpu.memory_space<vmem>>, vector<1x96x8xf32>
    %608 = vector.shape_cast %607 : vector<1x96x8xf32> to vector<96x8xf32>
    %cst_241 = arith.constant dense<0.000000e+00> : vector<96x8xf32>
    %609 = tpu.matmul %378, %601, %cst_241 {dimension_numbers = #tpu.dot_dimension_numbers<[1], [0], [0], [1], [0, 0, 1, 1], [], []>} : vector<96x32xf32>, vector<32x8xf32>, vector<96x8xf32> -> vector<96x8xf32>
    %610 = vector.extract_strided_slice %608 {offsets = [0, 0], sizes = [32, 8], strides = [1, 1]} : vector<96x8xf32> to vector<32x8xf32>
    %611 = vector.extract_strided_slice %609 {offsets = [0, 0], sizes = [32, 8], strides = [1, 1]} : vector<96x8xf32> to vector<32x8xf32>
    %612 = arith.addf %610, %611 : vector<32x8xf32>
    %cst_242 = arith.constant 0.000000e+00 : f32
    %613 = vector.broadcast %cst_242 : f32 to vector<32x8xf32>
    %614 = arith.subf %613, %612 : vector<32x8xf32>
    %615 = math.exp %614 : vector<32x8xf32>
    %cst_243 = arith.constant 1.000000e+00 : f32
    %616 = vector.broadcast %cst_243 : f32 to vector<32x8xf32>
    %617 = arith.addf %616, %615 : vector<32x8xf32>
    %618 = tpu.reciprocal %617 {approx = true} : vector<32x8xf32> -> vector<32x8xf32>
    %619 = vector.extract_strided_slice %608 {offsets = [32, 0], sizes = [32, 8], strides = [1, 1]} : vector<96x8xf32> to vector<32x8xf32>
    %620 = vector.extract_strided_slice %609 {offsets = [32, 0], sizes = [32, 8], strides = [1, 1]} : vector<96x8xf32> to vector<32x8xf32>
    %621 = arith.addf %619, %620 : vector<32x8xf32>
    %cst_244 = arith.constant 0.000000e+00 : f32
    %622 = vector.broadcast %cst_244 : f32 to vector<32x8xf32>
    %623 = arith.subf %622, %621 : vector<32x8xf32>
    %624 = math.exp %623 : vector<32x8xf32>
    %cst_245 = arith.constant 1.000000e+00 : f32
    %625 = vector.broadcast %cst_245 : f32 to vector<32x8xf32>
    %626 = arith.addf %625, %624 : vector<32x8xf32>
    %627 = tpu.reciprocal %626 {approx = true} : vector<32x8xf32> -> vector<32x8xf32>
    %628 = vector.extract_strided_slice %608 {offsets = [64, 0], sizes = [32, 8], strides = [1, 1]} : vector<96x8xf32> to vector<32x8xf32>
    %629 = vector.extract_strided_slice %609 {offsets = [64, 0], sizes = [32, 8], strides = [1, 1]} : vector<96x8xf32> to vector<32x8xf32>
    %630 = arith.addf %629, %384 : vector<32x8xf32>
    %631 = arith.mulf %618, %630 : vector<32x8xf32>
    %632 = arith.addf %628, %631 : vector<32x8xf32>
    %633 = math.tanh %632 : vector<32x8xf32>
    %cst_246 = arith.constant 1.000000e+00 : f32
    %634 = vector.broadcast %cst_246 : f32 to vector<32x8xf32>
    %635 = arith.subf %634, %627 : vector<32x8xf32>
    %636 = arith.mulf %635, %633 : vector<32x8xf32>
    %637 = arith.mulf %627, %601 : vector<32x8xf32>
    %638 = arith.addf %636, %637 : vector<32x8xf32>
    %639 = arith.index_cast %c4_i32_238 : i32 to index
    %c0_247 = arith.constant 0 : index
    %c0_248 = arith.constant 0 : index
    %640 = vector.load %arg14[%639, %c0_247, %c0_248] : memref<8x32x8xf32, #tpu.memory_space<vmem>>, vector<1x32x8xf32>
    %641 = vector.shape_cast %640 : vector<1x32x8xf32> to vector<32x8xf32>
    %642 = vector.shape_cast %638 : vector<32x8xf32> to vector<1x32x8xf32>
    tpu.vector_store %arg14[%639, %c0_247, %c0_248], %642 {strides = array<i32>} : memref<8x32x8xf32, #tpu.memory_space<vmem>>, vector<1x32x8xf32>,
    %c5_i32_249 = arith.constant 5 : i32
    %643 = arith.index_cast %c5_i32_249 : i32 to index
    %c0_250 = arith.constant 0 : index
    %c0_251 = arith.constant 0 : index
    %644 = vector.load %arg13[%643, %c0_250, %c0_251] : memref<8x96x8xf32, #tpu.memory_space<vmem>>, vector<1x96x8xf32>
    %645 = vector.shape_cast %644 : vector<1x96x8xf32> to vector<96x8xf32>
    %cst_252 = arith.constant dense<0.000000e+00> : vector<96x8xf32>
    %646 = tpu.matmul %378, %638, %cst_252 {dimension_numbers = #tpu.dot_dimension_numbers<[1], [0], [0], [1], [0, 0, 1, 1], [], []>} : vector<96x32xf32>, vector<32x8xf32>, vector<96x8xf32> -> vector<96x8xf32>
    %647 = vector.extract_strided_slice %645 {offsets = [0, 0], sizes = [32, 8], strides = [1, 1]} : vector<96x8xf32> to vector<32x8xf32>
    %648 = vector.extract_strided_slice %646 {offsets = [0, 0], sizes = [32, 8], strides = [1, 1]} : vector<96x8xf32> to vector<32x8xf32>
    %649 = arith.addf %647, %648 : vector<32x8xf32>
    %cst_253 = arith.constant 0.000000e+00 : f32
    %650 = vector.broadcast %cst_253 : f32 to vector<32x8xf32>
    %651 = arith.subf %650, %649 : vector<32x8xf32>
    %652 = math.exp %651 : vector<32x8xf32>
    %cst_254 = arith.constant 1.000000e+00 : f32
    %653 = vector.broadcast %cst_254 : f32 to vector<32x8xf32>
    %654 = arith.addf %653, %652 : vector<32x8xf32>
    %655 = tpu.reciprocal %654 {approx = true} : vector<32x8xf32> -> vector<32x8xf32>
    %656 = vector.extract_strided_slice %645 {offsets = [32, 0], sizes = [32, 8], strides = [1, 1]} : vector<96x8xf32> to vector<32x8xf32>
    %657 = vector.extract_strided_slice %646 {offsets = [32, 0], sizes = [32, 8], strides = [1, 1]} : vector<96x8xf32> to vector<32x8xf32>
    %658 = arith.addf %656, %657 : vector<32x8xf32>
    %cst_255 = arith.constant 0.000000e+00 : f32
    %659 = vector.broadcast %cst_255 : f32 to vector<32x8xf32>
    %660 = arith.subf %659, %658 : vector<32x8xf32>
    %661 = math.exp %660 : vector<32x8xf32>
    %cst_256 = arith.constant 1.000000e+00 : f32
    %662 = vector.broadcast %cst_256 : f32 to vector<32x8xf32>
    %663 = arith.addf %662, %661 : vector<32x8xf32>
    %664 = tpu.reciprocal %663 {approx = true} : vector<32x8xf32> -> vector<32x8xf32>
    %665 = vector.extract_strided_slice %645 {offsets = [64, 0], sizes = [32, 8], strides = [1, 1]} : vector<96x8xf32> to vector<32x8xf32>
    %666 = vector.extract_strided_slice %646 {offsets = [64, 0], sizes = [32, 8], strides = [1, 1]} : vector<96x8xf32> to vector<32x8xf32>
    %667 = arith.addf %666, %384 : vector<32x8xf32>
    %668 = arith.mulf %655, %667 : vector<32x8xf32>
    %669 = arith.addf %665, %668 : vector<32x8xf32>
    %670 = math.tanh %669 : vector<32x8xf32>
    %cst_257 = arith.constant 1.000000e+00 : f32
    %671 = vector.broadcast %cst_257 : f32 to vector<32x8xf32>
    %672 = arith.subf %671, %664 : vector<32x8xf32>
    %673 = arith.mulf %672, %670 : vector<32x8xf32>
    %674 = arith.mulf %664, %638 : vector<32x8xf32>
    %675 = arith.addf %673, %674 : vector<32x8xf32>
    %676 = arith.index_cast %c5_i32_249 : i32 to index
    %c0_258 = arith.constant 0 : index
    %c0_259 = arith.constant 0 : index
    %677 = vector.load %arg14[%676, %c0_258, %c0_259] : memref<8x32x8xf32, #tpu.memory_space<vmem>>, vector<1x32x8xf32>
    %678 = vector.shape_cast %677 : vector<1x32x8xf32> to vector<32x8xf32>
    %679 = vector.shape_cast %675 : vector<32x8xf32> to vector<1x32x8xf32>
    tpu.vector_store %arg14[%676, %c0_258, %c0_259], %679 {strides = array<i32>} : memref<8x32x8xf32, #tpu.memory_space<vmem>>, vector<1x32x8xf32>,
    %c6_i32_260 = arith.constant 6 : i32
    %680 = arith.index_cast %c6_i32_260 : i32 to index
    %c0_261 = arith.constant 0 : index
    %c0_262 = arith.constant 0 : index
    %681 = vector.load %arg13[%680, %c0_261, %c0_262] : memref<8x96x8xf32, #tpu.memory_space<vmem>>, vector<1x96x8xf32>
    %682 = vector.shape_cast %681 : vector<1x96x8xf32> to vector<96x8xf32>
    %cst_263 = arith.constant dense<0.000000e+00> : vector<96x8xf32>
    %683 = tpu.matmul %378, %675, %cst_263 {dimension_numbers = #tpu.dot_dimension_numbers<[1], [0], [0], [1], [0, 0, 1, 1], [], []>} : vector<96x32xf32>, vector<32x8xf32>, vector<96x8xf32> -> vector<96x8xf32>
    %684 = vector.extract_strided_slice %682 {offsets = [0, 0], sizes = [32, 8], strides = [1, 1]} : vector<96x8xf32> to vector<32x8xf32>
    %685 = vector.extract_strided_slice %683 {offsets = [0, 0], sizes = [32, 8], strides = [1, 1]} : vector<96x8xf32> to vector<32x8xf32>
    %686 = arith.addf %684, %685 : vector<32x8xf32>
    %cst_264 = arith.constant 0.000000e+00 : f32
    %687 = vector.broadcast %cst_264 : f32 to vector<32x8xf32>
    %688 = arith.subf %687, %686 : vector<32x8xf32>
    %689 = math.exp %688 : vector<32x8xf32>
    %cst_265 = arith.constant 1.000000e+00 : f32
    %690 = vector.broadcast %cst_265 : f32 to vector<32x8xf32>
    %691 = arith.addf %690, %689 : vector<32x8xf32>
    %692 = tpu.reciprocal %691 {approx = true} : vector<32x8xf32> -> vector<32x8xf32>
    %693 = vector.extract_strided_slice %682 {offsets = [32, 0], sizes = [32, 8], strides = [1, 1]} : vector<96x8xf32> to vector<32x8xf32>
    %694 = vector.extract_strided_slice %683 {offsets = [32, 0], sizes = [32, 8], strides = [1, 1]} : vector<96x8xf32> to vector<32x8xf32>
    %695 = arith.addf %693, %694 : vector<32x8xf32>
    %cst_266 = arith.constant 0.000000e+00 : f32
    %696 = vector.broadcast %cst_266 : f32 to vector<32x8xf32>
    %697 = arith.subf %696, %695 : vector<32x8xf32>
    %698 = math.exp %697 : vector<32x8xf32>
    %cst_267 = arith.constant 1.000000e+00 : f32
    %699 = vector.broadcast %cst_267 : f32 to vector<32x8xf32>
    %700 = arith.addf %699, %698 : vector<32x8xf32>
    %701 = tpu.reciprocal %700 {approx = true} : vector<32x8xf32> -> vector<32x8xf32>
    %702 = vector.extract_strided_slice %682 {offsets = [64, 0], sizes = [32, 8], strides = [1, 1]} : vector<96x8xf32> to vector<32x8xf32>
    %703 = vector.extract_strided_slice %683 {offsets = [64, 0], sizes = [32, 8], strides = [1, 1]} : vector<96x8xf32> to vector<32x8xf32>
    %704 = arith.addf %703, %384 : vector<32x8xf32>
    %705 = arith.mulf %692, %704 : vector<32x8xf32>
    %706 = arith.addf %702, %705 : vector<32x8xf32>
    %707 = math.tanh %706 : vector<32x8xf32>
    %cst_268 = arith.constant 1.000000e+00 : f32
    %708 = vector.broadcast %cst_268 : f32 to vector<32x8xf32>
    %709 = arith.subf %708, %701 : vector<32x8xf32>
    %710 = arith.mulf %709, %707 : vector<32x8xf32>
    %711 = arith.mulf %701, %675 : vector<32x8xf32>
    %712 = arith.addf %710, %711 : vector<32x8xf32>
    %713 = arith.index_cast %c6_i32_260 : i32 to index
    %c0_269 = arith.constant 0 : index
    %c0_270 = arith.constant 0 : index
    %714 = vector.load %arg14[%713, %c0_269, %c0_270] : memref<8x32x8xf32, #tpu.memory_space<vmem>>, vector<1x32x8xf32>
    %715 = vector.shape_cast %714 : vector<1x32x8xf32> to vector<32x8xf32>
    %716 = vector.shape_cast %712 : vector<32x8xf32> to vector<1x32x8xf32>
    tpu.vector_store %arg14[%713, %c0_269, %c0_270], %716 {strides = array<i32>} : memref<8x32x8xf32, #tpu.memory_space<vmem>>, vector<1x32x8xf32>,
    %c7_i32_271 = arith.constant 7 : i32
    %717 = arith.index_cast %c7_i32_271 : i32 to index
    %c0_272 = arith.constant 0 : index
    %c0_273 = arith.constant 0 : index
    %718 = vector.load %arg13[%717, %c0_272, %c0_273] : memref<8x96x8xf32, #tpu.memory_space<vmem>>, vector<1x96x8xf32>
    %719 = vector.shape_cast %718 : vector<1x96x8xf32> to vector<96x8xf32>
    %cst_274 = arith.constant dense<0.000000e+00> : vector<96x8xf32>
    %720 = tpu.matmul %378, %712, %cst_274 {dimension_numbers = #tpu.dot_dimension_numbers<[1], [0], [0], [1], [0, 0, 1, 1], [], []>} : vector<96x32xf32>, vector<32x8xf32>, vector<96x8xf32> -> vector<96x8xf32>
    %721 = vector.extract_strided_slice %719 {offsets = [0, 0], sizes = [32, 8], strides = [1, 1]} : vector<96x8xf32> to vector<32x8xf32>
    %722 = vector.extract_strided_slice %720 {offsets = [0, 0], sizes = [32, 8], strides = [1, 1]} : vector<96x8xf32> to vector<32x8xf32>
    %723 = arith.addf %721, %722 : vector<32x8xf32>
    %cst_275 = arith.constant 0.000000e+00 : f32
    %724 = vector.broadcast %cst_275 : f32 to vector<32x8xf32>
    %725 = arith.subf %724, %723 : vector<32x8xf32>
    %726 = math.exp %725 : vector<32x8xf32>
    %cst_276 = arith.constant 1.000000e+00 : f32
    %727 = vector.broadcast %cst_276 : f32 to vector<32x8xf32>
    %728 = arith.addf %727, %726 : vector<32x8xf32>
    %729 = tpu.reciprocal %728 {approx = true} : vector<32x8xf32> -> vector<32x8xf32>
    %730 = vector.extract_strided_slice %719 {offsets = [32, 0], sizes = [32, 8], strides = [1, 1]} : vector<96x8xf32> to vector<32x8xf32>
    %731 = vector.extract_strided_slice %720 {offsets = [32, 0], sizes = [32, 8], strides = [1, 1]} : vector<96x8xf32> to vector<32x8xf32>
    %732 = arith.addf %730, %731 : vector<32x8xf32>
    %cst_277 = arith.constant 0.000000e+00 : f32
    %733 = vector.broadcast %cst_277 : f32 to vector<32x8xf32>
    %734 = arith.subf %733, %732 : vector<32x8xf32>
    %735 = math.exp %734 : vector<32x8xf32>
    %cst_278 = arith.constant 1.000000e+00 : f32
    %736 = vector.broadcast %cst_278 : f32 to vector<32x8xf32>
    %737 = arith.addf %736, %735 : vector<32x8xf32>
    %738 = tpu.reciprocal %737 {approx = true} : vector<32x8xf32> -> vector<32x8xf32>
    %739 = vector.extract_strided_slice %719 {offsets = [64, 0], sizes = [32, 8], strides = [1, 1]} : vector<96x8xf32> to vector<32x8xf32>
    %740 = vector.extract_strided_slice %720 {offsets = [64, 0], sizes = [32, 8], strides = [1, 1]} : vector<96x8xf32> to vector<32x8xf32>
    %741 = arith.addf %740, %384 : vector<32x8xf32>
    %742 = arith.mulf %729, %741 : vector<32x8xf32>
    %743 = arith.addf %739, %742 : vector<32x8xf32>
    %744 = math.tanh %743 : vector<32x8xf32>
    %cst_279 = arith.constant 1.000000e+00 : f32
    %745 = vector.broadcast %cst_279 : f32 to vector<32x8xf32>
    %746 = arith.subf %745, %738 : vector<32x8xf32>
    %747 = arith.mulf %746, %744 : vector<32x8xf32>
    %748 = arith.mulf %738, %712 : vector<32x8xf32>
    %749 = arith.addf %747, %748 : vector<32x8xf32>
    %750 = arith.index_cast %c7_i32_271 : i32 to index
    %c0_280 = arith.constant 0 : index
    %c0_281 = arith.constant 0 : index
    %751 = vector.load %arg14[%750, %c0_280, %c0_281] : memref<8x32x8xf32, #tpu.memory_space<vmem>>, vector<1x32x8xf32>
    %752 = vector.shape_cast %751 : vector<1x32x8xf32> to vector<32x8xf32>
    %753 = vector.shape_cast %749 : vector<32x8xf32> to vector<1x32x8xf32>
    tpu.vector_store %arg14[%750, %c0_280, %c0_281], %753 {strides = array<i32>} : memref<8x32x8xf32, #tpu.memory_space<vmem>>, vector<1x32x8xf32>,
    %c8_i32_282 = arith.constant 8 : i32
    %c0_283 = arith.constant 0 : index
    %c0_284 = arith.constant 0 : index
    %754 = vector.load %arg10[%c0_283, %c0_284] : memref<32x1xf32, #tpu.memory_space<vmem>>, vector<32x1xf32>
    %c0_285 = arith.constant 0 : index
    %c0_286 = arith.constant 0 : index
    %755 = vector.load %arg11[%c0_285, %c0_286] : memref<1x1xf32, #tpu.memory_space<vmem>>, vector<1x1xf32>
    %c0_287 = arith.constant 0 : index
    %c0_288 = arith.constant 0 : index
    %c0_289 = arith.constant 0 : index
    %756 = vector.load %arg14[%c0_287, %c0_288, %c0_289] : memref<8x32x8xf32, #tpu.memory_space<vmem>>, vector<8x32x8xf32>
    %757 = vector.shape_cast %754 : vector<32x1xf32> to vector<1x32x1xf32>
    %758 = vector.broadcast %757 : vector<1x32x1xf32> to vector<8x32x8xf32>
    %759 = arith.mulf %756, %758 : vector<8x32x8xf32>
    %cst_290 = arith.constant dense<0.000000e+00> : vector<8x8xf32>
    %760 = vector.multi_reduction <add>, %759, %cst_290 [1] : vector<8x32x8xf32> to vector<8x8xf32>
    %761 = vector.broadcast %755 : vector<1x1xf32> to vector<8x8xf32>
    %762 = arith.addf %760, %761 : vector<8x8xf32>
    %cst_291 = arith.constant 0.000000e+00 : f32
    %763 = vector.broadcast %cst_291 : f32 to vector<8x8xf32>
    %764 = arith.subf %763, %762 : vector<8x8xf32>
    %765 = math.exp %764 : vector<8x8xf32>
    %cst_292 = arith.constant 1.000000e+00 : f32
    %766 = vector.broadcast %cst_292 : f32 to vector<8x8xf32>
    %767 = arith.addf %766, %765 : vector<8x8xf32>
    %768 = tpu.reciprocal %767 {approx = true} : vector<8x8xf32> -> vector<8x8xf32>
    %c0_293 = arith.constant 0 : index
    %c0_294 = arith.constant 0 : index
    %769 = vector.load %arg12[%c0_293, %c0_294] : memref<8x8xf32, #tpu.memory_space<vmem>>, vector<8x8xf32>
    tpu.vector_store %arg12[%c0_293, %c0_294], %768 {strides = array<i32>} : memref<8x8xf32, #tpu.memory_space<vmem>>, vector<8x8xf32>,
    return
  }
  func.func @transform_0(%arg0: i32) -> (i32, i32, i32) {
    %c0_i32 = arith.constant 0 : i32
    %c0_i32_0 = arith.constant 0 : i32
    %c0_i32_1 = arith.constant 0 : i32
    return %c0_i32, %c0_i32_0, %arg0 : i32, i32, i32
  }
  func.func @transform_1(%arg0: i32) -> (i32, i32) {
    %c0_i32 = arith.constant 0 : i32
    %c0_i32_0 = arith.constant 0 : i32
    %c0_i32_1 = arith.constant 0 : i32
    return %c0_i32, %c0_i32_0 : i32, i32
  }
  func.func @transform_2(%arg0: i32) -> (i32, i32) {
    %c0_i32 = arith.constant 0 : i32
    %c0_i32_0 = arith.constant 0 : i32
    %c0_i32_1 = arith.constant 0 : i32
    return %c0_i32, %c0_i32_0 : i32, i32
  }
  func.func @transform_3(%arg0: i32) -> (i32, i32) {
    %c0_i32 = arith.constant 0 : i32
    %c0_i32_0 = arith.constant 0 : i32
    %c0_i32_1 = arith.constant 0 : i32
    return %c0_i32, %c0_i32_0 : i32, i32
  }
  func.func @transform_4(%arg0: i32) -> (i32, i32) {
    %c0_i32 = arith.constant 0 : i32
    %c0_i32_0 = arith.constant 0 : i32
    %c0_i32_1 = arith.constant 0 : i32
    return %c0_i32, %c0_i32_0 : i32, i32
  }
  func.func @transform_5(%arg0: i32) -> (i32, i32) {
    %c0_i32 = arith.constant 0 : i32
    %c0_i32_0 = arith.constant 0 : i32
    %c0_i32_1 = arith.constant 0 : i32
    return %c0_i32, %c0_i32_0 : i32, i32
  }
  func.func @transform_6(%arg0: i32) -> (i32, i32) {
    %c0_i32 = arith.constant 0 : i32
    %c0_i32_0 = arith.constant 0 : i32
    %c0_i32_1 = arith.constant 0 : i32
    return %c0_i32, %c0_i32_0 : i32, i32
  }
  func.func @transform_7(%arg0: i32) -> (i32, i32) {
    %c0_i32 = arith.constant 0 : i32
    %c0_i32_0 = arith.constant 0 : i32
    %c0_i32_1 = arith.constant 0 : i32
    return %c0_i32, %c0_i32_0 : i32, i32
  }
  func.func @transform_8(%arg0: i32) -> (i32, i32) {
    %c0_i32 = arith.constant 0 : i32
    %c0_i32_0 = arith.constant 0 : i32
    %c0_i32_1 = arith.constant 0 : i32
    return %c0_i32, %c0_i32_0 : i32, i32
  }
  func.func @transform_9(%arg0: i32) -> (i32, i32) {
    %c0_i32 = arith.constant 0 : i32
    %c0_i32_0 = arith.constant 0 : i32
    %c0_i32_1 = arith.constant 0 : i32
    return %c0_i32, %c0_i32_0 : i32, i32
  }
  func.func @transform_10(%arg0: i32) -> (i32, i32) {
    %c0_i32 = arith.constant 0 : i32
    %c0_i32_0 = arith.constant 0 : i32
    %c0_i32_1 = arith.constant 0 : i32
    return %c0_i32, %c0_i32_0 : i32, i32
  }
  func.func @transform_11(%arg0: i32) -> (i32, i32) {
    %c0_i32 = arith.constant 0 : i32
    %c0_i32_0 = arith.constant 0 : i32
    return %c0_i32, %arg0 : i32, i32
  }
}

</mosaic_0001>

<bundles_post_ra>
// kernel: recurrent_matcher_forward.1
= control target key start
LH: loop header
LB: loop body
LE: loop exit
PB: predicated region body
PF: predicated region fallthrough
CT: control target
= control target key end

     0   :  { %s11387_s0 = inlined_call_operand.vmem [shape: f32[8,8,8], index: 0, kind: input, shape index: {}]   ;;  %s11388_s1 = inlined_call_operand.vmem [shape: f32[96,8], index: 1, kind: input, shape index: {}]   ;;  %s11389_s2 = inlined_call_operand.vmem [shape: f32[96,32], index: 2, kind: input, shape index: {}]   ;;  %s11390_s3 = inlined_call_operand.vmem [shape: f32[96,1], index: 3, kind: input, shape index: {}]   ;;  %s11391_s4 = inlined_call_operand.vmem [shape: f32[32,1], index: 4, kind: input, shape index: {}]   ;;  %s11392_s5 = inlined_call_operand.vmem [shape: f32[96,32], index: 5, kind: input, shape index: {}]   ;;  %s11393_s6 = inlined_call_operand.vmem [shape: f32[96,32], index: 6, kind: input, shape index: {}]   ;;  %s11394_s7 = inlined_call_operand.vmem [shape: f32[96,1], index: 7, kind: input, shape index: {}]   ;;  %s11395_s8 = inlined_call_operand.vmem [shape: f32[32,1], index: 8, kind: input, shape index: {}]   ;;  %s11396_s9 = inlined_call_operand.vmem [shape: f32[32,1], index: 9, kind: input, shape index: {}]   ;;  %s11397_s10 = inlined_call_operand.<no memory space> [shape: f32[1,1], index: 10, kind: input, shape index: {}]   ;;  %s11398_s11 = inlined_call_operand.hbm [shape: f32[8,8], index: 11, kind: output, shape index: {}]  }
   0x1   :  { %v16_v0 = vstv %s11397_s10 }
   0x2   :  { %17 = vst [vmem:[#allocation4] sm:$0x1] %v16_v0 }
   0x3   :  { %v161_v1 = vld [vmem:[%s11387_s0] sm:$0xff]  ;;  %v6516_v2 = vld [vmem:[%s11387_s0 + $0x8] sm:$0xff]  ;;  %vm162_vm0 = vcmask 64512   ;;  %v8994_v5 = vld [vmem:[%s11388_s1 + $0x10] sm:$0xff]  ;;  %v8907_v14 = vmov 0  }
   0x4   :  { %v8982_v3 = vld [vmem:[%s11388_s1] sm:$0xff]  ;;  %7378 = vmatprep.subr.mxu0 %v161_v1  ;;  %7398 = vmatprep.subr.mxu1 %v6516_v2  ;;  %v8987_v4 = vld [vmem:[%s11388_s1 + $0x8] sm:$0xff]  ;;  %v6529_v6 = vld [vmem:[%s11387_s0 + $0x10] sm:$0xff] }
   0x5   :  { %7379 = vmatpush3.msra.mxu0 %v161_v1  ;;  %7380 = vmatprep.mubr.msk.f32.mxu0 %vm162_vm0, %v8982_v3  ;;  %v9012_v7 = vld [vmem:[%s11388_s1 + $0x18] sm:$0xff]  ;;  %v9020_v9 = vld [vmem:[%s11388_s1 + $0x20] sm:$0xff]  ;;  %v6568_v11 = vld [vmem:[%s11387_s0 + $0x28] sm:$0xff] }
   0x6   :  { %7399 = vmatpush3.msra.mxu1 %v6516_v2  ;;  %7400 = vmatprep.mubr.msk.f32.mxu1 %vm162_vm0, %v8982_v3  ;;  %v6542_v8 = vld [vmem:[%s11387_s0 + $0x18] sm:$0xff]  ;;  %v6555_v10 = vld [vmem:[%s11387_s0 + $0x20] sm:$0xff]  ;;  %v9039_v12 = vld [vmem:[%s11388_s1 + $0x28] sm:$0xff] }
   0x7   :  { %7381 = vmatmul.mubr.msk.f32.vlgmr.msra.gmra.mxu0 %vm162_vm0, %v8987_v4  ;;  %7401 = vmatmul.mubr.msk.f32.vlgmr.msra.gmra.mxu1 %vm162_vm0, %v8987_v4  ;;  %v9044_v13 = vld [vmem:[%s11388_s1 + $0x30] sm:$0xff]  ;;  %v68_v15 = vld [vmem:[%s11390_s3 + $0x18] sm:$0xff]  ;;  %v66_v16 = vld [vmem:[%s11390_s3 + $0x8] sm:$0xff] }
   0x8   :  { %7383 = vmatprep.mubr.msk.f32.mxu0 %vm162_vm0, %v8994_v5  ;;  %7403 = vmatprep.mubr.msk.f32.mxu1 %vm162_vm0, %v8994_v5  ;;  %v9063_v17 = vld [vmem:[%s11388_s1 + $0x38] sm:$0xff]  ;;  %v9068_v18 = vld [vmem:[%s11388_s1 + $0x40] sm:$0xff]  ;;  %v67_v19 = vld [vmem:[%s11390_s3 + $0x10] sm:$0xff] }
   0x9   :  { %7418 = vmatprep.subr.mxu0 %v6529_v6  ;;  %7438 = vmatprep.subr.mxu1 %v6542_v8  ;;  %v65_v20 = vld [vmem:[%s11390_s3] sm:$0xff]  ;;  %v9087_v21 = vld [vmem:[%s11388_s1 + $0x48] sm:$0xff]  ;;  %v9092_v22 = vld [vmem:[%s11388_s1 + $0x50] sm:$0xff] }
   0xa   :  { %7419 = vmatpush3.msra.mxu0 %v6529_v6  ;;  %7439 = vmatpush3.msra.mxu1 %v6542_v8  ;;  %v72_v23 = vld [vmem:[%s11390_s3 + $0x38] sm:$0xff]  ;;  %v71_v24 = vld [vmem:[%s11390_s3 + $0x30] sm:$0xff]  ;;  %v70_v26 = vld [vmem:[%s11390_s3 + $0x28] sm:$0xff] }
   0xb   :  { %7384 = vmatmul.mubr.msk.f32.gmra.mxu0 %vm162_vm0, %v9012_v7  ;;  %7404 = vmatmul.mubr.msk.f32.gmra.mxu1 %vm162_vm0, %v9012_v7  ;;  %v9111_v25 = vld [vmem:[%s11388_s1 + $0x58] sm:$0xff]  ;;  %v69_v27 = vld [vmem:[%s11390_s3 + $0x20] sm:$0xff] }
   0xc   :  { %7386 = vmatprep.mubr.msk.f32.mxu0 %vm162_vm0, %v9020_v9  ;;  %7406 = vmatprep.mubr.msk.f32.mxu1 %vm162_vm0, %v9020_v9 }
   0xd   :  { %7458 = vmatprep.subr.mxu0 %v6555_v10  ;;  %7478 = vmatprep.subr.mxu1 %v6568_v11 }
   0xe   :  { %8153 = vset.pattern.permute.xlu0 %v8907_v14  ;;  %8154 = vset.pattern.permute.xlu1 %v8907_v14 }
   0xf   :  { %7387 = vmatmul.mubr.msk.f32.gmra.mxu0 %vm162_vm0, %v9039_v12  ;;  %7407 = vmatmul.mubr.msk.f32.gmra.mxu1 %vm162_vm0, %v9039_v12 }
  0x10   :  { %7389 = vmatprep.mubr.msk.f32.mxu0 %vm162_vm0, %v9044_v13  ;;  %7409 = vmatprep.mubr.msk.f32.mxu1 %vm162_vm0, %v9044_v13 }
  0x11   :  { %94 = vperm.xlu0 %8153, %v68_v15   ;;  %84 = vperm.xlu1 %8154, %v66_v16  }
  0x13   :  { %7390 = vmatmul.mubr.msk.f32.gmra.mxu0 %vm162_vm0, %v9063_v17  ;;  %7410 = vmatmul.mubr.msk.f32.gmra.mxu1 %vm162_vm0, %v9063_v17 }
  0x14   :  { %7392 = vmatprep.mubr.msk.f32.mxu0 %vm162_vm0, %v9068_v18  ;;  %7412 = vmatprep.mubr.msk.f32.mxu1 %vm162_vm0, %v9068_v18 }
  0x15   :  { %89 = vperm.xlu0 %8153, %v67_v19   ;;  %79 = vperm.xlu1 %8154, %v65_v20  }
  0x17   :  { %7393 = vmatmul.mubr.msk.f32.gmra.mxu0 %vm162_vm0, %v9087_v21  ;;  %7413 = vmatmul.mubr.msk.f32.gmra.mxu1 %vm162_vm0, %v9087_v21 }
  0x18   :  { %7395 = vmatprep.mubr.msk.f32.mxu0 %vm162_vm0, %v9092_v22  ;;  %7415 = vmatprep.mubr.msk.f32.mxu1 %vm162_vm0, %v9092_v22 }
  0x19   :  { %114 = vperm.xlu0 %8153, %v72_v23   ;;  %109 = vperm.xlu1 %8154, %v71_v24  }
  0x1a   :  { %18 = vsyncpa [#allocation6], 0  ;;  %v6581_v28 = vld [vmem:[%s11387_s0 + $0x30] sm:$0xff]  ;;  %v6594_v29 = vld [vmem:[%s11387_s0 + $0x38] sm:$0xff]  ;;  %v8908_v41 = vmov 0.0   ;;  %vm1328_vm1 = vcmask 261120  }
  0x1b   :  { %7396 = vmatmul.mubr.msk.f32.gmra.mxu0 %vm162_vm0, %v9111_v25  ;;  %7416 = vmatmul.mubr.msk.f32.gmra.mxu1 %vm162_vm0, %v9111_v25  ;;  %v76_v30 = vld [vmem:[%s11390_s3 + $0x58] sm:$0xff]  ;;  %v75_v31 = vld [vmem:[%s11390_s3 + $0x50] sm:$0xff]  ;;  %v74_v32 = vld [vmem:[%s11390_s3 + $0x48] sm:$0xff]  ;;  %vm6474_vm2 = vcmask 1041409   ;;  %vm6476_vm3 = vcmask 1042434   ;;  %vm6478_vm4 = vcmask 1043459  }
  0x1c   :  { %7420 = vmatprep.mubr.msk.f32.mxu0 %vm162_vm0, %v8982_v3  ;;  %7440 = vmatprep.mubr.msk.f32.mxu1 %vm162_vm0, %v8982_v3  ;;  %v73_v33 = vld [vmem:[%s11390_s3 + $0x40] sm:$0xff]  ;;  %v140_v34 = vld [vmem:[%s11391_s4 + $0x18] sm:$0xff]  ;;  %v139_v35 = vld [vmem:[%s11391_s4 + $0x10] sm:$0xff]  ;;  %vm6480_vm5 = vcmask 1044484   ;;  %vm6482_vm6 = vcmask 1045509   ;;  %vm6484_vm7 = vcmask 1046534  }
  0x1d   :  { %104 = vperm.xlu0 %8153, %v70_v26   ;;  %99 = vperm.xlu1 %8154, %v69_v27   ;;  %v138_v36 = vld [vmem:[%s11391_s4 + $0x8] sm:$0xff]  ;;  %v137_v37 = vld [vmem:[%s11391_s4] sm:$0xff]  ;;  %v3155_v38 = vld [vmem:[%s11394_s7 + $0x18] sm:$0xff]  ;;  %vm6486_vm8 = vcmask 1047559  }
  0x1e   :  { %v3154_v39 = vld [vmem:[%s11394_s7 + $0x10] sm:$0xff]  ;;  %v3153_v40 = vld [vmem:[%s11394_s7 + $0x8] sm:$0xff]  ;;  %v3152_v42 = vld [vmem:[%s11394_s7] sm:$0xff] }
  0x1f   :  { %7421 = vmatmul.mubr.msk.f32.vlgmr.msra.gmra.mxu0 %vm162_vm0, %v8987_v4  ;;  %7441 = vmatmul.mubr.msk.f32.vlgmr.msra.gmra.mxu1 %vm162_vm0, %v8987_v4  ;;  %v3159_v43 = vld [vmem:[%s11394_s7 + $0x38] sm:$0xff]  ;;  %v3158_v44 = vld [vmem:[%s11394_s7 + $0x30] sm:$0xff]  ;;  %v3157_v45 = vld [vmem:[%s11394_s7 + $0x28] sm:$0xff] }
  0x20   :  { %7423 = vmatprep.mubr.msk.f32.mxu0 %vm162_vm0, %v8994_v5  ;;  %7443 = vmatprep.mubr.msk.f32.mxu1 %vm162_vm0, %v8994_v5  ;;  %v3156_v46 = vld [vmem:[%s11394_s7 + $0x20] sm:$0xff]  ;;  %v3163_v47 = vld [vmem:[%s11394_s7 + $0x58] sm:$0xff]  ;;  %v3162_v48 = vld [vmem:[%s11394_s7 + $0x50] sm:$0xff] }
  0x21   :  { %7459 = vmatpush3.msra.mxu0 %v6555_v10  ;;  %7479 = vmatpush3.msra.mxu1 %v6568_v11  ;;  %v3161_v49 = vld [vmem:[%s11394_s7 + $0x48] sm:$0xff]  ;;  %v3160_v50 = vld [vmem:[%s11394_s7 + $0x40] sm:$0xff]  ;;  %v3227_v51 = vld [vmem:[%s11395_s8 + $0x18] sm:$0xff] }
  0x22   :  { %7498 = vmatprep.subr.mxu0 %v6581_v28  ;;  %7518 = vmatprep.subr.mxu1 %v6594_v29  ;;  %v3226_v52 = vld [vmem:[%s11395_s8 + $0x10] sm:$0xff]  ;;  %v3225_v53 = vld [vmem:[%s11395_s8 + $0x8] sm:$0xff]  ;;  %v3224_v54 = vld [vmem:[%s11395_s8] sm:$0xff] }
  0x23   :  { %7424 = vmatmul.mubr.msk.f32.gmra.mxu0 %vm162_vm0, %v9012_v7  ;;  %7444 = vmatmul.mubr.msk.f32.gmra.mxu1 %vm162_vm0, %v9012_v7  ;;  %v6216_v55 = vld [vmem:[%s11396_s9] sm:$0xff]  ;;  %v6217_v56 = vld [vmem:[%s11396_s9 + $0x8] sm:$0xff]  ;;  %v6218_v57 = vld [vmem:[%s11396_s9 + $0x10] sm:$0xff] }
  0x24   :  { %7426 = vmatprep.mubr.msk.f32.mxu0 %vm162_vm0, %v9020_v9  ;;  %7446 = vmatprep.mubr.msk.f32.mxu1 %vm162_vm0, %v9020_v9  ;;  %v6219_v58 = vld [vmem:[%s11396_s9 + $0x18] sm:$0xff]  ;;  %v6895_v59 = vld [vmem:[#allocation4] ss:$0 sm:$0xff]  ;;  %v9369_v61 = vld [vmem:[%s11389_s2 + $0x8] sm:$0xff] }
  0x25   :  { %134 = vperm.xlu0 %8153, %v76_v30   ;;  %129 = vperm.xlu1 %8154, %v75_v31   ;;  %v9358_v60 = vld [vmem:[%s11389_s2] sm:$0xff]  ;;  %v9376_v62 = vld [vmem:[%s11389_s2 + $0x10] sm:$0xff]  ;;  %v9385_v63 = vld [vmem:[%s11389_s2 + $0x18] sm:$0xff] }
  0x26   :  { %v9390_v0 = vld [vmem:[%s11389_s2 + $0x20] sm:$0xff]  ;;  %v9399_v1 = vld [vmem:[%s11389_s2 + $0x28] sm:$0xff]  ;;  %v9404_v2 = vld [vmem:[%s11389_s2 + $0x30] sm:$0xff] }
  0x27   :  { %7427 = vmatmul.mubr.msk.f32.gmra.mxu0 %vm162_vm0, %v9039_v12  ;;  %7447 = vmatmul.mubr.msk.f32.gmra.mxu1 %vm162_vm0, %v9039_v12  ;;  %v9432_v6 = vld [vmem:[%s11389_s2 + $0x50] sm:$0xff] }
  0x28   :  { %7429 = vmatprep.mubr.msk.f32.mxu0 %vm162_vm0, %v9044_v13  ;;  %7449 = vmatprep.mubr.msk.f32.mxu1 %vm162_vm0, %v9044_v13 }
  0x29   :  { %124 = vperm.xlu0 %8153, %v74_v32   ;;  %119 = vperm.xlu1 %8154, %v73_v33  }
  0x2b   :  { %7430 = vmatmul.mubr.msk.f32.gmra.mxu0 %vm162_vm0, %v9063_v17  ;;  %7450 = vmatmul.mubr.msk.f32.gmra.mxu1 %vm162_vm0, %v9063_v17 }
  0x2c   :  { %7432 = vmatprep.mubr.msk.f32.mxu0 %vm162_vm0, %v9068_v18  ;;  %7452 = vmatprep.mubr.msk.f32.mxu1 %vm162_vm0, %v9068_v18 }
  0x2d   :  { %158 = vperm.xlu0 %8153, %v140_v34   ;;  %153 = vperm.xlu1 %8154, %v139_v35  }
  0x2f   :  { %7433 = vmatmul.mubr.msk.f32.gmra.mxu0 %vm162_vm0, %v9087_v21  ;;  %7453 = vmatmul.mubr.msk.f32.gmra.mxu1 %vm162_vm0, %v9087_v21 }
  0x30   :  { %7435 = vmatprep.mubr.msk.f32.mxu0 %vm162_vm0, %v9092_v22  ;;  %7455 = vmatprep.mubr.msk.f32.mxu1 %vm162_vm0, %v9092_v22 }
  0x31   :  { %148 = vperm.xlu0 %8153, %v138_v36   ;;  %143 = vperm.xlu1 %8154, %v137_v37  }
  0x33   :  { %7436 = vmatmul.mubr.msk.f32.gmra.mxu0 %vm162_vm0, %v9111_v25  ;;  %7456 = vmatmul.mubr.msk.f32.gmra.mxu1 %vm162_vm0, %v9111_v25 }
  0x34   :  { %7460 = vmatprep.mubr.msk.f32.mxu0 %vm162_vm0, %v8982_v3  ;;  %7480 = vmatprep.mubr.msk.f32.mxu1 %vm162_vm0, %v8982_v3 }
  0x35   :  { %3181 = vperm.xlu0 %8153, %v3155_v38   ;;  %3176 = vperm.xlu1 %8154, %v3154_v39  }
  0x37   :  { %7461 = vmatmul.mubr.msk.f32.vlgmr.msra.gmra.mxu0 %vm162_vm0, %v8987_v4  ;;  %7481 = vmatmul.mubr.msk.f32.vlgmr.msra.gmra.mxu1 %vm162_vm0, %v8987_v4 }
  0x38   :  { %7463 = vmatprep.mubr.msk.f32.mxu0 %vm162_vm0, %v8994_v5  ;;  %7483 = vmatprep.mubr.msk.f32.mxu1 %vm162_vm0, %v8994_v5 }
  0x39   :  { %7499 = vmatpush3.msra.mxu0 %v6581_v28  ;;  %7519 = vmatpush3.msra.mxu1 %v6594_v29 }
  0x3a   :  { %7538 = vmatprep.subr.mxu0 %v8908_v41  ;;  %3171 = vperm.xlu0 %8153, %v3153_v40  }
  0x3b   :  { %7464 = vmatmul.mubr.msk.f32.gmra.mxu0 %vm162_vm0, %v9012_v7  ;;  %7484 = vmatmul.mubr.msk.f32.gmra.mxu1 %vm162_vm0, %v9012_v7 }
  0x3c   :  { %7466 = vmatprep.mubr.msk.f32.mxu0 %vm162_vm0, %v9020_v9  ;;  %7486 = vmatprep.mubr.msk.f32.mxu1 %vm162_vm0, %v9020_v9 }
  0x3d   :  { %3166 = vperm.xlu1 %8154, %v3152_v42  }
  0x3e   :  { %3201 = vperm.xlu0 %8153, %v3159_v43  }
  0x3f   :  { %7467 = vmatmul.mubr.msk.f32.gmra.mxu0 %vm162_vm0, %v9039_v12  ;;  %7487 = vmatmul.mubr.msk.f32.gmra.mxu1 %vm162_vm0, %v9039_v12 }
  0x40   :  { %7469 = vmatprep.mubr.msk.f32.mxu0 %vm162_vm0, %v9044_v13  ;;  %7489 = vmatprep.mubr.msk.f32.mxu1 %vm162_vm0, %v9044_v13 }
  0x41   :  { %3196 = vperm.xlu1 %8154, %v3158_v44  }
  0x42   :  { %3191 = vperm.xlu0 %8153, %v3157_v45  }
  0x43   :  { %7470 = vmatmul.mubr.msk.f32.gmra.mxu0 %vm162_vm0, %v9063_v17  ;;  %7490 = vmatmul.mubr.msk.f32.gmra.mxu1 %vm162_vm0, %v9063_v17 }
  0x44   :  { %7472 = vmatprep.mubr.msk.f32.mxu0 %vm162_vm0, %v9068_v18  ;;  %7492 = vmatprep.mubr.msk.f32.mxu1 %vm162_vm0, %v9068_v18 }
  0x45   :  { %3186 = vperm.xlu1 %8154, %v3156_v46  }
  0x46   :  { %3221 = vperm.xlu0 %8153, %v3163_v47  }
  0x47   :  { %7473 = vmatmul.mubr.msk.f32.gmra.mxu0 %vm162_vm0, %v9087_v21  ;;  %7493 = vmatmul.mubr.msk.f32.gmra.mxu1 %vm162_vm0, %v9087_v21 }
  0x48   :  { %7475 = vmatprep.mubr.msk.f32.mxu0 %vm162_vm0, %v9092_v22  ;;  %7495 = vmatprep.mubr.msk.f32.mxu1 %vm162_vm0, %v9092_v22 }
  0x49   :  { %3216 = vperm.xlu1 %8154, %v3162_v48  }
  0x4a   :  { %3211 = vperm.xlu0 %8153, %v3161_v49  }
  0x4b   :  { %7476 = vmatmul.mubr.msk.f32.gmra.mxu0 %vm162_vm0, %v9111_v25  ;;  %7496 = vmatmul.mubr.msk.f32.gmra.mxu1 %vm162_vm0, %v9111_v25 }
  0x4c   :  { %7500 = vmatprep.mubr.msk.f32.mxu0 %vm162_vm0, %v8982_v3  ;;  %7520 = vmatprep.mubr.msk.f32.mxu1 %vm162_vm0, %v8982_v3  ;;  %v9413_v3 = vld [vmem:[%s11389_s2 + $0x38] sm:$0xff] }
  0x4d   :  { %3206 = vperm.xlu1 %8154, %v3160_v50  }
  0x4e   :  { %3245 = vperm.xlu0 %8153, %v3227_v51  }
  0x4f   :  { %7501 = vmatmul.mubr.msk.f32.vlgmr.msra.gmra.mxu0 %vm162_vm0, %v8987_v4  ;;  %7521 = vmatmul.mubr.msk.f32.vlgmr.msra.gmra.mxu1 %vm162_vm0, %v8987_v4  ;;  %v9418_v4 = vld [vmem:[%s11389_s2 + $0x40] sm:$0xff] }
  0x50   :  { %7503 = vmatprep.mubr.msk.f32.mxu0 %vm162_vm0, %v8994_v5  ;;  %7523 = vmatprep.mubr.msk.f32.mxu1 %vm162_vm0, %v8994_v5  ;;  %v9427_v5 = vld [vmem:[%s11389_s2 + $0x48] sm:$0xff] }
  0x51   :  { %7539 = vmatpush3.msra.mxu0 %v8908_v41  ;;  %3240 = vperm.xlu1 %8154, %v3226_v52  }
  0x52   :  { %3235 = vperm.xlu0 %8153, %v3225_v53  }
  0x53   :  { %7504 = vmatmul.mubr.msk.f32.gmra.mxu0 %vm162_vm0, %v9012_v7  ;;  %7524 = vmatmul.mubr.msk.f32.gmra.mxu1 %vm162_vm0, %v9012_v7  ;;  %v9441_v7 = vld [vmem:[%s11389_s2 + $0x58] sm:$0xff] }
  0x54   :  { %7506 = vmatprep.mubr.msk.f32.mxu0 %vm162_vm0, %v9020_v9  ;;  %7526 = vmatprep.mubr.msk.f32.mxu1 %vm162_vm0, %v9020_v9 }
  0x55   :  { %3230 = vperm.xlu1 %8154, %v3224_v54  }
  0x56   :  { %6255 = vperm.xlu0 %8153, %v6216_v55  }
  0x57   :  { %7507 = vmatmul.mubr.msk.f32.gmra.mxu0 %vm162_vm0, %v9039_v12  ;;  %7527 = vmatmul.mubr.msk.f32.gmra.mxu1 %vm162_vm0, %v9039_v12 }
  0x58   :  { %7509 = vmatprep.mubr.msk.f32.mxu0 %vm162_vm0, %v9044_v13  ;;  %7529 = vmatprep.mubr.msk.f32.mxu1 %vm162_vm0, %v9044_v13 }
  0x59   :  { %6260 = vperm.xlu1 %8154, %v6217_v56  }
  0x5a   :  { %6265 = vperm.xlu0 %8153, %v6218_v57  }
  0x5b   :  { %7510 = vmatmul.mubr.msk.f32.gmra.mxu0 %vm162_vm0, %v9063_v17  ;;  %7530 = vmatmul.mubr.msk.f32.gmra.mxu1 %vm162_vm0, %v9063_v17 }
  0x5c   :  { %7512 = vmatprep.mubr.msk.f32.mxu0 %vm162_vm0, %v9068_v18  ;;  %7532 = vmatprep.mubr.msk.f32.mxu1 %vm162_vm0, %v9068_v18 }
  0x5d   :  { %6270 = vperm.xlu1 %8154, %v6219_v58  }
  0x5e   :  { %6415 = vperm.xlu0 %8153, %v6895_v59  }
  0x5f   :  { %7513 = vmatmul.mubr.msk.f32.gmra.mxu0 %vm162_vm0, %v9087_v21  ;;  %7533 = vmatmul.mubr.msk.f32.gmra.mxu1 %vm162_vm0, %v9087_v21 }
  0x60   :  { %7515 = vmatprep.mubr.msk.f32.mxu0 %vm162_vm0, %v9092_v22  ;;  %7535 = vmatprep.mubr.msk.f32.mxu1 %vm162_vm0, %v9092_v22 }
  0x63   :  { %7516 = vmatmul.mubr.msk.f32.gmra.mxu0 %vm162_vm0, %v9111_v25  ;;  %7536 = vmatmul.mubr.msk.f32.gmra.mxu1 %vm162_vm0, %v9111_v25 }
  0x64   :  { %7540 = vmatprep.mubr.msk.f32.mxu0 %vm1328_vm1, %v9358_v60  ;;  %7566 = vmatprep.mubr.msk.f32.mxu1 %vm1328_vm1, %v9358_v60 }
  0x67   :  { %7541 = vmatmul.mubr.msk.f32.vlgmr.msra.gmra.mxu0 %vm1328_vm1, %v9369_v61 }
  0x68   :  { %7543 = vmatprep.mubr.msk.f32.mxu0 %vm1328_vm1, %v9376_v62 }
  0x6b   :  { %7544 = vmatmul.mubr.msk.f32.gmra.mxu0 %vm1328_vm1, %v9385_v63 }
  0x6c   :  { %7546 = vmatprep.mubr.msk.f32.mxu0 %vm1328_vm1, %v9390_v0 }
  0x6f   :  { %7547 = vmatmul.mubr.msk.f32.gmra.mxu0 %vm1328_vm1, %v9399_v1 }
  0x70   :  { %7549 = vmatprep.mubr.msk.f32.mxu0 %vm1328_vm1, %v9404_v2 }
  0x73   :  { %7550 = vmatmul.mubr.msk.f32.gmra.mxu0 %vm1328_vm1, %v9413_v3 }
  0x74   :  { %7552 = vmatprep.mubr.msk.f32.mxu0 %vm1328_vm1, %v9418_v4 }
  0x77   :  { %7553 = vmatmul.mubr.msk.f32.gmra.mxu0 %vm1328_vm1, %v9427_v5 }
  0x78   :  { %7555 = vmatprep.mubr.msk.f32.mxu0 %vm1328_vm1, %v9432_v6 }
  0x7b   :  { %7556 = vmatmul.mubr.msk.f32.gmra.mxu0 %vm1328_vm1, %v9441_v7 }
  0x7c   :  { %7592 = vmatprep.mubr.msk.f32.mxu0 %vm1328_vm1, %v9358_v60 }
  0x8c   :  { %v9447_v8 = vpop.permute.xlu0 %94  ;;  %v9449_v9 = vpop.permute.xlu1 %84 }
  0x90   :  { %v9451_v10 = vpop.permute.xlu0 %89  ;;  %v9453_v11 = vpop.permute.xlu1 %79 }
  0x94   :  { %v9455_v12 = vpop.permute.xlu0 %114  ;;  %v9457_v13 = vpop.permute.xlu1 %109 }
  0x98   :  { %v9461_v18 = vpop.permute.xlu0 %104  ;;  %v9467_v23 = vpop.permute.xlu1 %99 }
  0xa0   :  { %v9477_v32 = vpop.permute.xlu0 %134  ;;  %v9483_v37 = vpop.permute.xlu1 %129 }
  0xa4   :  { %v9493_v47 = vpop.permute.xlu0 %124  ;;  %v9499_v52 = vpop.permute.xlu1 %119 }
  0xc7   :  { %v7382_v14 = vpop.f32.mrf.mxu0  ;;  %v7402_v15 = vpop.f32.mrf.mxu1 }
  0xc8   :  { %v271_v16 = vadd.f32 %v7382_v14, %v9449_v9  ;;  %v410_v17 = vadd.f32 %v7402_v15, %v9449_v9 }
  0xc9   :  { %v265_v19 = vpop.f32.mrf.mxu0  ;;  %v404_v20 = vpop.f32.mrf.mxu1 }
  0xca   :  { %325 = vst.msk [vmem:[#allocation2 + $0x8] sm:$0xff] %vm162_vm0, %v271_v16  ;;  %465 = vst.msk [vmem:[#allocation2 + $0x68] sm:$0xff] %vm162_vm0, %v410_v17  ;;  %v266_v21 = vadd.f32 %v265_v19, %v9453_v11  ;;  %v405_v22 = vadd.f32 %v404_v20, %v9453_v11 }
  0xcb   :  { %v7385_v24 = vpop.f32.mrf.mxu0  ;;  %v7405_v25 = vpop.f32.mrf.mxu1 }
  0xcc   :  { %324 = vst.msk [vmem:[#allocation2] sm:$0xff] %vm162_vm0, %v266_v21  ;;  %464 = vst.msk [vmem:[#allocation2 + $0x60] sm:$0xff] %vm162_vm0, %v405_v22  ;;  %v281_v26 = vadd.f32 %v7385_v24, %v9447_v8  ;;  %v420_v27 = vadd.f32 %v7405_v25, %v9447_v8 }
  0xcd   :  { %v275_v28 = vpop.f32.mrf.mxu0  ;;  %v414_v29 = vpop.f32.mrf.mxu1 }
  0xce   :  { %327 = vst.msk [vmem:[#allocation2 + $0x18] sm:$0xff] %vm162_vm0, %v281_v26  ;;  %467 = vst.msk [vmem:[#allocation2 + $0x78] sm:$0xff] %vm162_vm0, %v420_v27  ;;  %v276_v30 = vadd.f32 %v275_v28, %v9451_v10  ;;  %v415_v31 = vadd.f32 %v414_v29, %v9451_v10 }
  0xcf   :  { %v7388_v33 = vpop.f32.mrf.mxu0  ;;  %v7408_v34 = vpop.f32.mrf.mxu1 }
  0xd0   :  { %326 = vst.msk [vmem:[#allocation2 + $0x10] sm:$0xff] %vm162_vm0, %v276_v30  ;;  %466 = vst.msk [vmem:[#allocation2 + $0x70] sm:$0xff] %vm162_vm0, %v415_v31  ;;  %v291_v35 = vadd.f32 %v7388_v33, %v9461_v18  ;;  %v430_v36 = vadd.f32 %v7408_v34, %v9461_v18 }
  0xd1   :  { %v285_v38 = vpop.f32.mrf.mxu0  ;;  %v424_v39 = vpop.f32.mrf.mxu1 }
  0xd2   :  { %329 = vst.msk [vmem:[#allocation2 + $0x28] sm:$0xff] %vm162_vm0, %v291_v35  ;;  %469 = vst.msk [vmem:[#allocation2 + $0x88] sm:$0xff] %vm162_vm0, %v430_v36  ;;  %v286_v40 = vadd.f32 %v285_v38, %v9467_v23  ;;  %v425_v42 = vadd.f32 %v424_v39, %v9467_v23 }
  0xd3   :  { %v7391_v43 = vpop.f32.mrf.mxu0  ;;  %v7411_v44 = vpop.f32.mrf.mxu1 }
  0xd4   :  { %328 = vst.msk [vmem:[#allocation2 + $0x20] sm:$0xff] %vm162_vm0, %v286_v40  ;;  %468 = vst.msk [vmem:[#allocation2 + $0x80] sm:$0xff] %vm162_vm0, %v425_v42  ;;  %v301_v45 = vadd.f32 %v7391_v43, %v9455_v12  ;;  %v440_v46 = vadd.f32 %v7411_v44, %v9455_v12 }
  0xd5   :  { %v295_v48 = vpop.f32.mrf.mxu0  ;;  %v434_v49 = vpop.f32.mrf.mxu1 }
  0xd6   :  { %331 = vst.msk [vmem:[#allocation2 + $0x38] sm:$0xff] %vm162_vm0, %v301_v45  ;;  %471 = vst.msk [vmem:[#allocation2 + $0x98] sm:$0xff] %vm162_vm0, %v440_v46  ;;  %v296_v50 = vadd.f32 %v295_v48, %v9457_v13  ;;  %v435_v51 = vadd.f32 %v434_v49, %v9457_v13 }
  0xd7   :  { %v7394_v53 = vpop.f32.mrf.mxu0  ;;  %v7414_v54 = vpop.f32.mrf.mxu1 }
  0xd8   :  { %330 = vst.msk [vmem:[#allocation2 + $0x30] sm:$0xff] %vm162_vm0, %v296_v50  ;;  %470 = vst.msk [vmem:[#allocation2 + $0x90] sm:$0xff] %vm162_vm0, %v435_v51  ;;  %v311_v55 = vadd.f32 %v7394_v53, %v9493_v47  ;;  %v450_v56 = vadd.f32 %v7414_v54, %v9493_v47 }
  0xd9   :  { %v305_v57 = vpop.f32.mrf.mxu0  ;;  %v444_v58 = vpop.f32.mrf.mxu1 }
  0xda   :  { %333 = vst.msk [vmem:[#allocation2 + $0x48] sm:$0xff] %vm162_vm0, %v311_v55  ;;  %473 = vst.msk [vmem:[#allocation2 + $0xa8] sm:$0xff] %vm162_vm0, %v450_v56  ;;  %v306_v59 = vadd.f32 %v305_v57, %v9499_v52  ;;  %v445_v14 = vadd.f32 %v444_v58, %v9499_v52 }
  0xdb   :  { %v7397_v15 = vpop.f32.mrf.mxu0  ;;  %v7417_v16 = vpop.f32.mrf.mxu1 }
  0xdc   :  { %332 = vst.msk [vmem:[#allocation2 + $0x40] sm:$0xff] %vm162_vm0, %v306_v59  ;;  %472 = vst.msk [vmem:[#allocation2 + $0xa0] sm:$0xff] %vm162_vm0, %v445_v14  ;;  %v321_v17 = vadd.f32 %v7397_v15, %v9477_v32  ;;  %v460_v19 = vadd.f32 %v7417_v16, %v9477_v32 }
  0xdd   :  { %v315_v20 = vpop.f32.mrf.mxu0  ;;  %v454_v21 = vpop.f32.mrf.mxu1 }
  0xde   :  { %335 = vst.msk [vmem:[#allocation2 + $0x58] sm:$0xff] %vm162_vm0, %v321_v17  ;;  %475 = vst.msk [vmem:[#allocation2 + $0xb8] sm:$0xff] %vm162_vm0, %v460_v19  ;;  %v316_v22 = vadd.f32 %v315_v20, %v9483_v37  ;;  %v455_v24 = vadd.f32 %v454_v21, %v9483_v37 }
  0xdf   :  { %v7422_v25 = vpop.f32.mrf.mxu0  ;;  %v7442_v26 = vpop.f32.mrf.mxu1 }
  0xe0   :  { %334 = vst.msk [vmem:[#allocation2 + $0x50] sm:$0xff] %vm162_vm0, %v316_v22  ;;  %474 = vst.msk [vmem:[#allocation2 + $0xb0] sm:$0xff] %vm162_vm0, %v455_v24  ;;  %v550_v27 = vadd.f32 %v7422_v25, %v9449_v9  ;;  %v690_v28 = vadd.f32 %v7442_v26, %v9449_v9 }
  0xe1   :  { %v544_v29 = vpop.f32.mrf.mxu0  ;;  %v684_v30 = vpop.f32.mrf.mxu1 }
  0xe2   :  { %605 = vst.msk [vmem:[#allocation2 + $0xc8] sm:$0xff] %vm162_vm0, %v550_v27  ;;  %745 = vst.msk [vmem:[#allocation2 + $0x128] sm:$0xff] %vm162_vm0, %v690_v28  ;;  %v545_v31 = vadd.f32 %v544_v29, %v9453_v11  ;;  %v685_v33 = vadd.f32 %v684_v30, %v9453_v11 }
  0xe3   :  { %v7425_v34 = vpop.f32.mrf.mxu0  ;;  %v7445_v35 = vpop.f32.mrf.mxu1 }
  0xe4   :  { %604 = vst.msk [vmem:[#allocation2 + $0xc0] sm:$0xff] %vm162_vm0, %v545_v31  ;;  %744 = vst.msk [vmem:[#allocation2 + $0x120] sm:$0xff] %vm162_vm0, %v685_v33  ;;  %v560_v36 = vadd.f32 %v7425_v34, %v9447_v8  ;;  %v700_v38 = vadd.f32 %v7445_v35, %v9447_v8 }
  0xe5   :  { %v554_v39 = vpop.f32.mrf.mxu0  ;;  %v694_v40 = vpop.f32.mrf.mxu1 }
  0xe6   :  { %607 = vst.msk [vmem:[#allocation2 + $0xd8] sm:$0xff] %vm162_vm0, %v560_v36  ;;  %747 = vst.msk [vmem:[#allocation2 + $0x138] sm:$0xff] %vm162_vm0, %v700_v38  ;;  %v555_v42 = vadd.f32 %v554_v39, %v9451_v10  ;;  %v695_v43 = vadd.f32 %v694_v40, %v9451_v10 }
  0xe7   :  { %v7428_v44 = vpop.f32.mrf.mxu0  ;;  %v7448_v45 = vpop.f32.mrf.mxu1 }
  0xe8   :  { %606 = vst.msk [vmem:[#allocation2 + $0xd0] sm:$0xff] %vm162_vm0, %v555_v42  ;;  %746 = vst.msk [vmem:[#allocation2 + $0x130] sm:$0xff] %vm162_vm0, %v695_v43  ;;  %v570_v46 = vadd.f32 %v7428_v44, %v9461_v18  ;;  %v710_v48 = vadd.f32 %v7448_v45, %v9461_v18 }
  0xe9   :  { %v564_v49 = vpop.f32.mrf.mxu0  ;;  %v704_v50 = vpop.f32.mrf.mxu1 }
  0xea   :  { %609 = vst.msk [vmem:[#allocation2 + $0xe8] sm:$0xff] %vm162_vm0, %v570_v46  ;;  %749 = vst.msk [vmem:[#allocation2 + $0x148] sm:$0xff] %vm162_vm0, %v710_v48  ;;  %v565_v51 = vadd.f32 %v564_v49, %v9467_v23  ;;  %v705_v53 = vadd.f32 %v704_v50, %v9467_v23 }
  0xeb   :  { %v7431_v54 = vpop.f32.mrf.mxu0  ;;  %v7451_v55 = vpop.f32.mrf.mxu1 }
  0xec   :  { %608 = vst.msk [vmem:[#allocation2 + $0xe0] sm:$0xff] %vm162_vm0, %v565_v51  ;;  %748 = vst.msk [vmem:[#allocation2 + $0x140] sm:$0xff] %vm162_vm0, %v705_v53  ;;  %v580_v56 = vadd.f32 %v7431_v54, %v9455_v12  ;;  %v720_v57 = vadd.f32 %v7451_v55, %v9455_v12 }
  0xed   :  { %v574_v58 = vpop.f32.mrf.mxu0  ;;  %v714_v59 = vpop.f32.mrf.mxu1 }
  0xee   :  { %611 = vst.msk [vmem:[#allocation2 + $0xf8] sm:$0xff] %vm162_vm0, %v580_v56  ;;  %751 = vst.msk [vmem:[#allocation2 + $0x158] sm:$0xff] %vm162_vm0, %v720_v57  ;;  %v575_v14 = vadd.f32 %v574_v58, %v9457_v13  ;;  %v715_v15 = vadd.f32 %v714_v59, %v9457_v13 }
  0xef   :  { %v7434_v16 = vpop.f32.mrf.mxu0  ;;  %v7454_v17 = vpop.f32.mrf.mxu1 }
  0xf0   :  { %610 = vst.msk [vmem:[#allocation2 + $0xf0] sm:$0xff] %vm162_vm0, %v575_v14  ;;  %750 = vst.msk [vmem:[#allocation2 + $0x150] sm:$0xff] %vm162_vm0, %v715_v15  ;;  %v590_v19 = vadd.f32 %v7434_v16, %v9493_v47  ;;  %v730_v20 = vadd.f32 %v7454_v17, %v9493_v47 }
  0xf1   :  { %v584_v21 = vpop.f32.mrf.mxu0  ;;  %v724_v22 = vpop.f32.mrf.mxu1 }
  0xf2   :  { %613 = vst.msk [vmem:[#allocation2 + $0x108] sm:$0xff] %vm162_vm0, %v590_v19  ;;  %753 = vst.msk [vmem:[#allocation2 + $0x168] sm:$0xff] %vm162_vm0, %v730_v20  ;;  %v585_v24 = vadd.f32 %v584_v21, %v9499_v52  ;;  %v725_v25 = vadd.f32 %v724_v22, %v9499_v52 }
  0xf3   :  { %v7437_v26 = vpop.f32.mrf.mxu0  ;;  %v7457_v27 = vpop.f32.mrf.mxu1 }
  0xf4   :  { %612 = vst.msk [vmem:[#allocation2 + $0x100] sm:$0xff] %vm162_vm0, %v585_v24  ;;  %752 = vst.msk [vmem:[#allocation2 + $0x160] sm:$0xff] %vm162_vm0, %v725_v25  ;;  %v600_v28 = vadd.f32 %v7437_v26, %v9477_v32  ;;  %v740_v29 = vadd.f32 %v7457_v27, %v9477_v32 }
  0xf5   :  { %v594_v30 = vpop.f32.mrf.mxu0  ;;  %v734_v31 = vpop.f32.mrf.mxu1 }
  0xf6   :  { %615 = vst.msk [vmem:[#allocation2 + $0x118] sm:$0xff] %vm162_vm0, %v600_v28  ;;  %755 = vst.msk [vmem:[#allocation2 + $0x178] sm:$0xff] %vm162_vm0, %v740_v29  ;;  %v595_v33 = vadd.f32 %v594_v30, %v9483_v37  ;;  %v735_v34 = vadd.f32 %v734_v31, %v9483_v37 }
  0xf7   :  { %v7462_v35 = vpop.f32.mrf.mxu0  ;;  %v7482_v36 = vpop.f32.mrf.mxu1 }
  0xf8   :  { %614 = vst.msk [vmem:[#allocation2 + $0x110] sm:$0xff] %vm162_vm0, %v595_v33  ;;  %754 = vst.msk [vmem:[#allocation2 + $0x170] sm:$0xff] %vm162_vm0, %v735_v34  ;;  %v830_v38 = vadd.f32 %v7462_v35, %v9449_v9  ;;  %v970_v39 = vadd.f32 %v7482_v36, %v9449_v9 }
  0xf9   :  { %v824_v40 = vpop.f32.mrf.mxu0  ;;  %v964_v42 = vpop.f32.mrf.mxu1 }
  0xfa   :  { %885 = vst.msk [vmem:[#allocation2 + $0x188] sm:$0xff] %vm162_vm0, %v830_v38  ;;  %1025 = vst.msk [vmem:[#allocation2 + $0x1e8] sm:$0xff] %vm162_vm0, %v970_v39  ;;  %v825_v43 = vadd.f32 %v824_v40, %v9453_v11  ;;  %v965_v44 = vadd.f32 %v964_v42, %v9453_v11 }
  0xfb   :  { %v7465_v45 = vpop.f32.mrf.mxu0  ;;  %v7485_v46 = vpop.f32.mrf.mxu1 }
  0xfc   :  { %884 = vst.msk [vmem:[#allocation2 + $0x180] sm:$0xff] %vm162_vm0, %v825_v43  ;;  %1024 = vst.msk [vmem:[#allocation2 + $0x1e0] sm:$0xff] %vm162_vm0, %v965_v44  ;;  %v840_v48 = vadd.f32 %v7465_v45, %v9447_v8  ;;  %v980_v49 = vadd.f32 %v7485_v46, %v9447_v8 }
  0xfd   :  { %v834_v50 = vpop.f32.mrf.mxu0  ;;  %v974_v51 = vpop.f32.mrf.mxu1 }
  0xfe   :  { %887 = vst.msk [vmem:[#allocation2 + $0x198] sm:$0xff] %vm162_vm0, %v840_v48  ;;  %1027 = vst.msk [vmem:[#allocation2 + $0x1f8] sm:$0xff] %vm162_vm0, %v980_v49  ;;  %v835_v53 = vadd.f32 %v834_v50, %v9451_v10  ;;  %v975_v54 = vadd.f32 %v974_v51, %v9451_v10 }
  0xff   :  { %v7468_v55 = vpop.f32.mrf.mxu0  ;;  %v7488_v56 = vpop.f32.mrf.mxu1 }
 0x100   :  { %886 = vst.msk [vmem:[#allocation2 + $0x190] sm:$0xff] %vm162_vm0, %v835_v53  ;;  %1026 = vst.msk [vmem:[#allocation2 + $0x1f0] sm:$0xff] %vm162_vm0, %v975_v54  ;;  %v850_v57 = vadd.f32 %v7468_v55, %v9461_v18  ;;  %v990_v58 = vadd.f32 %v7488_v56, %v9461_v18 }
 0x101   :  { %v844_v59 = vpop.f32.mrf.mxu0  ;;  %v984_v14 = vpop.f32.mrf.mxu1 }
 0x102   :  { %889 = vst.msk [vmem:[#allocation2 + $0x1a8] sm:$0xff] %vm162_vm0, %v850_v57  ;;  %1029 = vst.msk [vmem:[#allocation2 + $0x208] sm:$0xff] %vm162_vm0, %v990_v58  ;;  %v845_v15 = vadd.f32 %v844_v59, %v9467_v23  ;;  %v985_v16 = vadd.f32 %v984_v14, %v9467_v23 }
 0x103   :  { %v7471_v17 = vpop.f32.mrf.mxu0  ;;  %v7491_v19 = vpop.f32.mrf.mxu1 }
 0x104   :  { %888 = vst.msk [vmem:[#allocation2 + $0x1a0] sm:$0xff] %vm162_vm0, %v845_v15  ;;  %1028 = vst.msk [vmem:[#allocation2 + $0x200] sm:$0xff] %vm162_vm0, %v985_v16  ;;  %v860_v20 = vadd.f32 %v7471_v17, %v9455_v12  ;;  %v1000_v21 = vadd.f32 %v7491_v19, %v9455_v12 }
 0x105   :  { %v854_v22 = vpop.f32.mrf.mxu0  ;;  %v994_v24 = vpop.f32.mrf.mxu1 }
 0x106   :  { %891 = vst.msk [vmem:[#allocation2 + $0x1b8] sm:$0xff] %vm162_vm0, %v860_v20  ;;  %1031 = vst.msk [vmem:[#allocation2 + $0x218] sm:$0xff] %vm162_vm0, %v1000_v21  ;;  %v855_v25 = vadd.f32 %v854_v22, %v9457_v13  ;;  %v995_v26 = vadd.f32 %v994_v24, %v9457_v13 }
 0x107   :  { %v7474_v27 = vpop.f32.mrf.mxu0  ;;  %v7494_v28 = vpop.f32.mrf.mxu1 }
 0x108   :  { %890 = vst.msk [vmem:[#allocation2 + $0x1b0] sm:$0xff] %vm162_vm0, %v855_v25  ;;  %1030 = vst.msk [vmem:[#allocation2 + $0x210] sm:$0xff] %vm162_vm0, %v995_v26  ;;  %v870_v29 = vadd.f32 %v7474_v27, %v9493_v47  ;;  %v1010_v30 = vadd.f32 %v7494_v28, %v9493_v47 }
 0x109   :  { %v864_v31 = vpop.f32.mrf.mxu0  ;;  %v1004_v33 = vpop.f32.mrf.mxu1 }
 0x10a   :  { %893 = vst.msk [vmem:[#allocation2 + $0x1c8] sm:$0xff] %vm162_vm0, %v870_v29  ;;  %1033 = vst.msk [vmem:[#allocation2 + $0x228] sm:$0xff] %vm162_vm0, %v1010_v30  ;;  %v865_v34 = vadd.f32 %v864_v31, %v9499_v52  ;;  %v1005_v35 = vadd.f32 %v1004_v33, %v9499_v52 }
 0x10b   :  { %v7477_v36 = vpop.f32.mrf.mxu0  ;;  %v7497_v38 = vpop.f32.mrf.mxu1 }
 0x10c   :  { %892 = vst.msk [vmem:[#allocation2 + $0x1c0] sm:$0xff] %vm162_vm0, %v865_v34  ;;  %1032 = vst.msk [vmem:[#allocation2 + $0x220] sm:$0xff] %vm162_vm0, %v1005_v35  ;;  %v880_v39 = vadd.f32 %v7477_v36, %v9477_v32  ;;  %v1020_v40 = vadd.f32 %v7497_v38, %v9477_v32 }
 0x10d   :  { %v874_v42 = vpop.f32.mrf.mxu0  ;;  %v1014_v43 = vpop.f32.mrf.mxu1 }
 0x10e   :  { %895 = vst.msk [vmem:[#allocation2 + $0x1d8] sm:$0xff] %vm162_vm0, %v880_v39  ;;  %1035 = vst.msk [vmem:[#allocation2 + $0x238] sm:$0xff] %vm162_vm0, %v1020_v40  ;;  %v875_v44 = vadd.f32 %v874_v42, %v9483_v37  ;;  %v1015_v45 = vadd.f32 %v1014_v43, %v9483_v37 }
 0x10f   :  { %v7502_v46 = vpop.f32.mrf.mxu0  ;;  %v7522_v48 = vpop.f32.mrf.mxu1 }
 0x110   :  { %894 = vst.msk [vmem:[#allocation2 + $0x1d0] sm:$0xff] %vm162_vm0, %v875_v44  ;;  %1034 = vst.msk [vmem:[#allocation2 + $0x230] sm:$0xff] %vm162_vm0, %v1015_v45  ;;  %v1110_v49 = vadd.f32 %v7502_v46, %v9449_v9  ;;  %v1250_v50 = vadd.f32 %v7522_v48, %v9449_v9  ;;  %v1317_v45 = vld [vmem:[#allocation2 + $0x8] sm:$0xff] }
 0x111   :  { %v1104_v51 = vpop.f32.mrf.mxu0  ;;  %v1244_v53 = vpop.f32.mrf.mxu1 }
 0x112   :  { %1165 = vst.msk [vmem:[#allocation2 + $0x248] sm:$0xff] %vm162_vm0, %v1110_v49  ;;  %1305 = vst.msk [vmem:[#allocation2 + $0x2a8] sm:$0xff] %vm162_vm0, %v1250_v50  ;;  %v1105_v54 = vadd.f32 %v1104_v51, %v9453_v11  ;;  %v1245_v55 = vadd.f32 %v1244_v53, %v9453_v11  ;;  %v1316_v49 = vld [vmem:[#allocation2] sm:$0xff]  ;;  %v1319_v53 = vld [vmem:[#allocation2 + $0x18] sm:$0xff] }
 0x113   :  { %v7505_v56 = vpop.f32.mrf.mxu0  ;;  %v7525_v57 = vpop.f32.mrf.mxu1 }
 0x114   :  { %1164 = vst.msk [vmem:[#allocation2 + $0x240] sm:$0xff] %vm162_vm0, %v1105_v54  ;;  %1304 = vst.msk [vmem:[#allocation2 + $0x2a0] sm:$0xff] %vm162_vm0, %v1245_v55  ;;  %v1120_v58 = vadd.f32 %v7505_v56, %v9447_v8  ;;  %v1260_v9 = vadd.f32 %v7525_v57, %v9447_v8 }
 0x115   :  { %v1114_v59 = vpop.f32.mrf.mxu0  ;;  %v1254_v14 = vpop.f32.mrf.mxu1 }
 0x116   :  { %1167 = vst.msk [vmem:[#allocation2 + $0x258] sm:$0xff] %vm162_vm0, %v1120_v58  ;;  %1307 = vst.msk [vmem:[#allocation2 + $0x2b8] sm:$0xff] %vm162_vm0, %v1260_v9  ;;  %v1115_v15 = vadd.f32 %v1114_v59, %v9451_v10  ;;  %v1255_v11 = vadd.f32 %v1254_v14, %v9451_v10  ;;  %v1318_v58 = vld [vmem:[#allocation2 + $0x10] sm:$0xff] }
 0x117   :  { %v7508_v16 = vpop.f32.mrf.mxu0  ;;  %v7528_v17 = vpop.f32.mrf.mxu1 }
 0x118   :  { %1166 = vst.msk [vmem:[#allocation2 + $0x250] sm:$0xff] %vm162_vm0, %v1115_v15  ;;  %1306 = vst.msk [vmem:[#allocation2 + $0x2b0] sm:$0xff] %vm162_vm0, %v1255_v11  ;;  %v1130_v19 = vadd.f32 %v7508_v16, %v9461_v18  ;;  %v1270_v8 = vadd.f32 %v7528_v17, %v9461_v18  ;;  %v1321_v15 = vld [vmem:[#allocation2 + $0x28] sm:$0xff] }
 0x119   :  { %v1124_v20 = vpop.f32.mrf.mxu0  ;;  %v1264_v21 = vpop.f32.mrf.mxu1 }
 0x11a   :  { %1169 = vst.msk [vmem:[#allocation2 + $0x268] sm:$0xff] %vm162_vm0, %v1130_v19  ;;  %1309 = vst.msk [vmem:[#allocation2 + $0x2c8] sm:$0xff] %vm162_vm0, %v1270_v8  ;;  %v1125_v22 = vadd.f32 %v1124_v20, %v9467_v23  ;;  %v1265_v10 = vadd.f32 %v1264_v21, %v9467_v23  ;;  %v1320_v8 = vld [vmem:[#allocation2 + $0x20] sm:$0xff] }
 0x11b   :  { %v7511_v24 = vpop.f32.mrf.mxu0  ;;  %v7531_v25 = vpop.f32.mrf.mxu1 }
 0x11c   :  { %1168 = vst.msk [vmem:[#allocation2 + $0x260] sm:$0xff] %vm162_vm0, %v1125_v22  ;;  %1308 = vst.msk [vmem:[#allocation2 + $0x2c0] sm:$0xff] %vm162_vm0, %v1265_v10  ;;  %v1140_v26 = vadd.f32 %v7511_v24, %v9455_v12  ;;  %v1280_v18 = vadd.f32 %v7531_v25, %v9455_v12  ;;  %v1323_v24 = vld [vmem:[#allocation2 + $0x38] sm:$0xff] }
 0x11d   :  { %v1134_v27 = vpop.f32.mrf.mxu0  ;;  %v1274_v28 = vpop.f32.mrf.mxu1 }
 0x11e   :  { %1171 = vst.msk [vmem:[#allocation2 + $0x278] sm:$0xff] %vm162_vm0, %v1140_v26  ;;  %1311 = vst.msk [vmem:[#allocation2 + $0x2d8] sm:$0xff] %vm162_vm0, %v1280_v18  ;;  %v1135_v29 = vadd.f32 %v1134_v27, %v9457_v13  ;;  %v1275_v23 = vadd.f32 %v1274_v28, %v9457_v13  ;;  %v1322_v28 = vld [vmem:[#allocation2 + $0x30] sm:$0xff] }
 0x11f   :  { %v7514_v30 = vpop.f32.mrf.mxu0  ;;  %v7534_v31 = vpop.f32.mrf.mxu1 }
 0x120   :  { %1170 = vst.msk [vmem:[#allocation2 + $0x270] sm:$0xff] %vm162_vm0, %v1135_v29  ;;  %1310 = vst.msk [vmem:[#allocation2 + $0x2d0] sm:$0xff] %vm162_vm0, %v1275_v23  ;;  %v1150_v33 = vadd.f32 %v7514_v30, %v9493_v47  ;;  %v1290_v12 = vadd.f32 %v7534_v31, %v9493_v47 }
 0x121   :  { %v1144_v34 = vpop.f32.mrf.mxu0  ;;  %v1284_v35 = vpop.f32.mrf.mxu1 }
 0x122   :  { %1173 = vst.msk [vmem:[#allocation2 + $0x288] sm:$0xff] %vm162_vm0, %v1150_v33  ;;  %1313 = vst.msk [vmem:[#allocation2 + $0x2e8] sm:$0xff] %vm162_vm0, %v1290_v12  ;;  %v1145_v36 = vadd.f32 %v1144_v34, %v9499_v52  ;;  %v1285_v13 = vadd.f32 %v1284_v35, %v9499_v52 }
 0x123   :  { %v7517_v38 = vpop.f32.mrf.mxu0  ;;  %v7537_v39 = vpop.f32.mrf.mxu1 }
 0x124   :  { %1172 = vst.msk [vmem:[#allocation2 + $0x280] sm:$0xff] %vm162_vm0, %v1145_v36  ;;  %1312 = vst.msk [vmem:[#allocation2 + $0x2e0] sm:$0xff] %vm162_vm0, %v1285_v13  ;;  %v1160_v40 = vadd.f32 %v7517_v38, %v9477_v32  ;;  %v1300_v47 = vadd.f32 %v7537_v39, %v9477_v32 }
 0x125   :  { %v1154_v42 = vpop.f32.mrf.mxu0  ;;  %v1294_v43 = vpop.f32.mrf.mxu1 }
 0x126   :  { %1175 = vst.msk [vmem:[#allocation2 + $0x298] sm:$0xff] %vm162_vm0, %v1160_v40  ;;  %1315 = vst.msk [vmem:[#allocation2 + $0x2f8] sm:$0xff] %vm162_vm0, %v1300_v47  ;;  %v1155_v44 = vadd.f32 %v1154_v42, %v9483_v37  ;;  %v1295_v52 = vadd.f32 %v1294_v43, %v9483_v37 }
 0x127   :  { %v7542_v46 = vpop.f32.mrf.mxu0 }
 0x128   :  { %1174 = vst.msk [vmem:[#allocation2 + $0x290] sm:$0xff] %vm162_vm0, %v1155_v44  ;;  %1314 = vst.msk [vmem:[#allocation2 + $0x2f0] sm:$0xff] %vm162_vm0, %v1295_v52  ;;  %v1491_v48 = vadd.f32 %v7542_v46, %v1317_v45  ;;  %v9663_v44 = vpop.permute.xlu0 %158  ;;  %v9665_v45 = vpop.permute.xlu1 %153 }
 0x129   :  { %v1431_v50 = vpop.f32.mrf.mxu0 }
 0x12a   :  { %v1495_v32 = vsub.f32 0.0, %v1491_v48  ;;  %v1490_v51 = vadd.f32 %v1431_v50, %v1316_v49 }
 0x12b   :  { %v7545_v54 = vpop.f32.mrf.mxu0 }
 0x12c   :  { %v1500_v55 = vmul.f32 1.442695, %v1495_v32  ;;  %v1494_v56 = vsub.f32 0.0, %v1490_v51  ;;  %v1493_v57 = vadd.f32 %v7545_v54, %v1319_v53  ;;  %v9667_v32 = vpop.permute.xlu0 %148 }
 0x12d   :  { %v1441_v9 = vpop.f32.mrf.mxu0 }
 0x12e   :  { %8155 = vpow2.f32 %v1500_v55  ;;  %v1498_v37 = vmul.f32 1.442695, %v1494_v56  ;;  %v1497_v59 = vsub.f32 0.0, %v1493_v57  ;;  %v1492_v14 = vadd.f32 %v1441_v9, %v1318_v58  ;;  %v9670_v57 = vpop.permute.xlu1 %143 }
 0x12f   :  { %v7548_v11 = vpop.f32.mrf.mxu0 }
 0x130   :  { %8157 = vpow2.f32 %v1498_v37  ;;  %v1504_v16 = vmul.f32 1.442695, %v1497_v59  ;;  %v1496_v17 = vsub.f32 0.0, %v1492_v14  ;;  %v1515_v19 = vadd.f32 %v7548_v11, %v1321_v15  ;;  %v1325_v15 = vld [vmem:[#allocation2 + $0x48] sm:$0xff] }
 0x131   :  { %v1451_v20 = vpop.f32.mrf.mxu0 }
 0x132   :  { %8159 = vpow2.f32 %v1504_v16  ;;  %v1502_v21 = vmul.f32 1.442695, %v1496_v17  ;;  %v1519_v22 = vsub.f32 0.0, %v1515_v19  ;;  %v1514_v10 = vadd.f32 %v1451_v20, %v1320_v8  ;;  %v1324_v20 = vld [vmem:[#allocation2 + $0x40] sm:$0xff] }
 0x133   :  { %v7551_v25 = vpop.f32.mrf.mxu0 }
 0x134   :  { %8161 = vpow2.f32 %v1502_v21  ;;  %v1524_v26 = vmul.f32 1.442695, %v1519_v22  ;;  %v1518_v18 = vsub.f32 0.0, %v1514_v10  ;;  %v1517_v27 = vadd.f32 %v7551_v25, %v1323_v24  ;;  %v1327_v25 = vld [vmem:[#allocation2 + $0x58] sm:$0xff] }
 0x135   :  { %v1461_v29 = vpop.f32.mrf.mxu0 }
 0x136   :  { %v1522_v23 = vmul.f32 1.442695, %v1518_v18  ;;  %v1521_v30 = vsub.f32 0.0, %v1517_v27  ;;  %v1516_v31 = vadd.f32 %v1461_v29, %v1322_v28  ;;  %8163 = vpow2.f32 %v1524_v26  ;;  %v1326_v27 = vld [vmem:[#allocation2 + $0x50] sm:$0xff] }
 0x137   :  { %v7554_v42 = vpop.f32.mrf.mxu0 }
 0x138   :  { %v1528_v33 = vmul.f32 1.442695, %v1521_v30  ;;  %v1520_v12 = vsub.f32 0.0, %v1516_v31  ;;  %8165 = vpow2.f32 %v1522_v23  ;;  %v1539_v55 = vadd.f32 %v7554_v42, %v9667_v32 }
 0x139   :  { %v1471_v46 = vpop.f32.mrf.mxu0 }
 0x13a   :  { %v1526_v34 = vmul.f32 1.442695, %v1520_v12  ;;  %8167 = vpow2.f32 %v1528_v33  ;;  %v1538_v37 = vadd.f32 %v1471_v46, %v9670_v57 }
 0x13b   :  { %v8156_v35 = vpop.eup %8155  ;;  %v7557_v51 = vpop.f32.mrf.mxu0 }
 0x13c   :  { %v1507_v36 = vadd.f32 1.0, %v8156_v35  ;;  %8169 = vpow2.f32 %v1526_v34  ;;  %v1541_v19 = vadd.f32 %v7557_v51, %v9663_v44 }
 0x13d   :  { %v8158_v13 = vpop.eup %8157  ;;  %v1481_v11 = vpop.f32.mrf.mxu0 }
 0x13e   :  { %8171 = vrcp.f32 %v1507_v36  ;;  %v1506_v38 = vadd.f32 1.0, %v8158_v13  ;;  %v1540_v10 = vadd.f32 %v1481_v11, %v9665_v45 }
 0x13f   :  { %v8160_v39 = vpop.eup %8159 }
 0x140   :  { %8173 = vrcp.f32 %v1506_v38  ;;  %v1509_v40 = vadd.f32 1.0, %v8160_v39 }
 0x141   :  { %v8162_v47 = vpop.eup %8161 }
 0x142   :  { %8175 = vrcp.f32 %v1509_v40  ;;  %v1508_v43 = vadd.f32 1.0, %v8162_v47 }
 0x143   :  { %v8164_v52 = vpop.eup %8163 }
 0x144   :  { %8177 = vrcp.f32 %v1508_v43  ;;  %v1531_v50 = vadd.f32 1.0, %v8164_v52 }
 0x145   :  { %v8166_v48 = vpop.eup %8165 }
 0x146   :  { %v1530_v54 = vadd.f32 1.0, %v8166_v48  ;;  %8179 = vrcp.f32 %v1531_v50 }
 0x147   :  { %v8168_v49 = vpop.eup %8167 }
 0x148   :  { %v1533_v58 = vadd.f32 1.0, %v8168_v49  ;;  %8181 = vrcp.f32 %v1530_v54 }
 0x149   :  { %v8170_v53 = vpop.eup %8169 }
 0x14a   :  { %v1532_v14 = vadd.f32 1.0, %v8170_v53  ;;  %8183 = vrcp.f32 %v1533_v58 }
 0x14b   :  { %v8172_v56 = vpop.eup %8171 }
 0x14c   :  { %v1543_v9 = vmul.f32 %v8172_v56, %v1539_v55 }
 0x14d   :  { %v8174_v59 = vpop.eup %8173 }
 0x14e   :  { %v1547_v16 = vadd.f32 %v1543_v9, %v1325_v15  ;;  %v1542_v17 = vmul.f32 %v8174_v59, %v1538_v37  ;;  %v1576_v9 = vld [vmem:[#allocation2 + $0x70] sm:$0xff] }
 0x14f   :  { %v8176_v8 = vpop.eup %8175 }
 0x150   :  { %8185 = vtanh.f32 %v1547_v16  ;;  %v1546_v21 = vadd.f32 %v1542_v17, %v1324_v20  ;;  %v1545_v22 = vmul.f32 %v8176_v8, %v1541_v19  ;;  %v1578_v17 = vld [vmem:[#allocation2 + $0x80] sm:$0xff] }
 0x151   :  { %v8178_v24 = vpop.eup %8177  ;;  %8187 = vrcp.f32 %v1532_v14  ;;  %v1579_v14 = vld [vmem:[#allocation2 + $0x88] sm:$0xff] }
 0x152   :  { %8189 = vtanh.f32 %v1546_v21  ;;  %v1549_v26 = vadd.f32 %v1545_v22, %v1327_v25  ;;  %v1544_v18 = vmul.f32 %v8178_v24, %v1540_v10  ;;  %v1581_v22 = vld [vmem:[#allocation2 + $0x98] sm:$0xff] }
 0x153   :  { %v8180_v29 = vpop.eup %8179 }
 0x154   :  { %8191 = vtanh.f32 %v1549_v26  ;;  %v1548_v28 = vadd.f32 %v1544_v18, %v1326_v27  ;;  %v1555_v31 = vsub.f32 1.0, %v8180_v29  ;;  %v1563_v35 = vmul.f32 0.0, %v8180_v29  ;;  %v1580_v18 = vld [vmem:[#allocation2 + $0x90] sm:$0xff] }
 0x155   :  { %v8182_v23 = vpop.eup %8181 }
 0x156   :  { %8193 = vtanh.f32 %v1548_v28  ;;  %v1554_v36 = vsub.f32 1.0, %v8182_v23  ;;  %v1562_v47 = vmul.f32 0.0, %v8182_v23 }
 0x157   :  { %v8184_v30 = vpop.eup %8183 }
 0x158   :  { %v1557_v38 = vsub.f32 1.0, %v8184_v30  ;;  %v1565_v52 = vmul.f32 0.0, %v8184_v30 }
 0x15d   :  { %v8186_v33 = vpop.eup %8185 }
 0x15e   :  { %v8188_v12 = vpop.eup %8187  ;;  %v1559_v34 = vmul.f32 %v8186_v33, %v1555_v31 }
 0x15f   :  { %v8190_v13 = vpop.eup %8189  ;;  %v1556_v46 = vsub.f32 1.0, %v8188_v12  ;;  %v1564_v53 = vmul.f32 0.0, %v8188_v12 }
 0x160   :  { %v9675_v39 = vadd.f32 %v1563_v35, %v1559_v34  ;;  %v1558_v40 = vmul.f32 %v8190_v13, %v1554_v36 }
 0x161   :  { %v8192_v42 = vpop.eup %8191 }
 0x162   :  { %v1561_v43 = vmul.f32 %v8192_v42, %v1557_v38  ;;  %1571 = vst.msk [vmem:[#allocation3 + $0x8] sm:$0xff] %vm162_vm0, %v9675_v39  ;;  %v9679_v48 = vadd.f32 %v1562_v47, %v1558_v40 }
 0x163   :  { %v8194_v49 = vpop.eup %8193 }
 0x164   :  { %v9681_v50 = vadd.f32 %v1565_v52, %v1561_v43  ;;  %v1560_v51 = vmul.f32 %v8194_v49, %v1556_v46  ;;  %1570 = vst.msk [vmem:[#allocation3] sm:$0xff] %vm162_vm0, %v9679_v48 }
 0x166   :  { %1573 = vst.msk [vmem:[#allocation3 + $0x18] sm:$0xff] %vm162_vm0, %v9681_v50  ;;  %7558 = vmatprep.subr.mxu1 %v9681_v50  ;;  %v9688_v54 = vadd.f32 %v1564_v53, %v1560_v51 }
 0x167   :  { %7559 = vmatpush3.msra.mxu1 %v9681_v50 }
 0x168   :  { %1572 = vst.msk [vmem:[#allocation3 + $0x10] sm:$0xff] %vm162_vm0, %v9688_v54  ;;  %7560 = vmatprep.subr.mxu1 %v9688_v54 }
 0x169   :  { %7561 = vmatpush3.msra.mxu1 %v9688_v54 }
 0x16a   :  { %7562 = vmatprep.subr.mxu1 %v9675_v39 }
 0x16b   :  { %7563 = vmatpush3.msra.mxu1 %v9675_v39 }
 0x16c   :  { %7564 = vmatprep.subr.mxu1 %v9679_v48 }
 0x16d   :  { %7565 = vmatpush3.msra.mxu1 %v9679_v48 }
 0x16e   :  { %7567 = vmatmul.mubr.msk.f32.vlgmr.msra.gmra.mxu1 %vm1328_vm1, %v9369_v61  ;;  %v1575_v61 = vld [vmem:[#allocation2 + $0x68] sm:$0xff] }
 0x16f   :  { %7569 = vmatprep.mubr.msk.f32.mxu1 %vm1328_vm1, %v9376_v62 }
 0x172   :  { %7570 = vmatmul.mubr.msk.f32.gmra.mxu1 %vm1328_vm1, %v9385_v63 }
 0x173   :  { %7572 = vmatprep.mubr.msk.f32.mxu1 %vm1328_vm1, %v9390_v0  ;;  %v1574_v0 = vld [vmem:[#allocation2 + $0x60] sm:$0xff] }
 0x176   :  { %7573 = vmatmul.mubr.msk.f32.gmra.mxu1 %vm1328_vm1, %v9399_v1 }
 0x177   :  { %7575 = vmatprep.mubr.msk.f32.mxu1 %vm1328_vm1, %v9404_v2 }
 0x17a   :  { %7576 = vmatmul.mubr.msk.f32.gmra.mxu1 %vm1328_vm1, %v9413_v3 }
 0x17b   :  { %7578 = vmatprep.mubr.msk.f32.mxu1 %vm1328_vm1, %v9418_v4  ;;  %v1577_v4 = vld [vmem:[#allocation2 + $0x78] sm:$0xff] }
 0x17e   :  { %7579 = vmatmul.mubr.msk.f32.gmra.mxu1 %vm1328_vm1, %v9427_v5 }
 0x17f   :  { %7581 = vmatprep.mubr.msk.f32.mxu1 %vm1328_vm1, %v9432_v6 }
 0x182   :  { %7582 = vmatmul.mubr.msk.f32.gmra.mxu1 %vm1328_vm1, %v9441_v7 }
 0x183   :  { %7618 = vmatprep.mubr.msk.f32.mxu1 %vm1328_vm1, %v9358_v60 }
 0x22e   :  { %v7568_v62 = vpop.f32.mrf.mxu1 }
 0x22f   :  { %v1712_v63 = vadd.f32 %v7568_v62, %v1575_v61 }
 0x230   :  { %v1652_v1 = vpop.f32.mrf.mxu1 }
 0x231   :  { %v1716_v2 = vsub.f32 0.0, %v1712_v63  ;;  %v1711_v3 = vadd.f32 %v1652_v1, %v1574_v0 }
 0x232   :  { %v7571_v55 = vpop.f32.mrf.mxu1 }
 0x233   :  { %v1721_v56 = vmul.f32 1.442695, %v1716_v2  ;;  %v1715_v5 = vsub.f32 0.0, %v1711_v3  ;;  %v1714_v58 = vadd.f32 %v7571_v55, %v1577_v4 }
 0x234   :  { %v1662_v6 = vpop.f32.mrf.mxu1 }
 0x235   :  { %8195 = vpow2.f32 %v1721_v56  ;;  %v1719_v37 = vmul.f32 1.442695, %v1715_v5  ;;  %v1718_v7 = vsub.f32 0.0, %v1714_v58  ;;  %v1713_v59 = vadd.f32 %v1662_v6, %v1576_v9  ;;  %v1583_v56 = vld [vmem:[#allocation2 + $0xa8] sm:$0xff] }
 0x236   :  { %v7574_v60 = vpop.f32.mrf.mxu1 }
 0x237   :  { %8197 = vpow2.f32 %v1719_v37  ;;  %v1725_v15 = vmul.f32 1.442695, %v1718_v7  ;;  %v1717_v11 = vsub.f32 0.0, %v1713_v59  ;;  %v1736_v16 = vadd.f32 %v7574_v60, %v1579_v14  ;;  %v1582_v7 = vld [vmem:[#allocation2 + $0xa0] sm:$0xff] }
 0x238   :  { %v1672_v19 = vpop.f32.mrf.mxu1 }
 0x239   :  { %8199 = vpow2.f32 %v1725_v15  ;;  %v1723_v8 = vmul.f32 1.442695, %v1717_v11  ;;  %v1740_v20 = vsub.f32 0.0, %v1736_v16  ;;  %v1735_v21 = vadd.f32 %v1672_v19, %v1578_v17  ;;  %v1585_v11 = vld [vmem:[#allocation2 + $0xb8] sm:$0xff]  ;;  %v1584_v19 = vld [vmem:[#allocation2 + $0xb0] sm:$0xff] }
 0x23a   :  { %v7577_v10 = vpop.f32.mrf.mxu1 }
 0x23b   :  { %8201 = vpow2.f32 %v1723_v8  ;;  %v1745_v24 = vmul.f32 1.442695, %v1740_v20  ;;  %v1739_v25 = vsub.f32 0.0, %v1735_v21  ;;  %v1738_v26 = vadd.f32 %v7577_v10, %v1581_v22 }
 0x23c   :  { %v1682_v27 = vpop.f32.mrf.mxu1 }
 0x23d   :  { %v1743_v28 = vmul.f32 1.442695, %v1739_v25  ;;  %v1742_v29 = vsub.f32 0.0, %v1738_v26  ;;  %v1737_v23 = vadd.f32 %v1682_v27, %v1580_v18  ;;  %8203 = vpow2.f32 %v1745_v24 }
 0x23e   :  { %v7580_v47 = vpop.f32.mrf.mxu1 }
 0x23f   :  { %v1749_v30 = vmul.f32 1.442695, %v1742_v29  ;;  %v1741_v31 = vsub.f32 0.0, %v1737_v23  ;;  %8205 = vpow2.f32 %v1743_v28  ;;  %v1760_v63 = vadd.f32 %v7580_v47, %v9667_v32  ;;  %v9772_v47 = vld [vmem:[%s11389_s2 + $0x18] sm:$0xff] }
 0x240   :  { %v1692_v52 = vpop.f32.mrf.mxu1 }
 0x241   :  { %v1747_v33 = vmul.f32 1.442695, %v1741_v31  ;;  %8207 = vpow2.f32 %v1749_v30  ;;  %v1759_v3 = vadd.f32 %v1692_v52, %v9670_v57  ;;  %v9793_v52 = vld [vmem:[%s11389_s2 + $0x30] sm:$0xff] }
 0x242   :  { %v8196_v12 = vpop.eup %8195  ;;  %v7583_v53 = vpop.f32.mrf.mxu1 }
 0x243   :  { %v1728_v34 = vadd.f32 1.0, %v8196_v12  ;;  %8209 = vpow2.f32 %v1747_v33  ;;  %v1762_v6 = vadd.f32 %v7583_v53, %v9663_v44  ;;  %v9821_v53 = vld [vmem:[%s11389_s2 + $0x50] sm:$0xff] }
 0x244   :  { %v8198_v35 = vpop.eup %8197  ;;  %v1702_v5 = vpop.f32.mrf.mxu1 }
 0x245   :  { %8211 = vrcp.f32 %v1728_v34  ;;  %v1727_v36 = vadd.f32 1.0, %v8198_v35  ;;  %v1761_v60 = vadd.f32 %v1702_v5, %v9665_v45 }
 0x246   :  { %v8200_v13 = vpop.eup %8199 }
 0x247   :  { %8213 = vrcp.f32 %v1727_v36  ;;  %v1730_v38 = vadd.f32 1.0, %v8200_v13 }
 0x248   :  { %v8202_v40 = vpop.eup %8201 }
 0x249   :  { %8215 = vrcp.f32 %v1730_v38  ;;  %v1729_v42 = vadd.f32 1.0, %v8202_v40 }
 0x24a   :  { %v8204_v43 = vpop.eup %8203 }
 0x24b   :  { %8217 = vrcp.f32 %v1729_v42  ;;  %v1752_v51 = vadd.f32 1.0, %v8204_v43  ;;  %v9779_v42 = vld [vmem:[%s11389_s2 + $0x20] sm:$0xff]  ;;  %v9786_v43 = vld [vmem:[%s11389_s2 + $0x28] sm:$0xff] }
 0x24c   :  { %v8206_v46 = vpop.eup %8205 }
 0x24d   :  { %v1751_v62 = vadd.f32 1.0, %v8206_v46  ;;  %8219 = vrcp.f32 %v1752_v51  ;;  %v9800_v46 = vld [vmem:[%s11389_s2 + $0x38] sm:$0xff]  ;;  %v9814_v51 = vld [vmem:[%s11389_s2 + $0x48] sm:$0xff] }
 0x24e   :  { %v8208_v49 = vpop.eup %8207 }
 0x24f   :  { %v1754_v1 = vadd.f32 1.0, %v8208_v49  ;;  %8221 = vrcp.f32 %v1751_v62  ;;  %v9807_v49 = vld [vmem:[%s11389_s2 + $0x40] sm:$0xff] }
 0x250   :  { %v8210_v61 = vpop.eup %8209  ;;  %v9835_v62 = vld [vmem:[%s11389_s2] sm:$0xff] }
 0x251   :  { %v1753_v55 = vadd.f32 1.0, %v8210_v61  ;;  %8223 = vrcp.f32 %v1754_v1  ;;  %v9828_v61 = vld [vmem:[%s11389_s2 + $0x58] sm:$0xff] }
 0x252   :  { %v8212_v0 = vpop.eup %8211 }
 0x253   :  { %v1764_v2 = vmul.f32 %v8212_v0, %v1760_v63  ;;  %v1797_v63 = vld [vmem:[#allocation2 + $0xc8] sm:$0xff] }
 0x254   :  { %v8214_v4 = vpop.eup %8213 }
 0x255   :  { %v1768_v58 = vadd.f32 %v1764_v2, %v1583_v56  ;;  %v1763_v9 = vmul.f32 %v8214_v4, %v1759_v3  ;;  %v1796_v2 = vld [vmem:[#allocation2 + $0xc0] sm:$0xff]  ;;  %v1799_v56 = vld [vmem:[#allocation2 + $0xd8] sm:$0xff] }
 0x256   :  { %v8216_v37 = vpop.eup %8215 }
 0x257   :  { %8225 = vtanh.f32 %v1768_v58  ;;  %v1767_v59 = vadd.f32 %v1763_v9, %v1582_v7  ;;  %v1766_v14 = vmul.f32 %v8216_v37, %v1762_v6  ;;  %v1798_v37 = vld [vmem:[#allocation2 + $0xd0] sm:$0xff] }
 0x258   :  { %v8218_v15 = vpop.eup %8217  ;;  %8227 = vrcp.f32 %v1753_v55 }
 0x259   :  { %8229 = vtanh.f32 %v1767_v59  ;;  %v1770_v16 = vadd.f32 %v1766_v14, %v1585_v11  ;;  %v1765_v17 = vmul.f32 %v8218_v15, %v1761_v60  ;;  %v1801_v15 = vld [vmem:[#allocation2 + $0xe8] sm:$0xff] }
 0x25a   :  { %v8220_v20 = vpop.eup %8219 }
 0x25b   :  { %8231 = vtanh.f32 %v1770_v16  ;;  %v1769_v8 = vadd.f32 %v1765_v17, %v1584_v19  ;;  %v1776_v10 = vsub.f32 1.0, %v8220_v20  ;;  %v1784_v18 = vmul.f32 %v8220_v20, %v9675_v39 }
 0x25c   :  { %v8222_v21 = vpop.eup %8221 }
 0x25d   :  { %8233 = vtanh.f32 %v1769_v8  ;;  %v1775_v27 = vsub.f32 1.0, %v8222_v21  ;;  %v1783_v31 = vmul.f32 %v8222_v21, %v9679_v48  ;;  %v1800_v8 = vld [vmem:[#allocation2 + $0xe0] sm:$0xff] }
 0x25e   :  { %v8224_v22 = vpop.eup %8223 }
 0x25f   :  { %v1778_v29 = vsub.f32 1.0, %v8224_v22  ;;  %v1786_v34 = vmul.f32 %v8224_v22, %v9681_v50  ;;  %v9758_v50 = vld [vmem:[%s11389_s2 + $0x8] sm:$0xff] }
 0x264   :  { %v8226_v24 = vpop.eup %8225 }
 0x265   :  { %v8228_v25 = vpop.eup %8227  ;;  %v1780_v26 = vmul.f32 %v8226_v24, %v1776_v10  ;;  %v1803_v24 = vld [vmem:[#allocation2 + $0xf8] sm:$0xff] }
 0x266   :  { %v8230_v28 = vpop.eup %8229  ;;  %v1777_v35 = vsub.f32 1.0, %v8228_v25  ;;  %v1785_v40 = vmul.f32 %v8228_v25, %v9688_v54  ;;  %v9765_v54 = vld [vmem:[%s11389_s2 + $0x10] sm:$0xff] }
 0x267   :  { %v9728_v23 = vadd.f32 %v1784_v18, %v1780_v26  ;;  %v1779_v30 = vmul.f32 %v8230_v28, %v1775_v27  ;;  %v1802_v28 = vld [vmem:[#allocation2 + $0xf0] sm:$0xff] }
 0x268   :  { %v8232_v33 = vpop.eup %8231 }
 0x269   :  { %v1782_v12 = vmul.f32 %v8232_v33, %v1778_v29  ;;  %1793 = vst.msk [vmem:[#allocation3 + $0x28] sm:$0xff] %vm162_vm0, %v9728_v23  ;;  %v9734_v36 = vadd.f32 %v1783_v31, %v1779_v30 }
 0x26a   :  { %v8234_v13 = vpop.eup %8233 }
 0x26b   :  { %v9736_v39 = vadd.f32 %v1786_v34, %v1782_v12  ;;  %v1781_v38 = vmul.f32 %v8234_v13, %v1777_v35  ;;  %1792 = vst.msk [vmem:[#allocation3 + $0x20] sm:$0xff] %vm162_vm0, %v9734_v36 }
 0x26d   :  { %1795 = vst.msk [vmem:[#allocation3 + $0x38] sm:$0xff] %vm162_vm0, %v9736_v39  ;;  %7584 = vmatprep.subr.mxu0 %v9736_v39  ;;  %v9744_v48 = vadd.f32 %v1785_v40, %v1781_v38 }
 0x26e   :  { %7585 = vmatpush3.msra.mxu0 %v9736_v39 }
 0x26f   :  { %1794 = vst.msk [vmem:[#allocation3 + $0x30] sm:$0xff] %vm162_vm0, %v9744_v48  ;;  %7586 = vmatprep.subr.mxu0 %v9744_v48 }
 0x270   :  { %7587 = vmatpush3.msra.mxu0 %v9744_v48 }
 0x271   :  { %7588 = vmatprep.subr.mxu0 %v9728_v23 }
 0x272   :  { %7589 = vmatpush3.msra.mxu0 %v9728_v23 }
 0x273   :  { %7590 = vmatprep.subr.mxu0 %v9734_v36 }
 0x274   :  { %7591 = vmatpush3.msra.mxu0 %v9734_v36 }
 0x275   :  { %7593 = vmatmul.mubr.msk.f32.vlgmr.msra.gmra.mxu0 %vm1328_vm1, %v9758_v50 }
 0x276   :  { %7595 = vmatprep.mubr.msk.f32.mxu0 %vm1328_vm1, %v9765_v54 }
 0x279   :  { %7596 = vmatmul.mubr.msk.f32.gmra.mxu0 %vm1328_vm1, %v9772_v47 }
 0x27a   :  { %7598 = vmatprep.mubr.msk.f32.mxu0 %vm1328_vm1, %v9779_v42 }
 0x27d   :  { %7599 = vmatmul.mubr.msk.f32.gmra.mxu0 %vm1328_vm1, %v9786_v43 }
 0x27e   :  { %7601 = vmatprep.mubr.msk.f32.mxu0 %vm1328_vm1, %v9793_v52 }
 0x281   :  { %7602 = vmatmul.mubr.msk.f32.gmra.mxu0 %vm1328_vm1, %v9800_v46 }
 0x282   :  { %7604 = vmatprep.mubr.msk.f32.mxu0 %vm1328_vm1, %v9807_v49 }
 0x285   :  { %7605 = vmatmul.mubr.msk.f32.gmra.mxu0 %vm1328_vm1, %v9814_v51 }
 0x286   :  { %7607 = vmatprep.mubr.msk.f32.mxu0 %vm1328_vm1, %v9821_v53 }
 0x289   :  { %7608 = vmatmul.mubr.msk.f32.gmra.mxu0 %vm1328_vm1, %v9828_v61 }
 0x28a   :  { %7644 = vmatprep.mubr.msk.f32.mxu0 %vm1328_vm1, %v9835_v62 }
 0x335   :  { %v7594_v0 = vpop.f32.mrf.mxu0 }
 0x336   :  { %v1934_v1 = vadd.f32 %v7594_v0, %v1797_v63 }
 0x337   :  { %v1874_v3 = vpop.f32.mrf.mxu0 }
 0x338   :  { %v1938_v4 = vsub.f32 0.0, %v1934_v1  ;;  %v1933_v55 = vadd.f32 %v1874_v3, %v1796_v2 }
 0x339   :  { %v7597_v5 = vpop.f32.mrf.mxu0 }
 0x33a   :  { %v1943_v58 = vmul.f32 1.442695, %v1938_v4  ;;  %v1937_v9 = vsub.f32 0.0, %v1933_v55  ;;  %v1936_v6 = vadd.f32 %v7597_v5, %v1799_v56 }
 0x33b   :  { %v1884_v7 = vpop.f32.mrf.mxu0 }
 0x33c   :  { %8235 = vpow2.f32 %v1943_v58  ;;  %v1941_v59 = vmul.f32 1.442695, %v1937_v9  ;;  %v1940_v14 = vsub.f32 0.0, %v1936_v6  ;;  %v1935_v60 = vadd.f32 %v1884_v7, %v1798_v37 }
 0x33d   :  { %v7600_v11 = vpop.f32.mrf.mxu0 }
 0x33e   :  { %8237 = vpow2.f32 %v1941_v59  ;;  %v1947_v16 = vmul.f32 1.442695, %v1940_v14  ;;  %v1939_v17 = vsub.f32 0.0, %v1935_v60  ;;  %v1958_v19 = vadd.f32 %v7600_v11, %v1801_v15 }
 0x33f   :  { %v1894_v20 = vpop.f32.mrf.mxu0 }
 0x340   :  { %8239 = vpow2.f32 %v1947_v16  ;;  %v1945_v21 = vmul.f32 1.442695, %v1939_v17  ;;  %v1962_v22 = vsub.f32 0.0, %v1958_v19  ;;  %v1957_v10 = vadd.f32 %v1894_v20, %v1800_v8  ;;  %v1805_v19 = vld [vmem:[#allocation2 + $0x108] sm:$0xff] }
 0x341   :  { %v7603_v25 = vpop.f32.mrf.mxu0 }
 0x342   :  { %8241 = vpow2.f32 %v1945_v21  ;;  %v1967_v26 = vmul.f32 1.442695, %v1962_v22  ;;  %v1961_v18 = vsub.f32 0.0, %v1957_v10  ;;  %v1960_v27 = vadd.f32 %v7603_v25, %v1803_v24  ;;  %v1804_v24 = vld [vmem:[#allocation2 + $0x100] sm:$0xff] }
 0x343   :  { %v1904_v29 = vpop.f32.mrf.mxu0 }
 0x344   :  { %v1965_v30 = vmul.f32 1.442695, %v1961_v18  ;;  %v1964_v31 = vsub.f32 0.0, %v1960_v27  ;;  %v1959_v33 = vadd.f32 %v1904_v29, %v1802_v28  ;;  %8243 = vpow2.f32 %v1967_v26  ;;  %v1807_v28 = vld [vmem:[#allocation2 + $0x118] sm:$0xff] }
 0x345   :  { %v7606_v3 = vpop.f32.mrf.mxu0 }
 0x346   :  { %v1971_v12 = vmul.f32 1.442695, %v1964_v31  ;;  %v1963_v34 = vsub.f32 0.0, %v1959_v33  ;;  %8245 = vpow2.f32 %v1965_v30  ;;  %v1982_v59 = vadd.f32 %v7606_v3, %v9667_v32  ;;  %v1806_v31 = vld [vmem:[#allocation2 + $0x110] sm:$0xff] }
 0x347   :  { %v1914_v56 = vpop.f32.mrf.mxu0 }
 0x348   :  { %v1969_v35 = vmul.f32 1.442695, %v1963_v34  ;;  %8247 = vpow2.f32 %v1971_v12  ;;  %v1981_v11 = vadd.f32 %v1914_v56, %v9670_v57 }
 0x349   :  { %v8236_v13 = vpop.eup %8235  ;;  %v7609_v6 = vpop.f32.mrf.mxu0 }
 0x34a   :  { %v1950_v38 = vadd.f32 1.0, %v8236_v13  ;;  %8249 = vpow2.f32 %v1969_v35  ;;  %v1984_v22 = vadd.f32 %v7609_v6, %v9663_v44 }
 0x34b   :  { %v8238_v40 = vpop.eup %8237  ;;  %v1924_v8 = vpop.f32.mrf.mxu0 }
 0x34c   :  { %8251 = vrcp.f32 %v1950_v38  ;;  %v1949_v63 = vadd.f32 1.0, %v8238_v40  ;;  %v1983_v18 = vadd.f32 %v1924_v8, %v9665_v45 }
 0x34d   :  { %v8240_v0 = vpop.eup %8239 }
 0x34e   :  { %8253 = vrcp.f32 %v1949_v63  ;;  %v1952_v1 = vadd.f32 1.0, %v8240_v0 }
 0x34f   :  { %v8242_v2 = vpop.eup %8241 }
 0x350   :  { %8255 = vrcp.f32 %v1952_v1  ;;  %v1951_v4 = vadd.f32 1.0, %v8242_v2 }
 0x351   :  { %v8244_v55 = vpop.eup %8243 }
 0x352   :  { %8257 = vrcp.f32 %v1951_v4  ;;  %v1974_v9 = vadd.f32 1.0, %v8244_v55 }
 0x353   :  { %v8246_v5 = vpop.eup %8245 }
 0x354   :  { %v1973_v7 = vadd.f32 1.0, %v8246_v5  ;;  %8259 = vrcp.f32 %v1974_v9 }
 0x355   :  { %v8248_v58 = vpop.eup %8247 }
 0x356   :  { %v1976_v60 = vadd.f32 1.0, %v8248_v58  ;;  %8261 = vrcp.f32 %v1973_v7 }
 0x357   :  { %v8250_v37 = vpop.eup %8249 }
 0x358   :  { %v1975_v17 = vadd.f32 1.0, %v8250_v37  ;;  %8263 = vrcp.f32 %v1976_v60 }
 0x359   :  { %v8252_v14 = vpop.eup %8251 }
 0x35a   :  { %v1986_v15 = vmul.f32 %v8252_v14, %v1982_v59 }
 0x35b   :  { %v8254_v16 = vpop.eup %8253 }
 0x35c   :  { %v1990_v20 = vadd.f32 %v1986_v15, %v1805_v19  ;;  %v1985_v21 = vmul.f32 %v8254_v16, %v1981_v11  ;;  %v2018_v15 = vld [vmem:[#allocation2 + $0x120] sm:$0xff]  ;;  %v2021_v19 = vld [vmem:[#allocation2 + $0x138] sm:$0xff] }
 0x35d   :  { %v8256_v10 = vpop.eup %8255 }
 0x35e   :  { %8265 = vtanh.f32 %v1990_v20  ;;  %v1989_v25 = vadd.f32 %v1985_v21, %v1804_v24  ;;  %v1988_v26 = vmul.f32 %v8256_v10, %v1984_v22  ;;  %v2020_v10 = vld [vmem:[#allocation2 + $0x130] sm:$0xff] }
 0x35f   :  { %v8258_v27 = vpop.eup %8257  ;;  %8267 = vrcp.f32 %v1975_v17 }
 0x360   :  { %8269 = vtanh.f32 %v1989_v25  ;;  %v1992_v29 = vadd.f32 %v1988_v26, %v1807_v28  ;;  %v1987_v30 = vmul.f32 %v8258_v27, %v1983_v18  ;;  %v2023_v27 = vld [vmem:[#allocation2 + $0x148] sm:$0xff] }
 0x361   :  { %v8260_v12 = vpop.eup %8259 }
 0x362   :  { %8271 = vtanh.f32 %v1992_v29  ;;  %v1991_v33 = vadd.f32 %v1987_v30, %v1806_v31  ;;  %v1998_v13 = vsub.f32 1.0, %v8260_v12  ;;  %v2006_v0 = vmul.f32 %v8260_v12, %v9728_v23 }
 0x363   :  { %v8262_v34 = vpop.eup %8261 }
 0x364   :  { %8273 = vtanh.f32 %v1991_v33  ;;  %v1997_v1 = vsub.f32 1.0, %v8262_v34  ;;  %v2005_v56 = vmul.f32 %v8262_v34, %v9734_v36  ;;  %v2022_v33 = vld [vmem:[#allocation2 + $0x140] sm:$0xff] }
 0x365   :  { %v8264_v35 = vpop.eup %8263 }
 0x366   :  { %v2000_v3 = vsub.f32 1.0, %v8264_v35  ;;  %v2008_v9 = vmul.f32 %v8264_v35, %v9736_v39  ;;  %v2019_v39 = vld [vmem:[#allocation2 + $0x128] sm:$0xff] }
 0x36b   :  { %v8266_v38 = vpop.eup %8265 }
 0x36c   :  { %v8268_v40 = vpop.eup %8267  ;;  %v2002_v63 = vmul.f32 %v8266_v38, %v1998_v13  ;;  %v2025_v38 = vld [vmem:[#allocation2 + $0x158] sm:$0xff] }
 0x36d   :  { %v8270_v2 = vpop.eup %8269  ;;  %v1999_v6 = vsub.f32 1.0, %v8268_v40  ;;  %v2007_v14 = vmul.f32 %v8268_v40, %v9744_v48 }
 0x36e   :  { %v9844_v4 = vadd.f32 %v2006_v0, %v2002_v63  ;;  %v2001_v55 = vmul.f32 %v8270_v2, %v1997_v1  ;;  %v2024_v2 = vld [vmem:[#allocation2 + $0x150] sm:$0xff] }
 0x36f   :  { %v8272_v5 = vpop.eup %8271 }
 0x370   :  { %v2004_v58 = vmul.f32 %v8272_v5, %v2000_v3  ;;  %2015 = vst.msk [vmem:[#allocation3 + $0x48] sm:$0xff] %vm162_vm0, %v9844_v4  ;;  %v9850_v37 = vadd.f32 %v2005_v56, %v2001_v55 }
 0x371   :  { %v8274_v7 = vpop.eup %8273 }
 0x372   :  { %v9852_v23 = vadd.f32 %v2008_v9, %v2004_v58  ;;  %v2003_v59 = vmul.f32 %v8274_v7, %v1999_v6  ;;  %2014 = vst.msk [vmem:[#allocation3 + $0x40] sm:$0xff] %vm162_vm0, %v9850_v37 }
 0x374   :  { %2017 = vst.msk [vmem:[#allocation3 + $0x58] sm:$0xff] %vm162_vm0, %v9852_v23  ;;  %7610 = vmatprep.subr.mxu1 %v9852_v23  ;;  %v9860_v36 = vadd.f32 %v2007_v14, %v2003_v59 }
 0x375   :  { %7611 = vmatpush3.msra.mxu1 %v9852_v23 }
 0x376   :  { %2016 = vst.msk [vmem:[#allocation3 + $0x50] sm:$0xff] %vm162_vm0, %v9860_v36  ;;  %7612 = vmatprep.subr.mxu1 %v9860_v36 }
 0x377   :  { %7613 = vmatpush3.msra.mxu1 %v9860_v36 }
 0x378   :  { %7614 = vmatprep.subr.mxu1 %v9844_v4 }
 0x379   :  { %7615 = vmatpush3.msra.mxu1 %v9844_v4 }
 0x37a   :  { %7616 = vmatprep.subr.mxu1 %v9850_v37 }
 0x37b   :  { %7617 = vmatpush3.msra.mxu1 %v9850_v37 }
 0x37c   :  { %7619 = vmatmul.mubr.msk.f32.vlgmr.msra.gmra.mxu1 %vm1328_vm1, %v9758_v50 }
 0x37d   :  { %7621 = vmatprep.mubr.msk.f32.mxu1 %vm1328_vm1, %v9765_v54 }
 0x380   :  { %7622 = vmatmul.mubr.msk.f32.gmra.mxu1 %vm1328_vm1, %v9772_v47 }
 0x381   :  { %7624 = vmatprep.mubr.msk.f32.mxu1 %vm1328_vm1, %v9779_v42 }
 0x384   :  { %7625 = vmatmul.mubr.msk.f32.gmra.mxu1 %vm1328_vm1, %v9786_v43 }
 0x385   :  { %7627 = vmatprep.mubr.msk.f32.mxu1 %vm1328_vm1, %v9793_v52 }
 0x388   :  { %7628 = vmatmul.mubr.msk.f32.gmra.mxu1 %vm1328_vm1, %v9800_v46 }
 0x389   :  { %7630 = vmatprep.mubr.msk.f32.mxu1 %vm1328_vm1, %v9807_v49 }
 0x38c   :  { %7631 = vmatmul.mubr.msk.f32.gmra.mxu1 %vm1328_vm1, %v9814_v51 }
 0x38d   :  { %7633 = vmatprep.mubr.msk.f32.mxu1 %vm1328_vm1, %v9821_v53 }
 0x390   :  { %7634 = vmatmul.mubr.msk.f32.gmra.mxu1 %vm1328_vm1, %v9828_v61 }
 0x391   :  { %7670 = vmatprep.mubr.msk.f32.mxu1 %vm1328_vm1, %v9835_v62 }
 0x43c   :  { %v7620_v48 = vpop.f32.mrf.mxu1 }
 0x43d   :  { %v2156_v60 = vadd.f32 %v7620_v48, %v2019_v39 }
 0x43e   :  { %v2096_v11 = vpop.f32.mrf.mxu1 }
 0x43f   :  { %v2160_v16 = vsub.f32 0.0, %v2156_v60  ;;  %v2155_v17 = vadd.f32 %v2096_v11, %v2018_v15 }
 0x440   :  { %v7623_v8 = vpop.f32.mrf.mxu1 }
 0x441   :  { %v2165_v20 = vmul.f32 1.442695, %v2160_v16  ;;  %v2159_v21 = vsub.f32 0.0, %v2155_v17  ;;  %v2158_v22 = vadd.f32 %v7623_v8, %v2021_v19 }
 0x442   :  { %v2106_v24 = vpop.f32.mrf.mxu1 }
 0x443   :  { %8275 = vpow2.f32 %v2165_v20  ;;  %v2163_v25 = vmul.f32 1.442695, %v2159_v21  ;;  %v2162_v26 = vsub.f32 0.0, %v2158_v22  ;;  %v2157_v18 = vadd.f32 %v2106_v24, %v2020_v10 }
 0x444   :  { %v7626_v28 = vpop.f32.mrf.mxu1 }
 0x445   :  { %8277 = vpow2.f32 %v2163_v25  ;;  %v2169_v29 = vmul.f32 1.442695, %v2162_v26  ;;  %v2161_v30 = vsub.f32 0.0, %v2157_v18  ;;  %v2180_v31 = vadd.f32 %v7626_v28, %v2023_v27 }
 0x446   :  { %v2116_v12 = vpop.f32.mrf.mxu1 }
 0x447   :  { %8279 = vpow2.f32 %v2169_v29  ;;  %v2167_v34 = vmul.f32 1.442695, %v2161_v30  ;;  %v2184_v35 = vsub.f32 0.0, %v2180_v31  ;;  %v2179_v13 = vadd.f32 %v2116_v12, %v2022_v33  ;;  %v2027_v31 = vld [vmem:[#allocation2 + $0x168] sm:$0xff] }
 0x448   :  { %v7629_v40 = vpop.f32.mrf.mxu1 }
 0x449   :  { %8281 = vpow2.f32 %v2167_v34  ;;  %v2189_v63 = vmul.f32 1.442695, %v2184_v35  ;;  %v2183_v0 = vsub.f32 0.0, %v2179_v13  ;;  %v2182_v1 = vadd.f32 %v7629_v40, %v2025_v38  ;;  %v2026_v38 = vld [vmem:[#allocation2 + $0x160] sm:$0xff] }
 0x44a   :  { %v2126_v3 = vpop.f32.mrf.mxu1 }
 0x44b   :  { %v2187_v55 = vmul.f32 1.442695, %v2183_v0  ;;  %v2186_v56 = vsub.f32 0.0, %v2182_v1  ;;  %v2181_v5 = vadd.f32 %v2126_v3, %v2024_v2  ;;  %8283 = vpow2.f32 %v2189_v63  ;;  %v2029_v2 = vld [vmem:[#allocation2 + $0x178] sm:$0xff] }
 0x44c   :  { %v7632_v11 = vpop.f32.mrf.mxu1 }
 0x44d   :  { %v2193_v58 = vmul.f32 1.442695, %v2186_v56  ;;  %v2185_v9 = vsub.f32 0.0, %v2181_v5  ;;  %8285 = vpow2.f32 %v2187_v55  ;;  %v2204_v25 = vadd.f32 %v7632_v11, %v9667_v32  ;;  %v2028_v56 = vld [vmem:[#allocation2 + $0x170] sm:$0xff] }
 0x44e   :  { %v2136_v19 = vpop.f32.mrf.mxu1 }
 0x44f   :  { %v2191_v6 = vmul.f32 1.442695, %v2185_v9  ;;  %8287 = vpow2.f32 %v2193_v58  ;;  %v2203_v28 = vadd.f32 %v2136_v19, %v9670_v57 }
 0x450   :  { %v8276_v7 = vpop.eup %8275  ;;  %v7635_v22 = vpop.f32.mrf.mxu1 }
 0x451   :  { %v2172_v59 = vadd.f32 1.0, %v8276_v7  ;;  %8289 = vpow2.f32 %v2191_v6  ;;  %v2206_v35 = vadd.f32 %v7635_v22, %v9663_v44 }
 0x452   :  { %v8278_v14 = vpop.eup %8277  ;;  %v2146_v33 = vpop.f32.mrf.mxu1 }
 0x453   :  { %8291 = vrcp.f32 %v2172_v59  ;;  %v2171_v39 = vadd.f32 1.0, %v8278_v14  ;;  %v2205_v0 = vadd.f32 %v2146_v33, %v9665_v45 }
 0x454   :  { %v8280_v48 = vpop.eup %8279 }
 0x455   :  { %8293 = vrcp.f32 %v2171_v39  ;;  %v2174_v60 = vadd.f32 1.0, %v8280_v48 }
 0x456   :  { %v8282_v15 = vpop.eup %8281 }
 0x457   :  { %8295 = vrcp.f32 %v2174_v60  ;;  %v2173_v16 = vadd.f32 1.0, %v8282_v15 }
 0x458   :  { %v8284_v17 = vpop.eup %8283 }
 0x459   :  { %8297 = vrcp.f32 %v2173_v16  ;;  %v2196_v21 = vadd.f32 1.0, %v8284_v17 }
 0x45a   :  { %v8286_v8 = vpop.eup %8285 }
 0x45b   :  { %v2195_v24 = vadd.f32 1.0, %v8286_v8  ;;  %8299 = vrcp.f32 %v2196_v21 }
 0x45c   :  { %v8288_v20 = vpop.eup %8287 }
 0x45d   :  { %v2198_v18 = vadd.f32 1.0, %v8288_v20  ;;  %8301 = vrcp.f32 %v2195_v24 }
 0x45e   :  { %v8290_v10 = vpop.eup %8289 }
 0x45f   :  { %v2197_v30 = vadd.f32 1.0, %v8290_v10  ;;  %8303 = vrcp.f32 %v2198_v18 }
 0x460   :  { %v8292_v26 = vpop.eup %8291 }
 0x461   :  { %v2208_v27 = vmul.f32 %v8292_v26, %v2204_v25 }
 0x462   :  { %v8294_v29 = vpop.eup %8293 }
 0x463   :  { %v2212_v12 = vadd.f32 %v2208_v27, %v2027_v31  ;;  %v2207_v34 = vmul.f32 %v8294_v29, %v2203_v28  ;;  %v2240_v27 = vld [vmem:[#allocation2 + $0x180] sm:$0xff]  ;;  %v2243_v31 = vld [vmem:[#allocation2 + $0x198] sm:$0xff] }
 0x464   :  { %v8296_v13 = vpop.eup %8295 }
 0x465   :  { %8305 = vtanh.f32 %v2212_v12  ;;  %v2211_v40 = vadd.f32 %v2207_v34, %v2026_v38  ;;  %v2210_v63 = vmul.f32 %v8296_v13, %v2206_v35  ;;  %v2242_v13 = vld [vmem:[#allocation2 + $0x190] sm:$0xff] }
 0x466   :  { %v8298_v1 = vpop.eup %8297  ;;  %8307 = vrcp.f32 %v2197_v30 }
 0x467   :  { %8309 = vtanh.f32 %v2211_v40  ;;  %v2214_v3 = vadd.f32 %v2210_v63, %v2029_v2  ;;  %v2209_v55 = vmul.f32 %v8298_v1, %v2205_v0  ;;  %v2245_v1 = vld [vmem:[#allocation2 + $0x1a8] sm:$0xff] }
 0x468   :  { %v8300_v58 = vpop.eup %8299 }
 0x469   :  { %8311 = vtanh.f32 %v2214_v3  ;;  %v2213_v5 = vadd.f32 %v2209_v55, %v2028_v56  ;;  %v2220_v7 = vsub.f32 1.0, %v8300_v58  ;;  %v2228_v48 = vmul.f32 %v8300_v58, %v9844_v4 }
 0x46a   :  { %v8302_v9 = vpop.eup %8301 }
 0x46b   :  { %8313 = vtanh.f32 %v2213_v5  ;;  %v2219_v60 = vsub.f32 1.0, %v8302_v9  ;;  %v2227_v19 = vmul.f32 %v8302_v9, %v9850_v37  ;;  %v2244_v5 = vld [vmem:[#allocation2 + $0x1a0] sm:$0xff] }
 0x46c   :  { %v8304_v6 = vpop.eup %8303 }
 0x46d   :  { %v2222_v11 = vsub.f32 1.0, %v8304_v6  ;;  %v2230_v21 = vmul.f32 %v8304_v6, %v9852_v23  ;;  %v2241_v23 = vld [vmem:[#allocation2 + $0x188] sm:$0xff] }
 0x472   :  { %v8306_v59 = vpop.eup %8305 }
 0x473   :  { %v8308_v14 = vpop.eup %8307  ;;  %v2224_v39 = vmul.f32 %v8306_v59, %v2220_v7  ;;  %v2247_v59 = vld [vmem:[#allocation2 + $0x1b8] sm:$0xff] }
 0x474   :  { %v8310_v15 = vpop.eup %8309  ;;  %v2221_v22 = vsub.f32 1.0, %v8308_v14  ;;  %v2229_v26 = vmul.f32 %v8308_v14, %v9860_v36 }
 0x475   :  { %v9900_v16 = vadd.f32 %v2228_v48, %v2224_v39  ;;  %v2223_v17 = vmul.f32 %v8310_v15, %v2219_v60  ;;  %v2246_v15 = vld [vmem:[#allocation2 + $0x1b0] sm:$0xff] }
 0x476   :  { %v8312_v8 = vpop.eup %8311 }
 0x477   :  { %v2226_v20 = vmul.f32 %v8312_v8, %v2222_v11  ;;  %2237 = vst.msk [vmem:[#allocation3 + $0x68] sm:$0xff] %vm162_vm0, %v9900_v16  ;;  %v9906_v10 = vadd.f32 %v2227_v19, %v2223_v17 }
 0x478   :  { %v8314_v24 = vpop.eup %8313 }
 0x479   :  { %v9908_v4 = vadd.f32 %v2230_v21, %v2226_v20  ;;  %v2225_v25 = vmul.f32 %v8314_v24, %v2221_v22  ;;  %2236 = vst.msk [vmem:[#allocation3 + $0x60] sm:$0xff] %vm162_vm0, %v9906_v10 }
 0x47b   :  { %2239 = vst.msk [vmem:[#allocation3 + $0x78] sm:$0xff] %vm162_vm0, %v9908_v4  ;;  %7636 = vmatprep.subr.mxu0 %v9908_v4  ;;  %v9916_v37 = vadd.f32 %v2229_v26, %v2225_v25 }
 0x47c   :  { %7637 = vmatpush3.msra.mxu0 %v9908_v4 }
 0x47d   :  { %2238 = vst.msk [vmem:[#allocation3 + $0x70] sm:$0xff] %vm162_vm0, %v9916_v37  ;;  %7638 = vmatprep.subr.mxu0 %v9916_v37 }
 0x47e   :  { %7639 = vmatpush3.msra.mxu0 %v9916_v37 }
 0x47f   :  { %7640 = vmatprep.subr.mxu0 %v9900_v16 }
 0x480   :  { %7641 = vmatpush3.msra.mxu0 %v9900_v16 }
 0x481   :  { %7642 = vmatprep.subr.mxu0 %v9906_v10 }
 0x482   :  { %7643 = vmatpush3.msra.mxu0 %v9906_v10 }
 0x483   :  { %7645 = vmatmul.mubr.msk.f32.vlgmr.msra.gmra.mxu0 %vm1328_vm1, %v9758_v50 }
 0x484   :  { %7647 = vmatprep.mubr.msk.f32.mxu0 %vm1328_vm1, %v9765_v54 }
 0x487   :  { %7648 = vmatmul.mubr.msk.f32.gmra.mxu0 %vm1328_vm1, %v9772_v47 }
 0x488   :  { %7650 = vmatprep.mubr.msk.f32.mxu0 %vm1328_vm1, %v9779_v42 }
 0x48b   :  { %7651 = vmatmul.mubr.msk.f32.gmra.mxu0 %vm1328_vm1, %v9786_v43 }
 0x48c   :  { %7653 = vmatprep.mubr.msk.f32.mxu0 %vm1328_vm1, %v9793_v52 }
 0x48f   :  { %7654 = vmatmul.mubr.msk.f32.gmra.mxu0 %vm1328_vm1, %v9800_v46 }
 0x490   :  { %7656 = vmatprep.mubr.msk.f32.mxu0 %vm1328_vm1, %v9807_v49 }
 0x493   :  { %7657 = vmatmul.mubr.msk.f32.gmra.mxu0 %vm1328_vm1, %v9814_v51 }
 0x494   :  { %7659 = vmatprep.mubr.msk.f32.mxu0 %vm1328_vm1, %v9821_v53 }
 0x497   :  { %7660 = vmatmul.mubr.msk.f32.gmra.mxu0 %vm1328_vm1, %v9828_v61 }
 0x498   :  { %7696 = vmatprep.mubr.msk.f32.mxu0 %vm1328_vm1, %v9835_v62 }
 0x543   :  { %v7646_v36 = vpop.f32.mrf.mxu0 }
 0x544   :  { %v2378_v18 = vadd.f32 %v7646_v36, %v2241_v23 }
 0x545   :  { %v2318_v28 = vpop.f32.mrf.mxu0 }
 0x546   :  { %v2382_v29 = vsub.f32 0.0, %v2378_v18  ;;  %v2377_v30 = vadd.f32 %v2318_v28, %v2240_v27 }
 0x547   :  { %v7649_v33 = vpop.f32.mrf.mxu0 }
 0x548   :  { %v2387_v12 = vmul.f32 1.442695, %v2382_v29  ;;  %v2381_v34 = vsub.f32 0.0, %v2377_v30  ;;  %v2380_v35 = vadd.f32 %v7649_v33, %v2243_v31 }
 0x549   :  { %v2328_v38 = vpop.f32.mrf.mxu0 }
 0x54a   :  { %8315 = vpow2.f32 %v2387_v12  ;;  %v2385_v40 = vmul.f32 1.442695, %v2381_v34  ;;  %v2384_v63 = vsub.f32 0.0, %v2380_v35  ;;  %v2379_v0 = vadd.f32 %v2328_v38, %v2242_v13 }
 0x54b   :  { %v7652_v2 = vpop.f32.mrf.mxu0 }
 0x54c   :  { %8317 = vpow2.f32 %v2385_v40  ;;  %v2391_v3 = vmul.f32 1.442695, %v2384_v63  ;;  %v2383_v55 = vsub.f32 0.0, %v2379_v0  ;;  %v2402_v56 = vadd.f32 %v7652_v2, %v2245_v1 }
 0x54d   :  { %v2338_v58 = vpop.f32.mrf.mxu0 }
 0x54e   :  { %8319 = vpow2.f32 %v2391_v3  ;;  %v2389_v9 = vmul.f32 1.442695, %v2383_v55  ;;  %v2406_v6 = vsub.f32 0.0, %v2402_v56  ;;  %v2401_v7 = vadd.f32 %v2338_v58, %v2244_v5  ;;  %v2249_v56 = vld [vmem:[#allocation2 + $0x1c8] sm:$0xff] }
 0x54f   :  { %v7655_v14 = vpop.f32.mrf.mxu0 }
 0x550   :  { %8321 = vpow2.f32 %v2389_v9  ;;  %v2411_v39 = vmul.f32 1.442695, %v2406_v6  ;;  %v2405_v48 = vsub.f32 0.0, %v2401_v7  ;;  %v2404_v60 = vadd.f32 %v7655_v14, %v2247_v59  ;;  %v2248_v59 = vld [vmem:[#allocation2 + $0x1c0] sm:$0xff] }
 0x551   :  { %v2348_v11 = vpop.f32.mrf.mxu0 }
 0x552   :  { %v2409_v17 = vmul.f32 1.442695, %v2405_v48  ;;  %v2408_v19 = vsub.f32 0.0, %v2404_v60  ;;  %v2403_v8 = vadd.f32 %v2348_v11, %v2246_v15  ;;  %8323 = vpow2.f32 %v2411_v39  ;;  %v2251_v15 = vld [vmem:[#allocation2 + $0x1d8] sm:$0xff] }
 0x553   :  { %v7658_v28 = vpop.f32.mrf.mxu0 }
 0x554   :  { %v2415_v20 = vmul.f32 1.442695, %v2408_v19  ;;  %v2407_v21 = vsub.f32 0.0, %v2403_v8  ;;  %8325 = vpow2.f32 %v2409_v17  ;;  %v2426_v40 = vadd.f32 %v7658_v28, %v9667_v32  ;;  %v2250_v19 = vld [vmem:[#allocation2 + $0x1d0] sm:$0xff] }
 0x555   :  { %v2358_v31 = vpop.f32.mrf.mxu0 }
 0x556   :  { %v2413_v22 = vmul.f32 1.442695, %v2407_v21  ;;  %8327 = vpow2.f32 %v2415_v20  ;;  %v2425_v2 = vadd.f32 %v2358_v31, %v9670_v57 }
 0x557   :  { %v8316_v24 = vpop.eup %8315  ;;  %v7661_v35 = vpop.f32.mrf.mxu0 }
 0x558   :  { %v2394_v25 = vadd.f32 1.0, %v8316_v24  ;;  %8329 = vpow2.f32 %v2413_v22  ;;  %v2428_v6 = vadd.f32 %v7661_v35, %v9663_v44 }
 0x559   :  { %v8318_v26 = vpop.eup %8317  ;;  %v2368_v5 = vpop.f32.mrf.mxu0 }
 0x55a   :  { %8331 = vrcp.f32 %v2394_v25  ;;  %v2393_v23 = vadd.f32 1.0, %v8318_v26  ;;  %v2427_v48 = vadd.f32 %v2368_v5, %v9665_v45 }
 0x55b   :  { %v8320_v36 = vpop.eup %8319 }
 0x55c   :  { %8333 = vrcp.f32 %v2393_v23  ;;  %v2396_v18 = vadd.f32 1.0, %v8320_v36 }
 0x55d   :  { %v8322_v27 = vpop.eup %8321 }
 0x55e   :  { %8335 = vrcp.f32 %v2396_v18  ;;  %v2395_v29 = vadd.f32 1.0, %v8322_v27 }
 0x55f   :  { %v8324_v30 = vpop.eup %8323 }
 0x560   :  { %8337 = vrcp.f32 %v2395_v29  ;;  %v2418_v34 = vadd.f32 1.0, %v8324_v30 }
 0x561   :  { %v8326_v33 = vpop.eup %8325 }
 0x562   :  { %v2417_v38 = vadd.f32 1.0, %v8326_v33  ;;  %8339 = vrcp.f32 %v2418_v34 }
 0x563   :  { %v8328_v12 = vpop.eup %8327 }
 0x564   :  { %v2420_v0 = vadd.f32 1.0, %v8328_v12  ;;  %8341 = vrcp.f32 %v2417_v38 }
 0x565   :  { %v8330_v13 = vpop.eup %8329 }
 0x566   :  { %v2419_v55 = vadd.f32 1.0, %v8330_v13  ;;  %8343 = vrcp.f32 %v2420_v0 }
 0x567   :  { %v8332_v63 = vpop.eup %8331 }
 0x568   :  { %v2430_v1 = vmul.f32 %v8332_v63, %v2426_v40 }
 0x569   :  { %v8334_v3 = vpop.eup %8333 }
 0x56a   :  { %v2434_v58 = vadd.f32 %v2430_v1, %v2249_v56  ;;  %v2429_v9 = vmul.f32 %v8334_v3, %v2425_v2  ;;  %v2464_v1 = vld [vmem:[#allocation2 + $0x1f0] sm:$0xff] }
 0x56b   :  { %v8336_v7 = vpop.eup %8335 }
 0x56c   :  { %8345 = vtanh.f32 %v2434_v58  ;;  %v2433_v14 = vadd.f32 %v2429_v9, %v2248_v59  ;;  %v2432_v39 = vmul.f32 %v8336_v7, %v2428_v6  ;;  %v2466_v9 = vld [vmem:[#allocation2 + $0x200] sm:$0xff] }
 0x56d   :  { %v8338_v60 = vpop.eup %8337  ;;  %8347 = vrcp.f32 %v2419_v55  ;;  %v2467_v55 = vld [vmem:[#allocation2 + $0x208] sm:$0xff] }
 0x56e   :  { %8349 = vtanh.f32 %v2433_v14  ;;  %v2436_v11 = vadd.f32 %v2432_v39, %v2251_v15  ;;  %v2431_v17 = vmul.f32 %v8338_v60, %v2427_v48  ;;  %v2469_v39 = vld [vmem:[#allocation2 + $0x218] sm:$0xff] }
 0x56f   :  { %v8340_v20 = vpop.eup %8339 }
 0x570   :  { %8351 = vtanh.f32 %v2436_v11  ;;  %v2435_v8 = vadd.f32 %v2431_v17, %v2250_v19  ;;  %v2442_v24 = vsub.f32 1.0, %v8340_v20  ;;  %v2450_v36 = vmul.f32 %v8340_v20, %v9900_v16  ;;  %v2468_v17 = vld [vmem:[#allocation2 + $0x210] sm:$0xff] }
 0x571   :  { %v8342_v21 = vpop.eup %8341 }
 0x572   :  { %8353 = vtanh.f32 %v2435_v8  ;;  %v2441_v18 = vsub.f32 1.0, %v8342_v21  ;;  %v2449_v31 = vmul.f32 %v8342_v21, %v9906_v10 }
 0x573   :  { %v8344_v22 = vpop.eup %8343 }
 0x574   :  { %v2444_v28 = vsub.f32 1.0, %v8344_v22  ;;  %v2452_v34 = vmul.f32 %v8344_v22, %v9908_v4 }
 0x579   :  { %v8346_v25 = vpop.eup %8345 }
 0x57a   :  { %v8348_v26 = vpop.eup %8347  ;;  %v2446_v23 = vmul.f32 %v8346_v25, %v2442_v24 }
 0x57b   :  { %v8350_v27 = vpop.eup %8349  ;;  %v2443_v35 = vsub.f32 1.0, %v8348_v26  ;;  %v2451_v63 = vmul.f32 %v8348_v26, %v9916_v37 }
 0x57c   :  { %v9956_v29 = vadd.f32 %v2450_v36, %v2446_v23  ;;  %v2445_v30 = vmul.f32 %v8350_v27, %v2441_v18 }
 0x57d   :  { %v8352_v33 = vpop.eup %8351 }
 0x57e   :  { %v2448_v12 = vmul.f32 %v8352_v33, %v2444_v28  ;;  %2459 = vst.msk [vmem:[#allocation3 + $0x88] sm:$0xff] %vm162_vm0, %v9956_v29  ;;  %v9962_v13 = vadd.f32 %v2449_v31, %v2445_v30 }
 0x57f   :  { %v8354_v38 = vpop.eup %8353 }
 0x580   :  { %v9964_v16 = vadd.f32 %v2452_v34, %v2448_v12  ;;  %v2447_v40 = vmul.f32 %v8354_v38, %v2443_v35  ;;  %2458 = vst.msk [vmem:[#allocation3 + $0x80] sm:$0xff] %vm162_vm0, %v9962_v13 }
 0x582   :  { %2461 = vst.msk [vmem:[#allocation3 + $0x98] sm:$0xff] %vm162_vm0, %v9964_v16  ;;  %7662 = vmatprep.subr.mxu1 %v9964_v16  ;;  %v9972_v10 = vadd.f32 %v2451_v63, %v2447_v40 }
 0x583   :  { %7663 = vmatpush3.msra.mxu1 %v9964_v16 }
 0x584   :  { %2460 = vst.msk [vmem:[#allocation3 + $0x90] sm:$0xff] %vm162_vm0, %v9972_v10  ;;  %7664 = vmatprep.subr.mxu1 %v9972_v10 }
 0x585   :  { %7665 = vmatpush3.msra.mxu1 %v9972_v10 }
 0x586   :  { %7666 = vmatprep.subr.mxu1 %v9956_v29 }
 0x587   :  { %7667 = vmatpush3.msra.mxu1 %v9956_v29 }
 0x588   :  { %7668 = vmatprep.subr.mxu1 %v9962_v13 }
 0x589   :  { %7669 = vmatpush3.msra.mxu1 %v9962_v13 }
 0x58a   :  { %7671 = vmatmul.mubr.msk.f32.vlgmr.msra.gmra.mxu1 %vm1328_vm1, %v9758_v50  ;;  %v2463_v50 = vld [vmem:[#allocation2 + $0x1e8] sm:$0xff] }
 0x58b   :  { %7673 = vmatprep.mubr.msk.f32.mxu1 %vm1328_vm1, %v9765_v54 }
 0x58e   :  { %7674 = vmatmul.mubr.msk.f32.gmra.mxu1 %vm1328_vm1, %v9772_v47 }
 0x58f   :  { %7676 = vmatprep.mubr.msk.f32.mxu1 %vm1328_vm1, %v9779_v42  ;;  %v2462_v42 = vld [vmem:[#allocation2 + $0x1e0] sm:$0xff] }
 0x592   :  { %7677 = vmatmul.mubr.msk.f32.gmra.mxu1 %vm1328_vm1, %v9786_v43 }
 0x593   :  { %7679 = vmatprep.mubr.msk.f32.mxu1 %vm1328_vm1, %v9793_v52 }
 0x596   :  { %7680 = vmatmul.mubr.msk.f32.gmra.mxu1 %vm1328_vm1, %v9800_v46 }
 0x597   :  { %7682 = vmatprep.mubr.msk.f32.mxu1 %vm1328_vm1, %v9807_v49  ;;  %v2465_v49 = vld [vmem:[#allocation2 + $0x1f8] sm:$0xff] }
 0x59a   :  { %7683 = vmatmul.mubr.msk.f32.gmra.mxu1 %vm1328_vm1, %v9814_v51 }
 0x59b   :  { %7685 = vmatprep.mubr.msk.f32.mxu1 %vm1328_vm1, %v9821_v53 }
 0x59e   :  { %7686 = vmatmul.mubr.msk.f32.gmra.mxu1 %vm1328_vm1, %v9828_v61 }
 0x59f   :  { %7722 = vmatprep.mubr.msk.f32.mxu1 %vm1328_vm1, %v9835_v62 }
 0x64a   :  { %v7672_v54 = vpop.f32.mrf.mxu1 }
 0x64b   :  { %v2600_v47 = vadd.f32 %v7672_v54, %v2463_v50 }
 0x64c   :  { %v2540_v43 = vpop.f32.mrf.mxu1 }
 0x64d   :  { %v2604_v52 = vsub.f32 0.0, %v2600_v47  ;;  %v2599_v46 = vadd.f32 %v2540_v43, %v2462_v42 }
 0x64e   :  { %v7675_v4 = vpop.f32.mrf.mxu1 }
 0x64f   :  { %v2609_v37 = vmul.f32 1.442695, %v2604_v52  ;;  %v2603_v51 = vsub.f32 0.0, %v2599_v46  ;;  %v2602_v0 = vadd.f32 %v7675_v4, %v2465_v49 }
 0x650   :  { %v2550_v53 = vpop.f32.mrf.mxu1 }
 0x651   :  { %8355 = vpow2.f32 %v2609_v37  ;;  %v2607_v2 = vmul.f32 1.442695, %v2603_v51  ;;  %v2606_v61 = vsub.f32 0.0, %v2602_v0  ;;  %v2601_v3 = vadd.f32 %v2550_v53, %v2464_v1  ;;  %v2471_v37 = vld [vmem:[#allocation2 + $0x228] sm:$0xff] }
 0x652   :  { %v7678_v62 = vpop.f32.mrf.mxu1 }
 0x653   :  { %8357 = vpow2.f32 %v2607_v2  ;;  %v2613_v56 = vmul.f32 1.442695, %v2606_v61  ;;  %v2605_v5 = vsub.f32 0.0, %v2601_v3  ;;  %v2624_v58 = vadd.f32 %v7678_v62, %v2467_v55  ;;  %v2470_v61 = vld [vmem:[#allocation2 + $0x220] sm:$0xff] }
 0x654   :  { %v2560_v6 = vpop.f32.mrf.mxu1 }
 0x655   :  { %8359 = vpow2.f32 %v2613_v56  ;;  %v2611_v7 = vmul.f32 1.442695, %v2605_v5  ;;  %v2628_v59 = vsub.f32 0.0, %v2624_v58  ;;  %v2623_v14 = vadd.f32 %v2560_v6, %v2466_v9  ;;  %v2473_v5 = vld [vmem:[#allocation2 + $0x238] sm:$0xff]  ;;  %v2472_v6 = vld [vmem:[#allocation2 + $0x230] sm:$0xff] }
 0x656   :  { %v7681_v48 = vpop.f32.mrf.mxu1 }
 0x657   :  { %8361 = vpow2.f32 %v2611_v7  ;;  %v2633_v60 = vmul.f32 1.442695, %v2628_v59  ;;  %v2627_v15 = vsub.f32 0.0, %v2623_v14  ;;  %v2626_v11 = vadd.f32 %v7681_v48, %v2469_v39 }
 0x658   :  { %v2570_v19 = vpop.f32.mrf.mxu1 }
 0x659   :  { %v2631_v8 = vmul.f32 1.442695, %v2627_v15  ;;  %v2630_v20 = vsub.f32 0.0, %v2626_v11  ;;  %v2625_v21 = vadd.f32 %v2570_v19, %v2468_v17  ;;  %8363 = vpow2.f32 %v2633_v60 }
 0x65a   :  { %v7684_v31 = vpop.f32.mrf.mxu1 }
 0x65b   :  { %v2637_v22 = vmul.f32 1.442695, %v2630_v20  ;;  %v2629_v24 = vsub.f32 0.0, %v2625_v21  ;;  %8365 = vpow2.f32 %v2631_v8  ;;  %v2648_v47 = vadd.f32 %v7684_v31, %v9667_v32  ;;  %v3250_v31 = vld [vmem:[#allocation3 + $0x10] sm:$0xff] }
 0x65c   :  { %v2580_v34 = vpop.f32.mrf.mxu1 }
 0x65d   :  { %v2635_v25 = vmul.f32 1.442695, %v2629_v24  ;;  %8367 = vpow2.f32 %v2637_v22  ;;  %v2647_v46 = vadd.f32 %v2580_v34, %v9670_v57  ;;  %v10056_v34 = vld [vmem:[%s11389_s2 + $0x18] sm:$0xff] }
 0x65e   :  { %v8356_v26 = vpop.eup %8355  ;;  %v7687_v63 = vpop.f32.mrf.mxu1 }
 0x65f   :  { %v2616_v23 = vadd.f32 1.0, %v8356_v26  ;;  %8369 = vpow2.f32 %v2635_v25  ;;  %v2650_v53 = vadd.f32 %v7687_v63, %v9663_v44  ;;  %v10070_v63 = vld [vmem:[%s11389_s2 + $0x28] sm:$0xff] }
 0x660   :  { %v8358_v36 = vpop.eup %8357  ;;  %v2590_v51 = vpop.f32.mrf.mxu1 }
 0x661   :  { %8371 = vrcp.f32 %v2616_v23  ;;  %v2615_v18 = vadd.f32 1.0, %v8358_v36  ;;  %v2649_v62 = vadd.f32 %v2590_v51, %v9665_v45  ;;  %v10140_v51 = vld [vmem:[%s11392_s5 + $0x18] sm:$0xff] }
 0x662   :  { %v8360_v27 = vpop.eup %8359 }
 0x663   :  { %8373 = vrcp.f32 %v2615_v18  ;;  %v2618_v28 = vadd.f32 1.0, %v8360_v27 }
 0x664   :  { %v8362_v30 = vpop.eup %8361 }
 0x665   :  { %8375 = vrcp.f32 %v2618_v28  ;;  %v2617_v33 = vadd.f32 1.0, %v8362_v30 }
 0x666   :  { %v8364_v12 = vpop.eup %8363 }
 0x667   :  { %8377 = vrcp.f32 %v2617_v33  ;;  %v2640_v40 = vadd.f32 1.0, %v8364_v12  ;;  %v10049_v33 = vld [vmem:[%s11389_s2 + $0x10] sm:$0xff]  ;;  %v3249_v12 = vld [vmem:[#allocation3 + $0x8] sm:$0xff] }
 0x668   :  { %v8366_v35 = vpop.eup %8365 }
 0x669   :  { %v2639_v54 = vadd.f32 1.0, %v8366_v35  ;;  %8379 = vrcp.f32 %v2640_v40  ;;  %v3248_v35 = vld [vmem:[#allocation3] sm:$0xff]  ;;  %v3569_v40 = vld [vmem:[#allocation3 + $0x58] sm:$0xff] }
 0x66a   :  { %v8368_v38 = vpop.eup %8367 }
 0x66b   :  { %v2642_v43 = vadd.f32 1.0, %v8368_v38  ;;  %8381 = vrcp.f32 %v2639_v54  ;;  %v10063_v38 = vld [vmem:[%s11389_s2 + $0x20] sm:$0xff]  ;;  %v10084_v54 = vld [vmem:[%s11389_s2 + $0x38] sm:$0xff] }
 0x66c   :  { %v8370_v50 = vpop.eup %8369 }
 0x66d   :  { %v2641_v4 = vadd.f32 1.0, %v8370_v50  ;;  %8383 = vrcp.f32 %v2642_v43  ;;  %v10077_v50 = vld [vmem:[%s11389_s2 + $0x30] sm:$0xff] }
 0x66e   :  { %v8372_v42 = vpop.eup %8371  ;;  %v10105_v43 = vld [vmem:[%s11389_s2 + $0x50] sm:$0xff] }
 0x66f   :  { %v2652_v52 = vmul.f32 %v8372_v42, %v2648_v47  ;;  %v10091_v47 = vld [vmem:[%s11389_s2 + $0x40] sm:$0xff]  ;;  %v10098_v42 = vld [vmem:[%s11389_s2 + $0x48] sm:$0xff] }
 0x670   :  { %v8374_v49 = vpop.eup %8373 }
 0x671   :  { %v2656_v0 = vadd.f32 %v2652_v52, %v2471_v37  ;;  %v2651_v1 = vmul.f32 %v8374_v49, %v2647_v46  ;;  %v10112_v52 = vld [vmem:[%s11392_s5] sm:$0xff]  ;;  %v10117_v46 = vld [vmem:[%s11389_s2 + $0x58] sm:$0xff]  ;;  %v10126_v49 = vld [vmem:[%s11392_s5 + $0x8] sm:$0xff] }
 0x672   :  { %v8376_v2 = vpop.eup %8375  ;;  %v3568_v37 = vld [vmem:[#allocation3 + $0x50] sm:$0xff] }
 0x673   :  { %8385 = vtanh.f32 %v2656_v0  ;;  %v2655_v3 = vadd.f32 %v2651_v1, %v2470_v61  ;;  %v2654_v55 = vmul.f32 %v8376_v2, %v2650_v53  ;;  %v10145_v0 = vld [vmem:[%s11392_s5 + $0x20] sm:$0xff]  ;;  %v3567_v1 = vld [vmem:[#allocation3 + $0x48] sm:$0xff]  ;;  %v10159_v61 = vld [vmem:[%s11392_s5 + $0x30] sm:$0xff] }
 0x674   :  { %v8378_v56 = vpop.eup %8377  ;;  %8387 = vrcp.f32 %v2641_v4  ;;  %v10131_v4 = vld [vmem:[%s11392_s5 + $0x10] sm:$0xff]  ;;  %v3566_v53 = vld [vmem:[#allocation3 + $0x40] sm:$0xff]  ;;  %v10154_v2 = vld [vmem:[%s11392_s5 + $0x28] sm:$0xff] }
 0x675   :  { %8389 = vtanh.f32 %v2655_v3  ;;  %v2658_v58 = vadd.f32 %v2654_v55, %v2473_v5  ;;  %v2653_v9 = vmul.f32 %v8378_v56, %v2649_v62  ;;  %v3851_v3 = vld [vmem:[#allocation3 + $0x98] sm:$0xff]  ;;  %v10173_v62 = vld [vmem:[%s11392_s5 + $0x40] sm:$0xff]  ;;  %v10182_v56 = vld [vmem:[%s11392_s5 + $0x48] sm:$0xff] }
 0x676   :  { %v8380_v59 = vpop.eup %8379  ;;  %v10168_v55 = vld [vmem:[%s11392_s5 + $0x38] sm:$0xff]  ;;  %v10187_v5 = vld [vmem:[%s11392_s5 + $0x50] sm:$0xff] }
 0x677   :  { %8391 = vtanh.f32 %v2658_v58  ;;  %v2657_v7 = vadd.f32 %v2653_v9, %v2472_v6  ;;  %v2664_v48 = vsub.f32 1.0, %v8380_v59  ;;  %v2672_v17 = vmul.f32 %v8380_v59, %v9956_v29  ;;  %v10196_v58 = vld [vmem:[%s11392_s5 + $0x58] sm:$0xff]  ;;  %v3850_v9 = vld [vmem:[#allocation3 + $0x90] sm:$0xff]  ;;  %v3849_v6 = vld [vmem:[#allocation3 + $0x88] sm:$0xff] }
 0x678   :  { %v8382_v14 = vpop.eup %8381  ;;  %v2685_v59 = vld [vmem:[#allocation2 + $0x248] sm:$0xff] }
 0x679   :  { %8393 = vtanh.f32 %v2657_v7  ;;  %v2663_v19 = vsub.f32 1.0, %v8382_v14  ;;  %v2671_v24 = vmul.f32 %v8382_v14, %v9962_v13  ;;  %v3848_v7 = vld [vmem:[#allocation3 + $0x80] sm:$0xff] }
 0x67a   :  { %v8384_v39 = vpop.eup %8383 }
 0x67b   :  { %v2666_v20 = vsub.f32 1.0, %v8384_v39  ;;  %v2674_v23 = vmul.f32 %v8384_v39, %v9964_v16  ;;  %v3251_v16 = vld [vmem:[#allocation3 + $0x18] sm:$0xff] }
 0x680   :  { %v8386_v60 = vpop.eup %8385 }
 0x681   :  { %v8388_v15 = vpop.eup %8387  ;;  %v2668_v11 = vmul.f32 %v8386_v60, %v2664_v48  ;;  %v2684_v48 = vld [vmem:[#allocation2 + $0x240] sm:$0xff] }
 0x682   :  { %v8390_v8 = vpop.eup %8389  ;;  %v2665_v36 = vsub.f32 1.0, %v8388_v15  ;;  %v2673_v30 = vmul.f32 %v8388_v15, %v9972_v10  ;;  %v10042_v10 = vld [vmem:[%s11389_s2 + $0x8] sm:$0xff] }
 0x683   :  { %v10012_v21 = vadd.f32 %v2672_v17, %v2668_v11  ;;  %v2667_v22 = vmul.f32 %v8390_v8, %v2663_v19  ;;  %v2687_v17 = vld [vmem:[#allocation2 + $0x258] sm:$0xff] }
 0x684   :  { %v8392_v25 = vpop.eup %8391 }
 0x685   :  { %v2670_v26 = vmul.f32 %v8392_v25, %v2666_v20  ;;  %2681 = vst.msk [vmem:[#allocation3 + $0xa8] sm:$0xff] %vm162_vm0, %v10012_v21  ;;  %v10018_v18 = vadd.f32 %v2671_v24, %v2667_v22  ;;  %v2686_v24 = vld [vmem:[#allocation2 + $0x250] sm:$0xff] }
 0x686   :  { %v8394_v27 = vpop.eup %8393 }
 0x687   :  { %v10020_v29 = vadd.f32 %v2674_v23, %v2670_v26  ;;  %v2669_v28 = vmul.f32 %v8394_v27, %v2665_v36  ;;  %2680 = vst.msk [vmem:[#allocation3 + $0xa0] sm:$0xff] %vm162_vm0, %v10018_v18  ;;  %v2689_v27 = vld [vmem:[#allocation2 + $0x268] sm:$0xff] }
 0x689   :  { %2683 = vst.msk [vmem:[#allocation3 + $0xb8] sm:$0xff] %vm162_vm0, %v10020_v29  ;;  %7688 = vmatprep.subr.mxu0 %v10020_v29  ;;  %v10028_v13 = vadd.f32 %v2673_v30, %v2669_v28 }
 0x68a   :  { %7689 = vmatpush3.msra.mxu0 %v10020_v29 }
 0x68b   :  { %2682 = vst.msk [vmem:[#allocation3 + $0xb0] sm:$0xff] %vm162_vm0, %v10028_v13  ;;  %7690 = vmatprep.subr.mxu0 %v10028_v13 }
 0x68c   :  { %7691 = vmatpush3.msra.mxu0 %v10028_v13 }
 0x68d   :  { %7692 = vmatprep.subr.mxu0 %v10012_v21 }
 0x68e   :  { %7693 = vmatpush3.msra.mxu0 %v10012_v21 }
 0x68f   :  { %7694 = vmatprep.subr.mxu0 %v10018_v18 }
 0x690   :  { %7695 = vmatpush3.msra.mxu0 %v10018_v18 }
 0x691   :  { %7697 = vmatmul.mubr.msk.f32.vlgmr.msra.gmra.mxu0 %vm1328_vm1, %v10042_v10  ;;  %7740 = vmatprep.subr.mxu0 %v3251_v16 }
 0x692   :  { %7741 = vmatpush3.msra.mxu0 %v3251_v16  ;;  %7699 = vmatprep.mubr.msk.f32.mxu0 %vm1328_vm1, %v10049_v33 }
 0x693   :  { %7742 = vmatprep.subr.mxu0 %v3250_v31 }
 0x694   :  { %7743 = vmatpush3.msra.mxu0 %v3250_v31 }
 0x695   :  { %7700 = vmatmul.mubr.msk.f32.gmra.mxu0 %vm1328_vm1, %v10056_v34  ;;  %7744 = vmatprep.subr.mxu0 %v3249_v12 }
 0x696   :  { %7745 = vmatpush3.msra.mxu0 %v3249_v12  ;;  %7702 = vmatprep.mubr.msk.f32.mxu0 %vm1328_vm1, %v10063_v38  ;;  %v10250_v12 = vpop.permute.xlu0 %3181 }
 0x697   :  { %7746 = vmatprep.subr.mxu0 %v3248_v35 }
 0x698   :  { %7747 = vmatpush3.msra.mxu0 %v3248_v35  ;;  %v2688_v35 = vld [vmem:[#allocation2 + $0x260] sm:$0xff] }
 0x699   :  { %7703 = vmatmul.mubr.msk.f32.gmra.mxu0 %vm1328_vm1, %v10070_v63  ;;  %7792 = vmatprep.subr.mxu0 %v3569_v40 }
 0x69a   :  { %7705 = vmatprep.mubr.msk.f32.mxu0 %vm1328_vm1, %v10077_v50 }
 0x69d   :  { %7706 = vmatmul.mubr.msk.f32.gmra.mxu0 %vm1328_vm1, %v10084_v54 }
 0x69e   :  { %7708 = vmatprep.mubr.msk.f32.mxu0 %vm1328_vm1, %v10091_v47 }
 0x6a1   :  { %7709 = vmatmul.mubr.msk.f32.gmra.mxu0 %vm1328_vm1, %v10098_v42 }
 0x6a2   :  { %7711 = vmatprep.mubr.msk.f32.mxu0 %vm1328_vm1, %v10105_v43 }
 0x6a5   :  { %7712 = vmatmul.mubr.msk.f32.gmra.mxu0 %vm1328_vm1, %v10117_v46 }
 0x6a6   :  { %7748 = vmatprep.mubr.msk.f32.mxu0 %vm1328_vm1, %v10112_v52 }
 0x6a9   :  { %7749 = vmatmul.mubr.msk.f32.vlgmr.msra.gmra.mxu0 %vm1328_vm1, %v10126_v49 }
 0x6aa   :  { %7793 = vmatpush3.msra.mxu0 %v3569_v40  ;;  %7751 = vmatprep.mubr.msk.f32.mxu0 %vm1328_vm1, %v10131_v4 }
 0x6ab   :  { %7794 = vmatprep.subr.mxu0 %v3568_v37 }
 0x6ac   :  { %7795 = vmatpush3.msra.mxu0 %v3568_v37 }
 0x6ad   :  { %7796 = vmatprep.subr.mxu0 %v3567_v1  ;;  %7752 = vmatmul.mubr.msk.f32.gmra.mxu0 %vm1328_vm1, %v10140_v51 }
 0x6ae   :  { %7797 = vmatpush3.msra.mxu0 %v3567_v1  ;;  %7754 = vmatprep.mubr.msk.f32.mxu0 %vm1328_vm1, %v10145_v0 }
 0x6af   :  { %7798 = vmatprep.subr.mxu0 %v3566_v53 }
 0x6b0   :  { %7799 = vmatpush3.msra.mxu0 %v3566_v53 }
 0x6b1   :  { %7844 = vmatprep.subr.mxu0 %v3851_v3  ;;  %7755 = vmatmul.mubr.msk.f32.gmra.mxu0 %vm1328_vm1, %v10154_v2 }
 0x6b2   :  { %7757 = vmatprep.mubr.msk.f32.mxu0 %vm1328_vm1, %v10159_v61 }
 0x6b5   :  { %7758 = vmatmul.mubr.msk.f32.gmra.mxu0 %vm1328_vm1, %v10168_v55 }
 0x6b6   :  { %7760 = vmatprep.mubr.msk.f32.mxu0 %vm1328_vm1, %v10173_v62 }
 0x6b9   :  { %7761 = vmatmul.mubr.msk.f32.gmra.mxu0 %vm1328_vm1, %v10182_v56 }
 0x6ba   :  { %7763 = vmatprep.mubr.msk.f32.mxu0 %vm1328_vm1, %v10187_v5 }
 0x6bd   :  { %7764 = vmatmul.mubr.msk.f32.gmra.mxu0 %vm1328_vm1, %v10196_v58 }
 0x6be   :  { %7800 = vmatprep.mubr.msk.f32.mxu0 %vm1328_vm1, %v10112_v52 }
 0x6c1   :  { %7801 = vmatmul.mubr.msk.f32.vlgmr.msra.gmra.mxu0 %vm1328_vm1, %v10126_v49 }
 0x6c2   :  { %7845 = vmatpush3.msra.mxu0 %v3851_v3  ;;  %7803 = vmatprep.mubr.msk.f32.mxu0 %vm1328_vm1, %v10131_v4  ;;  %v10252_v3 = vpop.permute.xlu1 %3176 }
 0x6c3   :  { %7846 = vmatprep.subr.mxu0 %v3850_v9 }
 0x6c4   :  { %7847 = vmatpush3.msra.mxu0 %v3850_v9  ;;  %v2691_v9 = vld [vmem:[#allocation2 + $0x278] sm:$0xff] }
 0x6c5   :  { %7848 = vmatprep.subr.mxu0 %v3849_v6  ;;  %7804 = vmatmul.mubr.msk.f32.gmra.mxu0 %vm1328_vm1, %v10140_v51 }
 0x6c6   :  { %7849 = vmatpush3.msra.mxu0 %v3849_v6  ;;  %7806 = vmatprep.mubr.msk.f32.mxu0 %vm1328_vm1, %v10145_v0 }
 0x6c7   :  { %7850 = vmatprep.subr.mxu0 %v3848_v7 }
 0x6c8   :  { %7851 = vmatpush3.msra.mxu0 %v3848_v7 }
 0x6c9   :  { %7807 = vmatmul.mubr.msk.f32.gmra.mxu0 %vm1328_vm1, %v10154_v2 }
 0x6ca   :  { %7809 = vmatprep.mubr.msk.f32.mxu0 %vm1328_vm1, %v10159_v61 }
 0x6cd   :  { %7810 = vmatmul.mubr.msk.f32.gmra.mxu0 %vm1328_vm1, %v10168_v55 }
 0x6ce   :  { %7812 = vmatprep.mubr.msk.f32.mxu0 %vm1328_vm1, %v10173_v62 }
 0x6d1   :  { %7813 = vmatmul.mubr.msk.f32.gmra.mxu0 %vm1328_vm1, %v10182_v56 }
 0x6d2   :  { %7815 = vmatprep.mubr.msk.f32.mxu0 %vm1328_vm1, %v10187_v5 }
 0x6d5   :  { %7816 = vmatmul.mubr.msk.f32.gmra.mxu0 %vm1328_vm1, %v10196_v58 }
 0x6d6   :  { %7852 = vmatprep.mubr.msk.f32.mxu0 %vm1328_vm1, %v10112_v52 }
 0x6d9   :  { %7853 = vmatmul.mubr.msk.f32.vlgmr.msra.gmra.mxu0 %vm1328_vm1, %v10126_v49 }
 0x6da   :  { %7855 = vmatprep.mubr.msk.f32.mxu0 %vm1328_vm1, %v10131_v4 }
 0x6dd   :  { %7856 = vmatmul.mubr.msk.f32.gmra.mxu0 %vm1328_vm1, %v10140_v51 }
 0x6de   :  { %7858 = vmatprep.mubr.msk.f32.mxu0 %vm1328_vm1, %v10145_v0 }
 0x6e1   :  { %7859 = vmatmul.mubr.msk.f32.gmra.mxu0 %vm1328_vm1, %v10154_v2 }
 0x6e2   :  { %7861 = vmatprep.mubr.msk.f32.mxu0 %vm1328_vm1, %v10159_v61 }
 0x6e5   :  { %7862 = vmatmul.mubr.msk.f32.gmra.mxu0 %vm1328_vm1, %v10168_v55 }
 0x6e6   :  { %7864 = vmatprep.mubr.msk.f32.mxu0 %vm1328_vm1, %v10173_v62 }
 0x6e9   :  { %7865 = vmatmul.mubr.msk.f32.gmra.mxu0 %vm1328_vm1, %v10182_v56 }
 0x6ea   :  { %7867 = vmatprep.mubr.msk.f32.mxu0 %vm1328_vm1, %v10187_v5 }
 0x6ed   :  { %7868 = vmatmul.mubr.msk.f32.gmra.mxu0 %vm1328_vm1, %v10196_v58 }
 0x6ee   :  { %7904 = vmatprep.mubr.msk.f32.mxu0 %vm1328_vm1, %v10112_v52 }
 0x751   :  { %v7698_v14 = vpop.f32.mrf.mxu0 }
 0x752   :  { %v2822_v39 = vadd.f32 %v7698_v14, %v2685_v59 }
 0x753   :  { %v2762_v60 = vpop.f32.mrf.mxu0 }
 0x754   :  { %v2826_v15 = vsub.f32 0.0, %v2822_v39  ;;  %v2821_v11 = vadd.f32 %v2762_v60, %v2684_v48  ;;  %v2690_v39 = vld [vmem:[#allocation2 + $0x270] sm:$0xff] }
 0x755   :  { %v7701_v19 = vpop.f32.mrf.mxu0 }
 0x756   :  { %v2831_v8 = vmul.f32 1.442695, %v2826_v15  ;;  %v2825_v20 = vsub.f32 0.0, %v2821_v11  ;;  %v2824_v22 = vadd.f32 %v7701_v19, %v2687_v17  ;;  %v10254_v17 = vpop.permute.xlu0 %3171 }
 0x757   :  { %v2772_v25 = vpop.f32.mrf.mxu0 }
 0x758   :  { %8395 = vpow2.f32 %v2831_v8  ;;  %v2829_v26 = vmul.f32 1.442695, %v2825_v20  ;;  %v2828_v23 = vsub.f32 0.0, %v2824_v22  ;;  %v2823_v36 = vadd.f32 %v2772_v25, %v2686_v24  ;;  %v10256_v22 = vpop.permute.xlu1 %3166 }
 0x759   :  { %v7704_v28 = vpop.f32.mrf.mxu0 }
 0x75a   :  { %8397 = vpow2.f32 %v2829_v26  ;;  %v2835_v30 = vmul.f32 1.442695, %v2828_v23  ;;  %v2827_v16 = vsub.f32 0.0, %v2823_v36  ;;  %v2846_v31 = vadd.f32 %v7704_v28, %v2689_v27  ;;  %v10258_v28 = vpop.permute.xlu0 %3201 }
 0x75b   :  { %v2782_v40 = vpop.f32.mrf.mxu0 }
 0x75c   :  { %8399 = vpow2.f32 %v2835_v30  ;;  %v2833_v37 = vmul.f32 1.442695, %v2827_v16  ;;  %v2850_v1 = vsub.f32 0.0, %v2846_v31  ;;  %v2845_v53 = vadd.f32 %v2782_v40, %v2688_v35  ;;  %v10260_v35 = vpop.permute.xlu1 %3196 }
 0x75d   :  { %v7707_v6 = vpop.f32.mrf.mxu0 }
 0x75e   :  { %8401 = vpow2.f32 %v2833_v37  ;;  %v2855_v7 = vmul.f32 1.442695, %v2850_v1  ;;  %v2849_v59 = vsub.f32 0.0, %v2845_v53  ;;  %v2848_v14 = vadd.f32 %v7707_v6, %v2691_v9 }
 0x75f   :  { %v2792_v48 = vpop.f32.mrf.mxu0 }
 0x760   :  { %v2853_v60 = vmul.f32 1.442695, %v2849_v59  ;;  %v2852_v15 = vsub.f32 0.0, %v2848_v14  ;;  %v2847_v11 = vadd.f32 %v2792_v48, %v2690_v39  ;;  %8403 = vpow2.f32 %v2855_v7  ;;  %v10265_v59 = vpop.permute.xlu0 %3191 }
 0x761   :  { %v7710_v19 = vpop.f32.mrf.mxu0 }
 0x762   :  { %v2859_v8 = vmul.f32 1.442695, %v2852_v15  ;;  %v2851_v20 = vsub.f32 0.0, %v2847_v11  ;;  %8405 = vpow2.f32 %v2853_v60  ;;  %v10269_v60 = vpop.permute.xlu1 %3186 }
 0x763   :  { %v2802_v24 = vpop.f32.mrf.mxu0 }
 0x764   :  { %v2857_v25 = vmul.f32 1.442695, %v2851_v20  ;;  %8407 = vpow2.f32 %v2859_v8 }
 0x765   :  { %v8396_v26 = vpop.eup %8395  ;;  %v7713_v23 = vpop.f32.mrf.mxu0 }
 0x766   :  { %v2838_v36 = vadd.f32 1.0, %v8396_v26  ;;  %8409 = vpow2.f32 %v2857_v25 }
 0x767   :  { %v8398_v27 = vpop.eup %8397  ;;  %v2812_v30 = vpop.f32.mrf.mxu0 }
 0x768   :  { %8411 = vrcp.f32 %v2838_v36  ;;  %v2837_v16 = vadd.f32 1.0, %v8398_v27  ;;  %v10275_v27 = vpop.permute.xlu0 %3221 }
 0x769   :  { %v8400_v31 = vpop.eup %8399  ;;  %v7750_v40 = vpop.f32.mrf.mxu0 }
 0x76a   :  { %8413 = vrcp.f32 %v2837_v16  ;;  %v2840_v37 = vadd.f32 1.0, %v8400_v31  ;;  %v3360_v1 = vadd.f32 %v7750_v40, %v10254_v17 }
 0x76b   :  { %v8402_v53 = vpop.eup %8401  ;;  %v3354_v9 = vpop.f32.mrf.mxu0 }
 0x76c   :  { %8415 = vrcp.f32 %v2840_v37  ;;  %v2839_v6 = vadd.f32 1.0, %v8402_v53  ;;  %3414 = vst.msk [vmem:[#allocation2 + $0x8] sm:$0xff] %vm162_vm0, %v3360_v1  ;;  %v3355_v7 = vadd.f32 %v3354_v9, %v10256_v22  ;;  %v2870_v37 = vadd.f32 %v7710_v19, %v9667_v32  ;;  %v10280_v9 = vpop.permute.xlu1 %3216  ;;  %v2693_v19 = vld [vmem:[#allocation2 + $0x288] sm:$0xff] }
 0x76d   :  { %v7753_v14 = vpop.f32.mrf.mxu0  ;;  %v8404_v48 = vpop.eup %8403 }
 0x76e   :  { %8417 = vrcp.f32 %v2839_v6  ;;  %3413 = vst.msk [vmem:[#allocation2] sm:$0xff] %vm162_vm0, %v3355_v7  ;;  %v3370_v39 = vadd.f32 %v7753_v14, %v10250_v12  ;;  %v2862_v26 = vadd.f32 1.0, %v8404_v48 }
 0x76f   :  { %v3364_v15 = vpop.f32.mrf.mxu0  ;;  %v8406_v8 = vpop.eup %8405 }
 0x770   :  { %3416 = vst.msk [vmem:[#allocation2 + $0x18] sm:$0xff] %vm162_vm0, %v3370_v39  ;;  %v3365_v11 = vadd.f32 %v3364_v15, %v10252_v3  ;;  %v2861_v40 = vadd.f32 1.0, %v8406_v8  ;;  %8419 = vrcp.f32 %v2862_v26  ;;  %v2869_v39 = vadd.f32 %v2802_v24, %v9670_v57  ;;  %v2692_v24 = vld [vmem:[#allocation2 + $0x280] sm:$0xff] }
 0x771   :  { %v7756_v20 = vpop.f32.mrf.mxu0  ;;  %v8408_v25 = vpop.eup %8407  ;;  %v2872_v8 = vadd.f32 %v7713_v23, %v9663_v44 }
 0x772   :  { %3415 = vst.msk [vmem:[#allocation2 + $0x10] sm:$0xff] %vm162_vm0, %v3365_v11  ;;  %v3380_v36 = vadd.f32 %v7756_v20, %v10265_v59  ;;  %v2864_v6 = vadd.f32 1.0, %v8408_v25  ;;  %8421 = vrcp.f32 %v2861_v40 }
 0x773   :  { %v3374_v16 = vpop.f32.mrf.mxu0  ;;  %v8410_v31 = vpop.eup %8409 }
 0x774   :  { %3418 = vst.msk [vmem:[#allocation2 + $0x28] sm:$0xff] %vm162_vm0, %v3380_v36  ;;  %v3375_v1 = vadd.f32 %v3374_v16, %v10269_v60  ;;  %v2863_v11 = vadd.f32 1.0, %v8410_v31  ;;  %8423 = vrcp.f32 %v2864_v6 }
 0x775   :  { %v8412_v53 = vpop.eup %8411  ;;  %v7759_v7 = vpop.f32.mrf.mxu0 }
 0x776   :  { %v2874_v14 = vmul.f32 %v8412_v53, %v2870_v37  ;;  %3417 = vst.msk [vmem:[#allocation2 + $0x20] sm:$0xff] %vm162_vm0, %v3375_v1  ;;  %v3390_v48 = vadd.f32 %v7759_v7, %v10258_v28  ;;  %v10288_v37 = vpop.permute.xlu0 %3211  ;;  %v2871_v1 = vadd.f32 %v2812_v30, %v9665_v45 }
 0x777   :  { %v8414_v15 = vpop.eup %8413  ;;  %v3384_v20 = vpop.f32.mrf.mxu0 }
 0x778   :  { %v2878_v36 = vadd.f32 %v2874_v14, %v2693_v19  ;;  %v2873_v16 = vmul.f32 %v8414_v15, %v2869_v39  ;;  %3420 = vst.msk [vmem:[#allocation2 + $0x38] sm:$0xff] %vm162_vm0, %v3390_v48  ;;  %v3385_v25 = vadd.f32 %v3384_v20, %v10260_v35  ;;  %v10293_v14 = vpop.permute.xlu1 %3206  ;;  %v2695_v39 = vld [vmem:[#allocation2 + $0x298] sm:$0xff]  ;;  %v2694_v19 = vld [vmem:[#allocation2 + $0x290] sm:$0xff] }
 0x779   :  { %v8416_v26 = vpop.eup %8415  ;;  %v7762_v53 = vpop.f32.mrf.mxu0 }
 0x77a   :  { %8425 = vtanh.f32 %v2878_v36  ;;  %v2877_v31 = vadd.f32 %v2873_v16, %v2692_v24  ;;  %v2876_v7 = vmul.f32 %v8416_v26, %v2872_v8  ;;  %3419 = vst.msk [vmem:[#allocation2 + $0x30] sm:$0xff] %vm162_vm0, %v3385_v25  ;;  %v3400_v23 = vadd.f32 %v7762_v53, %v10288_v37 }
 0x77b   :  { %v8418_v40 = vpop.eup %8417  ;;  %8427 = vrcp.f32 %v2863_v11  ;;  %v3394_v48 = vpop.f32.mrf.mxu0 }
 0x77c   :  { %8429 = vtanh.f32 %v2877_v31  ;;  %v2880_v15 = vadd.f32 %v2876_v7, %v2695_v39  ;;  %v2875_v6 = vmul.f32 %v8418_v40, %v2871_v1  ;;  %3422 = vst.msk [vmem:[#allocation2 + $0x48] sm:$0xff] %vm162_vm0, %v3400_v23  ;;  %v3395_v30 = vadd.f32 %v3394_v48, %v10293_v14 }
 0x77d   :  { %v7765_v20 = vpop.f32.mrf.mxu0  ;;  %v8420_v24 = vpop.eup %8419 }
 0x77e   :  { %8431 = vtanh.f32 %v2880_v15  ;;  %v2879_v8 = vadd.f32 %v2875_v6, %v2694_v19  ;;  %3421 = vst.msk [vmem:[#allocation2 + $0x40] sm:$0xff] %vm162_vm0, %v3395_v30  ;;  %v3410_v36 = vadd.f32 %v7765_v20, %v10275_v27  ;;  %v2886_v39 = vsub.f32 1.0, %v8420_v24 }
 0x77f   :  { %v3404_v16 = vpop.f32.mrf.mxu0  ;;  %v8422_v31 = vpop.eup %8421  ;;  %v2894_v20 = vmul.f32 %v8420_v24, %v10012_v21 }
 0x780   :  { %8433 = vtanh.f32 %v2879_v8  ;;  %3424 = vst.msk [vmem:[#allocation2 + $0x58] sm:$0xff] %vm162_vm0, %v3410_v36  ;;  %v3405_v11 = vadd.f32 %v3404_v16, %v10280_v9  ;;  %v2885_v8 = vsub.f32 1.0, %v8422_v31 }
 0x781   :  { %v7802_v25 = vpop.f32.mrf.mxu0  ;;  %v8424_v23 = vpop.eup %8423 }
 0x782   :  { %3423 = vst.msk [vmem:[#allocation2 + $0x50] sm:$0xff] %vm162_vm0, %v3405_v11  ;;  %v3642_v26 = vadd.f32 %v7802_v25, %v10254_v17  ;;  %v2893_v11 = vmul.f32 %v8422_v31, %v10018_v18 }
 0x783   :  { %v3636_v1 = vpop.f32.mrf.mxu0 }
 0x784   :  { %3696 = vst.msk [vmem:[#allocation2 + $0xc8] sm:$0xff] %vm162_vm0, %v3642_v26  ;;  %v3637_v53 = vadd.f32 %v3636_v1, %v10256_v22  ;;  %v2888_v26 = vsub.f32 1.0, %v8424_v23 }
 0x785   :  { %v7805_v7 = vpop.f32.mrf.mxu0 }
 0x786   :  { %3695 = vst.msk [vmem:[#allocation2 + $0xc0] sm:$0xff] %vm162_vm0, %v3637_v53  ;;  %v3652_v40 = vadd.f32 %v7805_v7, %v10250_v12 }
 0x787   :  { %v8426_v48 = vpop.eup %8425  ;;  %v3646_v15 = vpop.f32.mrf.mxu0 }
 0x788   :  { %v8428_v6 = vpop.eup %8427  ;;  %3698 = vst.msk [vmem:[#allocation2 + $0xd8] sm:$0xff] %vm162_vm0, %v3652_v40  ;;  %v3647_v30 = vadd.f32 %v3646_v15, %v10252_v3  ;;  %v2890_v19 = vmul.f32 %v8426_v48, %v2886_v39  ;;  %v2896_v15 = vmul.f32 %v8424_v23, %v10020_v29 }
 0x789   :  { %v8430_v36 = vpop.eup %8429  ;;  %v7808_v16 = vpop.f32.mrf.mxu0  ;;  %v2887_v39 = vsub.f32 1.0, %v8428_v6  ;;  %v2895_v23 = vmul.f32 %v8428_v6, %v10028_v13 }
 0x78a   :  { %3697 = vst.msk [vmem:[#allocation2 + $0xd0] sm:$0xff] %vm162_vm0, %v3647_v30  ;;  %v3662_v25 = vadd.f32 %v7808_v16, %v10265_v59  ;;  %v10313_v1 = vadd.f32 %v2894_v20, %v2890_v19  ;;  %v2889_v53 = vmul.f32 %v8430_v36, %v2885_v8 }
 0x78b   :  { %v8432_v7 = vpop.eup %8431  ;;  %v3656_v40 = vpop.f32.mrf.mxu0 }
 0x78c   :  { %3700 = vst.msk [vmem:[#allocation2 + $0xe8] sm:$0xff] %vm162_vm0, %v3662_v25  ;;  %v3657_v21 = vadd.f32 %v3656_v40, %v10269_v60  ;;  %v2892_v24 = vmul.f32 %v8432_v7, %v2888_v26  ;;  %2903 = vst.msk [vmem:[#allocation3 + $0xc8] sm:$0xff] %vm162_vm0, %v10313_v1  ;;  %v10320_v18 = vadd.f32 %v2893_v11, %v2889_v53  ;;  %v3428_v7 = vld [vmem:[#allocation3 + $0x38] sm:$0xff] }
 0x78d   :  { %v8434_v31 = vpop.eup %8433  ;;  %v7811_v48 = vpop.f32.mrf.mxu0 }
 0x78e   :  { %3699 = vst.msk [vmem:[#allocation2 + $0xe0] sm:$0xff] %vm162_vm0, %v3657_v21  ;;  %v3672_v30 = vadd.f32 %v7811_v48, %v10258_v28  ;;  %v10324_v19 = vadd.f32 %v2896_v15, %v2892_v24  ;;  %v2891_v29 = vmul.f32 %v8434_v31, %v2887_v39  ;;  %2902 = vst.msk [vmem:[#allocation3 + $0xc0] sm:$0xff] %vm162_vm0, %v10320_v18  ;;  %v3427_v24 = vld [vmem:[#allocation3 + $0x30] sm:$0xff] }
 0x78f   :  { %v3666_v20 = vpop.f32.mrf.mxu0 }
 0x790   :  { %3702 = vst.msk [vmem:[#allocation2 + $0xf8] sm:$0xff] %vm162_vm0, %v3672_v30  ;;  %v3667_v8 = vadd.f32 %v3666_v20, %v10260_v35  ;;  %2905 = vst.msk [vmem:[#allocation3 + $0xd8] sm:$0xff] %vm162_vm0, %v10324_v19  ;;  %7714 = vmatprep.subr.mxu1 %v10324_v19  ;;  %v10334_v36 = vadd.f32 %v2895_v23, %v2891_v29  ;;  %v3426_v30 = vld [vmem:[#allocation3 + $0x28] sm:$0xff]  ;;  %v3425_v20 = vld [vmem:[#allocation3 + $0x20] sm:$0xff] }
 0x791   :  { %7715 = vmatpush3.msra.mxu1 %v10324_v19  ;;  %v7814_v16 = vpop.f32.mrf.mxu0 }
 0x792   :  { %3701 = vst.msk [vmem:[#allocation2 + $0xf0] sm:$0xff] %vm162_vm0, %v3667_v8  ;;  %v3682_v13 = vadd.f32 %v7814_v16, %v10288_v37  ;;  %2904 = vst.msk [vmem:[#allocation3 + $0xd0] sm:$0xff] %vm162_vm0, %v10334_v36  ;;  %7716 = vmatprep.subr.mxu1 %v10334_v36 }
 0x793   :  { %7717 = vmatpush3.msra.mxu1 %v10334_v36  ;;  %v3676_v6 = vpop.f32.mrf.mxu0  ;;  %v4131_v29 = vld [vmem:[#allocation3 + $0xc8] sm:$0xff] }
 0x794   :  { %3704 = vst.msk [vmem:[#allocation2 + $0x108] sm:$0xff] %vm162_vm0, %v3682_v13  ;;  %v3677_v11 = vadd.f32 %v3676_v6, %v10293_v14  ;;  %7718 = vmatprep.subr.mxu1 %v10313_v1  ;;  %v3710_v13 = vld [vmem:[#allocation3 + $0x78] sm:$0xff] }
 0x795   :  { %7719 = vmatpush3.msra.mxu1 %v10313_v1  ;;  %v7817_v25 = vpop.f32.mrf.mxu0  ;;  %v4130_v8 = vld [vmem:[#allocation3 + $0xc0] sm:$0xff] }
 0x796   :  { %3703 = vst.msk [vmem:[#allocation2 + $0x100] sm:$0xff] %vm162_vm0, %v3677_v11  ;;  %v3692_v26 = vadd.f32 %v7817_v25, %v10275_v27  ;;  %7720 = vmatprep.subr.mxu1 %v10320_v18 }
 0x797   :  { %7721 = vmatpush3.msra.mxu1 %v10320_v18  ;;  %v3686_v53 = vpop.f32.mrf.mxu0  ;;  %v4133_v40 = vld [vmem:[#allocation3 + $0xd8] sm:$0xff] }
 0x798   :  { %3706 = vst.msk [vmem:[#allocation2 + $0x118] sm:$0xff] %vm162_vm0, %v3692_v26  ;;  %v3687_v15 = vadd.f32 %v3686_v53, %v10280_v9  ;;  %7723 = vmatmul.mubr.msk.f32.vlgmr.msra.gmra.mxu1 %vm1328_vm1, %v10042_v10  ;;  %7766 = vmatprep.subr.mxu1 %v3428_v7 }
 0x799   :  { %7896 = vmatprep.subr.mxu0 %v4133_v40  ;;  %7767 = vmatpush3.msra.mxu1 %v3428_v7  ;;  %v7854_v21 = vpop.f32.mrf.mxu0  ;;  %v4132_v39 = vld [vmem:[#allocation3 + $0xd0] sm:$0xff] }
 0x79a   :  { %3705 = vst.msk [vmem:[#allocation2 + $0x110] sm:$0xff] %vm162_vm0, %v3687_v15  ;;  %v3924_v31 = vadd.f32 %v7854_v21, %v10254_v17  ;;  %7897 = vmatpush3.msra.mxu0 %v4133_v40  ;;  %7768 = vmatprep.subr.mxu1 %v3427_v24  ;;  %v3708_v21 = vld [vmem:[#allocation3 + $0x68] sm:$0xff] }
 0x79b   :  { %7898 = vmatprep.subr.mxu0 %v4132_v39  ;;  %7725 = vmatprep.mubr.msk.f32.mxu1 %vm1328_vm1, %v10049_v33  ;;  %v3918_v48 = vpop.f32.mrf.mxu0 }
 0x79c   :  { %3978 = vst.msk [vmem:[#allocation2 + $0x188] sm:$0xff] %vm162_vm0, %v3924_v31  ;;  %7769 = vmatpush3.msra.mxu1 %v3427_v24  ;;  %v3919_v10 = vadd.f32 %v3918_v48, %v10256_v22  ;;  %7899 = vmatpush3.msra.mxu0 %v4132_v39  ;;  %v10433_v24 = vld [vmem:[%s11393_s6] sm:$0xff]  ;;  %v10442_v31 = vld [vmem:[%s11393_s6 + $0x8] sm:$0xff]  ;;  %v3992_v48 = vld [vmem:[#allocation3 + $0xb8] sm:$0xff] }
 0x79d   :  { %7726 = vmatmul.mubr.msk.f32.gmra.mxu1 %vm1328_vm1, %v10056_v34  ;;  %7770 = vmatprep.subr.mxu1 %v3426_v30  ;;  %v7857_v23 = vpop.f32.mrf.mxu0  ;;  %v3707_v39 = vld [vmem:[#allocation3 + $0x60] sm:$0xff] }
 0x79e   :  { %3977 = vst.msk [vmem:[#allocation2 + $0x180] sm:$0xff] %vm162_vm0, %v3919_v10  ;;  %7900 = vmatprep.subr.mxu0 %v4131_v29  ;;  %7771 = vmatpush3.msra.mxu1 %v3426_v30  ;;  %v3934_v33 = vadd.f32 %v7857_v23, %v10250_v12  ;;  %v10449_v10 = vld [vmem:[%s11393_s6 + $0x10] sm:$0xff]  ;;  %v10462_v30 = vld [vmem:[%s11393_s6 + $0x18] sm:$0xff]  ;;  %v10480_v23 = vld [vmem:[%s11393_s6 + $0x28] sm:$0xff] }
 0x79f   :  { %7901 = vmatpush3.msra.mxu0 %v4131_v29  ;;  %7772 = vmatprep.subr.mxu1 %v3425_v20  ;;  %v3928_v16 = vpop.f32.mrf.mxu0  ;;  %v10467_v29 = vld [vmem:[%s11393_s6 + $0x20] sm:$0xff] }
 0x7a0   :  { %3980 = vst.msk [vmem:[#allocation2 + $0x198] sm:$0xff] %vm162_vm0, %v3934_v33  ;;  %7902 = vmatprep.subr.mxu0 %v4130_v8  ;;  %7728 = vmatprep.mubr.msk.f32.mxu1 %vm1328_vm1, %v10063_v38  ;;  %v3929_v34 = vadd.f32 %v3928_v16, %v10252_v3  ;;  %v10485_v33 = vld [vmem:[%s11393_s6 + $0x30] sm:$0xff]  ;;  %v10516_v16 = vld [vmem:[%s11393_s6 + $0x48] sm:$0xff] }
 0x7a1   :  { %7773 = vmatpush3.msra.mxu1 %v3425_v20  ;;  %7903 = vmatpush3.msra.mxu0 %v4130_v8  ;;  %v7860_v6 = vpop.f32.mrf.mxu0  ;;  %v10498_v20 = vld [vmem:[%s11393_s6 + $0x38] sm:$0xff]  ;;  %v10503_v8 = vld [vmem:[%s11393_s6 + $0x40] sm:$0xff] }
 0x7a2   :  { %3979 = vst.msk [vmem:[#allocation2 + $0x190] sm:$0xff] %vm162_vm0, %v3929_v34  ;;  %7729 = vmatmul.mubr.msk.f32.gmra.mxu1 %vm1328_vm1, %v10070_v63  ;;  %7818 = vmatprep.subr.mxu1 %v3710_v13  ;;  %v3944_v11 = vadd.f32 %v7860_v6, %v10265_v59  ;;  %v10523_v34 = vld [vmem:[%s11393_s6 + $0x50] sm:$0xff]  ;;  %v10532_v6 = vld [vmem:[%s11393_s6 + $0x58] sm:$0xff] }
 0x7a3   :  { %7905 = vmatmul.mubr.msk.f32.vlgmr.msra.gmra.mxu0 %vm1328_vm1, %v10126_v49  ;;  %7731 = vmatprep.mubr.msk.f32.mxu1 %vm1328_vm1, %v10077_v50  ;;  %v3938_v38 = vpop.f32.mrf.mxu0 }
 0x7a4   :  { %3982 = vst.msk [vmem:[#allocation2 + $0x1a8] sm:$0xff] %vm162_vm0, %v3944_v11  ;;  %v3939_v25 = vadd.f32 %v3938_v38, %v10269_v60  ;;  %7907 = vmatprep.mubr.msk.f32.mxu0 %vm1328_vm1, %v10131_v4  ;;  %7948 = vmatprep.subr.mxu0 %v8908_v41  ;;  %v3990_v11 = vld [vmem:[#allocation3 + $0xa8] sm:$0xff]  ;;  %v3989_v38 = vld [vmem:[#allocation3 + $0xa0] sm:$0xff] }
 0x7a5   :  { %v7863_v63 = vpop.f32.mrf.mxu0  ;;  %7949 = vmatpush3.msra.mxu0 %v8908_v41 }
 0x7a6   :  { %3981 = vst.msk [vmem:[#allocation2 + $0x1a0] sm:$0xff] %vm162_vm0, %v3939_v25  ;;  %7732 = vmatmul.mubr.msk.f32.gmra.mxu1 %vm1328_vm1, %v10084_v54  ;;  %v3954_v50 = vadd.f32 %v7863_v63, %v10258_v28  ;;  %v2909_v63 = vld [vmem:[#allocation2 + $0x2b8] sm:$0xff] }
 0x7a7   :  { %7908 = vmatmul.mubr.msk.f32.gmra.mxu0 %vm1328_vm1, %v10140_v51  ;;  %7734 = vmatprep.mubr.msk.f32.mxu1 %vm1328_vm1, %v10091_v47  ;;  %v3948_v26 = vpop.f32.mrf.mxu0 }
 0x7a8   :  { %3984 = vst.msk [vmem:[#allocation2 + $0x1b8] sm:$0xff] %vm162_vm0, %v3954_v50  ;;  %v3949_v53 = vadd.f32 %v3948_v26, %v10260_v35  ;;  %7910 = vmatprep.mubr.msk.f32.mxu0 %vm1328_vm1, %v10145_v0  ;;  %v2908_v26 = vld [vmem:[#allocation2 + $0x2b0] sm:$0xff] }
 0x7a9   :  { %v7866_v41 = vpop.f32.mrf.mxu0 }
 0x7aa   :  { %3983 = vst.msk [vmem:[#allocation2 + $0x1b0] sm:$0xff] %vm162_vm0, %v3949_v53  ;;  %7735 = vmatmul.mubr.msk.f32.gmra.mxu1 %vm1328_vm1, %v10098_v42  ;;  %v3964_v54 = vadd.f32 %v7866_v41, %v10288_v37 }
 0x7ab   :  { %7911 = vmatmul.mubr.msk.f32.gmra.mxu0 %vm1328_vm1, %v10154_v2  ;;  %7737 = vmatprep.mubr.msk.f32.mxu1 %vm1328_vm1, %v10105_v43  ;;  %v3958_v47 = vpop.f32.mrf.mxu0 }
 0x7ac   :  { %3986 = vst.msk [vmem:[#allocation2 + $0x1c8] sm:$0xff] %vm162_vm0, %v3964_v54  ;;  %v3959_v7 = vadd.f32 %v3958_v47, %v10293_v14  ;;  %7913 = vmatprep.mubr.msk.f32.mxu0 %vm1328_vm1, %v10159_v61  ;;  %v2911_v47 = vld [vmem:[#allocation2 + $0x2c8] sm:$0xff] }
 0x7ad   :  { %v7869_v40 = vpop.f32.mrf.mxu0 }
 0x7ae   :  { %3985 = vst.msk [vmem:[#allocation2 + $0x1c0] sm:$0xff] %vm162_vm0, %v3959_v7  ;;  %7738 = vmatmul.mubr.msk.f32.gmra.mxu1 %vm1328_vm1, %v10117_v46  ;;  %v3974_v42 = vadd.f32 %v7869_v40, %v10275_v27  ;;  %v3709_v46 = vld [vmem:[#allocation3 + $0x70] sm:$0xff] }
 0x7af   :  { %7914 = vmatmul.mubr.msk.f32.gmra.mxu0 %vm1328_vm1, %v10168_v55  ;;  %7774 = vmatprep.mubr.msk.f32.mxu1 %vm1328_vm1, %v10112_v52  ;;  %v3968_v43 = vpop.f32.mrf.mxu0 }
 0x7b0   :  { %3988 = vst.msk [vmem:[#allocation2 + $0x1d8] sm:$0xff] %vm162_vm0, %v3974_v42  ;;  %v3969_v15 = vadd.f32 %v3968_v43, %v10280_v9  ;;  %7916 = vmatprep.mubr.msk.f32.mxu0 %vm1328_vm1, %v10173_v62 }
 0x7b2   :  { %3987 = vst.msk [vmem:[#allocation2 + $0x1d0] sm:$0xff] %vm162_vm0, %v3969_v15  ;;  %7775 = vmatmul.mubr.msk.f32.vlgmr.msra.gmra.mxu1 %vm1328_vm1, %v10126_v49 }
 0x7b3   :  { %7819 = vmatpush3.msra.mxu1 %v3710_v13  ;;  %7917 = vmatmul.mubr.msk.f32.gmra.mxu0 %vm1328_vm1, %v10182_v56  ;;  %v3991_v13 = vld [vmem:[#allocation3 + $0xb0] sm:$0xff] }
 0x7b4   :  { %7820 = vmatprep.subr.mxu1 %v3709_v46  ;;  %7777 = vmatprep.mubr.msk.f32.mxu1 %vm1328_vm1, %v10131_v4 }
 0x7b5   :  { %7821 = vmatpush3.msra.mxu1 %v3709_v46  ;;  %7919 = vmatprep.mubr.msk.f32.mxu0 %vm1328_vm1, %v10187_v5  ;;  %v2910_v46 = vld [vmem:[#allocation2 + $0x2c0] sm:$0xff] }
 0x7b6   :  { %7822 = vmatprep.subr.mxu1 %v3708_v21  ;;  %7778 = vmatmul.mubr.msk.f32.gmra.mxu1 %vm1328_vm1, %v10140_v51 }
 0x7b7   :  { %7823 = vmatpush3.msra.mxu1 %v3708_v21  ;;  %7920 = vmatmul.mubr.msk.f32.gmra.mxu0 %vm1328_vm1, %v10196_v58 }
 0x7b8   :  { %7824 = vmatprep.subr.mxu1 %v3707_v39  ;;  %7780 = vmatprep.mubr.msk.f32.mxu1 %vm1328_vm1, %v10145_v0 }
 0x7b9   :  { %7825 = vmatpush3.msra.mxu1 %v3707_v39  ;;  %7950 = vmatprep.mubr.msk.f32.mxu0 %vm1328_vm1, %v10433_v24 }
 0x7ba   :  { %7870 = vmatprep.subr.mxu1 %v3992_v48  ;;  %7781 = vmatmul.mubr.msk.f32.gmra.mxu1 %vm1328_vm1, %v10154_v2 }
 0x7bb   :  { %7951 = vmatmul.mubr.msk.f32.vlgmr.msra.gmra.mxu0 %vm1328_vm1, %v10442_v31  ;;  %7783 = vmatprep.mubr.msk.f32.mxu1 %vm1328_vm1, %v10159_v61 }
 0x7bc   :  { %7953 = vmatprep.mubr.msk.f32.mxu0 %vm1328_vm1, %v10449_v10 }
 0x7be   :  { %7784 = vmatmul.mubr.msk.f32.gmra.mxu1 %vm1328_vm1, %v10168_v55 }
 0x7bf   :  { %7954 = vmatmul.mubr.msk.f32.gmra.mxu0 %vm1328_vm1, %v10462_v30  ;;  %7786 = vmatprep.mubr.msk.f32.mxu1 %vm1328_vm1, %v10173_v62 }
 0x7c0   :  { %7956 = vmatprep.mubr.msk.f32.mxu0 %vm1328_vm1, %v10467_v29 }
 0x7c2   :  { %7787 = vmatmul.mubr.msk.f32.gmra.mxu1 %vm1328_vm1, %v10182_v56 }
 0x7c3   :  { %7957 = vmatmul.mubr.msk.f32.gmra.mxu0 %vm1328_vm1, %v10480_v23  ;;  %7789 = vmatprep.mubr.msk.f32.mxu1 %vm1328_vm1, %v10187_v5 }
 0x7c4   :  { %7959 = vmatprep.mubr.msk.f32.mxu0 %vm1328_vm1, %v10485_v33 }
 0x7c6   :  { %7790 = vmatmul.mubr.msk.f32.gmra.mxu1 %vm1328_vm1, %v10196_v58 }
 0x7c7   :  { %7960 = vmatmul.mubr.msk.f32.gmra.mxu0 %vm1328_vm1, %v10498_v20  ;;  %7826 = vmatprep.mubr.msk.f32.mxu1 %vm1328_vm1, %v10112_v52 }
 0x7c8   :  { %7962 = vmatprep.mubr.msk.f32.mxu0 %vm1328_vm1, %v10503_v8 }
 0x7ca   :  { %7827 = vmatmul.mubr.msk.f32.vlgmr.msra.gmra.mxu1 %vm1328_vm1, %v10126_v49 }
 0x7cb   :  { %7871 = vmatpush3.msra.mxu1 %v3992_v48  ;;  %7963 = vmatmul.mubr.msk.f32.gmra.mxu0 %vm1328_vm1, %v10516_v16 }
 0x7cc   :  { %7872 = vmatprep.subr.mxu1 %v3991_v13  ;;  %7829 = vmatprep.mubr.msk.f32.mxu1 %vm1328_vm1, %v10131_v4 }
 0x7cd   :  { %7873 = vmatpush3.msra.mxu1 %v3991_v13  ;;  %7965 = vmatprep.mubr.msk.f32.mxu0 %vm1328_vm1, %v10523_v34 }
 0x7ce   :  { %7874 = vmatprep.subr.mxu1 %v3990_v11  ;;  %7830 = vmatmul.mubr.msk.f32.gmra.mxu1 %vm1328_vm1, %v10140_v51 }
 0x7cf   :  { %7875 = vmatpush3.msra.mxu1 %v3990_v11  ;;  %7966 = vmatmul.mubr.msk.f32.gmra.mxu0 %vm1328_vm1, %v10532_v6 }
 0x7d0   :  { %7876 = vmatprep.subr.mxu1 %v3989_v38  ;;  %7832 = vmatprep.mubr.msk.f32.mxu1 %vm1328_vm1, %v10145_v0 }
 0x7d1   :  { %7877 = vmatpush3.msra.mxu1 %v3989_v38  ;;  %8002 = vmatprep.mubr.msk.f32.mxu0 %vm1328_vm1, %v10433_v24  ;;  %v2913_v38 = vld [vmem:[#allocation2 + $0x2d8] sm:$0xff] }
 0x7d2   :  { %7833 = vmatmul.mubr.msk.f32.gmra.mxu1 %vm1328_vm1, %v10154_v2 }
 0x7d3   :  { %7835 = vmatprep.mubr.msk.f32.mxu1 %vm1328_vm1, %v10159_v61 }
 0x7d6   :  { %7836 = vmatmul.mubr.msk.f32.gmra.mxu1 %vm1328_vm1, %v10168_v55 }
 0x7d7   :  { %7838 = vmatprep.mubr.msk.f32.mxu1 %vm1328_vm1, %v10173_v62 }
 0x7da   :  { %7839 = vmatmul.mubr.msk.f32.gmra.mxu1 %vm1328_vm1, %v10182_v56 }
 0x7db   :  { %7841 = vmatprep.mubr.msk.f32.mxu1 %vm1328_vm1, %v10187_v5 }
 0x7de   :  { %7842 = vmatmul.mubr.msk.f32.gmra.mxu1 %vm1328_vm1, %v10196_v58 }
 0x7df   :  { %7878 = vmatprep.mubr.msk.f32.mxu1 %vm1328_vm1, %v10112_v52 }
 0x7e2   :  { %7879 = vmatmul.mubr.msk.f32.vlgmr.msra.gmra.mxu1 %vm1328_vm1, %v10126_v49  ;;  %v2907_v49 = vld [vmem:[#allocation2 + $0x2a8] sm:$0xff] }
 0x7e3   :  { %7881 = vmatprep.mubr.msk.f32.mxu1 %vm1328_vm1, %v10131_v4 }
 0x7e6   :  { %7882 = vmatmul.mubr.msk.f32.gmra.mxu1 %vm1328_vm1, %v10140_v51 }
 0x7e7   :  { %7884 = vmatprep.mubr.msk.f32.mxu1 %vm1328_vm1, %v10145_v0  ;;  %v2906_v0 = vld [vmem:[#allocation2 + $0x2a0] sm:$0xff] }
 0x7ea   :  { %7885 = vmatmul.mubr.msk.f32.gmra.mxu1 %vm1328_vm1, %v10154_v2 }
 0x7eb   :  { %7887 = vmatprep.mubr.msk.f32.mxu1 %vm1328_vm1, %v10159_v61 }
 0x7ee   :  { %7888 = vmatmul.mubr.msk.f32.gmra.mxu1 %vm1328_vm1, %v10168_v55 }
 0x7ef   :  { %7890 = vmatprep.mubr.msk.f32.mxu1 %vm1328_vm1, %v10173_v62 }
 0x7f2   :  { %7891 = vmatmul.mubr.msk.f32.gmra.mxu1 %vm1328_vm1, %v10182_v56 }
 0x7f3   :  { %7893 = vmatprep.mubr.msk.f32.mxu1 %vm1328_vm1, %v10187_v5 }
 0x7f6   :  { %7894 = vmatmul.mubr.msk.f32.gmra.mxu1 %vm1328_vm1, %v10196_v58 }
 0x7f7   :  { %7930 = vmatprep.mubr.msk.f32.mxu1 %vm1328_vm1, %v10112_v52 }
 0x858   :  { %v7724_v4 = vpop.f32.mrf.mxu1 }
 0x859   :  { %v3044_v51 = vadd.f32 %v7724_v4, %v2907_v49 }
 0x85a   :  { %v2984_v2 = vpop.f32.mrf.mxu1 }
 0x85b   :  { %v3048_v61 = vsub.f32 0.0, %v3044_v51  ;;  %v3043_v55 = vadd.f32 %v2984_v2, %v2906_v0 }
 0x85d   :  { %v3053_v62 = vmul.f32 1.442695, %v3048_v61  ;;  %v3047_v25 = vsub.f32 0.0, %v3043_v55  ;;  %v7727_v56 = vpop.f32.mrf.mxu1  ;;  %v2912_v55 = vld [vmem:[#allocation2 + $0x2d0] sm:$0xff] }
 0x85e   :  { %v3046_v50 = vadd.f32 %v7727_v56, %v2909_v63 }
 0x85f   :  { %8435 = vpow2.f32 %v3053_v62  ;;  %v3051_v5 = vmul.f32 1.442695, %v3047_v25  ;;  %v2994_v53 = vpop.f32.mrf.mxu1 }
 0x860   :  { %v3050_v58 = vsub.f32 0.0, %v3046_v50  ;;  %v3045_v41 = vadd.f32 %v2994_v53, %v2908_v26 }
 0x861   :  { %8437 = vpow2.f32 %v3051_v5 }
 0x862   :  { %v3057_v52 = vmul.f32 1.442695, %v3050_v58  ;;  %v3049_v54 = vsub.f32 0.0, %v3045_v41  ;;  %v7730_v7 = vpop.f32.mrf.mxu1 }
 0x863   :  { %v3068_v40 = vadd.f32 %v7730_v7, %v2911_v47  ;;  %v7906_v42 = vpop.f32.mrf.mxu0 }
 0x864   :  { %8439 = vpow2.f32 %v3057_v52  ;;  %v3055_v43 = vmul.f32 1.442695, %v3049_v54  ;;  %v4206_v15 = vadd.f32 %v7906_v42, %v10254_v17  ;;  %v3004_v21 = vpop.f32.mrf.mxu1 }
 0x865   :  { %v3072_v39 = vsub.f32 0.0, %v3068_v40  ;;  %v3067_v48 = vadd.f32 %v3004_v21, %v2910_v46  ;;  %v4200_v13 = vpop.f32.mrf.mxu0 }
 0x866   :  { %8441 = vpow2.f32 %v3055_v43  ;;  %4260 = vst.msk [vmem:[#allocation2 + $0x248] sm:$0xff] %vm162_vm0, %v4206_v15  ;;  %v4201_v11 = vadd.f32 %v4200_v13, %v10256_v22  ;;  %v7733_v49 = vpop.f32.mrf.mxu1 }
 0x867   :  { %v3077_v4 = vmul.f32 1.442695, %v3072_v39  ;;  %v3071_v51 = vsub.f32 0.0, %v3067_v48  ;;  %v3070_v0 = vadd.f32 %v7733_v49, %v2913_v38  ;;  %v7909_v2 = vpop.f32.mrf.mxu0 }
 0x868   :  { %4259 = vst.msk [vmem:[#allocation2 + $0x240] sm:$0xff] %vm162_vm0, %v4201_v11  ;;  %v4216_v61 = vadd.f32 %v7909_v2, %v10250_v12  ;;  %v3014_v62 = vpop.f32.mrf.mxu1 }
 0x869   :  { %8443 = vpow2.f32 %v3077_v4  ;;  %v3075_v25 = vmul.f32 1.442695, %v3071_v51  ;;  %v3074_v63 = vsub.f32 0.0, %v3070_v0  ;;  %v3069_v56 = vadd.f32 %v3014_v62, %v2912_v55  ;;  %v4210_v50 = vpop.f32.mrf.mxu0 }
 0x86a   :  { %4262 = vst.msk [vmem:[#allocation2 + $0x258] sm:$0xff] %vm162_vm0, %v4216_v61  ;;  %v4211_v5 = vadd.f32 %v4210_v50, %v10252_v3  ;;  %v10591_v26 = vpop.f32.mrf.mxu1 }
 0x86b   :  { %8445 = vpow2.f32 %v3075_v25  ;;  %v3081_v53 = vmul.f32 1.442695, %v3074_v63  ;;  %v3073_v58 = vsub.f32 0.0, %v3069_v56  ;;  %v7912_v41 = vpop.f32.mrf.mxu0 }
 0x86c   :  { %v8436_v52 = vpop.eup %8435  ;;  %4261 = vst.msk [vmem:[#allocation2 + $0x250] sm:$0xff] %vm162_vm0, %v4211_v5  ;;  %v4226_v54 = vadd.f32 %v7912_v41, %v10265_v59  ;;  %v3024_v47 = vpop.f32.mrf.mxu1 }
 0x86d   :  { %v3060_v7 = vadd.f32 1.0, %v8436_v52  ;;  %8447 = vpow2.f32 %v3081_v53  ;;  %v3079_v40 = vmul.f32 1.442695, %v3073_v58  ;;  %v4220_v42 = vpop.f32.mrf.mxu0 }
 0x86e   :  { %v8438_v43 = vpop.eup %8437  ;;  %4264 = vst.msk [vmem:[#allocation2 + $0x268] sm:$0xff] %vm162_vm0, %v4226_v54  ;;  %v4221_v15 = vadd.f32 %v4220_v42, %v10269_v60  ;;  %v7739_v46 = vpop.f32.mrf.mxu1 }
 0x86f   :  { %8449 = vrcp.f32 %v3060_v7  ;;  %v3059_v21 = vadd.f32 1.0, %v8438_v43  ;;  %v7915_v39 = vpop.f32.mrf.mxu0 }
 0x870   :  { %8451 = vpow2.f32 %v3079_v40  ;;  %4263 = vst.msk [vmem:[#allocation2 + $0x260] sm:$0xff] %vm162_vm0, %v4221_v15  ;;  %v4236_v48 = vadd.f32 %v7915_v39, %v10258_v28  ;;  %v10599_v13 = vpop.f32.mrf.mxu1 }
 0x871   :  { %v8440_v11 = vpop.eup %8439  ;;  %8453 = vrcp.f32 %v3059_v21  ;;  %v4230_v38 = vpop.f32.mrf.mxu0 }
 0x872   :  { %v3062_v49 = vadd.f32 1.0, %v8440_v11  ;;  %4266 = vst.msk [vmem:[#allocation2 + $0x278] sm:$0xff] %vm162_vm0, %v4236_v48  ;;  %v4231_v4 = vadd.f32 %v4230_v38, %v10260_v35  ;;  %v7776_v51 = vpop.f32.mrf.mxu1  ;;  %v3092_v38 = vadd.f32 %v10591_v26, %v9667_v32  ;;  %v4412_v26 = vld [vmem:[#allocation2] sm:$0xff] }
 0x873   :  { %v8442_v0 = vpop.eup %8441  ;;  %v3501_v2 = vadd.f32 %v7776_v51, %v10254_v17  ;;  %v7918_v61 = vpop.f32.mrf.mxu0 }
 0x874   :  { %8455 = vrcp.f32 %v3062_v49  ;;  %v3061_v55 = vadd.f32 1.0, %v8442_v0  ;;  %4265 = vst.msk [vmem:[#allocation2 + $0x270] sm:$0xff] %vm162_vm0, %v4231_v4  ;;  %v4246_v62 = vadd.f32 %v7918_v61, %v10288_v37  ;;  %v3495_v25 = vpop.f32.mrf.mxu1  ;;  %v4413_v4 = vld [vmem:[#allocation2 + $0x8] sm:$0xff] }
 0x875   :  { %3555 = vst.msk [vmem:[#allocation2 + $0x68] sm:$0xff] %vm162_vm0, %v3501_v2  ;;  %v3496_v63 = vadd.f32 %v3495_v25, %v10256_v22  ;;  %v4240_v56 = vpop.f32.mrf.mxu0  ;;  %v3091_v2 = vadd.f32 %v3024_v47, %v9670_v57 }
 0x876   :  { %v8444_v50 = vpop.eup %8443  ;;  %8457 = vrcp.f32 %v3061_v55  ;;  %4268 = vst.msk [vmem:[#allocation2 + $0x288] sm:$0xff] %vm162_vm0, %v4246_v62  ;;  %v4241_v5 = vadd.f32 %v4240_v56, %v10293_v14  ;;  %v7779_v53 = vpop.f32.mrf.mxu1 }
 0x877   :  { %3554 = vst.msk [vmem:[#allocation2 + $0x60] sm:$0xff] %vm162_vm0, %v3496_v63  ;;  %v3511_v58 = vadd.f32 %v7779_v53, %v10250_v12  ;;  %v7921_v41 = vpop.f32.mrf.mxu0  ;;  %v3084_v40 = vadd.f32 1.0, %v8444_v50  ;;  %v3094_v63 = vadd.f32 %v7739_v46, %v9663_v44  ;;  %v2915_v53 = vld [vmem:[#allocation2 + $0x2e8] sm:$0xff]  ;;  %v4415_v46 = vld [vmem:[#allocation2 + $0x18] sm:$0xff] }
 0x878   :  { %v8446_v52 = vpop.eup %8445  ;;  %4267 = vst.msk [vmem:[#allocation2 + $0x280] sm:$0xff] %vm162_vm0, %v4241_v5  ;;  %v4256_v54 = vadd.f32 %v7921_v41, %v10275_v27  ;;  %v3505_v7 = vpop.f32.mrf.mxu1 }
 0x879   :  { %3557 = vst.msk [vmem:[#allocation2 + $0x78] sm:$0xff] %vm162_vm0, %v3511_v58  ;;  %v3506_v42 = vadd.f32 %v3505_v7, %v10252_v3  ;;  %v4250_v43 = vpop.f32.mrf.mxu0  ;;  %v3083_v21 = vadd.f32 1.0, %v8446_v52  ;;  %8459 = vrcp.f32 %v3084_v40  ;;  %v2914_v7 = vld [vmem:[#allocation2 + $0x2e0] sm:$0xff] }
 0x87a   :  { %v8448_v15 = vpop.eup %8447  ;;  %4270 = vst.msk [vmem:[#allocation2 + $0x298] sm:$0xff] %vm162_vm0, %v4256_v54  ;;  %v4251_v39 = vadd.f32 %v4250_v43, %v10280_v9  ;;  %v7782_v48 = vpop.f32.mrf.mxu1 }
 0x87b   :  { %v3086_v11 = vadd.f32 1.0, %v8448_v15  ;;  %3556 = vst.msk [vmem:[#allocation2 + $0x70] sm:$0xff] %vm162_vm0, %v3506_v42  ;;  %v3521_v49 = vadd.f32 %v7782_v48, %v10265_v59  ;;  %v7952_v51 = vpop.f32.mrf.mxu0  ;;  %8461 = vrcp.f32 %v3083_v21  ;;  %v3093_v48 = vadd.f32 %v10599_v13, %v9665_v45 }
 0x87c   :  { %v8450_v0 = vpop.eup %8449  ;;  %4269 = vst.msk [vmem:[#allocation2 + $0x290] sm:$0xff] %vm162_vm0, %v4251_v39  ;;  %v4586_v61 = vadd.f32 %v7952_v51, %v4413_v4  ;;  %v3515_v55 = vpop.f32.mrf.mxu1 }
 0x87d   :  { %v8452_v62 = vpop.eup %8451  ;;  %v3096_v25 = vmul.f32 %v8450_v0, %v3092_v38  ;;  %3559 = vst.msk [vmem:[#allocation2 + $0x88] sm:$0xff] %vm162_vm0, %v3521_v49  ;;  %v3516_v32 = vadd.f32 %v3515_v55, %v10269_v60  ;;  %v4526_v56 = vpop.f32.mrf.mxu0  ;;  %8463 = vrcp.f32 %v3086_v11  ;;  %v4414_v0 = vld [vmem:[#allocation2 + $0x10] sm:$0xff]  ;;  %v2917_v55 = vld [vmem:[#allocation2 + $0x2f8] sm:$0xff] }
 0x87e   :  { %v8454_v50 = vpop.eup %8453  ;;  %v3085_v5 = vadd.f32 1.0, %v8452_v62  ;;  %v4590_v57 = vsub.f32 0.0, %v4586_v61  ;;  %v4585_v47 = vadd.f32 %v4526_v56, %v4412_v26  ;;  %v7785_v58 = vpop.f32.mrf.mxu1  ;;  %v4417_v56 = vld [vmem:[#allocation2 + $0x28] sm:$0xff] }
 0x87f   :  { %v3100_v41 = vadd.f32 %v3096_v25, %v2915_v53  ;;  %v3095_v52 = vmul.f32 %v8454_v50, %v3091_v2  ;;  %3558 = vst.msk [vmem:[#allocation2 + $0x80] sm:$0xff] %vm162_vm0, %v3516_v32  ;;  %v3531_v44 = vadd.f32 %v7785_v58, %v10258_v28  ;;  %v7955_v54 = vpop.f32.mrf.mxu0  ;;  %v2916_v50 = vld [vmem:[#allocation2 + $0x2f0] sm:$0xff] }
 0x880   :  { %8465 = vrcp.f32 %v3085_v5  ;;  %v4595_v40 = vmul.f32 1.442695, %v4590_v57  ;;  %v4589_v42 = vsub.f32 0.0, %v4585_v47  ;;  %v4588_v43 = vadd.f32 %v7955_v54, %v4415_v46  ;;  %v3525_v15 = vpop.f32.mrf.mxu1  ;;  %v4416_v47 = vld [vmem:[#allocation2 + $0x20] sm:$0xff] }
 0x881   :  { %v8456_v21 = vpop.eup %8455  ;;  %8467 = vtanh.f32 %v3100_v41  ;;  %v3099_v39 = vadd.f32 %v3095_v52, %v2914_v7  ;;  %3561 = vst.msk [vmem:[#allocation2 + $0x98] sm:$0xff] %vm162_vm0, %v3531_v44  ;;  %v3526_v11 = vadd.f32 %v3525_v15, %v10260_v35  ;;  %v4536_v38 = vpop.f32.mrf.mxu0 }
 0x882   :  { %v3098_v49 = vmul.f32 %v8456_v21, %v3094_v63  ;;  %8469 = vpow2.f32 %v4595_v40  ;;  %v4593_v4 = vmul.f32 1.442695, %v4589_v42  ;;  %v4592_v51 = vsub.f32 0.0, %v4588_v43  ;;  %v7788_v2 = vpop.f32.mrf.mxu1  ;;  %v4419_v43 = vld [vmem:[#allocation2 + $0x38] sm:$0xff] }
 0x883   :  { %v8458_v61 = vpop.eup %8457  ;;  %8471 = vtanh.f32 %v3099_v39  ;;  %3560 = vst.msk [vmem:[#allocation2 + $0x90] sm:$0xff] %vm162_vm0, %v3526_v11  ;;  %v4587_v62 = vadd.f32 %v4536_v38, %v4414_v0  ;;  %v3541_v25 = vadd.f32 %v7788_v2, %v10288_v37  ;;  %v7958_v45 = vpop.f32.mrf.mxu0  ;;  %v4418_v39 = vld [vmem:[#allocation2 + $0x30] sm:$0xff] }
 0x884   :  { %v3102_v13 = vadd.f32 %v3098_v49, %v2917_v55  ;;  %v3097_v32 = vmul.f32 %v8458_v61, %v3093_v48  ;;  %8473 = vpow2.f32 %v4593_v4  ;;  %v4599_v26 = vmul.f32 1.442695, %v4592_v51  ;;  %v3535_v63 = vpop.f32.mrf.mxu1 }
 0x885   :  { %v4591_v5 = vsub.f32 0.0, %v4587_v62  ;;  %3563 = vst.msk [vmem:[#allocation2 + $0xa8] sm:$0xff] %vm162_vm0, %v3541_v25  ;;  %v4610_v53 = vadd.f32 %v7958_v45, %v4417_v56  ;;  %v3536_v57 = vadd.f32 %v3535_v63, %v10293_v14  ;;  %v4546_v58 = vpop.f32.mrf.mxu0 }
 0x886   :  { %8475 = vtanh.f32 %v3102_v13  ;;  %v3101_v41 = vadd.f32 %v3097_v32, %v2916_v50  ;;  %v4609_v52 = vadd.f32 %v4546_v58, %v4416_v47  ;;  %v7791_v44 = vpop.f32.mrf.mxu1  ;;  %v8460_v11 = vpop.eup %8459 }
 0x887   :  { %8477 = vpow2.f32 %v4599_v26  ;;  %v4597_v46 = vmul.f32 1.442695, %v4591_v5  ;;  %3562 = vst.msk [vmem:[#allocation2 + $0xa0] sm:$0xff] %vm162_vm0, %v3536_v57  ;;  %v7961_v54 = vpop.f32.mrf.mxu0  ;;  %v4614_v7 = vsub.f32 0.0, %v4610_v53  ;;  %v3551_v42 = vadd.f32 %v7791_v44, %v10275_v27 }
 0x888   :  { %8479 = vtanh.f32 %v3101_v41  ;;  %v4613_v40 = vsub.f32 0.0, %v4609_v52  ;;  %v3545_v15 = vpop.f32.mrf.mxu1  ;;  %v4612_v21 = vadd.f32 %v7961_v54, %v4419_v43  ;;  %v8462_v2 = vpop.eup %8461  ;;  %v3108_v32 = vsub.f32 1.0, %v8460_v11 }
 0x889   :  { %8481 = vpow2.f32 %v4597_v46  ;;  %v4556_v48 = vpop.f32.mrf.mxu0  ;;  %v4619_v38 = vmul.f32 1.442695, %v4614_v7  ;;  %3565 = vst.msk [vmem:[#allocation2 + $0xb8] sm:$0xff] %vm162_vm0, %v3551_v42  ;;  %v3546_v4 = vadd.f32 %v3545_v15, %v10280_v9  ;;  %v3116_v50 = vmul.f32 %v8460_v11, %v10313_v1 }
 0x88a   :  { %v4617_v49 = vmul.f32 1.442695, %v4613_v40  ;;  %v4611_v51 = vadd.f32 %v4556_v48, %v4418_v39  ;;  %v7828_v0 = vpop.f32.mrf.mxu1  ;;  %v4616_v61 = vsub.f32 0.0, %v4612_v21  ;;  %v8464_v62 = vpop.eup %8463  ;;  %v3107_v57 = vsub.f32 1.0, %v8462_v2 }
 0x88b   :  { %v3783_v55 = vadd.f32 %v7828_v0, %v10254_v17  ;;  %8483 = vpow2.f32 %v4619_v38  ;;  %3564 = vst.msk [vmem:[#allocation2 + $0xb0] sm:$0xff] %vm162_vm0, %v3546_v4  ;;  %v3115_v44 = vmul.f32 %v8462_v2, %v10320_v18  ;;  %v3110_v43 = vsub.f32 1.0, %v8464_v62 }
 0x88c   :  { %v4615_v25 = vsub.f32 0.0, %v4611_v51  ;;  %v3777_v45 = vpop.f32.mrf.mxu1  ;;  %v4623_v26 = vmul.f32 1.442695, %v4616_v61  ;;  %8485 = vpow2.f32 %v4617_v49  ;;  %v3118_v38 = vmul.f32 %v8464_v62, %v10324_v19  ;;  %v10659_v19 = vpop.permute.xlu0 %3245 }
 0x88d   :  { %v8466_v13 = vpop.eup %8465  ;;  %3837 = vst.msk [vmem:[#allocation2 + $0x128] sm:$0xff] %vm162_vm0, %v3783_v55  ;;  %v3778_v56 = vadd.f32 %v3777_v45, %v10256_v22 }
 0x88e   :  { %v8468_v63 = vpop.eup %8467  ;;  %v7831_v5 = vpop.f32.mrf.mxu1  ;;  %v4621_v58 = vmul.f32 1.442695, %v4615_v25  ;;  %8487 = vpow2.f32 %v4623_v26  ;;  %v3109_v49 = vsub.f32 1.0, %v8466_v13  ;;  %v3117_v25 = vmul.f32 %v8466_v13, %v10334_v36 }
 0x88f   :  { %v8470_v53 = vpop.eup %8469  ;;  %v3112_v47 = vmul.f32 %v8468_v63, %v3108_v32  ;;  %3836 = vst.msk [vmem:[#allocation2 + $0x120] sm:$0xff] %vm162_vm0, %v3778_v56  ;;  %v3793_v41 = vadd.f32 %v7831_v5, %v10250_v12  ;;  %v7964_v26 = vpop.f32.mrf.mxu0 }
 0x890   :  { %v8472_v52 = vpop.eup %8471  ;;  %v4602_v46 = vadd.f32 1.0, %v8470_v53  ;;  %v3787_v54 = vpop.f32.mrf.mxu1 }
 0x891   :  { %v8474_v7 = vpop.eup %8473  ;;  %v3120_v40 = vadd.f32 %v3116_v50, %v3112_v47  ;;  %v3111_v42 = vmul.f32 %v8472_v52, %v3107_v57  ;;  %3839 = vst.msk [vmem:[#allocation2 + $0x138] sm:$0xff] %vm162_vm0, %v3793_v41  ;;  %v3788_v1 = vadd.f32 %v3787_v54, %v10252_v3  ;;  %v10664_v57 = vpop.permute.xlu1 %3240 }
 0x892   :  { %8489 = vrcp.f32 %v4602_v46  ;;  %v4601_v15 = vadd.f32 1.0, %v8474_v7  ;;  %v7834_v21 = vpop.f32.mrf.mxu1  ;;  %v4566_v13 = vpop.f32.mrf.mxu0 }
 0x893   :  { %v8476_v39 = vpop.eup %8475  ;;  %3125 = vst.msk [vmem:[#allocation3 + $0xe8] sm:$0xff] %vm162_vm0, %v3120_v40  ;;  %v3119_v48 = vadd.f32 %v3115_v44, %v3111_v42  ;;  %8491 = vpow2.f32 %v4621_v58  ;;  %3838 = vst.msk [vmem:[#allocation2 + $0x130] sm:$0xff] %vm162_vm0, %v3788_v1  ;;  %v3803_v18 = vadd.f32 %v7834_v21, %v10265_v59  ;;  %v10671_v46 = vpop.permute.xlu0 %3235 }
 0x894   :  { %v8478_v11 = vpop.eup %8477  ;;  %v3114_v4 = vmul.f32 %v8476_v39, %v3110_v43  ;;  %8493 = vrcp.f32 %v4601_v15  ;;  %v3797_v51 = vpop.f32.mrf.mxu1  ;;  %v4634_v42 = vadd.f32 %v7964_v26, %v10671_v46 }
 0x895   :  { %v8480_v0 = vpop.eup %8479  ;;  %3124 = vst.msk [vmem:[#allocation3 + $0xe0] sm:$0xff] %vm162_vm0, %v3119_v48  ;;  %v4604_v2 = vadd.f32 1.0, %v8478_v11  ;;  %3841 = vst.msk [vmem:[#allocation2 + $0x148] sm:$0xff] %vm162_vm0, %v3803_v18  ;;  %v3798_v61 = vadd.f32 %v3797_v51, %v10269_v60  ;;  %v7967_v1 = vpop.f32.mrf.mxu0 }
 0x896   :  { %v8482_v55 = vpop.eup %8481  ;;  %v3122_v45 = vadd.f32 %v3118_v38, %v3114_v4  ;;  %v3113_v32 = vmul.f32 %v8480_v0, %v3109_v49  ;;  %v7837_v56 = vpop.f32.mrf.mxu1  ;;  %v4421_v0 = vld [vmem:[#allocation2 + $0x48] sm:$0xff] }
 0x897   :  { %8495 = vrcp.f32 %v4604_v2  ;;  %v4603_v62 = vadd.f32 1.0, %v8482_v55  ;;  %3840 = vst.msk [vmem:[#allocation2 + $0x140] sm:$0xff] %vm162_vm0, %v3798_v61  ;;  %v3813_v63 = vadd.f32 %v7837_v56, %v10258_v28  ;;  %v10676_v21 = vpop.permute.xlu1 %3230  ;;  %v4420_v56 = vld [vmem:[#allocation2 + $0x40] sm:$0xff] }
 0x898   :  { %3127 = vst.msk [vmem:[#allocation3 + $0xf8] sm:$0xff] %vm162_vm0, %v3122_v45  ;;  %v3121_v50 = vadd.f32 %v3117_v25, %v3113_v32  ;;  %v3807_v5 = vpop.f32.mrf.mxu1  ;;  %v8484_v53 = vpop.eup %8483  ;;  %v4633_v38 = vadd.f32 %v4566_v13, %v10676_v21 }
 0x899   :  { %8497 = vrcp.f32 %v4603_v62  ;;  %3843 = vst.msk [vmem:[#allocation2 + $0x158] sm:$0xff] %vm162_vm0, %v3813_v63  ;;  %v3808_v36 = vadd.f32 %v3807_v5, %v10260_v35  ;;  %v8486_v58 = vpop.eup %8485  ;;  %v4626_v52 = vadd.f32 1.0, %v8484_v53  ;;  %v4576_v45 = vpop.f32.mrf.mxu0  ;;  %v4636_v62 = vadd.f32 %v7967_v1, %v10659_v19  ;;  %v4422_v1 = vld [vmem:[#allocation2 + $0x50] sm:$0xff] }
 0x89a   :  { %3126 = vst.msk [vmem:[#allocation3 + $0xf0] sm:$0xff] %vm162_vm0, %v3121_v50  ;;  %v7840_v47 = vpop.f32.mrf.mxu1  ;;  %v4625_v40 = vadd.f32 1.0, %v8486_v58  ;;  %v4272_v50 = vld [vmem:[#allocation3 + $0xe8] sm:$0xff] }
 0x89b   :  { %3842 = vst.msk [vmem:[#allocation2 + $0x150] sm:$0xff] %vm162_vm0, %v3808_v36  ;;  %v3823_v41 = vadd.f32 %v7840_v47, %v10288_v37  ;;  %v8488_v7 = vpop.eup %8487  ;;  %8499 = vrcp.f32 %v4626_v52  ;;  %v4635_v47 = vadd.f32 %v4576_v45, %v10664_v57 }
 0x89c   :  { %v3817_v44 = vpop.f32.mrf.mxu1  ;;  %v4628_v51 = vadd.f32 1.0, %v8488_v7  ;;  %8501 = vrcp.f32 %v4625_v40 }
 0x89d   :  { %3845 = vst.msk [vmem:[#allocation2 + $0x168] sm:$0xff] %vm162_vm0, %v3823_v41  ;;  %v3818_v54 = vadd.f32 %v3817_v44, %v10293_v14  ;;  %v4271_v41 = vld [vmem:[#allocation3 + $0xe0] sm:$0xff]  ;;  %v4423_v44 = vld [vmem:[#allocation2 + $0x58] sm:$0xff] }
 0x89e   :  { %v7843_v43 = vpop.f32.mrf.mxu1 }
 0x89f   :  { %v8490_v15 = vpop.eup %8489  ;;  %3844 = vst.msk [vmem:[#allocation2 + $0x160] sm:$0xff] %vm162_vm0, %v3818_v54  ;;  %v3833_v39 = vadd.f32 %v7843_v43, %v10275_v27  ;;  %v4274_v48 = vld [vmem:[#allocation3 + $0xf8] sm:$0xff] }
 0x8a0   :  { %v8492_v18 = vpop.eup %8491  ;;  %v4638_v11 = vmul.f32 %v8490_v15, %v4634_v42  ;;  %v3827_v49 = vpop.f32.mrf.mxu1  ;;  %7922 = vmatprep.subr.mxu1 %v4274_v48  ;;  %v8850_v15 = vld [vmem:[%s11392_s5 + $0x8] sm:$0xff] }
 0x8a1   :  { %v8494_v4 = vpop.eup %8493  ;;  %3847 = vst.msk [vmem:[#allocation2 + $0x178] sm:$0xff] %vm162_vm0, %v3833_v39  ;;  %v3828_v2 = vadd.f32 %v3827_v49, %v10280_v9  ;;  %7923 = vmatpush3.msra.mxu1 %v4274_v48  ;;  %v4273_v61 = vld [vmem:[#allocation3 + $0xf0] sm:$0xff]  ;;  %v4627_v26 = vadd.f32 1.0, %v8492_v18 }
 0x8a2   :  { %v4642_v55 = vadd.f32 %v4638_v11, %v4421_v0  ;;  %v4637_v25 = vmul.f32 %v8494_v4, %v4633_v38  ;;  %v7880_v32 = vpop.f32.mrf.mxu1  ;;  %7924 = vmatprep.subr.mxu1 %v4273_v61  ;;  %v8851_v18 = vld [vmem:[%s11392_s5 + $0x10] sm:$0xff]  ;;  %v8852_v4 = vld [vmem:[%s11392_s5 + $0x18] sm:$0xff] }
 0x8a3   :  { %3846 = vst.msk [vmem:[#allocation2 + $0x170] sm:$0xff] %vm162_vm0, %v3828_v2  ;;  %v4065_v63 = vadd.f32 %v7880_v32, %v10254_v17  ;;  %7925 = vmatpush3.msra.mxu1 %v4273_v61  ;;  %v8853_v2 = vld [vmem:[%s11392_s5 + $0x20] sm:$0xff]  ;;  %v8854_v32 = vld [vmem:[%s11392_s5 + $0x28] sm:$0xff] }
 0x8a4   :  { %v8496_v5 = vpop.eup %8495  ;;  %8503 = vtanh.f32 %v4642_v55  ;;  %v4641_v53 = vadd.f32 %v4637_v25, %v4420_v56  ;;  %v4059_v36 = vpop.f32.mrf.mxu1  ;;  %7926 = vmatprep.subr.mxu1 %v4272_v50 }
 0x8a5   :  { %8505 = vrcp.f32 %v4628_v51  ;;  %v4640_v13 = vmul.f32 %v8496_v5, %v4636_v62  ;;  %4119 = vst.msk [vmem:[#allocation2 + $0x1e8] sm:$0xff] %vm162_vm0, %v4065_v63  ;;  %v4060_v58 = vadd.f32 %v4059_v36, %v10256_v22  ;;  %7927 = vmatpush3.msra.mxu1 %v4272_v50  ;;  %v8855_v63 = vld [vmem:[%s11392_s5 + $0x30] sm:$0xff] }
 0x8a6   :  { %v8498_v52 = vpop.eup %8497  ;;  %8507 = vtanh.f32 %v4641_v53  ;;  %v7883_v54 = vpop.f32.mrf.mxu1  ;;  %7928 = vmatprep.subr.mxu1 %v4271_v41 }
 0x8a7   :  { %8509 = vrcp.f32 %v4627_v26  ;;  %v4644_v7 = vadd.f32 %v4640_v13, %v4423_v44  ;;  %v4639_v40 = vmul.f32 %v8498_v52, %v4635_v47  ;;  %4118 = vst.msk [vmem:[#allocation2 + $0x1e0] sm:$0xff] %vm162_vm0, %v4060_v58  ;;  %v4075_v42 = vadd.f32 %v7883_v54, %v10250_v12  ;;  %7929 = vmatpush3.msra.mxu1 %v4271_v41  ;;  %v8856_v44 = vld [vmem:[%s11392_s5 + $0x38] sm:$0xff] }
 0x8a8   :  { %v4069_v43 = vpop.f32.mrf.mxu1  ;;  %7931 = vmatmul.mubr.msk.f32.vlgmr.msra.gmra.mxu1 %vm1328_vm1, %v8850_v15  ;;  %v8500_v51 = vpop.eup %8499 }
 0x8a9   :  { %8511 = vtanh.f32 %v4644_v7  ;;  %v4643_v39 = vadd.f32 %v4639_v40, %v4422_v1  ;;  %4121 = vst.msk [vmem:[#allocation2 + $0x1f8] sm:$0xff] %vm162_vm0, %v4075_v42  ;;  %v4070_v48 = vadd.f32 %v4069_v43, %v10252_v3  ;;  %7933 = vmatprep.mubr.msk.f32.mxu1 %vm1328_vm1, %v8851_v18  ;;  %v8502_v55 = vpop.eup %8501  ;;  %v4650_v26 = vsub.f32 1.0, %v8500_v51  ;;  %v8857_v1 = vld [vmem:[%s11392_s5 + $0x40] sm:$0xff] }
 0x8aa   :  { %v7886_v11 = vpop.f32.mrf.mxu1  ;;  %v4658_v36 = vmul.f32 0.0, %v8500_v51  ;;  %v4649_v13 = vsub.f32 1.0, %v8502_v55  ;;  %v4657_v40 = vmul.f32 0.0, %v8502_v55 }
 0x8ab   :  { %8513 = vtanh.f32 %v4643_v39  ;;  %4120 = vst.msk [vmem:[#allocation2 + $0x1f0] sm:$0xff] %vm162_vm0, %v4070_v48  ;;  %v4085_v38 = vadd.f32 %v7886_v11, %v10265_v59 }
 0x8ac   :  { %v4079_v49 = vpop.f32.mrf.mxu1  ;;  %7934 = vmatmul.mubr.msk.f32.gmra.mxu1 %vm1328_vm1, %v8852_v4 }
 0x8ad   :  { %4123 = vst.msk [vmem:[#allocation2 + $0x208] sm:$0xff] %vm162_vm0, %v4085_v38  ;;  %v4080_v0 = vadd.f32 %v4079_v49, %v10269_v60  ;;  %7936 = vmatprep.mubr.msk.f32.mxu1 %vm1328_vm1, %v8853_v2 }
 0x8ae   :  { %v7889_v61 = vpop.f32.mrf.mxu1 }
 0x8af   :  { %4122 = vst.msk [vmem:[#allocation2 + $0x200] sm:$0xff] %vm162_vm0, %v4080_v0  ;;  %v4095_v25 = vadd.f32 %v7889_v61, %v10258_v28  ;;  %v8858_v0 = vld [vmem:[%s11392_s5 + $0x48] sm:$0xff] }
 0x8b0   :  { %v4089_v45 = vpop.f32.mrf.mxu1  ;;  %7937 = vmatmul.mubr.msk.f32.gmra.mxu1 %vm1328_vm1, %v8854_v32 }
 0x8b1   :  { %v8504_v56 = vpop.eup %8503  ;;  %4125 = vst.msk [vmem:[#allocation2 + $0x218] sm:$0xff] %vm162_vm0, %v4095_v25  ;;  %v4090_v62 = vadd.f32 %v4089_v45, %v10260_v35  ;;  %7939 = vmatprep.mubr.msk.f32.mxu1 %vm1328_vm1, %v8855_v63  ;;  %v8859_v45 = vld [vmem:[%s11392_s5 + $0x50] sm:$0xff] }
 0x8b2   :  { %v8506_v50 = vpop.eup %8505  ;;  %v7892_v5 = vpop.f32.mrf.mxu1  ;;  %v4654_v53 = vmul.f32 %v8504_v56, %v4650_v26  ;;  %v8860_v26 = vld [vmem:[%s11392_s5 + $0x58] sm:$0xff] }
 0x8b3   :  { %v8508_v47 = vpop.eup %8507  ;;  %4124 = vst.msk [vmem:[#allocation2 + $0x210] sm:$0xff] %vm162_vm0, %v4090_v62  ;;  %v4105_v58 = vadd.f32 %v7892_v5, %v10288_v37  ;;  %v4652_v43 = vsub.f32 1.0, %v8506_v50  ;;  %v4660_v38 = vmul.f32 0.0, %v8506_v50 }
 0x8b4   :  { %v8510_v41 = vpop.eup %8509  ;;  %v4099_v52 = vpop.f32.mrf.mxu1  ;;  %7940 = vmatmul.mubr.msk.f32.gmra.mxu1 %vm1328_vm1, %v8856_v44  ;;  %v10731_v54 = vadd.f32 %v4658_v36, %v4654_v53  ;;  %v4653_v7 = vmul.f32 %v8508_v47, %v4649_v13  ;;  %v4670_v53 = vld [vmem:[#allocation2 + $0x68] sm:$0xff]  ;;  %v4669_v13 = vld [vmem:[#allocation2 + $0x60] sm:$0xff] }
 0x8b5   :  { %4127 = vst.msk [vmem:[#allocation2 + $0x228] sm:$0xff] %vm162_vm0, %v4105_v58  ;;  %v4100_v42 = vadd.f32 %v4099_v52, %v10293_v14  ;;  %7942 = vmatprep.mubr.msk.f32.mxu1 %vm1328_vm1, %v8857_v1  ;;  %v4651_v49 = vsub.f32 1.0, %v8510_v41  ;;  %v4659_v25 = vmul.f32 0.0, %v8510_v41 }
 0x8b6   :  { %v8512_v15 = vpop.eup %8511  ;;  %v7895_v39 = vpop.f32.mrf.mxu1  ;;  %4666 = vst.msk [vmem:[#allocation3 + $0x8] sm:$0xff] %vm162_vm0, %v10731_v54  ;;  %v10741_v48 = vadd.f32 %v4657_v40, %v4653_v7 }
 0x8b7   :  { %4126 = vst.msk [vmem:[#allocation2 + $0x220] sm:$0xff] %vm162_vm0, %v4100_v42  ;;  %v4115_v18 = vadd.f32 %v7895_v39, %v10275_v27  ;;  %v4656_v11 = vmul.f32 %v8512_v15, %v4652_v43  ;;  %v4674_v15 = vld [vmem:[#allocation2 + $0x88] sm:$0xff] }
 0x8b8   :  { %v8514_v4 = vpop.eup %8513  ;;  %v4109_v51 = vpop.f32.mrf.mxu1  ;;  %7943 = vmatmul.mubr.msk.f32.gmra.mxu1 %vm1328_vm1, %v8858_v0  ;;  %4665 = vst.msk [vmem:[#allocation3] sm:$0xff] %vm162_vm0, %v10741_v48 }
 0x8b9   :  { %4129 = vst.msk [vmem:[#allocation2 + $0x238] sm:$0xff] %vm162_vm0, %v4115_v18  ;;  %v4110_v2 = vadd.f32 %v4109_v51, %v10280_v9  ;;  %v10753_v61 = vadd.f32 %v4660_v38, %v4656_v11  ;;  %v4655_v55 = vmul.f32 %v8514_v4, %v4651_v49  ;;  %7945 = vmatprep.mubr.msk.f32.mxu1 %vm1328_vm1, %v8859_v45  ;;  %v4673_v49 = vld [vmem:[#allocation2 + $0x80] sm:$0xff] }
 0x8bb   :  { %4128 = vst.msk [vmem:[#allocation2 + $0x230] sm:$0xff] %vm162_vm0, %v4110_v2  ;;  %4668 = vst.msk [vmem:[#allocation3 + $0x18] sm:$0xff] %vm162_vm0, %v10753_v61  ;;  %7968 = vmatprep.subr.mxu1 %v10753_v61  ;;  %v10763_v32 = vadd.f32 %v4659_v25, %v4655_v55  ;;  %v4676_v55 = vld [vmem:[#allocation2 + $0x98] sm:$0xff] }
 0x8bc   :  { %7969 = vmatpush3.msra.mxu1 %v10753_v61 }
 0x8bd   :  { %4667 = vst.msk [vmem:[#allocation3 + $0x10] sm:$0xff] %vm162_vm0, %v10763_v32  ;;  %7970 = vmatprep.subr.mxu1 %v10763_v32  ;;  %7946 = vmatmul.mubr.msk.f32.gmra.mxu1 %vm1328_vm1, %v8860_v26 }
 0x8be   :  { %7971 = vmatpush3.msra.mxu1 %v10763_v32  ;;  %7976 = vmatprep.mubr.msk.f32.mxu1 %vm1328_vm1, %v10433_v24  ;;  %v10805_v24 = vld [vmem:[%s11393_s6] sm:$0xff] }
 0x8bf   :  { %7972 = vmatprep.subr.mxu1 %v10731_v54 }
 0x8c0   :  { %7973 = vmatpush3.msra.mxu1 %v10731_v54 }
 0x8c1   :  { %7974 = vmatprep.subr.mxu1 %v10741_v48 }
 0x8c2   :  { %7975 = vmatpush3.msra.mxu1 %v10741_v48 }
 0x8c3   :  { %7977 = vmatmul.mubr.msk.f32.vlgmr.msra.gmra.mxu1 %vm1328_vm1, %v10442_v31 }
 0x8c4   :  { %7979 = vmatprep.mubr.msk.f32.mxu1 %vm1328_vm1, %v10449_v10 }
 0x8c7   :  { %7980 = vmatmul.mubr.msk.f32.gmra.mxu1 %vm1328_vm1, %v10462_v30 }
 0x8c8   :  { %7982 = vmatprep.mubr.msk.f32.mxu1 %vm1328_vm1, %v10467_v29 }
 0x8cb   :  { %7983 = vmatmul.mubr.msk.f32.gmra.mxu1 %vm1328_vm1, %v10480_v23 }
 0x8cc   :  { %7985 = vmatprep.mubr.msk.f32.mxu1 %vm1328_vm1, %v10485_v33 }
 0x8cf   :  { %7986 = vmatmul.mubr.msk.f32.gmra.mxu1 %vm1328_vm1, %v10498_v20 }
 0x8d0   :  { %7988 = vmatprep.mubr.msk.f32.mxu1 %vm1328_vm1, %v10503_v8 }
 0x8d3   :  { %7989 = vmatmul.mubr.msk.f32.gmra.mxu1 %vm1328_vm1, %v10516_v16 }
 0x8d4   :  { %7991 = vmatprep.mubr.msk.f32.mxu1 %vm1328_vm1, %v10523_v34 }
 0x8d7   :  { %7992 = vmatmul.mubr.msk.f32.gmra.mxu1 %vm1328_vm1, %v10532_v6 }
 0x8d8   :  { %8028 = vmatprep.mubr.msk.f32.mxu1 %vm1328_vm1, %v10805_v24 }
 0x968   :  { %v7932_v31 = vpop.f32.mrf.mxu1 }
 0x969   :  { %v4347_v10 = vadd.f32 %v7932_v31, %v10254_v17 }
 0x96a   :  { %v4341_v30 = vpop.f32.mrf.mxu1 }
 0x96b   :  { %4401 = vst.msk [vmem:[#allocation2 + $0x2a8] sm:$0xff] %vm162_vm0, %v4347_v10  ;;  %v4342_v29 = vadd.f32 %v4341_v30, %v10256_v22  ;;  %v4675_v10 = vld [vmem:[#allocation2 + $0x90] sm:$0xff] }
 0x96c   :  { %v7935_v23 = vpop.f32.mrf.mxu1 }
 0x96d   :  { %4400 = vst.msk [vmem:[#allocation2 + $0x2a0] sm:$0xff] %vm162_vm0, %v4342_v29  ;;  %v4357_v33 = vadd.f32 %v7935_v23, %v10250_v12 }
 0x96e   :  { %v4351_v20 = vpop.f32.mrf.mxu1 }
 0x96f   :  { %4403 = vst.msk [vmem:[#allocation2 + $0x2b8] sm:$0xff] %vm162_vm0, %v4357_v33  ;;  %v4352_v8 = vadd.f32 %v4351_v20, %v10252_v3 }
 0x970   :  { %v7938_v16 = vpop.f32.mrf.mxu1 }
 0x971   :  { %4402 = vst.msk [vmem:[#allocation2 + $0x2b0] sm:$0xff] %vm162_vm0, %v4352_v8  ;;  %v4367_v17 = vadd.f32 %v7938_v16, %v10265_v59 }
 0x972   :  { %v4361_v34 = vpop.f32.mrf.mxu1 }
 0x973   :  { %4405 = vst.msk [vmem:[#allocation2 + $0x2c8] sm:$0xff] %vm162_vm0, %v4367_v17  ;;  %v4362_v22 = vadd.f32 %v4361_v34, %v10269_v60 }
 0x974   :  { %v7941_v6 = vpop.f32.mrf.mxu1 }
 0x975   :  { %4404 = vst.msk [vmem:[#allocation2 + $0x2c0] sm:$0xff] %vm162_vm0, %v4362_v22  ;;  %v4377_v12 = vadd.f32 %v7941_v6, %v10258_v28 }
 0x976   :  { %v4371_v56 = vpop.f32.mrf.mxu1 }
 0x977   :  { %4407 = vst.msk [vmem:[#allocation2 + $0x2d8] sm:$0xff] %vm162_vm0, %v4377_v12  ;;  %v4372_v3 = vadd.f32 %v4371_v56, %v10260_v35 }
 0x978   :  { %v7944_v62 = vpop.f32.mrf.mxu1 }
 0x979   :  { %4406 = vst.msk [vmem:[#allocation2 + $0x2d0] sm:$0xff] %vm162_vm0, %v4372_v3  ;;  %v4387_v59 = vadd.f32 %v7944_v62, %v10288_v37 }
 0x97a   :  { %v4381_v63 = vpop.f32.mrf.mxu1 }
 0x97b   :  { %4409 = vst.msk [vmem:[#allocation2 + $0x2e8] sm:$0xff] %vm162_vm0, %v4387_v59  ;;  %v4382_v60 = vadd.f32 %v4381_v63, %v10293_v14  ;;  %v4672_v14 = vld [vmem:[#allocation2 + $0x78] sm:$0xff] }
 0x97d   :  { %4408 = vst.msk [vmem:[#allocation2 + $0x2e0] sm:$0xff] %vm162_vm0, %v4382_v60  ;;  %v7947_v50 = vpop.f32.mrf.mxu1 }
 0x97e   :  { %v4397_v28 = vadd.f32 %v7947_v50, %v10275_v27  ;;  %v4671_v27 = vld [vmem:[#allocation2 + $0x70] sm:$0xff] }
 0x97f   :  { %v4391_v5 = vpop.f32.mrf.mxu1 }
 0x980   :  { %4411 = vst.msk [vmem:[#allocation2 + $0x2f8] sm:$0xff] %vm162_vm0, %v4397_v28  ;;  %v4392_v35 = vadd.f32 %v4391_v5, %v10280_v9 }
 0x982   :  { %4410 = vst.msk [vmem:[#allocation2 + $0x2f0] sm:$0xff] %vm162_vm0, %v4392_v35 }
 0x983   :  { %v7978_v36 = vpop.f32.mrf.mxu1 }
 0x984   :  { %v4807_v37 = vadd.f32 %v7978_v36, %v4670_v53 }
 0x985   :  { %v4747_v47 = vpop.f32.mrf.mxu1 }
 0x986   :  { %v4811_v58 = vsub.f32 0.0, %v4807_v37  ;;  %v4806_v41 = vadd.f32 %v4747_v47, %v4669_v13 }
 0x987   :  { %v7981_v52 = vpop.f32.mrf.mxu1 }
 0x988   :  { %v4816_v44 = vmul.f32 1.442695, %v4811_v58  ;;  %v4810_v7 = vsub.f32 0.0, %v4806_v41  ;;  %v4809_v40 = vadd.f32 %v7981_v52, %v4672_v14 }
 0x989   :  { %v4757_v42 = vpop.f32.mrf.mxu1 }
 0x98a   :  { %8515 = vpow2.f32 %v4816_v44  ;;  %v4814_v1 = vmul.f32 1.442695, %v4810_v7  ;;  %v4813_v43 = vsub.f32 0.0, %v4809_v40  ;;  %v4808_v9 = vadd.f32 %v4757_v42, %v4671_v27  ;;  %v4678_v44 = vld [vmem:[#allocation2 + $0xa8] sm:$0xff] }
 0x98b   :  { %v7984_v39 = vpop.f32.mrf.mxu1 }
 0x98c   :  { %8517 = vpow2.f32 %v4814_v1  ;;  %v4820_v18 = vmul.f32 1.442695, %v4813_v43  ;;  %v4812_v11 = vsub.f32 0.0, %v4808_v9  ;;  %v4831_v38 = vadd.f32 %v7984_v39, %v4674_v15  ;;  %v4677_v43 = vld [vmem:[#allocation2 + $0xa0] sm:$0xff] }
 0x98d   :  { %v4767_v4 = vpop.f32.mrf.mxu1 }
 0x98e   :  { %8519 = vpow2.f32 %v4820_v18  ;;  %v4818_v51 = vmul.f32 1.442695, %v4812_v11  ;;  %v4835_v0 = vsub.f32 0.0, %v4831_v38  ;;  %v4830_v2 = vadd.f32 %v4767_v4, %v4673_v49  ;;  %v4680_v11 = vld [vmem:[#allocation2 + $0xb8] sm:$0xff]  ;;  %v4679_v4 = vld [vmem:[#allocation2 + $0xb0] sm:$0xff] }
 0x98f   :  { %v7987_v25 = vpop.f32.mrf.mxu1 }
 0x990   :  { %8521 = vpow2.f32 %v4818_v51  ;;  %v4840_v45 = vmul.f32 1.442695, %v4835_v0  ;;  %v4834_v26 = vsub.f32 0.0, %v4830_v2  ;;  %v4833_v31 = vadd.f32 %v7987_v25, %v4676_v55 }
 0x991   :  { %v4777_v30 = vpop.f32.mrf.mxu1 }
 0x992   :  { %v4838_v29 = vmul.f32 1.442695, %v4834_v26  ;;  %v4837_v23 = vsub.f32 0.0, %v4833_v31  ;;  %v4832_v33 = vadd.f32 %v4777_v30, %v4675_v10  ;;  %8523 = vpow2.f32 %v4840_v45 }
 0x993   :  { %v7990_v62 = vpop.f32.mrf.mxu1 }
 0x994   :  { %v4844_v20 = vmul.f32 1.442695, %v4837_v23  ;;  %v4836_v8 = vsub.f32 0.0, %v4832_v33  ;;  %8525 = vpow2.f32 %v4838_v29  ;;  %v4855_v37 = vadd.f32 %v7990_v62, %v10671_v46  ;;  %v10882_v62 = vld [vmem:[%s11393_s6 + $0x18] sm:$0xff] }
 0x995   :  { %v4787_v60 = vpop.f32.mrf.mxu1 }
 0x996   :  { %v4842_v16 = vmul.f32 1.442695, %v4836_v8  ;;  %8527 = vpow2.f32 %v4844_v20  ;;  %v4854_v41 = vadd.f32 %v4787_v60, %v10676_v21  ;;  %v10903_v60 = vld [vmem:[%s11393_s6 + $0x30] sm:$0xff] }
 0x997   :  { %v8516_v17 = vpop.eup %8515  ;;  %v7993_v35 = vpop.f32.mrf.mxu1 }
 0x998   :  { %v4823_v34 = vadd.f32 1.0, %v8516_v17  ;;  %8529 = vpow2.f32 %v4842_v16  ;;  %v4857_v42 = vadd.f32 %v7993_v35, %v10659_v19  ;;  %v10931_v35 = vld [vmem:[%s11393_s6 + $0x50] sm:$0xff] }
 0x999   :  { %v8518_v22 = vpop.eup %8517  ;;  %v4797_v7 = vpop.f32.mrf.mxu1 }
 0x99a   :  { %8531 = vrcp.f32 %v4823_v34  ;;  %v4822_v6 = vadd.f32 1.0, %v8518_v22  ;;  %v4856_v39 = vadd.f32 %v4797_v7, %v10664_v57 }
 0x99b   :  { %v8520_v12 = vpop.eup %8519 }
 0x99c   :  { %8533 = vrcp.f32 %v4822_v6  ;;  %v4825_v56 = vadd.f32 1.0, %v8520_v12 }
 0x99d   :  { %v8522_v3 = vpop.eup %8521 }
 0x99e   :  { %8535 = vrcp.f32 %v4825_v56  ;;  %v4824_v59 = vadd.f32 1.0, %v8522_v3 }
 0x99f   :  { %v8524_v63 = vpop.eup %8523 }
 0x9a0   :  { %8537 = vrcp.f32 %v4824_v59  ;;  %v4847_v5 = vadd.f32 1.0, %v8524_v63  ;;  %v10889_v59 = vld [vmem:[%s11393_s6 + $0x20] sm:$0xff]  ;;  %v10896_v63 = vld [vmem:[%s11393_s6 + $0x28] sm:$0xff] }
 0x9a1   :  { %v8526_v50 = vpop.eup %8525 }
 0x9a2   :  { %v4846_v36 = vadd.f32 1.0, %v8526_v50  ;;  %8539 = vrcp.f32 %v4847_v5  ;;  %v10910_v50 = vld [vmem:[%s11393_s6 + $0x38] sm:$0xff]  ;;  %v10924_v5 = vld [vmem:[%s11393_s6 + $0x48] sm:$0xff] }
 0x9a3   :  { %v8528_v28 = vpop.eup %8527 }
 0x9a4   :  { %v4849_v47 = vadd.f32 1.0, %v8528_v28  ;;  %8541 = vrcp.f32 %v4846_v36  ;;  %v10917_v28 = vld [vmem:[%s11393_s6 + $0x40] sm:$0xff]  ;;  %v4891_v36 = vld [vmem:[#allocation2 + $0xc8] sm:$0xff] }
 0x9a5   :  { %v8530_v53 = vpop.eup %8529 }
 0x9a6   :  { %v4848_v52 = vadd.f32 1.0, %v8530_v53  ;;  %8543 = vrcp.f32 %v4849_v47  ;;  %v10938_v53 = vld [vmem:[%s11393_s6 + $0x58] sm:$0xff]  ;;  %v4890_v47 = vld [vmem:[#allocation2 + $0xc0] sm:$0xff] }
 0x9a7   :  { %v8532_v13 = vpop.eup %8531 }
 0x9a8   :  { %v4859_v58 = vmul.f32 %v8532_v13, %v4855_v37 }
 0x9a9   :  { %v8534_v14 = vpop.eup %8533 }
 0x9aa   :  { %v4863_v40 = vadd.f32 %v4859_v58, %v4678_v44  ;;  %v4858_v27 = vmul.f32 %v8534_v14, %v4854_v41 }
 0x9ab   :  { %v8536_v1 = vpop.eup %8535 }
 0x9ac   :  { %8545 = vtanh.f32 %v4863_v40  ;;  %v4862_v9 = vadd.f32 %v4858_v27, %v4677_v43  ;;  %v4861_v15 = vmul.f32 %v8536_v1, %v4857_v42  ;;  %v4892_v42 = vld [vmem:[#allocation2 + $0xd0] sm:$0xff] }
 0x9ad   :  { %v8538_v18 = vpop.eup %8537  ;;  %8547 = vrcp.f32 %v4848_v52  ;;  %v4893_v52 = vld [vmem:[#allocation2 + $0xd8] sm:$0xff] }
 0x9ae   :  { %8549 = vtanh.f32 %v4862_v9  ;;  %v4865_v38 = vadd.f32 %v4861_v15, %v4680_v11  ;;  %v4860_v49 = vmul.f32 %v8538_v18, %v4856_v39  ;;  %v4895_v39 = vld [vmem:[#allocation2 + $0xe8] sm:$0xff] }
 0x9af   :  { %v8540_v0 = vpop.eup %8539 }
 0x9b0   :  { %8551 = vtanh.f32 %v4865_v38  ;;  %v4864_v51 = vadd.f32 %v4860_v49, %v4679_v4  ;;  %v4871_v25 = vsub.f32 1.0, %v8540_v0  ;;  %v4879_v10 = vmul.f32 %v8540_v0, %v10731_v54  ;;  %v4894_v4 = vld [vmem:[#allocation2 + $0xe0] sm:$0xff] }
 0x9b1   :  { %v8542_v2 = vpop.eup %8541 }
 0x9b2   :  { %8553 = vtanh.f32 %v4864_v51  ;;  %v4870_v30 = vsub.f32 1.0, %v8542_v2  ;;  %v4878_v8 = vmul.f32 %v8542_v2, %v10741_v48 }
 0x9b3   :  { %v8544_v55 = vpop.eup %8543 }
 0x9b4   :  { %v4873_v23 = vsub.f32 1.0, %v8544_v55  ;;  %v4881_v34 = vmul.f32 %v8544_v55, %v10753_v61  ;;  %v10868_v61 = vld [vmem:[%s11393_s6 + $0x8] sm:$0xff] }
 0x9b9   :  { %v8546_v45 = vpop.eup %8545 }
 0x9ba   :  { %v8548_v26 = vpop.eup %8547  ;;  %v4875_v31 = vmul.f32 %v8546_v45, %v4871_v25  ;;  %v4897_v25 = vld [vmem:[#allocation2 + $0xf8] sm:$0xff] }
 0x9bb   :  { %v8550_v29 = vpop.eup %8549  ;;  %v4872_v22 = vsub.f32 1.0, %v8548_v26  ;;  %v4880_v3 = vmul.f32 %v8548_v26, %v10763_v32  ;;  %v10875_v32 = vld [vmem:[%s11393_s6 + $0x10] sm:$0xff] }
 0x9bc   :  { %v10838_v33 = vadd.f32 %v4879_v10, %v4875_v31  ;;  %v4874_v20 = vmul.f32 %v8550_v29, %v4870_v30  ;;  %v4896_v30 = vld [vmem:[#allocation2 + $0xf0] sm:$0xff] }
 0x9bd   :  { %v8552_v16 = vpop.eup %8551 }
 0x9be   :  { %v4877_v17 = vmul.f32 %v8552_v16, %v4873_v23  ;;  %4887 = vst.msk [vmem:[#allocation3 + $0x28] sm:$0xff] %vm162_vm0, %v10838_v33  ;;  %v10844_v6 = vadd.f32 %v4878_v8, %v4874_v20 }
 0x9bf   :  { %v8554_v12 = vpop.eup %8553 }
 0x9c0   :  { %v10846_v54 = vadd.f32 %v4881_v34, %v4877_v17  ;;  %v4876_v56 = vmul.f32 %v8554_v12, %v4872_v22  ;;  %4886 = vst.msk [vmem:[#allocation3 + $0x20] sm:$0xff] %vm162_vm0, %v10844_v6 }
 0x9c2   :  { %4889 = vst.msk [vmem:[#allocation3 + $0x38] sm:$0xff] %vm162_vm0, %v10846_v54  ;;  %7994 = vmatprep.subr.mxu0 %v10846_v54  ;;  %v10854_v48 = vadd.f32 %v4880_v3, %v4876_v56 }
 0x9c3   :  { %7995 = vmatpush3.msra.mxu0 %v10846_v54 }
 0x9c4   :  { %4888 = vst.msk [vmem:[#allocation3 + $0x30] sm:$0xff] %vm162_vm0, %v10854_v48  ;;  %7996 = vmatprep.subr.mxu0 %v10854_v48 }
 0x9c5   :  { %7997 = vmatpush3.msra.mxu0 %v10854_v48 }
 0x9c6   :  { %7998 = vmatprep.subr.mxu0 %v10838_v33 }
 0x9c7   :  { %7999 = vmatpush3.msra.mxu0 %v10838_v33 }
 0x9c8   :  { %8000 = vmatprep.subr.mxu0 %v10844_v6 }
 0x9c9   :  { %8001 = vmatpush3.msra.mxu0 %v10844_v6 }
 0x9ca   :  { %8003 = vmatmul.mubr.msk.f32.vlgmr.msra.gmra.mxu0 %vm1328_vm1, %v10868_v61 }
 0x9cb   :  { %8005 = vmatprep.mubr.msk.f32.mxu0 %vm1328_vm1, %v10875_v32 }
 0x9ce   :  { %8006 = vmatmul.mubr.msk.f32.gmra.mxu0 %vm1328_vm1, %v10882_v62 }
 0x9cf   :  { %8008 = vmatprep.mubr.msk.f32.mxu0 %vm1328_vm1, %v10889_v59 }
 0x9d2   :  { %8009 = vmatmul.mubr.msk.f32.gmra.mxu0 %vm1328_vm1, %v10896_v63 }
 0x9d3   :  { %8011 = vmatprep.mubr.msk.f32.mxu0 %vm1328_vm1, %v10903_v60 }
 0x9d6   :  { %8012 = vmatmul.mubr.msk.f32.gmra.mxu0 %vm1328_vm1, %v10910_v50 }
 0x9d7   :  { %8014 = vmatprep.mubr.msk.f32.mxu0 %vm1328_vm1, %v10917_v28 }
 0x9da   :  { %8015 = vmatmul.mubr.msk.f32.gmra.mxu0 %vm1328_vm1, %v10924_v5 }
 0x9db   :  { %8017 = vmatprep.mubr.msk.f32.mxu0 %vm1328_vm1, %v10931_v35 }
 0x9de   :  { %8018 = vmatmul.mubr.msk.f32.gmra.mxu0 %vm1328_vm1, %v10938_v53 }
 0x9df   :  { %8054 = vmatprep.mubr.msk.f32.mxu0 %vm1328_vm1, %v10805_v24 }
 0xa8a   :  { %v8004_v37 = vpop.f32.mrf.mxu0 }
 0xa8b   :  { %v5028_v13 = vadd.f32 %v8004_v37, %v4891_v36 }
 0xa8c   :  { %v4968_v58 = vpop.f32.mrf.mxu0 }
 0xa8d   :  { %v5032_v41 = vsub.f32 0.0, %v5028_v13  ;;  %v5027_v14 = vadd.f32 %v4968_v58, %v4890_v47 }
 0xa8e   :  { %v8007_v44 = vpop.f32.mrf.mxu0 }
 0xa8f   :  { %v5037_v7 = vmul.f32 1.442695, %v5032_v41  ;;  %v5031_v40 = vsub.f32 0.0, %v5027_v14  ;;  %v5030_v27 = vadd.f32 %v8007_v44, %v4893_v52 }
 0xa90   :  { %v4978_v1 = vpop.f32.mrf.mxu0 }
 0xa91   :  { %8555 = vpow2.f32 %v5037_v7  ;;  %v5035_v43 = vmul.f32 1.442695, %v5031_v40  ;;  %v5034_v9 = vsub.f32 0.0, %v5030_v27  ;;  %v5029_v15 = vadd.f32 %v4978_v1, %v4892_v42 }
 0xa92   :  { %v8010_v18 = vpop.f32.mrf.mxu0 }
 0xa93   :  { %8557 = vpow2.f32 %v5035_v43  ;;  %v5041_v11 = vmul.f32 1.442695, %v5034_v9  ;;  %v5033_v38 = vsub.f32 0.0, %v5029_v15  ;;  %v5052_v49 = vadd.f32 %v8010_v18, %v4895_v39 }
 0xa94   :  { %v4988_v51 = vpop.f32.mrf.mxu0 }
 0xa95   :  { %8559 = vpow2.f32 %v5041_v11  ;;  %v5039_v0 = vmul.f32 1.442695, %v5033_v38  ;;  %v5056_v2 = vsub.f32 0.0, %v5052_v49  ;;  %v5051_v55 = vadd.f32 %v4988_v51, %v4894_v4  ;;  %v4899_v38 = vld [vmem:[#allocation2 + $0x108] sm:$0xff] }
 0xa96   :  { %v8013_v45 = vpop.f32.mrf.mxu0 }
 0xa97   :  { %8561 = vpow2.f32 %v5039_v0  ;;  %v5061_v26 = vmul.f32 1.442695, %v5056_v2  ;;  %v5055_v31 = vsub.f32 0.0, %v5051_v55  ;;  %v5054_v10 = vadd.f32 %v8013_v45, %v4897_v25  ;;  %v4898_v55 = vld [vmem:[#allocation2 + $0x100] sm:$0xff] }
 0xa98   :  { %v4998_v29 = vpop.f32.mrf.mxu0 }
 0xa99   :  { %v5059_v23 = vmul.f32 1.442695, %v5055_v31  ;;  %v5058_v20 = vsub.f32 0.0, %v5054_v10  ;;  %v5053_v8 = vadd.f32 %v4998_v29, %v4896_v30  ;;  %8563 = vpow2.f32 %v5061_v26  ;;  %v4901_v10 = vld [vmem:[#allocation2 + $0x118] sm:$0xff] }
 0xa9a   :  { %v8016_v47 = vpop.f32.mrf.mxu0 }
 0xa9b   :  { %v5065_v16 = vmul.f32 1.442695, %v5058_v20  ;;  %v5057_v17 = vsub.f32 0.0, %v5053_v8  ;;  %8565 = vpow2.f32 %v5059_v23  ;;  %v5076_v1 = vadd.f32 %v8016_v47, %v10671_v46  ;;  %v4900_v23 = vld [vmem:[#allocation2 + $0x110] sm:$0xff] }
 0xa9c   :  { %v5008_v14 = vpop.f32.mrf.mxu0 }
 0xa9d   :  { %v5063_v34 = vmul.f32 1.442695, %v5057_v17  ;;  %8567 = vpow2.f32 %v5065_v16  ;;  %v5075_v39 = vadd.f32 %v5008_v14, %v10676_v21 }
 0xa9e   :  { %v8556_v22 = vpop.eup %8555  ;;  %v8019_v40 = vpop.f32.mrf.mxu0 }
 0xa9f   :  { %v5044_v12 = vadd.f32 1.0, %v8556_v22  ;;  %8569 = vpow2.f32 %v5063_v34  ;;  %v5078_v0 = vadd.f32 %v8019_v40, %v10659_v19 }
 0xaa0   :  { %v8558_v56 = vpop.eup %8557  ;;  %v5018_v49 = vpop.f32.mrf.mxu0 }
 0xaa1   :  { %8571 = vrcp.f32 %v5044_v12  ;;  %v5043_v3 = vadd.f32 1.0, %v8558_v56  ;;  %v5077_v26 = vadd.f32 %v5018_v49, %v10664_v57 }
 0xaa2   :  { %v8560_v36 = vpop.eup %8559 }
 0xaa3   :  { %8573 = vrcp.f32 %v5043_v3  ;;  %v5046_v37 = vadd.f32 1.0, %v8560_v36 }
 0xaa4   :  { %v8562_v13 = vpop.eup %8561 }
 0xaa5   :  { %8575 = vrcp.f32 %v5046_v37  ;;  %v5045_v58 = vadd.f32 1.0, %v8562_v13 }
 0xaa6   :  { %v8564_v41 = vpop.eup %8563 }
 0xaa7   :  { %8577 = vrcp.f32 %v5045_v58  ;;  %v5068_v7 = vadd.f32 1.0, %v8564_v41 }
 0xaa8   :  { %v8566_v52 = vpop.eup %8565 }
 0xaa9   :  { %v5067_v42 = vadd.f32 1.0, %v8566_v52  ;;  %8579 = vrcp.f32 %v5068_v7 }
 0xaaa   :  { %v8568_v44 = vpop.eup %8567 }
 0xaab   :  { %v5070_v9 = vadd.f32 1.0, %v8568_v44  ;;  %8581 = vrcp.f32 %v5067_v42 }
 0xaac   :  { %v8570_v27 = vpop.eup %8569 }
 0xaad   :  { %v5069_v11 = vadd.f32 1.0, %v8570_v27  ;;  %8583 = vrcp.f32 %v5070_v9  ;;  %v5111_v9 = vld [vmem:[#allocation2 + $0x120] sm:$0xff] }
 0xaae   :  { %v8572_v43 = vpop.eup %8571 }
 0xaaf   :  { %v5080_v15 = vmul.f32 %v8572_v43, %v5076_v1 }
 0xab0   :  { %v8574_v18 = vpop.eup %8573 }
 0xab1   :  { %v5084_v4 = vadd.f32 %v5080_v15, %v4899_v38  ;;  %v5079_v51 = vmul.f32 %v8574_v18, %v5075_v39 }
 0xab2   :  { %v8576_v2 = vpop.eup %8575 }
 0xab3   :  { %8585 = vtanh.f32 %v5084_v4  ;;  %v5083_v25 = vadd.f32 %v5079_v51, %v4898_v55  ;;  %v5082_v45 = vmul.f32 %v8576_v2, %v5078_v0  ;;  %v5113_v0 = vld [vmem:[#allocation2 + $0x130] sm:$0xff] }
 0xab4   :  { %v8578_v31 = vpop.eup %8577  ;;  %8587 = vrcp.f32 %v5069_v11  ;;  %v5114_v11 = vld [vmem:[#allocation2 + $0x138] sm:$0xff] }
 0xab5   :  { %8589 = vtanh.f32 %v5083_v25  ;;  %v5086_v30 = vadd.f32 %v5082_v45, %v4901_v10  ;;  %v5081_v29 = vmul.f32 %v8578_v31, %v5077_v26  ;;  %v5116_v26 = vld [vmem:[#allocation2 + $0x148] sm:$0xff] }
 0xab6   :  { %v8580_v8 = vpop.eup %8579 }
 0xab7   :  { %8591 = vtanh.f32 %v5086_v30  ;;  %v5085_v20 = vadd.f32 %v5081_v29, %v4900_v23  ;;  %v5092_v34 = vsub.f32 1.0, %v8580_v8  ;;  %v5100_v3 = vmul.f32 %v8580_v8, %v10838_v33  ;;  %v5115_v23 = vld [vmem:[#allocation2 + $0x140] sm:$0xff] }
 0xab8   :  { %v8582_v16 = vpop.eup %8581 }
 0xab9   :  { %8593 = vtanh.f32 %v5085_v20  ;;  %v5091_v36 = vsub.f32 1.0, %v8582_v16  ;;  %v5099_v41 = vmul.f32 %v8582_v16, %v10844_v6 }
 0xaba   :  { %v8584_v17 = vpop.eup %8583 }
 0xabb   :  { %v5094_v13 = vsub.f32 1.0, %v8584_v17  ;;  %v5102_v44 = vmul.f32 %v8584_v17, %v10846_v54  ;;  %v5112_v54 = vld [vmem:[#allocation2 + $0x128] sm:$0xff] }
 0xac0   :  { %v8586_v22 = vpop.eup %8585 }
 0xac1   :  { %v8588_v12 = vpop.eup %8587  ;;  %v5096_v56 = vmul.f32 %v8586_v22, %v5092_v34  ;;  %v5118_v34 = vld [vmem:[#allocation2 + $0x158] sm:$0xff] }
 0xac2   :  { %v8590_v37 = vpop.eup %8589  ;;  %v5093_v7 = vsub.f32 1.0, %v8588_v12  ;;  %v5101_v1 = vmul.f32 %v8588_v12, %v10854_v48 }
 0xac3   :  { %v10949_v47 = vadd.f32 %v5100_v3, %v5096_v56  ;;  %v5095_v58 = vmul.f32 %v8590_v37, %v5091_v36  ;;  %v5117_v36 = vld [vmem:[#allocation2 + $0x150] sm:$0xff] }
 0xac4   :  { %v8592_v14 = vpop.eup %8591 }
 0xac5   :  { %v5098_v52 = vmul.f32 %v8592_v14, %v5094_v13  ;;  %5108 = vst.msk [vmem:[#allocation3 + $0x48] sm:$0xff] %vm162_vm0, %v10949_v47  ;;  %v10955_v40 = vadd.f32 %v5099_v41, %v5095_v58 }
 0xac6   :  { %v8594_v27 = vpop.eup %8593 }
 0xac7   :  { %v10957_v33 = vadd.f32 %v5102_v44, %v5098_v52  ;;  %v5097_v42 = vmul.f32 %v8594_v27, %v5093_v7  ;;  %5107 = vst.msk [vmem:[#allocation3 + $0x40] sm:$0xff] %vm162_vm0, %v10955_v40 }
 0xac9   :  { %5110 = vst.msk [vmem:[#allocation3 + $0x58] sm:$0xff] %vm162_vm0, %v10957_v33  ;;  %8020 = vmatprep.subr.mxu1 %v10957_v33  ;;  %v10965_v6 = vadd.f32 %v5101_v1, %v5097_v42 }
 0xaca   :  { %8021 = vmatpush3.msra.mxu1 %v10957_v33 }
 0xacb   :  { %5109 = vst.msk [vmem:[#allocation3 + $0x50] sm:$0xff] %vm162_vm0, %v10965_v6  ;;  %8022 = vmatprep.subr.mxu1 %v10965_v6 }
 0xacc   :  { %8023 = vmatpush3.msra.mxu1 %v10965_v6 }
 0xacd   :  { %8024 = vmatprep.subr.mxu1 %v10949_v47 }
 0xace   :  { %8025 = vmatpush3.msra.mxu1 %v10949_v47 }
 0xacf   :  { %8026 = vmatprep.subr.mxu1 %v10955_v40 }
 0xad0   :  { %8027 = vmatpush3.msra.mxu1 %v10955_v40 }
 0xad1   :  { %8029 = vmatmul.mubr.msk.f32.vlgmr.msra.gmra.mxu1 %vm1328_vm1, %v10868_v61 }
 0xad2   :  { %8031 = vmatprep.mubr.msk.f32.mxu1 %vm1328_vm1, %v10875_v32 }
 0xad5   :  { %8032 = vmatmul.mubr.msk.f32.gmra.mxu1 %vm1328_vm1, %v10882_v62 }
 0xad6   :  { %8034 = vmatprep.mubr.msk.f32.mxu1 %vm1328_vm1, %v10889_v59 }
 0xad9   :  { %8035 = vmatmul.mubr.msk.f32.gmra.mxu1 %vm1328_vm1, %v10896_v63 }
 0xada   :  { %8037 = vmatprep.mubr.msk.f32.mxu1 %vm1328_vm1, %v10903_v60 }
 0xadd   :  { %8038 = vmatmul.mubr.msk.f32.gmra.mxu1 %vm1328_vm1, %v10910_v50 }
 0xade   :  { %8040 = vmatprep.mubr.msk.f32.mxu1 %vm1328_vm1, %v10917_v28 }
 0xae1   :  { %8041 = vmatmul.mubr.msk.f32.gmra.mxu1 %vm1328_vm1, %v10924_v5 }
 0xae2   :  { %8043 = vmatprep.mubr.msk.f32.mxu1 %vm1328_vm1, %v10931_v35 }
 0xae5   :  { %8044 = vmatmul.mubr.msk.f32.gmra.mxu1 %vm1328_vm1, %v10938_v53 }
 0xae6   :  { %8080 = vmatprep.mubr.msk.f32.mxu1 %vm1328_vm1, %v10805_v24 }
 0xb91   :  { %v8030_v48 = vpop.f32.mrf.mxu1 }
 0xb92   :  { %v5249_v43 = vadd.f32 %v8030_v48, %v5112_v54 }
 0xb93   :  { %v5189_v15 = vpop.f32.mrf.mxu1 }
 0xb94   :  { %v5253_v39 = vsub.f32 0.0, %v5249_v43  ;;  %v5248_v18 = vadd.f32 %v5189_v15, %v5111_v9 }
 0xb95   :  { %v8033_v38 = vpop.f32.mrf.mxu1 }
 0xb96   :  { %v5258_v49 = vmul.f32 1.442695, %v5253_v39  ;;  %v5252_v4 = vsub.f32 0.0, %v5248_v18  ;;  %v5251_v51 = vadd.f32 %v8033_v38, %v5114_v11 }
 0xb97   :  { %v5199_v2 = vpop.f32.mrf.mxu1 }
 0xb98   :  { %8595 = vpow2.f32 %v5258_v49  ;;  %v5256_v55 = vmul.f32 1.442695, %v5252_v4  ;;  %v5255_v25 = vsub.f32 0.0, %v5251_v51  ;;  %v5250_v45 = vadd.f32 %v5199_v2, %v5113_v0 }
 0xb99   :  { %v8036_v31 = vpop.f32.mrf.mxu1 }
 0xb9a   :  { %8597 = vpow2.f32 %v5256_v55  ;;  %v5262_v10 = vmul.f32 1.442695, %v5255_v25  ;;  %v5254_v30 = vsub.f32 0.0, %v5250_v45  ;;  %v5273_v29 = vadd.f32 %v8036_v31, %v5116_v26 }
 0xb9b   :  { %v5209_v20 = vpop.f32.mrf.mxu1 }
 0xb9c   :  { %8599 = vpow2.f32 %v5262_v10  ;;  %v5260_v8 = vmul.f32 1.442695, %v5254_v30  ;;  %v5277_v16 = vsub.f32 0.0, %v5273_v29  ;;  %v5272_v17 = vadd.f32 %v5209_v20, %v5115_v23  ;;  %v5120_v30 = vld [vmem:[#allocation2 + $0x168] sm:$0xff] }
 0xb9d   :  { %v8039_v22 = vpop.f32.mrf.mxu1 }
 0xb9e   :  { %8601 = vpow2.f32 %v5260_v8  ;;  %v5282_v12 = vmul.f32 1.442695, %v5277_v16  ;;  %v5276_v56 = vsub.f32 0.0, %v5272_v17  ;;  %v5275_v3 = vadd.f32 %v8039_v22, %v5118_v34  ;;  %v5119_v17 = vld [vmem:[#allocation2 + $0x160] sm:$0xff] }
 0xb9f   :  { %v5219_v37 = vpop.f32.mrf.mxu1 }
 0xba0   :  { %v5280_v13 = vmul.f32 1.442695, %v5276_v56  ;;  %v5279_v58 = vsub.f32 0.0, %v5275_v3  ;;  %v5274_v41 = vadd.f32 %v5219_v37, %v5117_v36  ;;  %8603 = vpow2.f32 %v5282_v12  ;;  %v5122_v3 = vld [vmem:[#allocation2 + $0x178] sm:$0xff] }
 0xba1   :  { %v8042_v9 = vpop.f32.mrf.mxu1 }
 0xba2   :  { %v5286_v14 = vmul.f32 1.442695, %v5279_v58  ;;  %v5278_v52 = vsub.f32 0.0, %v5274_v41  ;;  %8605 = vpow2.f32 %v5280_v13  ;;  %v5297_v2 = vadd.f32 %v8042_v9, %v10671_v46  ;;  %v5121_v13 = vld [vmem:[#allocation2 + $0x170] sm:$0xff] }
 0xba3   :  { %v5229_v18 = vpop.f32.mrf.mxu1 }
 0xba4   :  { %v5284_v44 = vmul.f32 1.442695, %v5278_v52  ;;  %8607 = vpow2.f32 %v5286_v14  ;;  %v5296_v26 = vadd.f32 %v5229_v18, %v10676_v21 }
 0xba5   :  { %v8596_v7 = vpop.eup %8595  ;;  %v8045_v4 = vpop.f32.mrf.mxu1 }
 0xba6   :  { %v5265_v27 = vadd.f32 1.0, %v8596_v7  ;;  %8609 = vpow2.f32 %v5284_v44  ;;  %v5299_v8 = vadd.f32 %v8045_v4, %v10659_v19 }
 0xba7   :  { %v8598_v42 = vpop.eup %8597  ;;  %v5239_v29 = vpop.f32.mrf.mxu1 }
 0xba8   :  { %8611 = vrcp.f32 %v5265_v27  ;;  %v5264_v1 = vadd.f32 1.0, %v8598_v42  ;;  %v5298_v12 = vadd.f32 %v5239_v29, %v10664_v57 }
 0xba9   :  { %v8600_v54 = vpop.eup %8599 }
 0xbaa   :  { %8613 = vrcp.f32 %v5264_v1  ;;  %v5267_v48 = vadd.f32 1.0, %v8600_v54 }
 0xbab   :  { %v8602_v43 = vpop.eup %8601 }
 0xbac   :  { %8615 = vrcp.f32 %v5267_v48  ;;  %v5266_v15 = vadd.f32 1.0, %v8602_v43 }
 0xbad   :  { %v8604_v39 = vpop.eup %8603 }
 0xbae   :  { %8617 = vrcp.f32 %v5266_v15  ;;  %v5289_v49 = vadd.f32 1.0, %v8604_v39 }
 0xbaf   :  { %v8606_v11 = vpop.eup %8605 }
 0xbb0   :  { %v5288_v0 = vadd.f32 1.0, %v8606_v11  ;;  %8619 = vrcp.f32 %v5289_v49 }
 0xbb1   :  { %v8608_v38 = vpop.eup %8607 }
 0xbb2   :  { %v5291_v25 = vadd.f32 1.0, %v8608_v38  ;;  %8621 = vrcp.f32 %v5288_v0 }
 0xbb3   :  { %v8610_v51 = vpop.eup %8609 }
 0xbb4   :  { %v5290_v10 = vadd.f32 1.0, %v8610_v51  ;;  %8623 = vrcp.f32 %v5291_v25  ;;  %v5332_v25 = vld [vmem:[#allocation2 + $0x180] sm:$0xff] }
 0xbb5   :  { %v8612_v55 = vpop.eup %8611 }
 0xbb6   :  { %v5301_v45 = vmul.f32 %v8612_v55, %v5297_v2 }
 0xbb7   :  { %v8614_v31 = vpop.eup %8613 }
 0xbb8   :  { %v5305_v23 = vadd.f32 %v5301_v45, %v5120_v30  ;;  %v5300_v20 = vmul.f32 %v8614_v31, %v5296_v26 }
 0xbb9   :  { %v8616_v16 = vpop.eup %8615 }
 0xbba   :  { %8625 = vtanh.f32 %v5305_v23  ;;  %v5304_v34 = vadd.f32 %v5300_v20, %v5119_v17  ;;  %v5303_v22 = vmul.f32 %v8616_v16, %v5299_v8  ;;  %v5334_v8 = vld [vmem:[#allocation2 + $0x190] sm:$0xff] }
 0xbbb   :  { %v8618_v56 = vpop.eup %8617  ;;  %8627 = vrcp.f32 %v5290_v10  ;;  %v5335_v10 = vld [vmem:[#allocation2 + $0x198] sm:$0xff] }
 0xbbc   :  { %8629 = vtanh.f32 %v5304_v34  ;;  %v5307_v36 = vadd.f32 %v5303_v22, %v5122_v3  ;;  %v5302_v37 = vmul.f32 %v8618_v56, %v5298_v12  ;;  %v5337_v12 = vld [vmem:[#allocation2 + $0x1a8] sm:$0xff] }
 0xbbd   :  { %v8620_v41 = vpop.eup %8619 }
 0xbbe   :  { %8631 = vtanh.f32 %v5307_v36  ;;  %v5306_v58 = vadd.f32 %v5302_v37, %v5121_v13  ;;  %v5313_v44 = vsub.f32 1.0, %v8620_v41  ;;  %v5321_v1 = vmul.f32 %v8620_v41, %v10949_v47  ;;  %v5336_v37 = vld [vmem:[#allocation2 + $0x1a0] sm:$0xff] }
 0xbbf   :  { %v8622_v14 = vpop.eup %8621 }
 0xbc0   :  { %8633 = vtanh.f32 %v5306_v58  ;;  %v5312_v54 = vsub.f32 1.0, %v8622_v14  ;;  %v5320_v39 = vmul.f32 %v8622_v14, %v10955_v40 }
 0xbc1   :  { %v8624_v52 = vpop.eup %8623 }
 0xbc2   :  { %v5315_v43 = vsub.f32 1.0, %v8624_v52  ;;  %v5323_v38 = vmul.f32 %v8624_v52, %v10957_v33  ;;  %v5333_v33 = vld [vmem:[#allocation2 + $0x188] sm:$0xff]  ;;  %v5339_v52 = vld [vmem:[#allocation2 + $0x1b8] sm:$0xff] }
 0xbc7   :  { %v8626_v7 = vpop.eup %8625 }
 0xbc8   :  { %v8628_v27 = vpop.eup %8627  ;;  %v5317_v42 = vmul.f32 %v8626_v7, %v5313_v44 }
 0xbc9   :  { %v8630_v48 = vpop.eup %8629  ;;  %v5314_v49 = vsub.f32 1.0, %v8628_v27  ;;  %v5322_v2 = vmul.f32 %v8628_v27, %v10965_v6 }
 0xbca   :  { %v11005_v9 = vadd.f32 %v5321_v1, %v5317_v42  ;;  %v5316_v15 = vmul.f32 %v8630_v48, %v5312_v54  ;;  %v5338_v1 = vld [vmem:[#allocation2 + $0x1b0] sm:$0xff] }
 0xbcb   :  { %v8632_v18 = vpop.eup %8631 }
 0xbcc   :  { %v5319_v11 = vmul.f32 %v8632_v18, %v5315_v43  ;;  %5329 = vst.msk [vmem:[#allocation3 + $0x68] sm:$0xff] %vm162_vm0, %v11005_v9  ;;  %v11011_v4 = vadd.f32 %v5320_v39, %v5316_v15 }
 0xbcd   :  { %v8634_v51 = vpop.eup %8633 }
 0xbce   :  { %v11013_v47 = vadd.f32 %v5323_v38, %v5319_v11  ;;  %v5318_v0 = vmul.f32 %v8634_v51, %v5314_v49  ;;  %5328 = vst.msk [vmem:[#allocation3 + $0x60] sm:$0xff] %vm162_vm0, %v11011_v4 }
 0xbd0   :  { %5331 = vst.msk [vmem:[#allocation3 + $0x78] sm:$0xff] %vm162_vm0, %v11013_v47  ;;  %8046 = vmatprep.subr.mxu0 %v11013_v47  ;;  %v11021_v40 = vadd.f32 %v5322_v2, %v5318_v0 }
 0xbd1   :  { %8047 = vmatpush3.msra.mxu0 %v11013_v47 }
 0xbd2   :  { %5330 = vst.msk [vmem:[#allocation3 + $0x70] sm:$0xff] %vm162_vm0, %v11021_v40  ;;  %8048 = vmatprep.subr.mxu0 %v11021_v40 }
 0xbd3   :  { %8049 = vmatpush3.msra.mxu0 %v11021_v40 }
 0xbd4   :  { %8050 = vmatprep.subr.mxu0 %v11005_v9 }
 0xbd5   :  { %8051 = vmatpush3.msra.mxu0 %v11005_v9 }
 0xbd6   :  { %8052 = vmatprep.subr.mxu0 %v11011_v4 }
 0xbd7   :  { %8053 = vmatpush3.msra.mxu0 %v11011_v4 }
 0xbd8   :  { %8055 = vmatmul.mubr.msk.f32.vlgmr.msra.gmra.mxu0 %vm1328_vm1, %v10868_v61 }
 0xbd9   :  { %8057 = vmatprep.mubr.msk.f32.mxu0 %vm1328_vm1, %v10875_v32 }
 0xbdc   :  { %8058 = vmatmul.mubr.msk.f32.gmra.mxu0 %vm1328_vm1, %v10882_v62 }
 0xbdd   :  { %8060 = vmatprep.mubr.msk.f32.mxu0 %vm1328_vm1, %v10889_v59 }
 0xbe0   :  { %8061 = vmatmul.mubr.msk.f32.gmra.mxu0 %vm1328_vm1, %v10896_v63 }
 0xbe1   :  { %8063 = vmatprep.mubr.msk.f32.mxu0 %vm1328_vm1, %v10903_v60 }
 0xbe4   :  { %8064 = vmatmul.mubr.msk.f32.gmra.mxu0 %vm1328_vm1, %v10910_v50 }
 0xbe5   :  { %8066 = vmatprep.mubr.msk.f32.mxu0 %vm1328_vm1, %v10917_v28 }
 0xbe8   :  { %8067 = vmatmul.mubr.msk.f32.gmra.mxu0 %vm1328_vm1, %v10924_v5 }
 0xbe9   :  { %8069 = vmatprep.mubr.msk.f32.mxu0 %vm1328_vm1, %v10931_v35 }
 0xbec   :  { %8070 = vmatmul.mubr.msk.f32.gmra.mxu0 %vm1328_vm1, %v10938_v53 }
 0xbed   :  { %8106 = vmatprep.mubr.msk.f32.mxu0 %vm1328_vm1, %v10805_v24 }
 0xc98   :  { %v8056_v6 = vpop.f32.mrf.mxu0 }
 0xc99   :  { %v5470_v55 = vadd.f32 %v8056_v6, %v5333_v33 }
 0xc9a   :  { %v5410_v45 = vpop.f32.mrf.mxu0 }
 0xc9b   :  { %v5474_v26 = vsub.f32 0.0, %v5470_v55  ;;  %v5469_v31 = vadd.f32 %v5410_v45, %v5332_v25 }
 0xc9c   :  { %v8059_v30 = vpop.f32.mrf.mxu0 }
 0xc9d   :  { %v5479_v29 = vmul.f32 1.442695, %v5474_v26  ;;  %v5473_v23 = vsub.f32 0.0, %v5469_v31  ;;  %v5472_v20 = vadd.f32 %v8059_v30, %v5335_v10 }
 0xc9e   :  { %v5420_v16 = vpop.f32.mrf.mxu0 }
 0xc9f   :  { %8635 = vpow2.f32 %v5479_v29  ;;  %v5477_v17 = vmul.f32 1.442695, %v5473_v23  ;;  %v5476_v34 = vsub.f32 0.0, %v5472_v20  ;;  %v5471_v22 = vadd.f32 %v5420_v16, %v5334_v8 }
 0xca0   :  { %v8062_v24 = vpop.f32.mrf.mxu0 }
 0xca1   :  { %8637 = vpow2.f32 %v5477_v17  ;;  %v5483_v56 = vmul.f32 1.442695, %v5476_v34  ;;  %v5475_v3 = vsub.f32 0.0, %v5471_v22  ;;  %v5494_v36 = vadd.f32 %v8062_v24, %v5337_v12 }
 0xca2   :  { %v5430_v13 = vpop.f32.mrf.mxu0 }
 0xca3   :  { %8639 = vpow2.f32 %v5483_v56  ;;  %v5481_v58 = vmul.f32 1.442695, %v5475_v3  ;;  %v5498_v41 = vsub.f32 0.0, %v5494_v36  ;;  %v5493_v14 = vadd.f32 %v5430_v13, %v5336_v37  ;;  %v5341_v56 = vld [vmem:[#allocation2 + $0x1c8] sm:$0xff] }
 0xca4   :  { %v8065_v44 = vpop.f32.mrf.mxu0 }
 0xca5   :  { %8641 = vpow2.f32 %v5481_v58  ;;  %v5503_v7 = vmul.f32 1.442695, %v5498_v41  ;;  %v5497_v27 = vsub.f32 0.0, %v5493_v14  ;;  %v5496_v42 = vadd.f32 %v8065_v44, %v5339_v52  ;;  %v5340_v41 = vld [vmem:[#allocation2 + $0x1c0] sm:$0xff] }
 0xca6   :  { %v5440_v54 = vpop.f32.mrf.mxu0 }
 0xca7   :  { %v5501_v48 = vmul.f32 1.442695, %v5497_v27  ;;  %v5500_v43 = vsub.f32 0.0, %v5496_v42  ;;  %v5495_v15 = vadd.f32 %v5440_v54, %v5338_v1  ;;  %8643 = vpow2.f32 %v5503_v7  ;;  %v5343_v27 = vld [vmem:[#allocation2 + $0x1d8] sm:$0xff]  ;;  %v5342_v54 = vld [vmem:[#allocation2 + $0x1d0] sm:$0xff] }
 0xca8   :  { %v8068_v55 = vpop.f32.mrf.mxu0 }
 0xca9   :  { %v5507_v39 = vmul.f32 1.442695, %v5500_v43  ;;  %v5499_v18 = vsub.f32 0.0, %v5495_v15  ;;  %8645 = vpow2.f32 %v5501_v48  ;;  %v5518_v8 = vadd.f32 %v8068_v55, %v10671_v46 }
 0xcaa   :  { %v5450_v26 = vpop.f32.mrf.mxu0 }
 0xcab   :  { %v5505_v11 = vmul.f32 1.442695, %v5499_v18  ;;  %8647 = vpow2.f32 %v5507_v39  ;;  %v5517_v22 = vadd.f32 %v5450_v26, %v10676_v21 }
 0xcac   :  { %v8636_v38 = vpop.eup %8635  ;;  %v8071_v29 = vpop.f32.mrf.mxu0 }
 0xcad   :  { %v5486_v49 = vadd.f32 1.0, %v8636_v38  ;;  %8649 = vpow2.f32 %v5505_v11  ;;  %v5520_v13 = vadd.f32 %v8071_v29, %v10659_v19 }
 0xcae   :  { %v8638_v51 = vpop.eup %8637  ;;  %v5460_v3 = vpop.f32.mrf.mxu0 }
 0xcaf   :  { %8651 = vrcp.f32 %v5486_v49  ;;  %v5485_v0 = vadd.f32 1.0, %v8638_v51  ;;  %v5519_v44 = vadd.f32 %v5460_v3, %v10664_v57 }
 0xcb0   :  { %v8640_v2 = vpop.eup %8639 }
 0xcb1   :  { %8653 = vrcp.f32 %v5485_v0  ;;  %v5488_v33 = vadd.f32 1.0, %v8640_v2 }
 0xcb2   :  { %v8642_v6 = vpop.eup %8641 }
 0xcb3   :  { %8655 = vrcp.f32 %v5488_v33  ;;  %v5487_v25 = vadd.f32 1.0, %v8642_v6 }
 0xcb4   :  { %v8644_v45 = vpop.eup %8643 }
 0xcb5   :  { %8657 = vrcp.f32 %v5487_v25  ;;  %v5510_v30 = vadd.f32 1.0, %v8644_v45 }
 0xcb6   :  { %v8646_v31 = vpop.eup %8645 }
 0xcb7   :  { %v5509_v20 = vadd.f32 1.0, %v8646_v31  ;;  %8659 = vrcp.f32 %v5510_v30 }
 0xcb8   :  { %v8648_v10 = vpop.eup %8647 }
 0xcb9   :  { %v5512_v17 = vadd.f32 1.0, %v8648_v10  ;;  %8661 = vrcp.f32 %v5509_v20 }
 0xcba   :  { %v8650_v23 = vpop.eup %8649 }
 0xcbb   :  { %v5511_v24 = vadd.f32 1.0, %v8650_v23  ;;  %8663 = vrcp.f32 %v5512_v17 }
 0xcbc   :  { %v8652_v16 = vpop.eup %8651 }
 0xcbd   :  { %v5522_v34 = vmul.f32 %v8652_v16, %v5518_v8  ;;  %v5555_v16 = vld [vmem:[#allocation2 + $0x1f0] sm:$0xff] }
 0xcbe   :  { %v8654_v12 = vpop.eup %8653 }
 0xcbf   :  { %v5526_v36 = vadd.f32 %v5522_v34, %v5341_v56  ;;  %v5521_v37 = vmul.f32 %v8654_v12, %v5517_v22  ;;  %v5558_v12 = vld [vmem:[#allocation2 + $0x208] sm:$0xff] }
 0xcc0   :  { %v8656_v58 = vpop.eup %8655 }
 0xcc1   :  { %8665 = vtanh.f32 %v5526_v36  ;;  %v5525_v14 = vadd.f32 %v5521_v37, %v5340_v41  ;;  %v5524_v52 = vmul.f32 %v8656_v58, %v5520_v13  ;;  %v5557_v37 = vld [vmem:[#allocation2 + $0x200] sm:$0xff] }
 0xcc2   :  { %v8658_v7 = vpop.eup %8657  ;;  %8667 = vrcp.f32 %v5511_v24 }
 0xcc3   :  { %8669 = vtanh.f32 %v5525_v14  ;;  %v5528_v42 = vadd.f32 %v5524_v52, %v5343_v27  ;;  %v5523_v1 = vmul.f32 %v8658_v7, %v5519_v44  ;;  %v5560_v52 = vld [vmem:[#allocation2 + $0x218] sm:$0xff] }
 0xcc4   :  { %v8660_v43 = vpop.eup %8659 }
 0xcc5   :  { %8671 = vtanh.f32 %v5528_v42  ;;  %v5527_v48 = vadd.f32 %v5523_v1, %v5342_v54  ;;  %v5534_v18 = vsub.f32 1.0, %v8660_v43  ;;  %v5542_v51 = vmul.f32 %v8660_v43, %v11005_v9  ;;  %v5559_v1 = vld [vmem:[#allocation2 + $0x210] sm:$0xff] }
 0xcc6   :  { %v8662_v15 = vpop.eup %8661 }
 0xcc7   :  { %8673 = vtanh.f32 %v5527_v48  ;;  %v5533_v0 = vsub.f32 1.0, %v8662_v15  ;;  %v5541_v25 = vmul.f32 %v8662_v15, %v11011_v4 }
 0xcc8   :  { %v8664_v39 = vpop.eup %8663 }
 0xcc9   :  { %v5536_v33 = vsub.f32 1.0, %v8664_v39  ;;  %v5544_v31 = vmul.f32 %v8664_v39, %v11013_v47 }
 0xcce   :  { %v8666_v11 = vpop.eup %8665 }
 0xccf   :  { %v8668_v38 = vpop.eup %8667  ;;  %v5538_v49 = vmul.f32 %v8666_v11, %v5534_v18 }
 0xcd0   :  { %v8670_v2 = vpop.eup %8669  ;;  %v5535_v10 = vsub.f32 1.0, %v8668_v38  ;;  %v5543_v20 = vmul.f32 %v8668_v38, %v11021_v40 }
 0xcd1   :  { %v11061_v6 = vadd.f32 %v5542_v51, %v5538_v49  ;;  %v5537_v55 = vmul.f32 %v8670_v2, %v5533_v0 }
 0xcd2   :  { %v8672_v45 = vpop.eup %8671 }
 0xcd3   :  { %v5540_v26 = vmul.f32 %v8672_v45, %v5536_v33  ;;  %5550 = vst.msk [vmem:[#allocation3 + $0x88] sm:$0xff] %vm162_vm0, %v11061_v6  ;;  %v11067_v30 = vadd.f32 %v5541_v25, %v5537_v55 }
 0xcd4   :  { %v8674_v29 = vpop.eup %8673 }
 0xcd5   :  { %v11069_v9 = vadd.f32 %v5544_v31, %v5540_v26  ;;  %v5539_v23 = vmul.f32 %v8674_v29, %v5535_v10  ;;  %5549 = vst.msk [vmem:[#allocation3 + $0x80] sm:$0xff] %vm162_vm0, %v11067_v30 }
 0xcd7   :  { %5552 = vst.msk [vmem:[#allocation3 + $0x98] sm:$0xff] %vm162_vm0, %v11069_v9  ;;  %8072 = vmatprep.subr.mxu1 %v11069_v9  ;;  %v11077_v4 = vadd.f32 %v5543_v20, %v5539_v23 }
 0xcd8   :  { %8073 = vmatpush3.msra.mxu1 %v11069_v9 }
 0xcd9   :  { %5551 = vst.msk [vmem:[#allocation3 + $0x90] sm:$0xff] %vm162_vm0, %v11077_v4  ;;  %8074 = vmatprep.subr.mxu1 %v11077_v4 }
 0xcda   :  { %8075 = vmatpush3.msra.mxu1 %v11077_v4 }
 0xcdb   :  { %8076 = vmatprep.subr.mxu1 %v11061_v6 }
 0xcdc   :  { %8077 = vmatpush3.msra.mxu1 %v11061_v6 }
 0xcdd   :  { %8078 = vmatprep.subr.mxu1 %v11067_v30 }
 0xcde   :  { %8079 = vmatpush3.msra.mxu1 %v11067_v30 }
 0xcdf   :  { %8081 = vmatmul.mubr.msk.f32.vlgmr.msra.gmra.mxu1 %vm1328_vm1, %v10868_v61  ;;  %v8873_v61 = vld [vmem:[%s11393_s6] sm:$0xff] }
 0xce0   :  { %8083 = vmatprep.mubr.msk.f32.mxu1 %vm1328_vm1, %v10875_v32  ;;  %v5554_v32 = vld [vmem:[#allocation2 + $0x1e8] sm:$0xff] }
 0xce3   :  { %8084 = vmatmul.mubr.msk.f32.gmra.mxu1 %vm1328_vm1, %v10882_v62 }
 0xce4   :  { %8086 = vmatprep.mubr.msk.f32.mxu1 %vm1328_vm1, %v10889_v59 }
 0xce7   :  { %8087 = vmatmul.mubr.msk.f32.gmra.mxu1 %vm1328_vm1, %v10896_v63  ;;  %v5553_v63 = vld [vmem:[#allocation2 + $0x1e0] sm:$0xff] }
 0xce8   :  { %8089 = vmatprep.mubr.msk.f32.mxu1 %vm1328_vm1, %v10903_v60 }
 0xceb   :  { %8090 = vmatmul.mubr.msk.f32.gmra.mxu1 %vm1328_vm1, %v10910_v50 }
 0xcec   :  { %8092 = vmatprep.mubr.msk.f32.mxu1 %vm1328_vm1, %v10917_v28 }
 0xcef   :  { %8093 = vmatmul.mubr.msk.f32.gmra.mxu1 %vm1328_vm1, %v10924_v5  ;;  %v5556_v5 = vld [vmem:[#allocation2 + $0x1f8] sm:$0xff] }
 0xcf0   :  { %8095 = vmatprep.mubr.msk.f32.mxu1 %vm1328_vm1, %v10931_v35 }
 0xcf3   :  { %8096 = vmatmul.mubr.msk.f32.gmra.mxu1 %vm1328_vm1, %v10938_v53 }
 0xcf4   :  { %8132 = vmatprep.mubr.msk.f32.mxu1 %vm1328_vm1, %v8873_v61 }
 0xd9f   :  { %v8082_v62 = vpop.f32.mrf.mxu1 }
 0xda0   :  { %v5691_v59 = vadd.f32 %v8082_v62, %v5554_v32 }
 0xda1   :  { %v5631_v60 = vpop.f32.mrf.mxu1 }
 0xda2   :  { %v5695_v50 = vsub.f32 0.0, %v5691_v59  ;;  %v5690_v28 = vadd.f32 %v5631_v60, %v5553_v63 }
 0xda3   :  { %v8085_v47 = vpop.f32.mrf.mxu1 }
 0xda4   :  { %v5700_v40 = vmul.f32 1.442695, %v5695_v50  ;;  %v5694_v35 = vsub.f32 0.0, %v5690_v28  ;;  %v5693_v8 = vadd.f32 %v8085_v47, %v5556_v5  ;;  %v5562_v47 = vld [vmem:[#allocation2 + $0x228] sm:$0xff] }
 0xda5   :  { %v5641_v53 = vpop.f32.mrf.mxu1 }
 0xda6   :  { %8675 = vpow2.f32 %v5700_v40  ;;  %v5698_v17 = vmul.f32 1.442695, %v5694_v35  ;;  %v5697_v34 = vsub.f32 0.0, %v5693_v8  ;;  %v5692_v22 = vadd.f32 %v5641_v53, %v5555_v16 }
 0xda7   :  { %v8088_v24 = vpop.f32.mrf.mxu1 }
 0xda8   :  { %8677 = vpow2.f32 %v5698_v17  ;;  %v5704_v56 = vmul.f32 1.442695, %v5697_v34  ;;  %v5696_v3 = vsub.f32 0.0, %v5692_v22  ;;  %v5715_v36 = vadd.f32 %v8088_v24, %v5558_v12  ;;  %v5561_v17 = vld [vmem:[#allocation2 + $0x220] sm:$0xff] }
 0xda9   :  { %v5651_v13 = vpop.f32.mrf.mxu1 }
 0xdaa   :  { %8679 = vpow2.f32 %v5704_v56  ;;  %v5702_v58 = vmul.f32 1.442695, %v5696_v3  ;;  %v5719_v41 = vsub.f32 0.0, %v5715_v36  ;;  %v5714_v14 = vadd.f32 %v5651_v13, %v5557_v37  ;;  %v5564_v56 = vld [vmem:[#allocation2 + $0x238] sm:$0xff]  ;;  %v5563_v37 = vld [vmem:[#allocation2 + $0x230] sm:$0xff] }
 0xdab   :  { %v8091_v44 = vpop.f32.mrf.mxu1 }
 0xdac   :  { %8681 = vpow2.f32 %v5702_v58  ;;  %v5724_v7 = vmul.f32 1.442695, %v5719_v41  ;;  %v5718_v27 = vsub.f32 0.0, %v5714_v14  ;;  %v5717_v42 = vadd.f32 %v8091_v44, %v5560_v52 }
 0xdad   :  { %v5661_v54 = vpop.f32.mrf.mxu1 }
 0xdae   :  { %v5722_v48 = vmul.f32 1.442695, %v5718_v27  ;;  %v5721_v43 = vsub.f32 0.0, %v5717_v42  ;;  %v5716_v15 = vadd.f32 %v5661_v54, %v5559_v1  ;;  %8683 = vpow2.f32 %v5724_v7 }
 0xdaf   :  { %v8094_v25 = vpop.f32.mrf.mxu1 }
 0xdb0   :  { %v5728_v39 = vmul.f32 1.442695, %v5721_v43  ;;  %v5720_v18 = vsub.f32 0.0, %v5716_v15  ;;  %8685 = vpow2.f32 %v5722_v48  ;;  %v5739_v62 = vadd.f32 %v8094_v25, %v10671_v46  ;;  %v11170_v25 = vld [vmem:[%s11393_s6 + $0x20] sm:$0xff] }
 0xdb1   :  { %v5671_v31 = vpop.f32.mrf.mxu1 }
 0xdb2   :  { %v5726_v11 = vmul.f32 1.442695, %v5720_v18  ;;  %8687 = vpow2.f32 %v5728_v39  ;;  %v5738_v50 = vadd.f32 %v5671_v31, %v10676_v21  ;;  %v11191_v31 = vld [vmem:[%s11393_s6 + $0x38] sm:$0xff] }
 0xdb3   :  { %v8676_v38 = vpop.eup %8675  ;;  %v8097_v20 = vpop.f32.mrf.mxu1 }
 0xdb4   :  { %v5707_v49 = vadd.f32 1.0, %v8676_v38  ;;  %8689 = vpow2.f32 %v5726_v11  ;;  %v5741_v16 = vadd.f32 %v8097_v20, %v10659_v19  ;;  %v11219_v20 = vld [vmem:[%s11393_s6 + $0x58] sm:$0xff] }
 0xdb5   :  { %v8678_v51 = vpop.eup %8677  ;;  %v5681_v40 = vpop.f32.mrf.mxu1 }
 0xdb6   :  { %8691 = vrcp.f32 %v5707_v49  ;;  %v5706_v0 = vadd.f32 1.0, %v8678_v51  ;;  %v5740_v12 = vadd.f32 %v5681_v40, %v10664_v57 }
 0xdb7   :  { %v8680_v2 = vpop.eup %8679 }
 0xdb8   :  { %8693 = vrcp.f32 %v5706_v0  ;;  %v5709_v33 = vadd.f32 1.0, %v8680_v2 }
 0xdb9   :  { %v8682_v55 = vpop.eup %8681 }
 0xdba   :  { %8695 = vrcp.f32 %v5709_v33  ;;  %v5708_v45 = vadd.f32 1.0, %v8682_v55  ;;  %v11163_v55 = vld [vmem:[%s11393_s6 + $0x18] sm:$0xff] }
 0xdbb   :  { %v8684_v26 = vpop.eup %8683 }
 0xdbc   :  { %8697 = vrcp.f32 %v5708_v45  ;;  %v5731_v23 = vadd.f32 1.0, %v8684_v26  ;;  %v11177_v45 = vld [vmem:[%s11393_s6 + $0x28] sm:$0xff]  ;;  %v11184_v26 = vld [vmem:[%s11393_s6 + $0x30] sm:$0xff] }
 0xdbd   :  { %v8686_v10 = vpop.eup %8685 }
 0xdbe   :  { %v5730_v32 = vadd.f32 1.0, %v8686_v10  ;;  %8699 = vrcp.f32 %v5731_v23  ;;  %v11198_v10 = vld [vmem:[%s11393_s6 + $0x40] sm:$0xff]  ;;  %v11212_v23 = vld [vmem:[%s11393_s6 + $0x50] sm:$0xff] }
 0xdbf   :  { %v8688_v29 = vpop.eup %8687 }
 0xdc0   :  { %v5733_v63 = vadd.f32 1.0, %v8688_v29  ;;  %8701 = vrcp.f32 %v5730_v32  ;;  %v11205_v29 = vld [vmem:[%s11393_s6 + $0x48] sm:$0xff] }
 0xdc1   :  { %v8690_v61 = vpop.eup %8689 }
 0xdc2   :  { %v5732_v5 = vadd.f32 1.0, %v8690_v61  ;;  %8703 = vrcp.f32 %v5733_v63  ;;  %v5775_v61 = vld [vmem:[#allocation2 + $0x248] sm:$0xff] }
 0xdc3   :  { %v8692_v59 = vpop.eup %8691 }
 0xdc4   :  { %v5743_v60 = vmul.f32 %v8692_v59, %v5739_v62  ;;  %v5774_v59 = vld [vmem:[#allocation2 + $0x240] sm:$0xff] }
 0xdc5   :  { %v8694_v28 = vpop.eup %8693 }
 0xdc6   :  { %v5747_v35 = vadd.f32 %v5743_v60, %v5562_v47  ;;  %v5742_v8 = vmul.f32 %v8694_v28, %v5738_v50  ;;  %v5777_v28 = vld [vmem:[#allocation2 + $0x258] sm:$0xff] }
 0xdc7   :  { %v8696_v53 = vpop.eup %8695 }
 0xdc8   :  { %8705 = vtanh.f32 %v5747_v35  ;;  %v5746_v34 = vadd.f32 %v5742_v8, %v5561_v17  ;;  %v5745_v22 = vmul.f32 %v8696_v53, %v5741_v16  ;;  %v5776_v8 = vld [vmem:[#allocation2 + $0x250] sm:$0xff] }
 0xdc9   :  { %v8698_v24 = vpop.eup %8697  ;;  %8707 = vrcp.f32 %v5732_v5 }
 0xdca   :  { %8709 = vtanh.f32 %v5746_v34  ;;  %v5749_v3 = vadd.f32 %v5745_v22, %v5564_v56  ;;  %v5744_v36 = vmul.f32 %v8698_v24, %v5740_v12  ;;  %v5779_v22 = vld [vmem:[#allocation2 + $0x268] sm:$0xff] }
 0xdcb   :  { %v8700_v58 = vpop.eup %8699 }
 0xdcc   :  { %8711 = vtanh.f32 %v5749_v3  ;;  %v5748_v13 = vadd.f32 %v5744_v36, %v5563_v37  ;;  %v5755_v52 = vsub.f32 1.0, %v8700_v58  ;;  %v5763_v42 = vmul.f32 %v8700_v58, %v11061_v6  ;;  %v5778_v36 = vld [vmem:[#allocation2 + $0x260] sm:$0xff] }
 0xdcd   :  { %v8702_v41 = vpop.eup %8701 }
 0xdce   :  { %8713 = vtanh.f32 %v5748_v13  ;;  %v5754_v1 = vsub.f32 1.0, %v8702_v41  ;;  %v5762_v39 = vmul.f32 %v8702_v41, %v11067_v30 }
 0xdcf   :  { %v8704_v14 = vpop.eup %8703 }
 0xdd0   :  { %v5757_v48 = vsub.f32 1.0, %v8704_v14  ;;  %v5765_v38 = vmul.f32 %v8704_v14, %v11069_v9  ;;  %v11149_v9 = vld [vmem:[%s11393_s6 + $0x8] sm:$0xff]  ;;  %v5781_v14 = vld [vmem:[#allocation2 + $0x278] sm:$0xff] }
 0xdd5   :  { %v8706_v44 = vpop.eup %8705 }
 0xdd6   :  { %v8708_v7 = vpop.eup %8707  ;;  %v5759_v27 = vmul.f32 %v8706_v44, %v5755_v52 }
 0xdd7   :  { %v8710_v54 = vpop.eup %8709  ;;  %v5756_v49 = vsub.f32 1.0, %v8708_v7  ;;  %v5764_v33 = vmul.f32 %v8708_v7, %v11077_v4  ;;  %v11156_v4 = vld [vmem:[%s11393_s6 + $0x10] sm:$0xff]  ;;  %s8909_s6 = smov [#allocation5]  }
 0xdd8   :  { %v11119_v43 = vadd.f32 %v5763_v42, %v5759_v27  ;;  %v5758_v15 = vmul.f32 %v8710_v54, %v5754_v1  ;;  %v5780_v42 = vld [vmem:[#allocation2 + $0x270] sm:$0xff]  ;;  %s6496_s14 = sshll.u32 %s8909_s6, 4  ;;  %s6497_s14 = int_to_ptr.vmem [resolvable:$true] %s6496_s14 }
 0xdd9   :  { %v8712_v18 = vpop.eup %8711  ;;  %s8885_s15 = scalar_lea.vmem %s6497_s14, 128  ;;  %p8890_p1 = scmp.lt.s32.totalorder %s6497_s14, %s6497_s14 }
 0xdda   :  { %v5761_v11 = vmul.f32 %v8712_v18, %v5757_v48  ;;  %5771 = vst.msk [vmem:[#allocation3 + $0xa8] sm:$0xff] %vm162_vm0, %v11119_v43  ;;  %v11125_v51 = vadd.f32 %v5762_v39, %v5758_v15  ;;  %p8886_p0 = scmp.ne.s32.totalorder %s6497_s14, %s8885_s15  ;;  %p8891_p2 = scmp.lt.s32.totalorder %s8885_s15, %s8885_s15 }
 0xddb   :  { %v8714_v0 = vpop.eup %8713 }
 0xddc   :  { %v11127_v6 = vadd.f32 %v5765_v38, %v5761_v11  ;;  %v5760_v2 = vmul.f32 %v8714_v0, %v5756_v49  ;;  %5770 = vst.msk [vmem:[#allocation3 + $0xa0] sm:$0xff] %vm162_vm0, %v11125_v51  ;;  %p8892_p3 = por %p8891_p2, %p8890_p1 }
 0xdde   :  { %5773 = vst.msk [vmem:[#allocation3 + $0xb8] sm:$0xff] %vm162_vm0, %v11127_v6  ;;  %8098 = vmatprep.subr.mxu0 %v11127_v6  ;;  %v11135_v30 = vadd.f32 %v5764_v33, %v5760_v2  ;;  %p8893_p4 = pnand %p8892_p3, %p8886_p0 }
 0xddf   :  { %8099 = vmatpush3.msra.mxu0 %v11127_v6 }
 0xde0   :  { %5772 = vst.msk [vmem:[#allocation3 + $0xb0] sm:$0xff] %vm162_vm0, %v11135_v30  ;;  %8100 = vmatprep.subr.mxu0 %v11135_v30 }
 0xde1   :  { %8101 = vmatpush3.msra.mxu0 %v11135_v30 }
 0xde2   :  { %8102 = vmatprep.subr.mxu0 %v11119_v43 }
 0xde3   :  { %8103 = vmatpush3.msra.mxu0 %v11119_v43 }
 0xde4   :  { %8104 = vmatprep.subr.mxu0 %v11125_v51 }
 0xde5   :  { %8105 = vmatpush3.msra.mxu0 %v11125_v51 }
 0xde6   :  { %8107 = vmatmul.mubr.msk.f32.vlgmr.msra.gmra.mxu0 %vm1328_vm1, %v11149_v9 }
 0xde7   :  { %8109 = vmatprep.mubr.msk.f32.mxu0 %vm1328_vm1, %v11156_v4 }
 0xdea   :  { %8110 = vmatmul.mubr.msk.f32.gmra.mxu0 %vm1328_vm1, %v11163_v55 }
 0xdeb   :  { %8112 = vmatprep.mubr.msk.f32.mxu0 %vm1328_vm1, %v11170_v25 }
 0xdee   :  { %8113 = vmatmul.mubr.msk.f32.gmra.mxu0 %vm1328_vm1, %v11177_v45 }
 0xdef   :  { %8115 = vmatprep.mubr.msk.f32.mxu0 %vm1328_vm1, %v11184_v26 }
 0xdf2   :  { %8116 = vmatmul.mubr.msk.f32.gmra.mxu0 %vm1328_vm1, %v11191_v31 }
 0xdf3   :  { %8118 = vmatprep.mubr.msk.f32.mxu0 %vm1328_vm1, %v11198_v10 }
 0xdf6   :  { %8119 = vmatmul.mubr.msk.f32.gmra.mxu0 %vm1328_vm1, %v11205_v29 }
 0xdf7   :  { %8121 = vmatprep.mubr.msk.f32.mxu0 %vm1328_vm1, %v11212_v23 }
 0xdfa   :  { %8122 = vmatmul.mubr.msk.f32.gmra.mxu0 %vm1328_vm1, %v11219_v20 }
 0xea6   :  { %v8108_v32 = vpop.f32.mrf.mxu0 }
 0xea7   :  { %v5912_v62 = vadd.f32 %v8108_v32, %v5775_v61 }
 0xea8   :  { %v5852_v63 = vpop.f32.mrf.mxu0 }
 0xea9   :  { %v5916_v60 = vsub.f32 0.0, %v5912_v62  ;;  %v5911_v50 = vadd.f32 %v5852_v63, %v5774_v59 }
 0xeaa   :  { %v8111_v5 = vpop.f32.mrf.mxu0 }
 0xeab   :  { %v5921_v47 = vmul.f32 1.442695, %v5916_v60  ;;  %v5915_v40 = vsub.f32 0.0, %v5911_v50  ;;  %v5914_v35 = vadd.f32 %v8111_v5, %v5777_v28 }
 0xeac   :  { %v5862_v16 = vpop.f32.mrf.mxu0 }
 0xead   :  { %8715 = vpow2.f32 %v5921_v47  ;;  %v5919_v53 = vmul.f32 1.442695, %v5915_v40  ;;  %v5918_v17 = vsub.f32 0.0, %v5914_v35  ;;  %v5913_v34 = vadd.f32 %v5862_v16, %v5776_v8 }
 0xeae   :  { %v8114_v12 = vpop.f32.mrf.mxu0 }
 0xeaf   :  { %8717 = vpow2.f32 %v5919_v53  ;;  %v5925_v24 = vmul.f32 1.442695, %v5918_v17  ;;  %v5917_v56 = vsub.f32 0.0, %v5913_v34  ;;  %v5936_v3 = vadd.f32 %v8114_v12, %v5779_v22 }
 0xeb0   :  { %v5872_v37 = vpop.f32.mrf.mxu0 }
 0xeb1   :  { %8719 = vpow2.f32 %v5925_v24  ;;  %v5923_v13 = vmul.f32 1.442695, %v5917_v56  ;;  %v5940_v58 = vsub.f32 0.0, %v5936_v3  ;;  %v5935_v41 = vadd.f32 %v5872_v37, %v5778_v36  ;;  %v5783_v24 = vld [vmem:[#allocation2 + $0x288] sm:$0xff] }
 0xeb2   :  { %v8117_v52 = vpop.f32.mrf.mxu0 }
 0xeb3   :  { %8721 = vpow2.f32 %v5923_v13  ;;  %v5945_v44 = vmul.f32 1.442695, %v5940_v58  ;;  %v5939_v7 = vsub.f32 0.0, %v5935_v41  ;;  %v5938_v27 = vadd.f32 %v8117_v52, %v5781_v14  ;;  %v5782_v58 = vld [vmem:[#allocation2 + $0x280] sm:$0xff] }
 0xeb4   :  { %v5882_v1 = vpop.f32.mrf.mxu0 }
 0xeb5   :  { %v5943_v54 = vmul.f32 1.442695, %v5939_v7  ;;  %v5942_v48 = vsub.f32 0.0, %v5938_v27  ;;  %v5937_v15 = vadd.f32 %v5882_v1, %v5780_v42  ;;  %8723 = vpow2.f32 %v5945_v44  ;;  %v5785_v7 = vld [vmem:[#allocation2 + $0x298] sm:$0xff]  ;;  %v5784_v1 = vld [vmem:[#allocation2 + $0x290] sm:$0xff] }
 0xeb6   :  { %v8120_v62 = vpop.f32.mrf.mxu0 }
 0xeb7   :  { %v5949_v39 = vmul.f32 1.442695, %v5942_v48  ;;  %v5941_v18 = vsub.f32 0.0, %v5937_v15  ;;  %8725 = vpow2.f32 %v5943_v54  ;;  %v5960_v8 = vadd.f32 %v8120_v62, %v10671_v46 }
 0xeb8   :  { %v5892_v60 = vpop.f32.mrf.mxu0 }
 0xeb9   :  { %v5947_v11 = vmul.f32 1.442695, %v5941_v18  ;;  %8727 = vpow2.f32 %v5949_v39  ;;  %v5959_v34 = vadd.f32 %v5892_v60, %v10676_v21 }
 0xeba   :  { %v8716_v38 = vpop.eup %8715  ;;  %v8123_v47 = vpop.f32.mrf.mxu0 }
 0xebb   :  { %v5928_v49 = vadd.f32 1.0, %v8716_v38  ;;  %8729 = vpow2.f32 %v5947_v11  ;;  %v5962_v37 = vadd.f32 %v8123_v47, %v10659_v19 }
 0xebc   :  { %v8718_v0 = vpop.eup %8717  ;;  %v5902_v56 = vpop.f32.mrf.mxu0 }
 0xebd   :  { %8731 = vrcp.f32 %v5928_v49  ;;  %v5927_v2 = vadd.f32 1.0, %v8718_v0  ;;  %v5961_v52 = vadd.f32 %v5902_v56, %v10664_v57 }
 0xebe   :  { %v8720_v33 = vpop.eup %8719 }
 0xebf   :  { %8733 = vrcp.f32 %v5927_v2  ;;  %v5930_v61 = vadd.f32 1.0, %v8720_v33 }
 0xec0   :  { %v8722_v32 = vpop.eup %8721 }
 0xec1   :  { %8735 = vrcp.f32 %v5930_v61  ;;  %v5929_v59 = vadd.f32 1.0, %v8722_v32 }
 0xec2   :  { %v8724_v63 = vpop.eup %8723 }
 0xec3   :  { %8737 = vrcp.f32 %v5929_v59  ;;  %v5952_v5 = vadd.f32 1.0, %v8724_v63 }
 0xec4   :  { %v8726_v50 = vpop.eup %8725 }
 0xec5   :  { %v5951_v35 = vadd.f32 1.0, %v8726_v50  ;;  %8739 = vrcp.f32 %v5952_v5 }
 0xec6   :  { %v8728_v28 = vpop.eup %8727 }
 0xec7   :  { %v5954_v53 = vadd.f32 1.0, %v8728_v28  ;;  %8741 = vrcp.f32 %v5951_v35 }
 0xec8   :  { %v8730_v40 = vpop.eup %8729 }
 0xec9   :  { %v5953_v12 = vadd.f32 1.0, %v8730_v40  ;;  %8743 = vrcp.f32 %v5954_v53  ;;  %v5997_v53 = vld [vmem:[#allocation2 + $0x2b0] sm:$0xff] }
 0xeca   :  { %v8732_v16 = vpop.eup %8731 }
 0xecb   :  { %v5964_v17 = vmul.f32 %v8732_v16, %v5960_v8 }
 0xecc   :  { %v8734_v22 = vpop.eup %8733 }
 0xecd   :  { %v5968_v3 = vadd.f32 %v5964_v17, %v5783_v24  ;;  %v5963_v36 = vmul.f32 %v8734_v22, %v5959_v34  ;;  %v6000_v22 = vld [vmem:[#allocation2 + $0x2c8] sm:$0xff] }
 0xece   :  { %v8736_v13 = vpop.eup %8735 }
 0xecf   :  { %8745 = vtanh.f32 %v5968_v3  ;;  %v5967_v41 = vadd.f32 %v5963_v36, %v5782_v58  ;;  %v5966_v14 = vmul.f32 %v8736_v13, %v5962_v37  ;;  %v5999_v3 = vld [vmem:[#allocation2 + $0x2c0] sm:$0xff] }
 0xed0   :  { %v8738_v44 = vpop.eup %8737  ;;  %8747 = vrcp.f32 %v5953_v12 }
 0xed1   :  { %8749 = vtanh.f32 %v5967_v41  ;;  %v5970_v27 = vadd.f32 %v5966_v14, %v5785_v7  ;;  %v5965_v42 = vmul.f32 %v8738_v44, %v5961_v52  ;;  %v11277_v41 = vpop.permute.xlu0 %6255  ;;  %v6002_v14 = vld [vmem:[#allocation2 + $0x2d8] sm:$0xff] }
 0xed2   :  { %v8740_v48 = vpop.eup %8739 }
 0xed3   :  { %8751 = vtanh.f32 %v5970_v27  ;;  %v5969_v54 = vadd.f32 %v5965_v42, %v5784_v1  ;;  %v5976_v18 = vsub.f32 1.0, %v8740_v48  ;;  %v5984_v0 = vmul.f32 %v8740_v48, %v11119_v43  ;;  %v6221_v42 = vld [vmem:[#allocation3] sm:$0xff]  ;;  %v6001_v1 = vld [vmem:[#allocation2 + $0x2d0] sm:$0xff]  ;;  %v6222_v48 = vld [vmem:[#allocation3 + $0x8] sm:$0xff] }
 0xed4   :  { %v8742_v15 = vpop.eup %8741 }
 0xed5   :  { %8753 = vtanh.f32 %v5969_v54  ;;  %v5975_v2 = vsub.f32 1.0, %v8742_v15  ;;  %v5983_v59 = vmul.f32 %v8742_v15, %v11125_v51 }
 0xed6   :  { %v8744_v39 = vpop.eup %8743 }
 0xed7   :  { %v5978_v61 = vsub.f32 1.0, %v8744_v39  ;;  %v5986_v50 = vmul.f32 %v8744_v39, %v11127_v6  ;;  %v5996_v6 = vld [vmem:[#allocation2 + $0x2a8] sm:$0xff] }
 0xedc   :  { %v8746_v11 = vpop.eup %8745 }
 0xedd   :  { %v8748_v38 = vpop.eup %8747  ;;  %v5980_v49 = vmul.f32 %v8746_v11, %v5976_v18  ;;  %v6223_v11 = vld [vmem:[#allocation3 + $0x10] sm:$0xff] }
 0xede   :  { %v8750_v33 = vpop.eup %8749  ;;  %v5977_v28 = vsub.f32 1.0, %v8748_v38  ;;  %v5985_v35 = vmul.f32 %v8748_v38, %v11135_v30  ;;  %v11279_v38 = vpop.permute.xlu1 %6260 }
 0xedf   :  { %v11228_v32 = vadd.f32 %v5984_v0, %v5980_v49  ;;  %v5979_v62 = vmul.f32 %v8750_v33, %v5975_v2  ;;  %v6273_v49 = vmul.f32 %v11277_v41, %v6221_v42  ;;  %v11282_v33 = vpop.permute.xlu0 %6265 }
 0xee0   :  { %v8752_v63 = vpop.eup %8751 }
 0xee1   :  { %v5982_v60 = vmul.f32 %v8752_v63, %v5978_v61  ;;  %5992 = vst.msk [vmem:[#allocation3 + $0xc8] sm:$0xff] %vm162_vm0, %v11228_v32  ;;  %v11234_v5 = vadd.f32 %v5983_v59, %v5979_v62  ;;  %v6274_v61 = vmul.f32 %v11279_v38, %v6222_v48  ;;  %v6225_v62 = vld [vmem:[#allocation3 + $0x20] sm:$0xff]  ;;  %v6275_v59 = vmul.f32 %v11282_v33, %v6223_v11 }
 0xee2   :  { %v8754_v47 = vpop.eup %8753 }
 0xee3   :  { %v11236_v43 = vadd.f32 %v5986_v50, %v5982_v60  ;;  %v5981_v40 = vmul.f32 %v8754_v47, %v5977_v28  ;;  %5991 = vst.msk [vmem:[#allocation3 + $0xc0] sm:$0xff] %vm162_vm0, %v11234_v5  ;;  %v6226_v50 = vld [vmem:[#allocation3 + $0x28] sm:$0xff]  ;;  %v6305_v28 = vsel %vm162_vm0, %v6273_v49, 0.0  ;;  %v6277_v47 = vmul.f32 %v11277_v41, %v6225_v62 }
 0xee5   :  { %5994 = vst.msk [vmem:[#allocation3 + $0xd8] sm:$0xff] %vm162_vm0, %v11236_v43  ;;  %8124 = vmatprep.subr.mxu1 %v11236_v43  ;;  %v11244_v51 = vadd.f32 %v5985_v35, %v5981_v40  ;;  %v6229_v40 = vld [vmem:[#allocation3 + $0x40] sm:$0xff] }
 0xee6   :  { %8125 = vmatpush3.msra.mxu1 %v11236_v43 }
 0xee7   :  { %5993 = vst.msk [vmem:[#allocation3 + $0xd0] sm:$0xff] %vm162_vm0, %v11244_v51  ;;  %8126 = vmatprep.subr.mxu1 %v11244_v51 }
 0xee8   :  { %8127 = vmatpush3.msra.mxu1 %v11244_v51 }
 0xee9   :  { %8128 = vmatprep.subr.mxu1 %v11228_v32 }
 0xeea   :  { %8129 = vmatpush3.msra.mxu1 %v11228_v32 }
 0xeeb   :  { %8130 = vmatprep.subr.mxu1 %v11234_v5 }
 0xeec   :  { %8131 = vmatpush3.msra.mxu1 %v11234_v5 }
 0xeed   :  { %8133 = vmatmul.mubr.msk.f32.vlgmr.msra.gmra.mxu1 %vm1328_vm1, %v11149_v9 }
 0xeee   :  { %8135 = vmatprep.mubr.msk.f32.mxu1 %vm1328_vm1, %v11156_v4  ;;  %v5995_v4 = vld [vmem:[#allocation2 + $0x2a0] sm:$0xff] }
 0xef1   :  { %8136 = vmatmul.mubr.msk.f32.gmra.mxu1 %vm1328_vm1, %v11163_v55 }
 0xef2   :  { %8138 = vmatprep.mubr.msk.f32.mxu1 %vm1328_vm1, %v11170_v25 }
 0xef5   :  { %8139 = vmatmul.mubr.msk.f32.gmra.mxu1 %vm1328_vm1, %v11177_v45 }
 0xef6   :  { %8141 = vmatprep.mubr.msk.f32.mxu1 %vm1328_vm1, %v11184_v26  ;;  %v5998_v26 = vld [vmem:[#allocation2 + $0x2b8] sm:$0xff] }
 0xef9   :  { %8142 = vmatmul.mubr.msk.f32.gmra.mxu1 %vm1328_vm1, %v11191_v31 }
 0xefa   :  { %8144 = vmatprep.mubr.msk.f32.mxu1 %vm1328_vm1, %v11198_v10 }
 0xefd   :  { %8145 = vmatmul.mubr.msk.f32.gmra.mxu1 %vm1328_vm1, %v11205_v29 }
 0xefe   :  { %8147 = vmatprep.mubr.msk.f32.mxu1 %vm1328_vm1, %v11212_v23 }
 0xf01   :  { %8148 = vmatmul.mubr.msk.f32.gmra.mxu1 %vm1328_vm1, %v11219_v20 }
 0xfad   :  { %v8134_v30 = vpop.f32.mrf.mxu1 }
 0xfae   :  { %v6133_v9 = vadd.f32 %v8134_v30, %v5996_v6  ;;  %v6306_v30 = vsel %vm162_vm0, %v6274_v61, 0.0 }
 0xfaf   :  { %v6073_v55 = vpop.f32.mrf.mxu1 }
 0xfb0   :  { %v6137_v25 = vsub.f32 0.0, %v6133_v9  ;;  %v6132_v45 = vadd.f32 %v6073_v55, %v5995_v4  ;;  %v6227_v9 = vld [vmem:[#allocation3 + $0x30] sm:$0xff]  ;;  %v6224_v4 = vld [vmem:[#allocation3 + $0x18] sm:$0xff]  ;;  %v6308_v55 = vsel %vm162_vm0, %v6275_v59, 0.0 }
 0xfb1   :  { %v8137_v31 = vpop.f32.mrf.mxu1 }
 0xfb2   :  { %v6142_v8 = vmul.f32 1.442695, %v6137_v25  ;;  %v6136_v10 = vsub.f32 0.0, %v6132_v45  ;;  %v6135_v16 = vadd.f32 %v8137_v31, %v5998_v26  ;;  %v6278_v25 = vmul.f32 %v11279_v38, %v6226_v50  ;;  %v6231_v45 = vld [vmem:[#allocation3 + $0x50] sm:$0xff]  ;;  %v6230_v26 = vld [vmem:[#allocation3 + $0x48] sm:$0xff] }
 0xfb3   :  { %v6083_v29 = vpop.f32.mrf.mxu1 }
 0xfb4   :  { %8755 = vpow2.f32 %v6142_v8  ;;  %v6140_v17 = vmul.f32 1.442695, %v6136_v10  ;;  %v6139_v23 = vsub.f32 0.0, %v6135_v16  ;;  %v6134_v34 = vadd.f32 %v6083_v29, %v5997_v53  ;;  %v6233_v53 = vld [vmem:[#allocation3 + $0x60] sm:$0xff]  ;;  %v11292_v29 = vpop.permute.xlu1 %6270 }
 0xfb5   :  { %v8140_v20 = vpop.f32.mrf.mxu1  ;;  %v6307_v10 = vadd.f32 %v6306_v30, %v6305_v28  ;;  %v6281_v16 = vmul.f32 %v11277_v41, %v6229_v40 }
 0xfb6   :  { %8757 = vpow2.f32 %v6140_v17  ;;  %v6146_v12 = vmul.f32 1.442695, %v6139_v23  ;;  %v6138_v24 = vsub.f32 0.0, %v6134_v34  ;;  %v6157_v56 = vadd.f32 %v8140_v20, %v6000_v22  ;;  %v6228_v17 = vld [vmem:[#allocation3 + $0x38] sm:$0xff]  ;;  %v6237_v22 = vld [vmem:[#allocation3 + $0x80] sm:$0xff] }
 0xfb7   :  { %v6093_v36 = vpop.f32.mrf.mxu1  ;;  %v6279_v23 = vmul.f32 %v11282_v33, %v6227_v9  ;;  %v6318_v34 = vsel %vm162_vm0, %v6277_v47, 0.0  ;;  %v6280_v42 = vmul.f32 %v11292_v29, %v6228_v17  ;;  %v6289_v48 = vmul.f32 %v11277_v41, %v6237_v22 }
 0xfb8   :  { %8759 = vpow2.f32 %v6146_v12  ;;  %v6144_v37 = vmul.f32 1.442695, %v6138_v24  ;;  %v6161_v13 = vsub.f32 0.0, %v6157_v56  ;;  %v6156_v58 = vadd.f32 %v6093_v36, %v5999_v3  ;;  %v6232_v3 = vld [vmem:[#allocation3 + $0x58] sm:$0xff] }
 0xfb9   :  { %v8143_v52 = vpop.f32.mrf.mxu1  ;;  %v6276_v24 = vmul.f32 %v11292_v29, %v6224_v4  ;;  %v6309_v56 = vadd.f32 %v6308_v55, %v6307_v10  ;;  %v6283_v36 = vmul.f32 %v11282_v33, %v6231_v45  ;;  %v11316_v40 = vsel %vm162_vm0, %v6280_v42, 0.0  ;;  %v6239_v45 = vld [vmem:[#allocation3 + $0x90] sm:$0xff] }
 0xfba   :  { %8761 = vpow2.f32 %v6144_v37  ;;  %v6166_v44 = vmul.f32 1.442695, %v6161_v13  ;;  %v6160_v7 = vsub.f32 0.0, %v6156_v58  ;;  %v6159_v27 = vadd.f32 %v8143_v52, %v6002_v14  ;;  %v6234_v13 = vld [vmem:[#allocation3 + $0x68] sm:$0xff]  ;;  %v6235_v52 = vld [vmem:[#allocation3 + $0x70] sm:$0xff] }
 0xfbb   :  { %v6103_v54 = vpop.f32.mrf.mxu1  ;;  %v6282_v37 = vmul.f32 %v11279_v38, %v6230_v26  ;;  %v6319_v14 = vsel %vm162_vm0, %v6278_v25, 0.0  ;;  %v6334_v49 = vsel %vm162_vm0, %v6283_v36, 0.0  ;;  %v6310_v59 = vsel %vm162_vm0, %v6276_v24, 0.0  ;;  %v6241_v26 = vld [vmem:[#allocation3 + $0xa0] sm:$0xff]  ;;  %v6243_v24 = vld [vmem:[#allocation3 + $0xb0] sm:$0xff] }
 0xfbc   :  { %v6164_v15 = vmul.f32 1.442695, %v6160_v7  ;;  %v6163_v39 = vsub.f32 0.0, %v6159_v27  ;;  %v6158_v18 = vadd.f32 %v6103_v54, %v6001_v1  ;;  %8763 = vpow2.f32 %v6166_v44  ;;  %v6238_v7 = vld [vmem:[#allocation3 + $0x88] sm:$0xff] }
 0xfbd   :  { %v8146_v58 = vpop.f32.mrf.mxu1  ;;  %v6285_v44 = vmul.f32 %v11277_v41, %v6233_v53  ;;  %v6320_v1 = vadd.f32 %v6319_v14, %v6318_v34  ;;  %v6331_v54 = vsel %vm162_vm0, %v6281_v16, 0.0  ;;  %v6290_v61 = vmul.f32 %v11279_v38, %v6238_v7 }
 0xfbe   :  { %v6170_v0 = vmul.f32 1.442695, %v6163_v39  ;;  %v6162_v2 = vsub.f32 0.0, %v6158_v18  ;;  %8765 = vpow2.f32 %v6164_v15  ;;  %v6321_v15 = vsel %vm162_vm0, %v6279_v23, 0.0  ;;  %v6242_v23 = vld [vmem:[#allocation3 + $0xa8] sm:$0xff] }
 0xfbf   :  { %v6284_v39 = vmul.f32 %v11292_v29, %v6232_v3  ;;  %v6286_v18 = vmul.f32 %v11279_v38, %v6234_v13  ;;  %v6113_v62 = vpop.f32.mrf.mxu1  ;;  %v6344_v50 = vsel %vm162_vm0, %v6285_v44, 0.0  ;;  %v11313_v47 = vadd.f32 %v6310_v59, %v6309_v56  ;;  %v6247_v56 = vld [vmem:[#allocation3 + $0xd0] sm:$0xff]  ;;  %v6246_v3 = vld [vmem:[#allocation3 + $0xc8] sm:$0xff]  ;;  %v6003_v59 = vld [vmem:[#allocation2 + $0x2e0] sm:$0xff] }
 0xfc0   :  { %v6168_v63 = vmul.f32 1.442695, %v6162_v2  ;;  %8767 = vpow2.f32 %v6170_v0  ;;  %v6332_v0 = vsel %vm162_vm0, %v6282_v37, 0.0  ;;  %v6287_v2 = vmul.f32 %v11282_v33, %v6235_v52 }
 0xfc1   :  { %v8756_v60 = vpop.eup %8755  ;;  %v6357_v30 = vsel %vm162_vm0, %v6289_v48, 0.0  ;;  %v11322_v4 = vsel %vm162_vm0, %v6284_v39, 0.0  ;;  %v6345_v25 = vsel %vm162_vm0, %v6286_v18, 0.0  ;;  %v6358_v17 = vsel %vm162_vm0, %v6290_v61, 0.0  ;;  %v8149_v34 = vpop.f32.mrf.mxu1  ;;  %v6004_v39 = vld [vmem:[#allocation2 + $0x2e8] sm:$0xff] }
 0xfc2   :  { %v6149_v35 = vadd.f32 1.0, %v8756_v60  ;;  %8769 = vpow2.f32 %v6168_v63  ;;  %v6333_v63 = vadd.f32 %v6332_v0, %v6331_v54  ;;  %v6236_v60 = vld [vmem:[#allocation3 + $0x78] sm:$0xff]  ;;  %v6347_v16 = vsel %vm162_vm0, %v6287_v2, 0.0 }
 0xfc3   :  { %v8758_v6 = vpop.eup %8757  ;;  %v11328_v10 = vmul.f32 %v11292_v29, %v6236_v60  ;;  %v6346_v53 = vadd.f32 %v6345_v25, %v6344_v50  ;;  %v6181_v37 = vadd.f32 %v8146_v58, %v10671_v46  ;;  %v6291_v14 = vmul.f32 %v11282_v33, %v6239_v45  ;;  %v6123_v18 = vpop.f32.mrf.mxu1  ;;  %v6006_v45 = vld [vmem:[#allocation2 + $0x2f8] sm:$0xff] }
 0xfc4   :  { %8771 = vrcp.f32 %v6149_v35  ;;  %v6148_v31 = vadd.f32 1.0, %v8758_v6  ;;  %v11318_v35 = vadd.f32 %v6321_v15, %v6320_v1  ;;  %v6240_v6 = vld [vmem:[#allocation3 + $0x98] sm:$0xff]  ;;  %v11324_v55 = vadd.f32 %v6334_v49, %v6333_v63 }
 0xfc5   :  { %v8760_v8 = vpop.eup %8759  ;;  %v6293_v52 = vmul.f32 %v11277_v41, %v6241_v26  ;;  %v6180_v1 = vadd.f32 %v6113_v62, %v10676_v21  ;;  %v6295_v48 = vmul.f32 %v11282_v33, %v6243_v24  ;;  %v6299_v15 = vmul.f32 %v11282_v33, %v6247_v56 }
 0xfc6   :  { %8773 = vrcp.f32 %v6148_v31  ;;  %v6151_v20 = vadd.f32 1.0, %v8760_v8  ;;  %v6245_v31 = vld [vmem:[#allocation3 + $0xc0] sm:$0xff]  ;;  %v6298_v46 = vmul.f32 %v11279_v38, %v6246_v3  ;;  %v6183_v0 = vadd.f32 %v8149_v34, %v10659_v19 }
 0xfc7   :  { %v8762_v12 = vpop.eup %8761  ;;  %v6297_v44 = vmul.f32 %v11277_v41, %v6245_v31  ;;  %v6360_v61 = vsel %vm162_vm0, %v6291_v14, 0.0  ;;  %v6370_v21 = vsel %vm162_vm0, %v6293_v52, 0.0  ;;  %v6182_v50 = vadd.f32 %v6123_v18, %v10664_v57 }
 0xfc8   :  { %8775 = vrcp.f32 %v6151_v20  ;;  %v6150_v27 = vadd.f32 1.0, %v8762_v12  ;;  %v11333_v20 = vmul.f32 %v11292_v29, %v6240_v6  ;;  %v6359_v12 = vadd.f32 %v6358_v17, %v6357_v30  ;;  %v6244_v6 = vld [vmem:[#allocation3 + $0xb8] sm:$0xff] }
 0xfc9   :  { %v8764_v11 = vpop.eup %8763  ;;  %v6383_v62 = vsel %vm162_vm0, %v6297_v44, 0.0  ;;  %v6373_v30 = vsel %vm162_vm0, %v6295_v48, 0.0  ;;  %v6384_v25 = vsel %vm162_vm0, %v6298_v46, 0.0  ;;  %v6386_v26 = vsel %vm162_vm0, %v6299_v15, 0.0 }
 0xfca   :  { %8777 = vrcp.f32 %v6150_v27  ;;  %v6173_v8 = vadd.f32 1.0, %v8764_v11  ;;  %v6294_v27 = vmul.f32 %v11279_v38, %v6242_v23  ;;  %v6348_v17 = vadd.f32 %v6347_v16, %v6346_v53 }
 0xfcb   :  { %v8766_v28 = vpop.eup %8765  ;;  %v6361_v23 = vadd.f32 %v6360_v61, %v6359_v12  ;;  %v6385_v57 = vadd.f32 %v6384_v25, %v6383_v62  ;;  %v6296_v24 = vmul.f32 %v11292_v29, %v6244_v6  ;;  %v6349_v16 = vsel %vm162_vm0, %v11328_v10, 0.0 }
 0xfcc   :  { %v6172_v36 = vadd.f32 1.0, %v8766_v28  ;;  %8779 = vrcp.f32 %v6173_v8  ;;  %v6371_v19 = vsel %vm162_vm0, %v6294_v27, 0.0  ;;  %v6362_v53 = vsel %vm162_vm0, %v11333_v20, 0.0 }
 0xfcd   :  { %v8768_v9 = vpop.eup %8767  ;;  %v6372_v34 = vadd.f32 %v6371_v19, %v6370_v21  ;;  %v6387_v14 = vadd.f32 %v6386_v26, %v6385_v57  ;;  %v6312_v12 = vrot.slane %v11313_v47, 4  ;;  %v6350_v52 = vadd.f32 %v6349_v16, %v6348_v17 }
 0xfce   :  { %v6175_v7 = vadd.f32 1.0, %v8768_v9  ;;  %8781 = vrcp.f32 %v6172_v36  ;;  %v6248_v9 = vld [vmem:[#allocation3 + $0xd8] sm:$0xff]  ;;  %v6324_v36 = vadd.f32 %v11316_v40, %v11318_v35  ;;  %v6363_v44 = vadd.f32 %v6362_v53, %v6361_v23 }
 0xfcf   :  { %v8770_v22 = vpop.eup %8769  ;;  %v6300_v56 = vmul.f32 %v11292_v29, %v6248_v9  ;;  %v6313_v10 = vadd.f32 %v6312_v12, %v11313_v47 }
 0xfd0   :  { %v6174_v58 = vadd.f32 1.0, %v8770_v22  ;;  %8783 = vrcp.f32 %v6175_v7  ;;  %v6005_v22 = vld [vmem:[#allocation2 + $0x2f0] sm:$0xff]  ;;  %v6375_v7 = vsel %vm162_vm0, %v6296_v24, 0.0  ;;  %v6325_v27 = vrot.slane %v6324_v36, 4 }
 0xfd1   :  { %v8772_v13 = vpop.eup %8771  ;;  %v6388_v40 = vsel %vm162_vm0, %v6300_v56, 0.0  ;;  %v6364_v48 = vrot.slane %v6363_v44, 4  ;;  %v6314_v62 = vrot.slane %v6313_v10, 2 }
 0xfd2   :  { %v6185_v42 = vmul.f32 %v8772_v13, %v6181_v37  ;;  %v6337_v37 = vadd.f32 %v11322_v4, %v11324_v55  ;;  %v6374_v13 = vadd.f32 %v6373_v30, %v6372_v34 }
 0xfd3   :  { %v8774_v54 = vpop.eup %8773  ;;  %v6315_v17 = vadd.f32 %v6314_v62, %v6313_v10  ;;  %v6416_v10 = vpop.permute.xlu0 %6415 }
 0xfd4   :  { %v6189_v11 = vadd.f32 %v6185_v42, %v6004_v39  ;;  %v6184_v49 = vmul.f32 %v8774_v54, %v6180_v1  ;;  %v6338_v4 = vrot.slane %v6337_v37, 4  ;;  %v6376_v55 = vadd.f32 %v6375_v7, %v6374_v13 }
 0xfd5   :  { %v8776_v2 = vpop.eup %8775  ;;  %v6389_v42 = vadd.f32 %v6388_v40, %v6387_v14  ;;  %v6351_v54 = vrot.slane %v6350_v52, 4 }
 0xfd6   :  { %8785 = vtanh.f32 %v6189_v11  ;;  %v6188_v63 = vadd.f32 %v6184_v49, %v6003_v59  ;;  %v6187_v60 = vmul.f32 %v8776_v2, %v6183_v0  ;;  %v6339_v39 = vadd.f32 %v6338_v4, %v6337_v37 }
 0xfd7   :  { %v8778_v28 = vpop.eup %8777  ;;  %8787 = vrcp.f32 %v6174_v58  ;;  %v6326_v58 = vadd.f32 %v6325_v27, %v6324_v36  ;;  %v6377_v18 = vrot.slane %v6376_v55, 4  ;;  %v6390_v11 = vrot.slane %v6389_v42, 4 }
 0xfd8   :  { %8789 = vtanh.f32 %v6188_v63  ;;  %v6191_v31 = vadd.f32 %v6187_v60, %v6006_v45  ;;  %v6186_v8 = vmul.f32 %v8778_v28, %v6182_v50  ;;  %v6352_v59 = vadd.f32 %v6351_v54, %v6350_v52 }
 0xfd9   :  { %v8780_v35 = vpop.eup %8779  ;;  %v6365_v63 = vadd.f32 %v6364_v48, %v6363_v44  ;;  %v6327_v30 = vrot.slane %v6326_v58, 2  ;;  %v6340_v19 = vrot.slane %v6339_v39, 2  ;;  %v6378_v9 = vadd.f32 %v6377_v18, %v6376_v55 }
 0xfda   :  { %8791 = vtanh.f32 %v6191_v31  ;;  %v6190_v3 = vadd.f32 %v6186_v8, %v6005_v22  ;;  %v6197_v15 = vsub.f32 1.0, %v8780_v35  ;;  %v6205_v0 = vmul.f32 %v8780_v35, %v11228_v32 }
 0xfdb   :  { %v8782_v1 = vpop.eup %8781  ;;  %v6391_v25 = vadd.f32 %v6390_v11, %v6389_v42  ;;  %v6353_v23 = vrot.slane %v6352_v59, 2  ;;  %v6366_v22 = vrot.slane %v6365_v63, 2  ;;  %v6328_v24 = vadd.f32 %v6327_v30, %v6326_v58 }
 0xfdc   :  { %8793 = vtanh.f32 %v6190_v3  ;;  %v6196_v2 = vsub.f32 1.0, %v8782_v1  ;;  %v6204_v47 = vmul.f32 %v8782_v1, %v11234_v5  ;;  %v6379_v56 = vrot.slane %v6378_v9, 2 }
 0xfdd   :  { %v8784_v20 = vpop.eup %8783  ;;  %v6341_v3 = vadd.f32 %v6340_v19, %v6339_v39  ;;  %v6392_v36 = vrot.slane %v6391_v25, 2  ;;  %v6316_v37 = vrot.slane %v6315_v17, 1  ;;  %v6354_v13 = vadd.f32 %v6353_v23, %v6352_v59 }
 0xfde   :  { %v6199_v60 = vsub.f32 1.0, %v8784_v20  ;;  %v6207_v45 = vmul.f32 %v8784_v20, %v11236_v43  ;;  %v6367_v14 = vadd.f32 %v6366_v22, %v6365_v63  ;;  %v6329_v53 = vrot.slane %v6328_v24, 1 }
 0xfdf   :  { %v6342_v12 = vrot.slane %v6341_v3, 1  ;;  %v6393_v52 = vadd.f32 %v6392_v36, %v6391_v25  ;;  %v6317_v7 = vadd.f32 %v6316_v37, %v6315_v17  ;;  %v6355_v40 = vrot.slane %v6354_v13, 1 }
 0xfe0   :  { %v6368_v4 = vrot.slane %v6367_v14, 1  ;;  %v6330_v42 = vadd.f32 %v6329_v53, %v6328_v24 }
 0xfe1   :  { %v6343_v54 = vadd.f32 %v6342_v12, %v6341_v3  ;;  %v6394_v48 = vrot.slane %v6393_v52, 1  ;;  %v6418_v58 = vadd.f32 %v6416_v10, %v6317_v7 }
 0xfe2   :  { %v6369_v11 = vadd.f32 %v6368_v4, %v6367_v14 }
 0xfe3   :  { %v8786_v46 = vpop.eup %8785 }
 0xfe4   :  { %v8788_v49 = vpop.eup %8787  ;;  %v6201_v61 = vmul.f32 %v8786_v46, %v6197_v15  ;;  %v6356_v46 = vadd.f32 %v6355_v40, %v6354_v13 }
 0xfe5   :  { %v8790_v21 = vpop.eup %8789  ;;  %v6198_v26 = vsub.f32 1.0, %v8788_v49  ;;  %v6206_v5 = vmul.f32 %v8788_v49, %v11244_v51  ;;  %v6380_v51 = vadd.f32 %v6379_v56, %v6378_v9 }
 0xfe6   :  { %v6209_v50 = vadd.f32 %v6205_v0, %v6201_v61  ;;  %v6200_v28 = vmul.f32 %v8790_v21, %v6196_v2  ;;  %v6419_v0 = vadd.f32 %v6416_v10, %v6330_v42  ;;  %v6395_v2 = vadd.f32 %v6394_v48, %v6393_v52 }
 0xfe7   :  { %v8792_v6 = vpop.eup %8791  ;;  %v6381_v1 = vrot.slane %v6380_v51, 1  ;;  %v6420_v21 = vadd.f32 %v6416_v10, %v6343_v54  ;;  %v6421_v59 = vadd.f32 %v6416_v10, %v6356_v46 }
 0xfe8   :  { %6213 = vst.msk [vmem:[#allocation3 + $0xe8] sm:$0xff] %vm162_vm0, %v6209_v50  ;;  %v6208_v32 = vadd.f32 %v6204_v47, %v6200_v28  ;;  %v6203_v31 = vmul.f32 %v8792_v6, %v6199_v60  ;;  %v6422_v47 = vadd.f32 %v6416_v10, %v6369_v11  ;;  %v6426_v60 = vsub.f32 0.0, %v6418_v58 }
 0xfe9   :  { %v8794_v8 = vpop.eup %8793  ;;  %v6427_v28 = vsub.f32 0.0, %v6419_v0  ;;  %v6428_v6 = vsub.f32 0.0, %v6420_v21  ;;  %v6429_v19 = vsub.f32 0.0, %v6421_v59 }
 0xfea   :  { %6212 = vst.msk [vmem:[#allocation3 + $0xe0] sm:$0xff] %vm162_vm0, %v6208_v32  ;;  %v6211_v34 = vadd.f32 %v6207_v45, %v6203_v31  ;;  %v6202_v57 = vmul.f32 %v8794_v8, %v6198_v26  ;;  %v6430_v9 = vsub.f32 0.0, %v6422_v47  ;;  %v6434_v25 = vmul.f32 1.442695, %v6426_v60 }
 0xfeb   :  { %v6436_v32 = vmul.f32 1.442695, %v6427_v28  ;;  %v6438_v8 = vmul.f32 1.442695, %v6428_v6  ;;  %v6440_v23 = vmul.f32 1.442695, %v6429_v19 }
 0xfec   :  { %6215 = vst.msk [vmem:[#allocation3 + $0xf8] sm:$0xff] %vm162_vm0, %v6211_v34  ;;  %v6210_v43 = vadd.f32 %v6206_v5, %v6202_v57  ;;  %8795 = vpow2.f32 %v6434_v25  ;;  %v6442_v5 = vmul.f32 1.442695, %v6430_v9 }
 0xfed   :  { %8797 = vpow2.f32 %v6436_v32 }
 0xfee   :  { %6214 = vst.msk [vmem:[#allocation3 + $0xf0] sm:$0xff] %vm162_vm0, %v6210_v43  ;;  %8799 = vpow2.f32 %v6438_v8 }
 0xfef   :  { %v6250_v16 = vld [vmem:[#allocation3 + $0xe8] sm:$0xff]  ;;  %8801 = vpow2.f32 %v6440_v23 }
 0xff0   :  { %v6302_v27 = vmul.f32 %v11279_v38, %v6250_v16  ;;  %v6382_v38 = vadd.f32 %v6381_v1, %v6380_v51  ;;  %8803 = vpow2.f32 %v6442_v5 }
 0xff1   :  { %v6249_v44 = vld [vmem:[#allocation3 + $0xe0] sm:$0xff] }
 0xff2   :  { %v6301_v35 = vmul.f32 %v11277_v41, %v6249_v44  ;;  %v6397_v41 = vsel %vm162_vm0, %v6302_v27, 0.0 }
 0xff3   :  { %v6252_v55 = vld [vmem:[#allocation3 + $0xf8] sm:$0xff] }
 0xff4   :  { %v6396_v20 = vsel %vm162_vm0, %v6301_v35, 0.0  ;;  %v6304_v18 = vmul.f32 %v11292_v29, %v6252_v55  ;;  %v6424_v29 = vadd.f32 %v6416_v10, %v6395_v2 }
 0xff5   :  { %v6251_v15 = vld [vmem:[#allocation3 + $0xf0] sm:$0xff]  ;;  %v6398_v49 = vadd.f32 %v6397_v41, %v6396_v20 }
 0xff6   :  { %v6303_v39 = vmul.f32 %v11282_v33, %v6251_v15  ;;  %v6401_v63 = vsel %vm162_vm0, %v6304_v18, 0.0  ;;  %v6423_v33 = vadd.f32 %v6416_v10, %v6382_v38  ;;  %v6432_v31 = vsub.f32 0.0, %v6424_v29 }
 0xff8   :  { %v6399_v61 = vsel %vm162_vm0, %v6303_v39, 0.0  ;;  %v6431_v26 = vsub.f32 0.0, %v6423_v33  ;;  %v6446_v22 = vmul.f32 1.442695, %v6432_v31 }
 0xff9   :  { %v6400_v62 = vadd.f32 %v6399_v61, %v6398_v49  ;;  %v8796_v37 = vpop.eup %8795 }
 0xffa   :  { %v6444_v57 = vmul.f32 1.442695, %v6431_v26  ;;  %v8798_v13 = vpop.eup %8797  ;;  %v6450_v53 = vadd.f32 1.0, %v8796_v37 }
 0xffb   :  { %v6402_v50 = vadd.f32 %v6401_v63, %v6400_v62  ;;  %v8800_v14 = vpop.eup %8799  ;;  %v6451_v12 = vadd.f32 1.0, %v8798_v13 }
 0xffc   :  { %8805 = vpow2.f32 %v6444_v57  ;;  %v8802_v16 = vpop.eup %8801  ;;  %v6452_v44 = vadd.f32 1.0, %v8800_v14 }
 0xffd   :  { %v6403_v30 = vrot.slane %v6402_v50, 4  ;;  %8807 = vpow2.f32 %v6446_v22  ;;  %v8804_v51 = vpop.eup %8803  ;;  %v6453_v40 = vadd.f32 1.0, %v8802_v16 }
 0xffe   :  { %v6454_v35 = vadd.f32 1.0, %v8804_v51 }
 0xfff   :  { %v6404_v45 = vadd.f32 %v6403_v30, %v6402_v50 }
0x1001   :  { %v6405_v17 = vrot.slane %v6404_v45, 2 }
0x1003   :  { %v6406_v34 = vadd.f32 %v6405_v17, %v6404_v45 }
0x1005   :  { %v6407_v24 = vrot.slane %v6406_v34, 1 }
0x1007   :  { %v6408_v56 = vadd.f32 %v6407_v24, %v6406_v34 }
0x1009   :  { %v6425_v43 = vadd.f32 %v6416_v10, %v6408_v56  ;;  %v8806_v52 = vpop.eup %8805 }
0x100a   :  { %v8808_v7 = vpop.eup %8807  ;;  %v6455_v27 = vadd.f32 1.0, %v8806_v52 }
0x100b   :  { %v6433_v3 = vsub.f32 0.0, %v6425_v43  ;;  %v6456_v4 = vadd.f32 1.0, %v8808_v7 }
0x100d   :  { %v6448_v36 = vmul.f32 1.442695, %v6433_v3 }
0x100f   :  { %8809 = vpow2.f32 %v6448_v36 }
0x1010   :  { %8811 = vrcp.f32 %v6450_v53 }
0x1011   :  { %8813 = vrcp.f32 %v6451_v12 }
0x1012   :  { %8815 = vrcp.f32 %v6452_v44 }
0x1013   :  { %8817 = vrcp.f32 %v6453_v40 }
0x1014   :  { %8819 = vrcp.f32 %v6454_v35 }
0x1015   :  { %8821 = vrcp.f32 %v6455_v27 }
0x1016   :  { %8823 = vrcp.f32 %v6456_v4 }
0x101c   :  { %v8810_v55 = vpop.eup %8809 }
0x101d   :  { %v6457_v42 = vadd.f32 1.0, %v8810_v55  ;;  %v8812_v1 = vpop.eup %8811 }
0x101e   :  { %v8814_v10 = vpop.eup %8813 }
0x101f   :  { %8825 = vrcp.f32 %v6457_v42  ;;  %v8816_v54 = vpop.eup %8815  ;;  %v6475_v15 = vsel %vm6474_vm2, %v8814_v10, %v8812_v1 }
0x1020   :  { %v8818_v48 = vpop.eup %8817  ;;  %v6477_v58 = vsel %vm6476_vm3, %v8816_v54, %v6475_v15 }
0x1021   :  { %v8820_v20 = vpop.eup %8819  ;;  %v6479_v18 = vsel %vm6478_vm4, %v8818_v48, %v6477_v58 }
0x1022   :  { %v8822_v46 = vpop.eup %8821  ;;  %v6481_v11 = vsel %vm6480_vm5, %v8820_v20, %v6479_v18 }
0x1023   :  { %v8824_v39 = vpop.eup %8823  ;;  %v6483_v41 = vsel %vm6482_vm6, %v8822_v46, %v6481_v11 }
0x1024   :  { %v6485_v49 = vsel %vm6484_vm7, %v8824_v39, %v6483_v41 }
0x102c   :  { %v8826_v38 = vpop.eup %8825 }
0x102d   :  { %v6487_v0 = vsel %vm6486_vm8, %v8826_v38, %v6485_v49 }
0x102e   :  { %6489 = vst.msk [vmem:[#allocation5] sm:$0xff] %vm162_vm0, %v6487_v0 }
0x102f   :  { %8896 = shalt.err (!%p8893_p4)
}
0x1030   :  { %6499 = dma.vmem_to_hbm [thread:$0]  %s6497_s14, 128, %s11398_s11, [#allocation6]  }
0x1031   :  { %8905 = dma.done.wait [#allocation6], 128  }
0x1032   :  { %8906 = vsyncadd [#allocation6], 4294967168 }
0x1033   :  { %6503 = vsyncpa [#allocation6], 1 }

</bundles_post_ra>
